<compile_context>
chip_gen: v6e
topology: v6e:2x2x1
jax: 0.10.0
libtpu: 0.0.40
codegen_flags: <defaults>
</compile_context>

<pallas_src>
import functools

import jax
import jax.numpy as jnp
from jax.experimental import pallas as pl
from jax.experimental.pallas import tpu as pltpu


# ----------------------------------------------------------------------------
# helpers
# ----------------------------------------------------------------------------
def _round_up(n, m):
    return ((n + m - 1) // m) * m


def _pad2(a, rows, cols):
    return jnp.pad(a, ((0, rows - a.shape[0]), (0, cols - a.shape[1])))


def _xavier_uniform(key, fan_in, fan_out):
    limit = (6.0 / (fan_in + fan_out)) ** 0.5
    return jax.random.uniform(key, (fan_in, fan_out), jnp.float32, -limit, limit)


# ----------------------------------------------------------------------------
# Fused kernel: encoder MLP -> residual VQ -> decoder MLP -> sigmoid
# ----------------------------------------------------------------------------
def _rqvae_fused_kernel(x_ref,
                        ew1, eb1, ew2, eb2, ew3, eb3,
                        cb_ref,
                        dw1, db1, dw2, db2, dw3, db3,
                        out_ref, idx_ref, loss_ref,
                        *, num_levels, k_valid, b_valid, tile_b):
    f32 = jnp.float32

    def dense(h, w_ref, b_ref, relu):
        w = w_ref[...]                                   # bf16, lane-aligned
        acc = jnp.dot(h.astype(w.dtype), w, preferred_element_type=f32) + b_ref[...]
        return jnp.maximum(acc, 0.0) if relu else acc

    # ---------------- encoder MLP (bf16 MXU, f32 accumulate) ----------------
    h = x_ref[...]                                       # (TB, Dp_in) f32
    h = dense(h, ew1, eb1, True)
    h = dense(h, ew2, eb2, True)
    z = dense(h, ew3, eb3, False)                        # (TB, Dp_e); padded lanes exactly 0

    # ---------------- residual vector quantizer (f32) ----------------
    cb = cb_ref[...]                                     # (L, Kp, Dp_e) f32
    kp = cb.shape[1]
    # ||c||^2 for every level at once; +1e30 on padded codewords so argmin ignores them.
    k_iota = jax.lax.broadcasted_iota(jnp.int32, (num_levels, kp), 1)
    cb_sq = jnp.sum(cb * cb, axis=-1) + jnp.where(k_iota < k_valid, 0.0, 1e30)

    need_row_mask = (b_valid % tile_b) != 0              # static
    if need_row_mask:
        row = (pl.program_id(0) * tile_b
               + jax.lax.broadcasted_iota(jnp.int32, (tile_b, 1), 0))
        row_mask = (row < b_valid).astype(f32)           # (TB, 1)

    residual = z
    x_q = jnp.zeros_like(z)
    sq_err = jnp.zeros((), f32)
    for level in range(num_levels):                      # static unroll (3 levels)
        cb_l = cb[level]                                 # (Kp, Dp_e)
        dot = jax.lax.dot_general(residual, cb_l, (((1,), (1,)), ((), ())),
                                  preferred_element_type=f32)        # (TB, Kp)
        # argmin is invariant to the per-row ||r||^2 term, so it is dropped.
        dists = cb_sq[level:level + 1] - 2.0 * dot
        idx = jnp.argmin(dists, axis=1).astype(jnp.int32)            # (TB,)
        onehot = (jax.lax.broadcasted_iota(jnp.int32, dists.shape, 1)
                  == idx[:, None]).astype(f32)                       # (TB, Kp)
        xq_l = jnp.dot(onehot, cb_l, preferred_element_type=f32)     # (TB, Dp_e)

        # codebook loss + beta * commitment loss = (1+beta) * MSE in the forward pass;
        # the (1+beta)/(B*e_dim*L) normalization is applied in the wrapper.
        diff = xq_l - residual                           # padded lanes are exactly 0
        sq = diff * diff
        if need_row_mask:
            sq = sq * row_mask                           # exclude padded batch rows
        sq_err = sq_err + jnp.sum(sq)

        idx_ref[level, :] = idx
        x_q = x_q + xq_l
        residual = residual - xq_l

    # ---------------- decoder MLP + fused sigmoid ----------------
    h = dense(x_q, dw1, db1, True)
    h = dense(h, dw2, db2, True)
    h = dense(h, dw3, db3, False)
    out = pl.reciprocal(1.0 + jnp.exp(-h), approx=True)  # sigmoid on the EUP

    out_ref[...] = out.astype(out_ref.dtype)
    # lane/sublane-dense scalar slab: broadcast this tile's squared-error sum over (8,128);
    # the wrapper reads element [tile*8, 0].
    loss_ref[...] = jnp.zeros((8, 128), f32) + sq_err


# ----------------------------------------------------------------------------
# Parameter init: xavier-uniform weights (logical shapes), zero bias,
# small-normal codebooks -- then zero-padded to 128-lane multiples once.
# MLP weights stored in bf16 (MXU dtype), biases / codebooks in f32.
# ----------------------------------------------------------------------------
def _init_mlp_padded(key, dims, matmul_dtype):
    assert len(dims) == 4, "fused kernel assumes exactly 3 linear layers per MLP"
    params = []
    keys = jax.random.split(key, len(dims) - 1)
    for k, (din, dout) in zip(keys, zip(dims[:-1], dims[1:])):
        w = _xavier_uniform(k, din, dout)
        b = jnp.zeros((1, dout), jnp.float32)
        rin, rout = _round_up(din, 128), _round_up(dout, 128)
        params.append(_pad2(w, rin, rout).astype(matmul_dtype))     # bf16 weights
        params.append(_pad2(b, 1, rout))                            # f32 bias
    return tuple(params)


def init_rqvae_params(key, in_dim=16, layers=(128, 64), e_dim=64,
                      num_emb_list=(32, 32, 32), beta=0.25,
                      matmul_dtype=jnp.bfloat16):
    k_enc, k_dec, k_cb = jax.random.split(key, 3)
    enc_dims = [in_dim] + list(layers) + [e_dim]
    dec_dims = [e_dim] + list(layers) + [in_dim]

    L, K = len(num_emb_list), num_emb_list[0]
    codebooks = 0.1 * jax.random.normal(k_cb, (L, K, e_dim), jnp.float32)
    kp, dp_e = _round_up(K, 128), _round_up(e_dim, 128)
    codebooks = jnp.pad(codebooks, ((0, 0), (0, kp - K), (0, dp_e - e_dim)))

    return {
        "encoder": _init_mlp_padded(k_enc, enc_dims, matmul_dtype),
        "decoder": _init_mlp_padded(k_dec, dec_dims, matmul_dtype),
        "codebooks": codebooks,
        "meta": {
            "in_dim": in_dim,
            "e_dim": e_dim,
            "num_levels": L,
            "codebook_size": K,
            "beta": beta,
            "dp_in": _round_up(in_dim, 128),
        },
    }


# ----------------------------------------------------------------------------
# Forward wrapper: single fused pallas_call, batch-tiled grid.
# ----------------------------------------------------------------------------
def rqvae_forward(params, x, epoch_idx=0):
    del epoch_idx  # only gates kmeans re-init during training; no effect on forward values
    meta = params["meta"]
    B, in_dim = x.shape
    assert in_dim == meta["in_dim"]
    dp_in = meta["dp_in"]
    L = meta["num_levels"]
    K = meta["codebook_size"]
    e_dim = meta["e_dim"]
    beta = meta["beta"]

    # Batch tile: ~256 hits the measured HBM-roofline sweet spot and keeps double-buffered
    # tiles comfortably inside v7x's smaller (64 MiB) VMEM at these feature widths.
    tile_b = 256 if B >= 256 else _round_up(B, 8)
    b_pad = _round_up(B, tile_b)
    num_tiles = b_pad // tile_b

    x_pad = jnp.pad(x.astype(jnp.float32), ((0, b_pad - B), (0, dp_in - in_dim)))

    enc = params["encoder"]
    dec = params["decoder"]
    cb = params["codebooks"]

    def resident(a):  # full-array block, constant index map -> stays VMEM-resident
        return pl.BlockSpec(a.shape, lambda i: (0,) * a.ndim)

    kernel = functools.partial(
        _rqvae_fused_kernel,
        num_levels=L, k_valid=K, b_valid=B, tile_b=tile_b)

    out_pad, idx_lb, loss_buf = pl.pallas_call(
        kernel,
        grid=(num_tiles,),
        out_shape=(
            jax.ShapeDtypeStruct((b_pad, dp_in), jnp.float32),    # decoder output (padded)
            jax.ShapeDtypeStruct((L, b_pad), jnp.int32),          # codebook indices
            jax.ShapeDtypeStruct((num_tiles * 8, 128), jnp.float32),  # per-tile sq-err slabs
        ),
        in_specs=[pl.BlockSpec((tile_b, dp_in), lambda i: (i, 0))]
                 + [resident(a) for a in enc]
                 + [resident(cb)]
                 + [resident(a) for a in dec],
        out_specs=(
            pl.BlockSpec((tile_b, dp_in), lambda i: (i, 0)),
            pl.BlockSpec((L, tile_b), lambda i: (0, i)),
            pl.BlockSpec((8, 128), lambda i: (i, 0)),
        ),
        compiler_params=pltpu.CompilerParams(
            dimension_semantics=("parallel",)),
    )(x_pad, *enc, cb, *dec)

    out = out_pad[:B, :in_dim]
    indices = idx_lb[:, :B].T                              # (B, L), matches torch.stack(dim=-1)
    per_tile = loss_buf.reshape(num_tiles, 8, 128)[:, 0, 0]
    rq_loss = (1.0 + beta) * jnp.sum(per_tile) / (B * e_dim * L)
    return out, rq_loss, indices


if __name__ == "__main__":
    key = jax.random.PRNGKey(0)
    k_param, k_x = jax.random.split(key)

    B, in_dim = 8, 16
    params = init_rqvae_params(k_param, in_dim=in_dim, layers=(128, 64),
                               e_dim=64, num_emb_list=(32, 32, 32), beta=0.25)
    x = jax.random.uniform(k_x, (B, in_dim), jnp.float32)

    out, rq_loss, indices = rqvae_forward(params, x, epoch_idx=0)
    jax.block_until_ready((out, rq_loss, indices))

    assert out.shape == (B, in_dim)
    assert indices.shape == (B, 3)
    assert rq_loss.shape == ()
    assert bool(jnp.isfinite(rq_loss))
    assert int(indices.max()) < 32 and int(indices.min()) >= 0  # padded codewords never chosen
    print("KERNEL_OK")
</pallas_src>

<mosaic_0001>
module attributes {stable_mosaic.version = 11 : i64} {
  func.func @_rqvae_fused_kernel(%arg0: i32, %arg1: memref<8x128xf32, #tpu.memory_space<vmem>>, %arg2: memref<128x128xbf16, #tpu.memory_space<vmem>>, %arg3: memref<1x128xf32, #tpu.memory_space<vmem>>, %arg4: memref<128x128xbf16, #tpu.memory_space<vmem>>, %arg5: memref<1x128xf32, #tpu.memory_space<vmem>>, %arg6: memref<128x128xbf16, #tpu.memory_space<vmem>>, %arg7: memref<1x128xf32, #tpu.memory_space<vmem>>, %arg8: memref<3x128x128xf32, #tpu.memory_space<vmem>>, %arg9: memref<128x128xbf16, #tpu.memory_space<vmem>>, %arg10: memref<1x128xf32, #tpu.memory_space<vmem>>, %arg11: memref<128x128xbf16, #tpu.memory_space<vmem>>, %arg12: memref<1x128xf32, #tpu.memory_space<vmem>>, %arg13: memref<128x128xbf16, #tpu.memory_space<vmem>>, %arg14: memref<1x128xf32, #tpu.memory_space<vmem>>, %arg15: memref<8x128xf32, #tpu.memory_space<vmem>>, %arg16: memref<3x8xi32, #tpu.memory_space<vmem>>, %arg17: memref<8x128xf32, #tpu.memory_space<vmem>>) attributes {dimension_semantics = [#tpu.dimension_semantics<parallel>], iteration_bounds = array<i64: 1>, scalar_prefetch = 0 : i64, scratch_operands = 0 : i64, tpu.core_type = #tpu.core_type<tc>, window_params = [{transform_indices = @transform_0, window_bounds = array<i64: 8, 128>}, {pipeline_mode = #tpu.pipeline_mode<synchronous>, transform_indices = @transform_1, window_bounds = array<i64: 128, 128>}, {pipeline_mode = #tpu.pipeline_mode<synchronous>, transform_indices = @transform_2, window_bounds = array<i64: 1, 128>}, {pipeline_mode = #tpu.pipeline_mode<synchronous>, transform_indices = @transform_3, window_bounds = array<i64: 128, 128>}, {pipeline_mode = #tpu.pipeline_mode<synchronous>, transform_indices = @transform_4, window_bounds = array<i64: 1, 128>}, {pipeline_mode = #tpu.pipeline_mode<synchronous>, transform_indices = @transform_5, window_bounds = array<i64: 128, 128>}, {pipeline_mode = #tpu.pipeline_mode<synchronous>, transform_indices = @transform_6, window_bounds = array<i64: 1, 128>}, {pipeline_mode = #tpu.pipeline_mode<synchronous>, transform_indices = @transform_7, window_bounds = array<i64: 3, 128, 128>}, {pipeline_mode = #tpu.pipeline_mode<synchronous>, transform_indices = @transform_8, window_bounds = array<i64: 128, 128>}, {pipeline_mode = #tpu.pipeline_mode<synchronous>, transform_indices = @transform_9, window_bounds = array<i64: 1, 128>}, {pipeline_mode = #tpu.pipeline_mode<synchronous>, transform_indices = @transform_10, window_bounds = array<i64: 128, 128>}, {pipeline_mode = #tpu.pipeline_mode<synchronous>, transform_indices = @transform_11, window_bounds = array<i64: 1, 128>}, {pipeline_mode = #tpu.pipeline_mode<synchronous>, transform_indices = @transform_12, window_bounds = array<i64: 128, 128>}, {pipeline_mode = #tpu.pipeline_mode<synchronous>, transform_indices = @transform_13, window_bounds = array<i64: 1, 128>}, {transform_indices = @transform_14, window_bounds = array<i64: 8, 128>}, {transform_indices = @transform_15, window_bounds = array<i64: 3, 8>}, {transform_indices = @transform_16, window_bounds = array<i64: 8, 128>}]} {
    %c0 = arith.constant 0 : index
    %c0_0 = arith.constant 0 : index
    %0 = vector.load %arg1[%c0, %c0_0] : memref<8x128xf32, #tpu.memory_space<vmem>>, vector<8x128xf32>
    %c0_1 = arith.constant 0 : index
    %c0_2 = arith.constant 0 : index
    %1 = vector.load %arg2[%c0_1, %c0_2] : memref<128x128xbf16, #tpu.memory_space<vmem>>, vector<128x128xbf16>
    %2 = arith.truncf %0 : vector<8x128xf32> to vector<8x128xbf16>
    %cst = arith.constant dense<0.000000e+00> : vector<8x128xf32>
    %3 = tpu.matmul %2, %1, %cst {dimension_numbers = #tpu.dot_dimension_numbers<[1], [0], [0], [1], [0, 0, 1, 1], [], []>} : vector<8x128xbf16>, vector<128x128xbf16>, vector<8x128xf32> -> vector<8x128xf32>
    %c0_3 = arith.constant 0 : index
    %c0_4 = arith.constant 0 : index
    %4 = vector.load %arg3[%c0_3, %c0_4] : memref<1x128xf32, #tpu.memory_space<vmem>>, vector<1x128xf32>
    %5 = vector.broadcast %4 : vector<1x128xf32> to vector<8x128xf32>
    %6 = arith.addf %3, %5 : vector<8x128xf32>
    %cst_5 = arith.constant 0.000000e+00 : f32
    %7 = vector.broadcast %cst_5 : f32 to vector<8x128xf32>
    %8 = arith.maximumf %6, %7 : vector<8x128xf32>
    %c0_6 = arith.constant 0 : index
    %c0_7 = arith.constant 0 : index
    %9 = vector.load %arg4[%c0_6, %c0_7] : memref<128x128xbf16, #tpu.memory_space<vmem>>, vector<128x128xbf16>
    %10 = arith.truncf %8 : vector<8x128xf32> to vector<8x128xbf16>
    %cst_8 = arith.constant dense<0.000000e+00> : vector<8x128xf32>
    %11 = tpu.matmul %10, %9, %cst_8 {dimension_numbers = #tpu.dot_dimension_numbers<[1], [0], [0], [1], [0, 0, 1, 1], [], []>} : vector<8x128xbf16>, vector<128x128xbf16>, vector<8x128xf32> -> vector<8x128xf32>
    %c0_9 = arith.constant 0 : index
    %c0_10 = arith.constant 0 : index
    %12 = vector.load %arg5[%c0_9, %c0_10] : memref<1x128xf32, #tpu.memory_space<vmem>>, vector<1x128xf32>
    %13 = vector.broadcast %12 : vector<1x128xf32> to vector<8x128xf32>
    %14 = arith.addf %11, %13 : vector<8x128xf32>
    %cst_11 = arith.constant 0.000000e+00 : f32
    %15 = vector.broadcast %cst_11 : f32 to vector<8x128xf32>
    %16 = arith.maximumf %14, %15 : vector<8x128xf32>
    %c0_12 = arith.constant 0 : index
    %c0_13 = arith.constant 0 : index
    %17 = vector.load %arg6[%c0_12, %c0_13] : memref<128x128xbf16, #tpu.memory_space<vmem>>, vector<128x128xbf16>
    %18 = arith.truncf %16 : vector<8x128xf32> to vector<8x128xbf16>
    %cst_14 = arith.constant dense<0.000000e+00> : vector<8x128xf32>
    %19 = tpu.matmul %18, %17, %cst_14 {dimension_numbers = #tpu.dot_dimension_numbers<[1], [0], [0], [1], [0, 0, 1, 1], [], []>} : vector<8x128xbf16>, vector<128x128xbf16>, vector<8x128xf32> -> vector<8x128xf32>
    %c0_15 = arith.constant 0 : index
    %c0_16 = arith.constant 0 : index
    %20 = vector.load %arg7[%c0_15, %c0_16] : memref<1x128xf32, #tpu.memory_space<vmem>>, vector<1x128xf32>
    %21 = vector.broadcast %20 : vector<1x128xf32> to vector<8x128xf32>
    %22 = arith.addf %19, %21 : vector<8x128xf32>
    %c0_17 = arith.constant 0 : index
    %c0_18 = arith.constant 0 : index
    %c0_19 = arith.constant 0 : index
    %23 = vector.load %arg8[%c0_17, %c0_18, %c0_19] : memref<3x128x128xf32, #tpu.memory_space<vmem>>, vector<3x128x128xf32>
    %24 = tpu.iota {dimensions = array<i32: 1>} : vector<3x128xi32>
    %25 = arith.mulf %23, %23 : vector<3x128x128xf32>
    %cst_20 = arith.constant dense<0.000000e+00> : vector<3x128xf32>
    %26 = vector.multi_reduction <add>, %25, %cst_20 [2] : vector<3x128x128xf32> to vector<3x128xf32>
    %c32_i32 = arith.constant 32 : i32
    %27 = vector.broadcast %c32_i32 : i32 to vector<3x128xi32>
    %28 = arith.cmpi slt, %24, %27 : vector<3x128xi32>
    %cst_21 = arith.constant 0.000000e+00 : f32
    %cst_22 = arith.constant 1.000000e+30 : f32
    %29 = vector.broadcast %cst_21 : f32 to vector<3x128xf32>
    %30 = vector.broadcast %cst_22 : f32 to vector<3x128xf32>
    %31 = arith.select %28, %29, %30 : vector<3x128xi1>, vector<3x128xf32>
    %32 = arith.addf %26, %31 : vector<3x128xf32>
    %cst_23 = arith.constant 0.000000e+00 : f32
    %33 = vector.broadcast %cst_23 : f32 to vector<8x128xf32>
    %34 = vector.extract_strided_slice %23 {offsets = [0, 0, 0], sizes = [1, 128, 128], strides = [1, 1, 1]} : vector<3x128x128xf32> to vector<1x128x128xf32>
    %35 = vector.shape_cast %34 : vector<1x128x128xf32> to vector<128x128xf32>
    %cst_24 = arith.constant dense<0.000000e+00> : vector<8x128xf32>
    %36 = tpu.matmul %22, %35, %cst_24 {dimension_numbers = #tpu.dot_dimension_numbers<[1], [1], [0], [0], [0, 0, 1, 0], [], []>} : vector<8x128xf32>, vector<128x128xf32>, vector<8x128xf32> -> vector<8x128xf32>
    %37 = vector.extract_strided_slice %32 {offsets = [0, 0], sizes = [1, 128], strides = [1, 1]} : vector<3x128xf32> to vector<1x128xf32>
    %cst_25 = arith.constant 2.000000e+00 : f32
    %38 = vector.broadcast %cst_25 : f32 to vector<8x128xf32>
    %39 = arith.mulf %38, %36 : vector<8x128xf32>
    %40 = vector.broadcast %37 : vector<1x128xf32> to vector<8x128xf32>
    %41 = arith.subf %40, %39 : vector<8x128xf32>
    %42 = tpu.reduce_index %41 {axis = 1 : i32, kind = #tpu.reduction_kind<arg_min>} : vector<8x128xf32> -> vector<8xi32>
    %43 = tpu.iota {dimensions = array<i32: 1>} : vector<8x128xi32>
    %44 = vector.shape_cast %42 : vector<8xi32> to vector<8x1xi32>
    %45 = vector.broadcast %44 : vector<8x1xi32> to vector<8x128xi32>
    %46 = arith.cmpi eq, %43, %45 : vector<8x128xi32>
    %47 = arith.extui %46 : vector<8x128xi1> to vector<8x128xi32>
    %48 = arith.sitofp %47 : vector<8x128xi32> to vector<8x128xf32>
    %cst_26 = arith.constant dense<0.000000e+00> : vector<8x128xf32>
    %49 = tpu.matmul %48, %35, %cst_26 {dimension_numbers = #tpu.dot_dimension_numbers<[1], [0], [0], [1], [0, 0, 1, 1], [], []>} : vector<8x128xf32>, vector<128x128xf32>, vector<8x128xf32> -> vector<8x128xf32>
    %50 = arith.subf %49, %22 : vector<8x128xf32>
    %51 = arith.mulf %50, %50 : vector<8x128xf32>
    %52 = vector.shape_cast %51 : vector<8x128xf32> to vector<1x8x128xf32>
    %cst_27 = arith.constant dense<0.000000e+00> : vector<1xf32>
    %53 = vector.multi_reduction <add>, %52, %cst_27 [1, 2] : vector<1x8x128xf32> to vector<1xf32>
    %54 = vector.shape_cast %53 : vector<1xf32> to vector<1x1x1xf32>
    %55 = vector.extract %54[0, 0, 0] : f32 from vector<1x1x1xf32>
    %cst_28 = arith.constant 0.000000e+00 : f32
    %56 = arith.addf %cst_28, %55 : f32
    %c0_29 = arith.constant 0 : index
    %c0_30 = arith.constant 0 : index
    %57 = vector.load %arg16[%c0_29, %c0_30] : memref<3x8xi32, #tpu.memory_space<vmem>>, vector<1x8xi32>
    %58 = vector.shape_cast %57 : vector<1x8xi32> to vector<8xi32>
    %59 = vector.shape_cast %42 : vector<8xi32> to vector<1x8xi32>
    tpu.vector_store %arg16[%c0_29, %c0_30], %59 {strides = array<i32>} : memref<3x8xi32, #tpu.memory_space<vmem>>, vector<1x8xi32>,
    %60 = arith.addf %33, %49 : vector<8x128xf32>
    %61 = arith.subf %22, %49 : vector<8x128xf32>
    %62 = vector.extract_strided_slice %23 {offsets = [1, 0, 0], sizes = [1, 128, 128], strides = [1, 1, 1]} : vector<3x128x128xf32> to vector<1x128x128xf32>
    %63 = vector.shape_cast %62 : vector<1x128x128xf32> to vector<128x128xf32>
    %cst_31 = arith.constant dense<0.000000e+00> : vector<8x128xf32>
    %64 = tpu.matmul %61, %63, %cst_31 {dimension_numbers = #tpu.dot_dimension_numbers<[1], [1], [0], [0], [0, 0, 1, 0], [], []>} : vector<8x128xf32>, vector<128x128xf32>, vector<8x128xf32> -> vector<8x128xf32>
    %65 = vector.extract_strided_slice %32 {offsets = [1, 0], sizes = [1, 128], strides = [1, 1]} : vector<3x128xf32> to vector<1x128xf32>
    %cst_32 = arith.constant 2.000000e+00 : f32
    %66 = vector.broadcast %cst_32 : f32 to vector<8x128xf32>
    %67 = arith.mulf %66, %64 : vector<8x128xf32>
    %68 = vector.broadcast %65 : vector<1x128xf32> to vector<8x128xf32>
    %69 = arith.subf %68, %67 : vector<8x128xf32>
    %70 = tpu.reduce_index %69 {axis = 1 : i32, kind = #tpu.reduction_kind<arg_min>} : vector<8x128xf32> -> vector<8xi32>
    %71 = tpu.iota {dimensions = array<i32: 1>} : vector<8x128xi32>
    %72 = vector.shape_cast %70 : vector<8xi32> to vector<8x1xi32>
    %73 = vector.broadcast %72 : vector<8x1xi32> to vector<8x128xi32>
    %74 = arith.cmpi eq, %71, %73 : vector<8x128xi32>
    %75 = arith.extui %74 : vector<8x128xi1> to vector<8x128xi32>
    %76 = arith.sitofp %75 : vector<8x128xi32> to vector<8x128xf32>
    %cst_33 = arith.constant dense<0.000000e+00> : vector<8x128xf32>
    %77 = tpu.matmul %76, %63, %cst_33 {dimension_numbers = #tpu.dot_dimension_numbers<[1], [0], [0], [1], [0, 0, 1, 1], [], []>} : vector<8x128xf32>, vector<128x128xf32>, vector<8x128xf32> -> vector<8x128xf32>
    %78 = arith.subf %77, %61 : vector<8x128xf32>
    %79 = arith.mulf %78, %78 : vector<8x128xf32>
    %80 = vector.shape_cast %79 : vector<8x128xf32> to vector<1x8x128xf32>
    %cst_34 = arith.constant dense<0.000000e+00> : vector<1xf32>
    %81 = vector.multi_reduction <add>, %80, %cst_34 [1, 2] : vector<1x8x128xf32> to vector<1xf32>
    %82 = vector.shape_cast %81 : vector<1xf32> to vector<1x1x1xf32>
    %83 = vector.extract %82[0, 0, 0] : f32 from vector<1x1x1xf32>
    %84 = arith.addf %56, %83 : f32
    %c1 = arith.constant 1 : index
    %c0_35 = arith.constant 0 : index
    %85 = vector.load %arg16[%c1, %c0_35] : memref<3x8xi32, #tpu.memory_space<vmem>>, vector<1x8xi32>
    %86 = vector.shape_cast %85 : vector<1x8xi32> to vector<8xi32>
    %87 = vector.shape_cast %70 : vector<8xi32> to vector<1x8xi32>
    tpu.vector_store %arg16[%c1, %c0_35], %87 {strides = array<i32>} : memref<3x8xi32, #tpu.memory_space<vmem>>, vector<1x8xi32>,
    %88 = arith.addf %60, %77 : vector<8x128xf32>
    %89 = arith.subf %61, %77 : vector<8x128xf32>
    %90 = vector.extract_strided_slice %23 {offsets = [2, 0, 0], sizes = [1, 128, 128], strides = [1, 1, 1]} : vector<3x128x128xf32> to vector<1x128x128xf32>
    %91 = vector.shape_cast %90 : vector<1x128x128xf32> to vector<128x128xf32>
    %cst_36 = arith.constant dense<0.000000e+00> : vector<8x128xf32>
    %92 = tpu.matmul %89, %91, %cst_36 {dimension_numbers = #tpu.dot_dimension_numbers<[1], [1], [0], [0], [0, 0, 1, 0], [], []>} : vector<8x128xf32>, vector<128x128xf32>, vector<8x128xf32> -> vector<8x128xf32>
    %93 = vector.extract_strided_slice %32 {offsets = [2, 0], sizes = [1, 128], strides = [1, 1]} : vector<3x128xf32> to vector<1x128xf32>
    %cst_37 = arith.constant 2.000000e+00 : f32
    %94 = vector.broadcast %cst_37 : f32 to vector<8x128xf32>
    %95 = arith.mulf %94, %92 : vector<8x128xf32>
    %96 = vector.broadcast %93 : vector<1x128xf32> to vector<8x128xf32>
    %97 = arith.subf %96, %95 : vector<8x128xf32>
    %98 = tpu.reduce_index %97 {axis = 1 : i32, kind = #tpu.reduction_kind<arg_min>} : vector<8x128xf32> -> vector<8xi32>
    %99 = tpu.iota {dimensions = array<i32: 1>} : vector<8x128xi32>
    %100 = vector.shape_cast %98 : vector<8xi32> to vector<8x1xi32>
    %101 = vector.broadcast %100 : vector<8x1xi32> to vector<8x128xi32>
    %102 = arith.cmpi eq, %99, %101 : vector<8x128xi32>
    %103 = arith.extui %102 : vector<8x128xi1> to vector<8x128xi32>
    %104 = arith.sitofp %103 : vector<8x128xi32> to vector<8x128xf32>
    %cst_38 = arith.constant dense<0.000000e+00> : vector<8x128xf32>
    %105 = tpu.matmul %104, %91, %cst_38 {dimension_numbers = #tpu.dot_dimension_numbers<[1], [0], [0], [1], [0, 0, 1, 1], [], []>} : vector<8x128xf32>, vector<128x128xf32>, vector<8x128xf32> -> vector<8x128xf32>
    %106 = arith.subf %105, %89 : vector<8x128xf32>
    %107 = arith.mulf %106, %106 : vector<8x128xf32>
    %108 = vector.shape_cast %107 : vector<8x128xf32> to vector<1x8x128xf32>
    %cst_39 = arith.constant dense<0.000000e+00> : vector<1xf32>
    %109 = vector.multi_reduction <add>, %108, %cst_39 [1, 2] : vector<1x8x128xf32> to vector<1xf32>
    %110 = vector.shape_cast %109 : vector<1xf32> to vector<1x1x1xf32>
    %111 = vector.extract %110[0, 0, 0] : f32 from vector<1x1x1xf32>
    %112 = arith.addf %84, %111 : f32
    %c2 = arith.constant 2 : index
    %c0_40 = arith.constant 0 : index
    %113 = vector.load %arg16[%c2, %c0_40] : memref<3x8xi32, #tpu.memory_space<vmem>>, vector<1x8xi32>
    %114 = vector.shape_cast %113 : vector<1x8xi32> to vector<8xi32>
    %115 = vector.shape_cast %98 : vector<8xi32> to vector<1x8xi32>
    tpu.vector_store %arg16[%c2, %c0_40], %115 {strides = array<i32>} : memref<3x8xi32, #tpu.memory_space<vmem>>, vector<1x8xi32>,
    %116 = arith.addf %88, %105 : vector<8x128xf32>
    %c0_41 = arith.constant 0 : index
    %c0_42 = arith.constant 0 : index
    %117 = vector.load %arg9[%c0_41, %c0_42] : memref<128x128xbf16, #tpu.memory_space<vmem>>, vector<128x128xbf16>
    %118 = arith.truncf %116 : vector<8x128xf32> to vector<8x128xbf16>
    %cst_43 = arith.constant dense<0.000000e+00> : vector<8x128xf32>
    %119 = tpu.matmul %118, %117, %cst_43 {dimension_numbers = #tpu.dot_dimension_numbers<[1], [0], [0], [1], [0, 0, 1, 1], [], []>} : vector<8x128xbf16>, vector<128x128xbf16>, vector<8x128xf32> -> vector<8x128xf32>
    %c0_44 = arith.constant 0 : index
    %c0_45 = arith.constant 0 : index
    %120 = vector.load %arg10[%c0_44, %c0_45] : memref<1x128xf32, #tpu.memory_space<vmem>>, vector<1x128xf32>
    %121 = vector.broadcast %120 : vector<1x128xf32> to vector<8x128xf32>
    %122 = arith.addf %119, %121 : vector<8x128xf32>
    %cst_46 = arith.constant 0.000000e+00 : f32
    %123 = vector.broadcast %cst_46 : f32 to vector<8x128xf32>
    %124 = arith.maximumf %122, %123 : vector<8x128xf32>
    %c0_47 = arith.constant 0 : index
    %c0_48 = arith.constant 0 : index
    %125 = vector.load %arg11[%c0_47, %c0_48] : memref<128x128xbf16, #tpu.memory_space<vmem>>, vector<128x128xbf16>
    %126 = arith.truncf %124 : vector<8x128xf32> to vector<8x128xbf16>
    %cst_49 = arith.constant dense<0.000000e+00> : vector<8x128xf32>
    %127 = tpu.matmul %126, %125, %cst_49 {dimension_numbers = #tpu.dot_dimension_numbers<[1], [0], [0], [1], [0, 0, 1, 1], [], []>} : vector<8x128xbf16>, vector<128x128xbf16>, vector<8x128xf32> -> vector<8x128xf32>
    %c0_50 = arith.constant 0 : index
    %c0_51 = arith.constant 0 : index
    %128 = vector.load %arg12[%c0_50, %c0_51] : memref<1x128xf32, #tpu.memory_space<vmem>>, vector<1x128xf32>
    %129 = vector.broadcast %128 : vector<1x128xf32> to vector<8x128xf32>
    %130 = arith.addf %127, %129 : vector<8x128xf32>
    %cst_52 = arith.constant 0.000000e+00 : f32
    %131 = vector.broadcast %cst_52 : f32 to vector<8x128xf32>
    %132 = arith.maximumf %130, %131 : vector<8x128xf32>
    %c0_53 = arith.constant 0 : index
    %c0_54 = arith.constant 0 : index
    %133 = vector.load %arg13[%c0_53, %c0_54] : memref<128x128xbf16, #tpu.memory_space<vmem>>, vector<128x128xbf16>
    %134 = arith.truncf %132 : vector<8x128xf32> to vector<8x128xbf16>
    %cst_55 = arith.constant dense<0.000000e+00> : vector<8x128xf32>
    %135 = tpu.matmul %134, %133, %cst_55 {dimension_numbers = #tpu.dot_dimension_numbers<[1], [0], [0], [1], [0, 0, 1, 1], [], []>} : vector<8x128xbf16>, vector<128x128xbf16>, vector<8x128xf32> -> vector<8x128xf32>
    %c0_56 = arith.constant 0 : index
    %c0_57 = arith.constant 0 : index
    %136 = vector.load %arg14[%c0_56, %c0_57] : memref<1x128xf32, #tpu.memory_space<vmem>>, vector<1x128xf32>
    %137 = vector.broadcast %136 : vector<1x128xf32> to vector<8x128xf32>
    %138 = arith.addf %135, %137 : vector<8x128xf32>
    %cst_58 = arith.constant 0.000000e+00 : f32
    %139 = vector.broadcast %cst_58 : f32 to vector<8x128xf32>
    %140 = arith.subf %139, %138 : vector<8x128xf32>
    %141 = math.exp %140 : vector<8x128xf32>
    %cst_59 = arith.constant 1.000000e+00 : f32
    %142 = vector.broadcast %cst_59 : f32 to vector<8x128xf32>
    %143 = arith.addf %142, %141 : vector<8x128xf32>
    %144 = tpu.reciprocal %143 {approx = true} : vector<8x128xf32> -> vector<8x128xf32>
    %c0_60 = arith.constant 0 : index
    %c0_61 = arith.constant 0 : index
    %145 = vector.load %arg15[%c0_60, %c0_61] : memref<8x128xf32, #tpu.memory_space<vmem>>, vector<8x128xf32>
    tpu.vector_store %arg15[%c0_60, %c0_61], %144 {strides = array<i32>} : memref<8x128xf32, #tpu.memory_space<vmem>>, vector<8x128xf32>,
    %cst_62 = arith.constant 0.000000e+00 : f32
    %146 = vector.broadcast %cst_62 : f32 to vector<8x128xf32>
    %147 = vector.broadcast %112 : f32 to vector<8x128xf32>
    %148 = arith.addf %146, %147 : vector<8x128xf32>
    %c0_63 = arith.constant 0 : index
    %c0_64 = arith.constant 0 : index
    %149 = vector.load %arg17[%c0_63, %c0_64] : memref<8x128xf32, #tpu.memory_space<vmem>>, vector<8x128xf32>
    tpu.vector_store %arg17[%c0_63, %c0_64], %148 {strides = array<i32>} : memref<8x128xf32, #tpu.memory_space<vmem>>, vector<8x128xf32>,
    return
  }
  func.func @transform_0(%arg0: i32) -> (i32, i32) {
    %c0_i32 = arith.constant 0 : i32
    %c0_i32_0 = arith.constant 0 : i32
    return %arg0, %c0_i32 : i32, i32
  }
  func.func @transform_1(%arg0: i32) -> (i32, i32) {
    %c0_i32 = arith.constant 0 : i32
    %c0_i32_0 = arith.constant 0 : i32
    %c0_i32_1 = arith.constant 0 : i32
    return %c0_i32, %c0_i32_0 : i32, i32
  }
  func.func @transform_2(%arg0: i32) -> (i32, i32) {
    %c0_i32 = arith.constant 0 : i32
    %c0_i32_0 = arith.constant 0 : i32
    %c0_i32_1 = arith.constant 0 : i32
    return %c0_i32, %c0_i32_0 : i32, i32
  }
  func.func @transform_3(%arg0: i32) -> (i32, i32) {
    %c0_i32 = arith.constant 0 : i32
    %c0_i32_0 = arith.constant 0 : i32
    %c0_i32_1 = arith.constant 0 : i32
    return %c0_i32, %c0_i32_0 : i32, i32
  }
  func.func @transform_4(%arg0: i32) -> (i32, i32) {
    %c0_i32 = arith.constant 0 : i32
    %c0_i32_0 = arith.constant 0 : i32
    %c0_i32_1 = arith.constant 0 : i32
    return %c0_i32, %c0_i32_0 : i32, i32
  }
  func.func @transform_5(%arg0: i32) -> (i32, i32) {
    %c0_i32 = arith.constant 0 : i32
    %c0_i32_0 = arith.constant 0 : i32
    %c0_i32_1 = arith.constant 0 : i32
    return %c0_i32, %c0_i32_0 : i32, i32
  }
  func.func @transform_6(%arg0: i32) -> (i32, i32) {
    %c0_i32 = arith.constant 0 : i32
    %c0_i32_0 = arith.constant 0 : i32
    %c0_i32_1 = arith.constant 0 : i32
    return %c0_i32, %c0_i32_0 : i32, i32
  }
  func.func @transform_7(%arg0: i32) -> (i32, i32, i32) {
    %c0_i32 = arith.constant 0 : i32
    %c0_i32_0 = arith.constant 0 : i32
    %c0_i32_1 = arith.constant 0 : i32
    %c0_i32_2 = arith.constant 0 : i32
    return %c0_i32, %c0_i32_0, %c0_i32_1 : i32, i32, i32
  }
  func.func @transform_8(%arg0: i32) -> (i32, i32) {
    %c0_i32 = arith.constant 0 : i32
    %c0_i32_0 = arith.constant 0 : i32
    %c0_i32_1 = arith.constant 0 : i32
    return %c0_i32, %c0_i32_0 : i32, i32
  }
  func.func @transform_9(%arg0: i32) -> (i32, i32) {
    %c0_i32 = arith.constant 0 : i32
    %c0_i32_0 = arith.constant 0 : i32
    %c0_i32_1 = arith.constant 0 : i32
    return %c0_i32, %c0_i32_0 : i32, i32
  }
  func.func @transform_10(%arg0: i32) -> (i32, i32) {
    %c0_i32 = arith.constant 0 : i32
    %c0_i32_0 = arith.constant 0 : i32
    %c0_i32_1 = arith.constant 0 : i32
    return %c0_i32, %c0_i32_0 : i32, i32
  }
  func.func @transform_11(%arg0: i32) -> (i32, i32) {
    %c0_i32 = arith.constant 0 : i32
    %c0_i32_0 = arith.constant 0 : i32
    %c0_i32_1 = arith.constant 0 : i32
    return %c0_i32, %c0_i32_0 : i32, i32
  }
  func.func @transform_12(%arg0: i32) -> (i32, i32) {
    %c0_i32 = arith.constant 0 : i32
    %c0_i32_0 = arith.constant 0 : i32
    %c0_i32_1 = arith.constant 0 : i32
    return %c0_i32, %c0_i32_0 : i32, i32
  }
  func.func @transform_13(%arg0: i32) -> (i32, i32) {
    %c0_i32 = arith.constant 0 : i32
    %c0_i32_0 = arith.constant 0 : i32
    %c0_i32_1 = arith.constant 0 : i32
    return %c0_i32, %c0_i32_0 : i32, i32
  }
  func.func @transform_14(%arg0: i32) -> (i32, i32) {
    %c0_i32 = arith.constant 0 : i32
    %c0_i32_0 = arith.constant 0 : i32
    return %arg0, %c0_i32 : i32, i32
  }
  func.func @transform_15(%arg0: i32) -> (i32, i32) {
    %c0_i32 = arith.constant 0 : i32
    %c0_i32_0 = arith.constant 0 : i32
    return %c0_i32, %arg0 : i32, i32
  }
  func.func @transform_16(%arg0: i32) -> (i32, i32) {
    %c0_i32 = arith.constant 0 : i32
    %c0_i32_0 = arith.constant 0 : i32
    return %arg0, %c0_i32 : i32, i32
  }
}

</mosaic_0001>

<bundles_post_ra>
// kernel: tpu_custom_call.1
= control target key start
LH: loop header
LB: loop body
LE: loop exit
PB: predicated region body
PF: predicated region fallthrough
CT: control target
= control target key end

     0   :  { %s13058_s0 = inlined_call_operand.hbm [shape: f32[8,128], index: 0, kind: input, shape index: {}]   ;;  %s13059_s1 = inlined_call_operand.hbm [shape: bf16[128,128], index: 1, kind: input, shape index: {}]   ;;  %s13060_s2 = inlined_call_operand.vmem [shape: f32[1,128], index: 2, kind: input, shape index: {}]   ;;  %s13061_s3 = inlined_call_operand.hbm [shape: bf16[128,128], index: 3, kind: input, shape index: {}]   ;;  %s13062_s4 = inlined_call_operand.vmem [shape: f32[1,128], index: 4, kind: input, shape index: {}]   ;;  %s13063_s5 = inlined_call_operand.hbm [shape: bf16[128,128], index: 5, kind: input, shape index: {}]   ;;  %s13064_s6 = inlined_call_operand.vmem [shape: f32[1,128], index: 6, kind: input, shape index: {}]   ;;  %s13065_s7 = inlined_call_operand.hbm [shape: f32[3,128,128], index: 7, kind: input, shape index: {}]   ;;  %s13066_s8 = inlined_call_operand.hbm [shape: bf16[128,128], index: 8, kind: input, shape index: {}]   ;;  %s13067_s9 = inlined_call_operand.vmem [shape: f32[1,128], index: 9, kind: input, shape index: {}]   ;;  %s13068_s10 = inlined_call_operand.hbm [shape: bf16[128,128], index: 10, kind: input, shape index: {}]   ;;  %s13069_s11 = inlined_call_operand.vmem [shape: f32[1,128], index: 11, kind: input, shape index: {}]   ;;  %s13070_s12 = inlined_call_operand.hbm [shape: bf16[128,128], index: 12, kind: input, shape index: {}]   ;;  %s13071_s13 = inlined_call_operand.vmem [shape: f32[1,128], index: 13, kind: input, shape index: {}]   ;;  %s13072_s14 = inlined_call_operand.hbm [shape: f32[8,128], index: 14, kind: output, shape index: {0}]   ;;  %s13073_s15 = inlined_call_operand.hbm [shape: s32[3,8], index: 15, kind: output, shape index: {1}]   ;;  %s13074_s16 = inlined_call_operand.hbm [shape: f32[8,128], index: 16, kind: output, shape index: {2}]  }
   0x1   :  { %13198 = sst [smem:[#allocation154_spill]] %s13058_s0 }
   0x2   :  { %22 = vsyncpa [#allocation3], 0 }
   0x3   :  { %23 = vsyncpa [#allocation6], 0 }
   0x4   :  { %24 = vsyncpa [#allocation9], 0 }
   0x5   :  { %25 = vsyncpa [#allocation12], 0 }
   0x6   :  { %26 = vsyncpa [#allocation15], 0 }
   0x7   :  { %27 = vsyncpa [#allocation4], 0 }
   0x8   :  { %28 = vsyncpa [#allocation18], 0  ;;  %s8491_s21 = smov [#allocation5]  }
   0x9   :  { %s44_s22 = sshll.u32 %s8491_s21, 4  ;;  %s45_s22 = int_to_ptr.vmem [resolvable:$true] %s44_s22 }
   0xa   :  { %s8265_s23 = scalar_lea.vmem %s45_s22, 1024  ;;  %p8270_p1 = scmp.lt.s32.totalorder %s45_s22, %s45_s22 }
   0xb   :  { %p8266_p0 = scmp.ne.s32.totalorder %s45_s22, %s8265_s23  ;;  %p8271_p2 = scmp.lt.s32.totalorder %s8265_s23, %s8265_s23 }
   0xd   :  { %p8272_p3 = por %p8271_p2, %p8270_p1 }
   0xf   :  { %p8273_p4 = pnand %p8272_p3, %p8266_p0 }
  0x11   :  { %8276 = shalt.err (!%p8273_p4)
}
  0x12   :  { %s8492_s24 = smov 64   ;;  %s8493_s25 = smov 4  }
  0x13   :  { %50 = dma.hbm_to_vmem [thread:$0]  %s13059_s1, 1024, %s45_s22, [#allocation6], %s8492_s24, %s8492_s24, %s8493_s25  }
  0x14   :  { %s8494_s28 = smov [#allocation8]   ;;  %s8495_s30 = smov [#allocation11]  }
  0x15   :  { %s72_s29 = sshll.u32 %s8494_s28, 4  ;;  %s98_s0 = sshll.u32 %s8495_s30, 4  ;;  %s73_s29 = int_to_ptr.vmem [resolvable:$true] %s72_s29  ;;  %s99_s0 = int_to_ptr.vmem [resolvable:$true] %s98_s0 }
  0x16   :  { %s8285_s17 = scalar_lea.vmem %s73_s29, 1024  ;;  %p8290_p6 = scmp.lt.s32.totalorder %s73_s29, %s73_s29 }
  0x17   :  { %p8286_p5 = scmp.ne.s32.totalorder %s73_s29, %s8285_s17  ;;  %p8291_p7 = scmp.lt.s32.totalorder %s8285_s17, %s8285_s17 }
  0x19   :  { %p8292_p8 = por %p8291_p7, %p8290_p6 }
  0x1b   :  { %p8293_p9 = pnand %p8292_p8, %p8286_p5 }
  0x1d   :  { %8296 = shalt.err (!%p8293_p9)
}
  0x1e   :  { %78 = dma.hbm_to_vmem [thread:$0]  %s13063_s5, 1024, %s73_s29, [#allocation9], %s8492_s24, %s8492_s24, %s8493_s25  }
  0x1f   :  { %s8305_s1 = scalar_lea.vmem %s99_s0, 1024  ;;  %p8310_p11 = scmp.lt.s32.totalorder %s99_s0, %s99_s0 }
  0x20   :  { %p8306_p10 = scmp.ne.s32.totalorder %s99_s0, %s8305_s1  ;;  %p8311_p12 = scmp.lt.s32.totalorder %s8305_s1, %s8305_s1 }
  0x22   :  { %p8312_p13 = por %p8311_p12, %p8310_p11 }
  0x24   :  { %p8313_p0 = pnand %p8312_p13, %p8306_p10 }
  0x26   :  { %8316 = shalt.err (!%p8313_p0)
}
  0x27   :  { %104 = dma.hbm_to_vmem [thread:$0]  %s13066_s8, 1024, %s99_s0, [#allocation12], %s8492_s24, %s8492_s24, %s8493_s25  }
  0x28   :  { %s8496_s22 = smov [#allocation2]   ;;  %s8497_s26 = smov [#allocation7]  }
  0x29   :  { %s35_s23 = sshll.u32 %s8496_s22, 4  ;;  %s58_s5 = sshll.u32 %s8497_s26, 4  ;;  %s36_s23 = int_to_ptr.vmem [resolvable:$true] %s35_s23  ;;  %s59_s5 = int_to_ptr.vmem [resolvable:$true] %s58_s5 }
  0x2a   :  { %s8325_s27 = scalar_lea.vmem %s36_s23, 128  ;;  %p8330_p2 = scmp.lt.s32.totalorder %s36_s23, %s36_s23 }
  0x2b   :  { %p8326_p1 = scmp.ne.s32.totalorder %s36_s23, %s8325_s27  ;;  %p8331_p3 = scmp.lt.s32.totalorder %s8325_s27, %s8325_s27 }
  0x2d   :  { %p8332_p4 = por %p8331_p3, %p8330_p2 }
  0x2f   :  { %p8333_p5 = pnand %p8332_p4, %p8326_p1 }
  0x31   :  { %8336 = shalt.err (!%p8333_p5)
}
  0x32   :  { %s13199_s30 = sld [smem:[#allocation154_spill]]  ;;  %s8345_s17 = scalar_lea.vmem %s59_s5, 1024 }
  0x33   :  { %p8346_p6 = scmp.ne.s32.totalorder %s59_s5, %s8345_s17  ;;  %p8350_p7 = scmp.lt.s32.totalorder %s59_s5, %s59_s5 }
  0x34   :  { %p8351_p8 = scmp.lt.s32.totalorder %s8345_s17, %s8345_s17 }
  0x36   :  { %p8352_p9 = por %p8351_p8, %p8350_p7 }
  0x38   :  { %38 = dma.hbm_to_vmem [thread:$0]  %s13199_s30, 128, %s36_s23, [#allocation3]  }
  0x39   :  { %p8353_p10 = pnand %p8352_p9, %p8346_p6 }
  0x3b   :  { %8356 = shalt.err (!%p8353_p10)
}
  0x3c   :  { %64 = dma.hbm_to_vmem [thread:$0]  %s13061_s3, 1024, %s59_s5, [#allocation6], %s8492_s24, %s8492_s24, %s8493_s25  }
  0x3d   :  { %s8498_s18 = smov [#allocation10]  }
  0x3e   :  { %s86_s19 = sshll.u32 %s8498_s18, 4  ;;  %s87_s19 = int_to_ptr.vmem [resolvable:$true] %s86_s19 }
  0x3f   :  { %s8365_s1 = scalar_lea.vmem %s87_s19, 6144  ;;  %p8370_p12 = scmp.lt.s32.totalorder %s87_s19, %s87_s19 }
  0x40   :  { %p8366_p11 = scmp.ne.s32.totalorder %s87_s19, %s8365_s1  ;;  %p8371_p13 = scmp.lt.s32.totalorder %s8365_s1, %s8365_s1 }
  0x42   :  { %p8372_p0 = por %p8371_p13, %p8370_p12 }
  0x44   :  { %p8373_p1 = pnand %p8372_p0, %p8366_p11 }
  0x46   :  { %8376 = shalt.err (!%p8373_p1)
}
  0x47   :  { %s8499_s20 = smov 128   ;;  %s8500_s21 = smov 8  }
  0x48   :  { %92 = dma.hbm_to_vmem [thread:$0]  %s13065_s7, 6144, %s87_s19, [#allocation9], %s8499_s20, %s8499_s20, %s8500_s21  }
  0x49   :  { %s8501_s26 = smov [#allocation13]   ;;  %s8502_s28 = smov [#allocation14]  }
  0x4a   :  { %s112_s27 = sshll.u32 %s8501_s26, 4  ;;  %s126_s3 = sshll.u32 %s8502_s28, 4  ;;  %s113_s27 = int_to_ptr.vmem [resolvable:$true] %s112_s27  ;;  %s127_s3 = int_to_ptr.vmem [resolvable:$true] %s126_s3 }
  0x4b   :  { %s8385_s5 = scalar_lea.vmem %s113_s27, 1024  ;;  %p8390_p3 = scmp.lt.s32.totalorder %s113_s27, %s113_s27 }
  0x4c   :  { %p8386_p2 = scmp.ne.s32.totalorder %s113_s27, %s8385_s5  ;;  %p8391_p4 = scmp.lt.s32.totalorder %s8385_s5, %s8385_s5 }
  0x4e   :  { %p8392_p5 = por %p8391_p4, %p8390_p3 }
  0x50   :  { %p8393_p6 = pnand %p8392_p5, %p8386_p2 }
  0x52   :  { %8396 = shalt.err (!%p8393_p6)
}
  0x53   :  { %118 = dma.hbm_to_vmem [thread:$0]  %s13068_s10, 1024, %s113_s27, [#allocation12], %s8492_s24, %s8492_s24, %s8493_s25  }
  0x54   :  { %s8405_s7 = scalar_lea.vmem %s127_s3, 1024  ;;  %p8410_p8 = scmp.lt.s32.totalorder %s127_s3, %s127_s3 }
  0x55   :  { %p8406_p7 = scmp.ne.s32.totalorder %s127_s3, %s8405_s7  ;;  %p8411_p9 = scmp.lt.s32.totalorder %s8405_s7, %s8405_s7 }
  0x57   :  { %p8412_p10 = por %p8411_p9, %p8410_p8 }
  0x59   :  { %p8413_p11 = pnand %p8412_p10, %p8406_p7 }
  0x5b   :  { %8416 = shalt.err (!%p8413_p11)
}
  0x5c   :  { %132 = dma.hbm_to_vmem [thread:$0]  %s13070_s12, 1024, %s127_s3, [#allocation15], %s8492_s24, %s8492_s24, %s8493_s25  }
  0x5d   :  { %8477 = dma.done.wait [#allocation3], 128  }
  0x5e   :  { %8478 = vsyncadd [#allocation3], 4294967168 }
  0x5f   :  { %8479 = dma.done.wait [#allocation6], 2048  }
  0x60   :  { %8480 = vsyncadd [#allocation6], 4294965248 }
  0x61   :  { %8481 = dma.done.wait [#allocation9], 7168  }
  0x62   :  { %8482 = vsyncadd [#allocation9], 4294960128 }
  0x63   :  { %8483 = dma.done.wait [#allocation12], 2048  }
  0x64   :  { %8484 = vsyncadd [#allocation12], 4294965248 }
  0x65   :  { %8485 = dma.done.wait [#allocation15], 1024  }
  0x66   :  { %8486 = vsyncadd [#allocation15], 4294966272  ;;  %v13075_v0 = vmov 0.0   ;;  %vm13173_vm0 = vmmov 0   ;;  %v8157_v1 = vld [vmem:[#allocation5 + $0x38] sm:$0xff]   ;;  %v8158_v2 = vld [vmem:[#allocation5 + $0x30] sm:$0xff]  }
  0x67   :  { %7799 = vmatprep.subr.bf16.mxu0 %v13075_v0  ;;  %7815 = vmatprep.mubr.msk.bf16.mxu0 %vm13173_vm0, %v13075_v0  ;;  %v8159_v3 = vld [vmem:[#allocation5 + $0x28] sm:$0xff]   ;;  %v8165_v4 = vld [vmem:[#allocation7 + $0x38] sm:$0xff]   ;;  %v8160_v5 = vld [vmem:[#allocation5 + $0x20] sm:$0xff]   ;;  %vm2208_vm2 = vcmask 130112   ;;  %vm2215_vm3 = vcmask 195712   ;;  %vm13136_vm4 = vcmask 261312  }
  0x68   :  { %7819 = vmatprep.subr.bf16.mxu1 %v13075_v0  ;;  %7835 = vmatprep.mubr.msk.bf16.mxu1 %vm13173_vm0, %v13075_v0  ;;  %v8166_v6 = vld [vmem:[#allocation7 + $0x30] sm:$0xff]   ;;  %v8161_v7 = vld [vmem:[#allocation5 + $0x18] sm:$0xff]   ;;  %v8167_v8 = vld [vmem:[#allocation7 + $0x28] sm:$0xff]   ;;  %vm13131_vm5 = vcmask 326912   ;;  %vm13124_vm6 = vcmask 392512   ;;  %vm13135_vm7 = vcmask 458112  }
  0x69   :  { %7800 = vmatpush3.bf16.msra.mxu0 %v8157_v1  ;;  %7820 = vmatpush3.bf16.msra.mxu1 %v8165_v4  ;;  %v8162_v9 = vld [vmem:[#allocation5 + $0x10] sm:$0xff]   ;;  %v8168_v10 = vld [vmem:[#allocation7 + $0x20] sm:$0xff]   ;;  %v8163_v11 = vld [vmem:[#allocation5 + $0x8] sm:$0xff]   ;;  %vm13134_vm8 = vcmask 523712   ;;  %vm2257_vm9 = vcmask 589312   ;;  %vm2264_vm10 = vcmask 654912  }
  0x6a   :  { %7801 = vmatprep.subr.bf16.mxu0 %v13075_v0  ;;  %7821 = vmatprep.subr.bf16.mxu1 %v13075_v0  ;;  %v8169_v12 = vld [vmem:[#allocation7 + $0x18] sm:$0xff]   ;;  %v8164_v13 = vld [vmem:[#allocation5] sm:$0xff]   ;;  %v8170_v15 = vld [vmem:[#allocation7 + $0x10] sm:$0xff]   ;;  %vm2271_vm11 = vcmask 720512   ;;  %vm2278_vm12 = vcmask 786112   ;;  %vm13140_vm13 = vcmask 851712  }
  0x6b   :  { %v160_v14 = vld [vmem:[#allocation2] sm:$0xff]  ;;  %v8171_v17 = vld [vmem:[#allocation7 + $0x8] sm:$0xff]   ;;  %v8172_v18 = vld [vmem:[#allocation7] sm:$0xff]   ;;  %vm2292_vm14 = vcmask 917312   ;;  %vm2299_vm15 = vcmask 982912   ;;  %s8508_s23 = smov [#allocation17]  }
  0x6c   :  { %v177_v16 = vpack.c.bf16 %v160_v14, %v160_v14  ;;  %v8173_v19 = vld [vmem:[#allocation8 + $0x38] sm:$0xff]   ;;  %v8174_v20 = vld [vmem:[#allocation8 + $0x30] sm:$0xff]   ;;  %v8175_v21 = vld [vmem:[#allocation8 + $0x28] sm:$0xff]   ;;  %s7553_s26 = sshll.u32 %s8508_s23, 4  ;;  %s7554_s26 = int_to_ptr.vmem [resolvable:$true] %s7553_s26 }
  0x6d   :  { %7802 = vmatpush3.bf16.msra.mxu0 %v8158_v2  ;;  %7822 = vmatpush3.bf16.msra.mxu1 %v8166_v6  ;;  %v8176_v22 = vld [vmem:[#allocation8 + $0x20] sm:$0xff]   ;;  %v8177_v23 = vld [vmem:[#allocation8 + $0x18] sm:$0xff]   ;;  %v8178_v24 = vld [vmem:[#allocation8 + $0x10] sm:$0xff]   ;;  %s8417_s27 = scalar_lea.vmem %s7554_s26, 64  ;;  %p8422_p13 = scmp.lt.s32.totalorder %s7554_s26, %s7554_s26 }
  0x6e   :  { %7803 = vmatprep.subr.bf16.mxu0 %v13075_v0  ;;  %7823 = vmatprep.subr.bf16.mxu1 %v13075_v0  ;;  %v7583_v25 = vld [vmem:[%s13060_s2] ss:$0 sm:$0xff]  ;;  %v8179_v33 = vld [vmem:[#allocation8 + $0x8] sm:$0xff]   ;;  %v8180_v34 = vld [vmem:[#allocation8] sm:$0xff]   ;;  %p8418_p12 = scmp.ne.s32.totalorder %s7554_s26, %s8417_s27  ;;  %p8423_p0 = scmp.lt.s32.totalorder %s8417_s27, %s8417_s27 }
  0x6f   :  { %v8675_v35 = vld [vmem:[#allocation10 + $0x78] sm:$0xff]  ;;  %v8678_v36 = vld [vmem:[#allocation10 + $0x10] sm:$0xff]  ;;  %v8687_v40 = vld [vmem:[#allocation10] sm:$0xff] }
  0x70   :  { %v8681_v37 = vld [vmem:[#allocation10 + $0x70] sm:$0xff]  ;;  %v551_v38 = vmul.f32 %v8678_v36, %v8678_v36  ;;  %v8685_v39 = vld [vmem:[#allocation10 + $0x18] sm:$0xff]  ;;  %v549_v42 = vmul.f32 %v8687_v40, %v8687_v40  ;;  %v8693_v43 = vld [vmem:[#allocation10 + $0x8] sm:$0xff]  ;;  %v564_v2 = vmul.f32 %v8675_v35, %v8675_v35  ;;  %p8424_p1 = por %p8423_p0, %p8422_p13 }
  0x71   :  { %7804 = vmatpush3.bf16.msra.mxu0 %v8159_v3  ;;  %7824 = vmatpush3.bf16.msra.mxu1 %v8167_v8  ;;  %v552_v41 = vmul.f32 %v8685_v39, %v8685_v39  ;;  %v8696_v44 = vld [vmem:[#allocation10 + $0x28] sm:$0xff]  ;;  %v550_v46 = vmul.f32 %v8693_v43, %v8693_v43  ;;  %v8703_v47 = vld [vmem:[#allocation10 + $0x20] sm:$0xff]  ;;  %v8708_v49 = vld [vmem:[#allocation10 + $0x38] sm:$0xff]  ;;  %v563_v4 = vmul.f32 %v8681_v37, %v8681_v37 }
  0x72   :  { %7805 = vmatprep.subr.bf16.mxu0 %v13075_v0  ;;  %7825 = vmatprep.subr.bf16.mxu1 %v13075_v0  ;;  %v8699_v45 = vld [vmem:[#allocation10 + $0x68] sm:$0xff]  ;;  %v554_v48 = vmul.f32 %v8696_v44, %v8696_v44  ;;  %v8711_v50 = vld [vmem:[#allocation10 + $0x60] sm:$0xff]  ;;  %v553_v51 = vmul.f32 %v8703_v47, %v8703_v47  ;;  %v8715_v52 = vld [vmem:[#allocation10 + $0x30] sm:$0xff]  ;;  %v556_v53 = vmul.f32 %v8708_v49, %v8708_v49  ;;  %p8425_p2 = pnand %p8424_p1, %p8418_p12 }
  0x73   :  { %601 = vadd.xlane.f32.xlu1 %v551_v38  ;;  %597 = vadd.xlane.f32.xlu0 %v549_v42  ;;  %v8721_v54 = vld [vmem:[#allocation10 + $0x58] sm:$0xff]  ;;  %v555_v55 = vmul.f32 %v8715_v52, %v8715_v52  ;;  %v8725_v56 = vld [vmem:[#allocation10 + $0x48] sm:$0xff]  ;;  %v8730_v58 = vld [vmem:[#allocation10 + $0x40] sm:$0xff]  ;;  %v562_v63 = vmul.f32 %v8699_v45, %v8699_v45  ;;  %v561_v1 = vmul.f32 %v8711_v50, %v8711_v50 }
  0x74   :  { %v558_v57 = vmul.f32 %v8725_v56, %v8725_v56  ;;  %v8733_v59 = vld [vmem:[#allocation10 + $0x50] sm:$0xff]  ;;  %v557_v60 = vmul.f32 %v8730_v58, %v8730_v58  ;;  %v560_v61 = vmul.f32 %v8721_v54, %v8721_v54  ;;  %v8752_v3 = vld [vmem:[#allocation10 + $0x88] sm:$0xff]  ;;  %v8780_v14 = vld [vmem:[#allocation10 + $0xb8] sm:$0xff] }
  0x75   :  { %7806 = vmatpush3.bf16.msra.mxu0 %v8160_v5  ;;  %7826 = vmatpush3.bf16.msra.mxu1 %v8168_v10  ;;  %v559_v62 = vmul.f32 %v8733_v59, %v8733_v59  ;;  %v8757_v5 = vld [vmem:[#allocation10 + $0x80] sm:$0xff]  ;;  %v566_v6 = vmul.f32 %v8752_v3, %v8752_v3 }
  0x76   :  { %7807 = vmatprep.subr.bf16.mxu0 %v13075_v0  ;;  %7827 = vmatprep.subr.bf16.mxu1 %v13075_v0  ;;  %v565_v8 = vmul.f32 %v8757_v5, %v8757_v5 }
  0x77   :  { %603 = vadd.xlane.f32.xlu1 %v552_v41  ;;  %599 = vadd.xlane.f32.xlu0 %v550_v46  ;;  %v8864_v41 = vld [vmem:[#allocation10 + $0xe0] sm:$0xff] }
  0x79   :  { %7808 = vmatpush3.bf16.msra.mxu0 %v8161_v7  ;;  %7828 = vmatpush3.bf16.msra.mxu1 %v8169_v12  ;;  %v8762_v7 = vld [vmem:[#allocation10 + $0x98] sm:$0xff] }
  0x7a   :  { %7809 = vmatprep.subr.bf16.mxu0 %v13075_v0  ;;  %7829 = vmatprep.subr.bf16.mxu1 %v13075_v0  ;;  %v568_v10 = vmul.f32 %v8762_v7, %v8762_v7 }
  0x7b   :  { %607 = vadd.xlane.f32.xlu1 %v554_v48  ;;  %605 = vadd.xlane.f32.xlu0 %v553_v51  ;;  %v536_v48 = vld [vmem:[#allocation10 + $0x128] sm:$0xff] }
  0x7d   :  { %7810 = vmatpush3.bf16.msra.mxu0 %v8162_v9  ;;  %7830 = vmatpush3.bf16.msra.mxu1 %v8170_v15  ;;  %v8767_v9 = vld [vmem:[#allocation10 + $0x90] sm:$0xff]  ;;  %v572_v15 = vmul.f32 %v8780_v14, %v8780_v14 }
  0x7e   :  { %7811 = vmatprep.subr.bf16.mxu0 %v13075_v0  ;;  %7831 = vmatprep.subr.bf16.mxu1 %v13075_v0  ;;  %v567_v12 = vmul.f32 %v8767_v9, %v8767_v9 }
  0x7f   :  { %611 = vadd.xlane.f32.xlu1 %v556_v53  ;;  %609 = vadd.xlane.f32.xlu0 %v555_v55  ;;  %v533_v53 = vld [vmem:[#allocation10 + $0x110] sm:$0xff] }
  0x80   :  { %v583_v55 = vmul.f32 %v533_v53, %v533_v53 }
  0x81   :  { %7812 = vmatpush3.bf16.msra.mxu0 %v8163_v11  ;;  %7832 = vmatpush3.bf16.msra.mxu1 %v8171_v17  ;;  %v8772_v11 = vld [vmem:[#allocation10 + $0xa8] sm:$0xff] }
  0x82   :  { %7813 = vmatprep.subr.bf16.mxu0 %v13075_v0  ;;  %7833 = vmatprep.subr.bf16.mxu1 %v13075_v0 }
  0x83   :  { %615 = vadd.xlane.f32.xlu1 %v558_v57  ;;  %613 = vadd.xlane.f32.xlu0 %v557_v60  ;;  %v535_v57 = vld [vmem:[#allocation10 + $0x120] sm:$0xff]  ;;  %v542_v60 = vld [vmem:[#allocation10 + $0x158] sm:$0xff] }
  0x85   :  { %7814 = vmatpush3.bf16.msra.mxu0 %v8164_v13  ;;  %7834 = vmatpush3.bf16.msra.mxu1 %v8172_v18  ;;  %v570_v13 = vmul.f32 %v8772_v11, %v8772_v11 }
  0x86   :  { %7839 = vmatprep.subr.bf16.mxu0 %v13075_v0  ;;  %7859 = vmatprep.subr.mxu1 %v13075_v0 }
  0x87   :  { %619 = vadd.xlane.f32.xlu1 %v560_v61  ;;  %617 = vadd.xlane.f32.xlu0 %v559_v62  ;;  %v537_v61 = vld [vmem:[#allocation10 + $0x130] sm:$0xff]  ;;  %v592_v62 = vmul.f32 %v542_v60, %v542_v60 }
  0x88   :  { %7816 = vmatmul.mubr.bf16.vlgmr.msra.gmra.mxu0 %v177_v16  ;;  %v7592_v16 = vld [vmem:[%s13062_s4] ss:$0 sm:$0xff] }
  0x89   :  { %7855 = vmatprep.mubr.msk.bf16.mxu0 %vm13173_vm0, %v13075_v0  ;;  %7840 = vmatpush3.bf16.msra.mxu0 %v8173_v19 }
  0x8a   :  { %7841 = vmatprep.subr.bf16.mxu0 %v13075_v0 }
  0x8b   :  { %623 = vadd.xlane.f32.xlu1 %v562_v63  ;;  %621 = vadd.xlane.f32.xlu0 %v561_v1  ;;  %v587_v63 = vmul.f32 %v537_v61, %v537_v61  ;;  %v544_v1 = vld [vmem:[#allocation10 + $0x168] sm:$0xff] }
  0x8d   :  { %7842 = vmatpush3.bf16.msra.mxu0 %v8174_v20 }
  0x8e   :  { %7843 = vmatprep.subr.bf16.mxu0 %v13075_v0 }
  0x8f   :  { %627 = vadd.xlane.f32.xlu1 %v564_v2  ;;  %625 = vadd.xlane.f32.xlu0 %v563_v4  ;;  %v539_v2 = vld [vmem:[#allocation10 + $0x140] sm:$0xff]  ;;  %v594_v4 = vmul.f32 %v544_v1, %v544_v1 }
  0x91   :  { %7844 = vmatpush3.bf16.msra.mxu0 %v8175_v21 }
  0x92   :  { %7845 = vmatprep.subr.bf16.mxu0 %v13075_v0 }
  0x93   :  { %631 = vadd.xlane.f32.xlu1 %v566_v6  ;;  %629 = vadd.xlane.f32.xlu0 %v565_v8  ;;  %v589_v6 = vmul.f32 %v539_v2, %v539_v2  ;;  %v546_v8 = vld [vmem:[#allocation10 + $0x178] sm:$0xff] }
  0x95   :  { %7846 = vmatpush3.bf16.msra.mxu0 %v8176_v22 }
  0x96   :  { %7847 = vmatprep.subr.bf16.mxu0 %v13075_v0 }
  0x97   :  { %635 = vadd.xlane.f32.xlu1 %v568_v10  ;;  %633 = vadd.xlane.f32.xlu0 %v567_v12  ;;  %v541_v10 = vld [vmem:[#allocation10 + $0x150] sm:$0xff]  ;;  %v596_v12 = vmul.f32 %v546_v8, %v546_v8 }
  0x99   :  { %7848 = vmatpush3.bf16.msra.mxu0 %v8177_v23 }
  0x9a   :  { %7849 = vmatprep.subr.bf16.mxu0 %v13075_v0 }
  0x9b   :  { %639 = vadd.xlane.f32.xlu1 %v570_v13  ;;  %v591_v13 = vmul.f32 %v541_v10, %v541_v10 }
  0x9d   :  { %7850 = vmatpush3.bf16.msra.mxu0 %v8178_v24  ;;  %v8832_v24 = vld [vmem:[#allocation10 + $0xc8] sm:$0xff] }
  0x9e   :  { %7851 = vmatprep.subr.bf16.mxu0 %v13075_v0 }
  0x9f   :  { %643 = vadd.xlane.f32.xlu1 %v572_v15  ;;  %v543_v15 = vld [vmem:[#allocation10 + $0x160] sm:$0xff] }
  0xa1   :  { %7852 = vmatpush3.bf16.msra.mxu0 %v8179_v33  ;;  %v8850_v33 = vld [vmem:[#allocation10 + $0xc0] sm:$0xff] }
  0xa2   :  { %7853 = vmatprep.subr.bf16.mxu0 %v13075_v0 }
  0xa5   :  { %7854 = vmatpush3.bf16.msra.mxu0 %v8180_v34 }
  0xa6   :  { %7894 = vmatprep.subr.mxu0 %v13075_v0 }
 0x148   :  { %v267_v26 = vpop.f32.mrf.mxu0 }
 0x149   :  { %v268_v27 = vadd.f32 %v7583_v25, %v267_v26  ;;  %v574_v25 = vmul.f32 %v8832_v24, %v8832_v24  ;;  %v8836_v26 = vld [vmem:[#allocation10 + $0xa0] sm:$0xff] }
 0x14a   :  { %v7817_v28 = vpop.f32.mrf.mxu0 }
 0x14b   :  { %v273_v29 = vmax.f32 %v268_v27, 0.0  ;;  %v569_v27 = vmul.f32 %v8836_v26, %v8836_v26  ;;  %647 = vadd.xlane.f32.xlu1 %v574_v25  ;;  %v8840_v28 = vld [vmem:[#allocation10 + $0xd8] sm:$0xff] }
 0x14c   :  { %v270_v30 = vpop.f32.mrf.mxu0 }
 0x14d   :  { %v290_v31 = vpack.c.bf16 %v273_v29, %v273_v29  ;;  %637 = vadd.xlane.f32.xlu0 %v569_v27  ;;  %v576_v29 = vmul.f32 %v8840_v28, %v8840_v28  ;;  %v8844_v30 = vld [vmem:[#allocation10 + $0xb0] sm:$0xff] }
 0x14e   :  { %v7818_v32 = vpop.f32.mrf.mxu0 }
 0x14f   :  { %7836 = vmatmul.mubr.bf16.vlgmr.msra.gmra.mxu1 %v290_v31  ;;  %v571_v31 = vmul.f32 %v8844_v30, %v8844_v30  ;;  %651 = vadd.xlane.f32.xlu1 %v576_v29  ;;  %v8848_v32 = vld [vmem:[#allocation10 + $0xe8] sm:$0xff] }
 0x150   :  { %7891 = vmatprep.mubr.msk.f32.mxu1 %vm13173_vm0, %v13075_v0  ;;  %7860 = vmatpush3.xpose.msra.mxu1 %v8675_v35  ;;  %v578_v34 = vmul.f32 %v8848_v32, %v8848_v32 }
 0x151   :  { %7861 = vmatprep.subr.mxu1 %v13075_v0  ;;  %641 = vadd.xlane.f32.xlu0 %v571_v31 }
 0x153   :  { %655 = vadd.xlane.f32.xlu1 %v578_v34 }
 0x154   :  { %7862 = vmatpush3.xpose.msra.mxu1 %v8681_v37 }
 0x155   :  { %7863 = vmatprep.subr.mxu1 %v13075_v0 }
 0x158   :  { %7864 = vmatpush3.xpose.msra.mxu1 %v8699_v45 }
 0x159   :  { %7865 = vmatprep.subr.mxu1 %v13075_v0 }
 0x15c   :  { %7866 = vmatpush3.xpose.msra.mxu1 %v8711_v50 }
 0x15d   :  { %7867 = vmatprep.subr.mxu1 %v13075_v0 }
 0x160   :  { %7868 = vmatpush3.xpose.msra.mxu1 %v8721_v54 }
 0x161   :  { %7869 = vmatprep.subr.mxu1 %v13075_v0 }
 0x164   :  { %7870 = vmatpush3.xpose.msra.mxu1 %v8733_v59 }
 0x165   :  { %7871 = vmatprep.subr.mxu1 %v13075_v0 }
 0x168   :  { %7872 = vmatpush3.xpose.msra.mxu1 %v8725_v56 }
 0x169   :  { %7873 = vmatprep.subr.mxu1 %v13075_v0 }
 0x16c   :  { %7874 = vmatpush3.xpose.msra.mxu1 %v8730_v58 }
 0x16d   :  { %7875 = vmatprep.subr.mxu1 %v13075_v0 }
 0x170   :  { %7876 = vmatpush3.xpose.msra.mxu1 %v8708_v49 }
 0x171   :  { %7877 = vmatprep.subr.mxu1 %v13075_v0 }
 0x174   :  { %7878 = vmatpush3.xpose.msra.mxu1 %v8715_v52 }
 0x175   :  { %7879 = vmatprep.subr.mxu1 %v13075_v0 }
 0x178   :  { %7880 = vmatpush3.xpose.msra.mxu1 %v8696_v44 }
 0x179   :  { %7881 = vmatprep.subr.mxu1 %v13075_v0 }
 0x17c   :  { %7882 = vmatpush3.xpose.msra.mxu1 %v8703_v47 }
 0x17d   :  { %7883 = vmatprep.subr.mxu1 %v13075_v0 }
 0x180   :  { %7884 = vmatpush3.xpose.msra.mxu1 %v8685_v39 }
 0x181   :  { %7885 = vmatprep.subr.mxu1 %v13075_v0 }
 0x184   :  { %7886 = vmatpush3.xpose.msra.mxu1 %v8678_v36 }
 0x185   :  { %7887 = vmatprep.subr.mxu1 %v13075_v0 }
 0x188   :  { %7888 = vmatpush3.xpose.msra.mxu1 %v8693_v43 }
 0x189   :  { %7889 = vmatprep.subr.mxu1 %v13075_v0 }
 0x18c   :  { %7890 = vmatpush3.xpose.msra.mxu1 %v8687_v40 }
 0x18d   :  { %7964 = vmatprep.subr.mxu1 %v13075_v0 }
 0x20f   :  { %v380_v17 = vpop.f32.mrf.mxu1 }
 0x210   :  { %v381_v18 = vadd.f32 %v7592_v16, %v380_v17  ;;  %v593_v16 = vmul.f32 %v543_v15, %v543_v15  ;;  %v545_v17 = vld [vmem:[#allocation10 + $0x170] sm:$0xff] }
 0x211   :  { %v7837_v19 = vpop.f32.mrf.mxu1 }
 0x212   :  { %v386_v20 = vmax.f32 %v381_v18, 0.0  ;;  %v547_v18 = vlaneseq  ;;  %v595_v19 = vmul.f32 %v545_v17, %v545_v17 }
 0x213   :  { %v383_v21 = vpop.f32.mrf.mxu1 }
 0x214   :  { %v403_v22 = vpack.c.bf16 %v386_v20, %v386_v20  ;;  %v8873_v20 = vand.u32 127, %v547_v18  ;;  %v8505_v21 = vmov 1e+30  }
 0x215   :  { %v7838_v23 = vpop.f32.mrf.mxu1 }
 0x216   :  { %7856 = vmatmul.mubr.bf16.vlgmr.msra.gmra.mxu0 %v403_v22  ;;  %13200 = vst [vmem:[#allocation27_spill] sm:$0xff] %v8873_v20  ;;  %vm693_vm1 = vcmp.lt.s32.totalorder %v8873_v20, 32  ;;  %v7601_v23 = vld [vmem:[%s13064_s6] ss:$0 sm:$0xff] }
 0x217   :  { %7895 = vmatpush3.msra.mxu0 %v8675_v35  ;;  %7926 = vmatprep.mubr.msk.f32.mxu0 %vm13173_vm0, %v13075_v0  ;;  %v573_v35 = vmul.f32 %v8850_v33, %v8850_v33  ;;  %v694_v22 = vsel %vm693_vm1, 0.0, %v8505_v21  ;;  %vm2306_vm1 = vcmask 1048512  }
 0x218   :  { %7896 = vmatprep.subr.mxu0 %v13075_v0 }
 0x219   :  { %7897 = vmatpush3.msra.mxu0 %v8681_v37  ;;  %v8858_v37 = vld [vmem:[#allocation10 + $0xd0] sm:$0xff]  ;;  %645 = vadd.xlane.f32.xlu0 %v573_v35 }
 0x21a   :  { %7898 = vmatprep.subr.mxu0 %v13075_v0 }
 0x21b   :  { %7899 = vmatpush3.msra.mxu0 %v8699_v45  ;;  %v8868_v45 = vld [vmem:[#allocation10 + $0xf0] sm:$0xff] }
 0x21c   :  { %7900 = vmatprep.subr.mxu0 %v13075_v0 }
 0x21d   :  { %7901 = vmatpush3.msra.mxu0 %v8711_v50  ;;  %v586_v50 = vmul.f32 %v536_v48, %v536_v48 }
 0x21e   :  { %7902 = vmatprep.subr.mxu0 %v13075_v0 }
 0x21f   :  { %7903 = vmatpush3.msra.mxu0 %v8721_v54 }
 0x220   :  { %7904 = vmatprep.subr.mxu0 %v13075_v0 }
 0x221   :  { %7905 = vmatpush3.msra.mxu0 %v8733_v59  ;;  %v585_v59 = vmul.f32 %v535_v57, %v535_v57 }
 0x222   :  { %7906 = vmatprep.subr.mxu0 %v13075_v0 }
 0x223   :  { %7907 = vmatpush3.msra.mxu0 %v8725_v56  ;;  %v540_v56 = vld [vmem:[#allocation10 + $0x148] sm:$0xff] }
 0x224   :  { %7908 = vmatprep.subr.mxu0 %v13075_v0 }
 0x225   :  { %7909 = vmatpush3.msra.mxu0 %v8730_v58  ;;  %v590_v58 = vmul.f32 %v540_v56, %v540_v56 }
 0x226   :  { %7910 = vmatprep.subr.mxu0 %v13075_v0 }
 0x227   :  { %7911 = vmatpush3.msra.mxu0 %v8708_v49  ;;  %v531_v49 = vld [vmem:[#allocation10 + $0x100] sm:$0xff] }
 0x228   :  { %7912 = vmatprep.subr.mxu0 %v13075_v0  ;;  %v581_v51 = vmul.f32 %v531_v49, %v531_v49 }
 0x229   :  { %7913 = vmatpush3.msra.mxu0 %v8715_v52  ;;  %v538_v52 = vld [vmem:[#allocation10 + $0x138] sm:$0xff] }
 0x22a   :  { %7914 = vmatprep.subr.mxu0 %v13075_v0  ;;  %v588_v54 = vmul.f32 %v538_v52, %v538_v52 }
 0x22b   :  { %7915 = vmatpush3.msra.mxu0 %v8696_v44  ;;  %v534_v44 = vld [vmem:[#allocation10 + $0x118] sm:$0xff] }
 0x22c   :  { %7916 = vmatprep.subr.mxu0 %v13075_v0  ;;  %v584_v46 = vmul.f32 %v534_v44, %v534_v44 }
 0x22d   :  { %7917 = vmatpush3.msra.mxu0 %v8703_v47  ;;  %v579_v47 = vmul.f32 %v8868_v45, %v8868_v45 }
 0x22e   :  { %7918 = vmatprep.subr.mxu0 %v13075_v0 }
 0x22f   :  { %7919 = vmatpush3.msra.mxu0 %v8685_v39  ;;  %v575_v39 = vmul.f32 %v8858_v37, %v8858_v37 }
 0x230   :  { %7920 = vmatprep.subr.mxu0 %v13075_v0 }
 0x231   :  { %7921 = vmatpush3.msra.mxu0 %v8678_v36  ;;  %v8856_v36 = vld [vmem:[#allocation10 + $0xf8] sm:$0xff]  ;;  %649 = vadd.xlane.f32.xlu0 %v575_v39 }
 0x232   :  { %7922 = vmatprep.subr.mxu0 %v13075_v0  ;;  %v580_v38 = vmul.f32 %v8856_v36, %v8856_v36 }
 0x233   :  { %7923 = vmatpush3.msra.mxu0 %v8693_v43  ;;  %v577_v43 = vmul.f32 %v8864_v41, %v8864_v41 }
 0x234   :  { %7924 = vmatprep.subr.mxu0 %v13075_v0  ;;  %659 = vadd.xlane.f32.xlu1 %v580_v38 }
 0x235   :  { %7925 = vmatpush3.msra.mxu0 %v8687_v40  ;;  %v532_v40 = vld [vmem:[#allocation10 + $0x108] sm:$0xff]  ;;  %653 = vadd.xlane.f32.xlu0 %v577_v43 }
 0x236   :  { %7929 = vmatprep.subr.mxu0 %v13075_v0  ;;  %v582_v42 = vmul.f32 %v532_v40, %v532_v40 }
 0x238   :  { %663 = vadd.xlane.f32.xlu1 %v582_v42 }
 0x239   :  { %657 = vadd.xlane.f32.xlu0 %v579_v47 }
 0x23c   :  { %667 = vadd.xlane.f32.xlu1 %v584_v46 }
 0x23d   :  { %661 = vadd.xlane.f32.xlu0 %v581_v51 }
 0x240   :  { %671 = vadd.xlane.f32.xlu1 %v586_v50 }
 0x241   :  { %665 = vadd.xlane.f32.xlu0 %v583_v55 }
 0x244   :  { %675 = vadd.xlane.f32.xlu1 %v588_v54 }
 0x245   :  { %669 = vadd.xlane.f32.xlu0 %v585_v59 }
 0x248   :  { %679 = vadd.xlane.f32.xlu1 %v590_v58 }
 0x249   :  { %673 = vadd.xlane.f32.xlu0 %v587_v63 }
 0x24c   :  { %683 = vadd.xlane.f32.xlu1 %v592_v62 }
 0x24d   :  { %677 = vadd.xlane.f32.xlu0 %v589_v6 }
 0x250   :  { %687 = vadd.xlane.f32.xlu1 %v594_v4 }
 0x251   :  { %681 = vadd.xlane.f32.xlu0 %v591_v13 }
 0x254   :  { %691 = vadd.xlane.f32.xlu1 %v596_v12 }
 0x255   :  { %685 = vadd.xlane.f32.xlu0 %v593_v16 }
 0x259   :  { %689 = vadd.xlane.f32.xlu0 %v595_v19 }
 0x265   :  { %701 = vbcast.lane.b32.xlu1 %v694_v22, 264 }
 0x269   :  { %705 = vbcast.lane.b32.xlu1 %v694_v22, 272 }
 0x26d   :  { %709 = vbcast.lane.b32.xlu1 %v694_v22, 280 }
 0x26f   :  { %697 = vbcast.lane.b32.xlu0 %v694_v22, 256 }
 0x271   :  { %717 = vbcast.lane.b32.xlu1 %v694_v22, 296 }
 0x273   :  { %713 = vbcast.lane.b32.xlu0 %v694_v22, 288 }
 0x275   :  { %725 = vbcast.lane.b32.xlu1 %v694_v22, 312 }
 0x277   :  { %721 = vbcast.lane.b32.xlu0 %v694_v22, 304 }
 0x279   :  { %733 = vbcast.lane.b32.xlu1 %v694_v22, 328 }
 0x27b   :  { %729 = vbcast.lane.b32.xlu0 %v694_v22, 320 }
 0x27d   :  { %741 = vbcast.lane.b32.xlu1 %v694_v22, 344 }
 0x27f   :  { %737 = vbcast.lane.b32.xlu0 %v694_v22, 336 }
 0x281   :  { %749 = vbcast.lane.b32.xlu1 %v694_v22, 360 }
 0x283   :  { %745 = vbcast.lane.b32.xlu0 %v694_v22, 352 }
 0x285   :  { %757 = vbcast.lane.b32.xlu1 %v694_v22, 376 }
 0x287   :  { %753 = vbcast.lane.b32.xlu0 %v694_v22, 368 }
 0x2d6   :  { %v493_v25 = vpop.f32.mrf.mxu0 }
 0x2d7   :  { %v8879_v27 = vadd.f32 %v7601_v23, %v493_v25 }
 0x2d8   :  { %v7857_v29 = vpop.f32.mrf.mxu0 }
 0x2d9   :  { %13201 = vst [vmem:[#allocation28_spill] sm:$0xff] %v8879_v27  ;;  %7892 = vmatmul.mubr.f32.vlgmr.msra.gmra.mxu1 %v8879_v27 }
 0x2da   :  { %v496_v31 = vpop.f32.mrf.mxu0  ;;  %7965 = vmatpush3.msra.mxu1 %v8856_v36  ;;  %7996 = vmatprep.mubr.msk.f32.mxu1 %vm13173_vm0, %v13075_v0 }
 0x2db   :  { %7966 = vmatprep.subr.mxu1 %v13075_v0 }
 0x2dc   :  { %v7858_v34 = vpop.f32.mrf.mxu0  ;;  %7967 = vmatpush3.msra.mxu1 %v8868_v45  ;;  %v8961_v45 = vshrl.u32 %v547_v18, 7 }
 0x2dd   :  { %7968 = vmatprep.subr.mxu1 %v13075_v0 }
 0x2de   :  { %7969 = vmatpush3.msra.mxu1 %v8848_v32  ;;  %13216 = vst [vmem:[#allocation43_spill] sm:$0xff] %v8961_v45  ;;  %v8968_v48 = vsub.s32 0, %v8961_v45  ;;  %v8997_v1 = vsub.s32 1, %v8961_v45  ;;  %v9024_v21 = vsub.s32 2, %v8961_v45 }
 0x2df   :  { %7970 = vmatprep.subr.mxu1 %v13075_v0 }
 0x2e0   :  { %7971 = vmatpush3.msra.mxu1 %v8864_v41  ;;  %13219 = vst [vmem:[#allocation46_spill] sm:$0xff] %v8968_v48  ;;  %13231 = vst [vmem:[#allocation58_spill] sm:$0xff] %v8997_v1 }
 0x2e1   :  { %7972 = vmatprep.subr.mxu1 %v13075_v0  ;;  %13243 = vst [vmem:[#allocation70_spill] sm:$0xff] %v9024_v21 }
 0x2e2   :  { %7973 = vmatpush3.msra.mxu1 %v8840_v28 }
 0x2e3   :  { %7974 = vmatprep.subr.mxu1 %v13075_v0 }
 0x2e4   :  { %7975 = vmatpush3.msra.mxu1 %v8858_v37 }
 0x2e5   :  { %7976 = vmatprep.subr.mxu1 %v13075_v0 }
 0x2e6   :  { %7977 = vmatpush3.msra.mxu1 %v8832_v24 }
 0x2e7   :  { %7978 = vmatprep.subr.mxu1 %v13075_v0 }
 0x2e8   :  { %7979 = vmatpush3.msra.mxu1 %v8850_v33 }
 0x2e9   :  { %7980 = vmatprep.subr.mxu1 %v13075_v0 }
 0x2ea   :  { %7981 = vmatpush3.msra.mxu1 %v8780_v14 }
 0x2eb   :  { %7982 = vmatprep.subr.mxu1 %v13075_v0 }
 0x2ec   :  { %7983 = vmatpush3.msra.mxu1 %v8844_v30 }
 0x2ed   :  { %7984 = vmatprep.subr.mxu1 %v13075_v0 }
 0x2ee   :  { %7985 = vmatpush3.msra.mxu1 %v8772_v11  ;;  %v8916_v11 = vpop.xlane.xlu1 %601 }
 0x2ef   :  { %7986 = vmatprep.subr.mxu1 %v13075_v0 }
 0x2f0   :  { %7987 = vmatpush3.msra.mxu1 %v8836_v26 }
 0x2f1   :  { %7988 = vmatprep.subr.mxu1 %v13075_v0 }
 0x2f2   :  { %7989 = vmatpush3.msra.mxu1 %v8762_v7  ;;  %v8918_v14 = vpop.xlane.xlu1 %603  ;;  %v8922_v7 = vpop.xlane.xlu0 %597 }
 0x2f3   :  { %7990 = vmatprep.subr.mxu1 %v13075_v0 }
 0x2f4   :  { %7991 = vmatpush3.msra.mxu1 %v8767_v9 }
 0x2f5   :  { %7992 = vmatprep.subr.mxu1 %v13075_v0 }
 0x2f6   :  { %7993 = vmatpush3.msra.mxu1 %v8752_v3  ;;  %v8920_v24 = vpop.xlane.xlu1 %607  ;;  %v8926_v9 = vpop.xlane.xlu0 %599 }
 0x2f7   :  { %7994 = vmatprep.subr.mxu1 %v13075_v0 }
 0x2f8   :  { %7995 = vmatpush3.msra.mxu1 %v8757_v5 }
 0x2f9   :  { %7999 = vmatprep.subr.mxu1 %v13075_v0 }
 0x2fa   :  { %v8924_v26 = vpop.xlane.xlu1 %611  ;;  %v8930_v3 = vpop.xlane.xlu0 %605 }
 0x2fe   :  { %v8928_v28 = vpop.xlane.xlu1 %615  ;;  %v8934_v5 = vpop.xlane.xlu0 %609 }
 0x2ff   :  { %13202 = vst [vmem:[#allocation29_spill] sm:$0xff] %v8928_v28 }
 0x302   :  { %v8932_v30 = vpop.xlane.xlu1 %619  ;;  %v8938_v33 = vpop.xlane.xlu0 %613 }
 0x303   :  { %13203 = vst [vmem:[#allocation30_spill] sm:$0xff] %v8932_v30  ;;  %13205 = vst [vmem:[#allocation32_spill] sm:$0xff] %v8938_v33 }
 0x306   :  { %v8936_v32 = vpop.xlane.xlu1 %623  ;;  %v8942_v36 = vpop.xlane.xlu0 %617 }
 0x307   :  { %13204 = vst [vmem:[#allocation31_spill] sm:$0xff] %v8936_v32  ;;  %13207 = vst [vmem:[#allocation34_spill] sm:$0xff] %v8942_v36 }
 0x30a   :  { %v8940_v35 = vpop.xlane.xlu1 %627  ;;  %v8946_v38 = vpop.xlane.xlu0 %621 }
 0x30b   :  { %13206 = vst [vmem:[#allocation33_spill] sm:$0xff] %v8940_v35  ;;  %13209 = vst [vmem:[#allocation36_spill] sm:$0xff] %v8946_v38 }
 0x30e   :  { %v8944_v37 = vpop.xlane.xlu1 %631  ;;  %v8950_v40 = vpop.xlane.xlu0 %625 }
 0x30f   :  { %13208 = vst [vmem:[#allocation35_spill] sm:$0xff] %v8944_v37  ;;  %13211 = vst [vmem:[#allocation38_spill] sm:$0xff] %v8950_v40 }
 0x312   :  { %v8948_v39 = vpop.xlane.xlu1 %635  ;;  %v8954_v42 = vpop.xlane.xlu0 %629 }
 0x313   :  { %13210 = vst [vmem:[#allocation37_spill] sm:$0xff] %v8948_v39  ;;  %13213 = vst [vmem:[#allocation40_spill] sm:$0xff] %v8954_v42 }
 0x316   :  { %v8952_v41 = vpop.xlane.xlu1 %639  ;;  %v8958_v44 = vpop.xlane.xlu0 %633 }
 0x317   :  { %13212 = vst [vmem:[#allocation39_spill] sm:$0xff] %v8952_v41  ;;  %13215 = vst [vmem:[#allocation42_spill] sm:$0xff] %v8958_v44  ;;  %v9133_v41 = vsub.s32 7, %v8961_v45 }
 0x319   :  { %13268 = vst [vmem:[#allocation95_spill] sm:$0xff] %v9133_v41 }
 0x31a   :  { %v8956_v43 = vpop.xlane.xlu1 %643  ;;  %v8965_v47 = vpop.xlane.xlu0 %637 }
 0x31b   :  { %13214 = vst [vmem:[#allocation41_spill] sm:$0xff] %v8956_v43  ;;  %13218 = vst [vmem:[#allocation45_spill] sm:$0xff] %v8965_v47 }
 0x31e   :  { %v8963_v46 = vpop.xlane.xlu1 %647  ;;  %v8974_v53 = vpop.xlane.xlu0 %641 }
 0x31f   :  { %13217 = vst [vmem:[#allocation44_spill] sm:$0xff] %v8963_v46  ;;  %13221 = vst [vmem:[#allocation48_spill] sm:$0xff] %v8974_v53 }
 0x322   :  { %v8970_v50 = vpop.xlane.xlu1 %651  ;;  %v8980_v56 = vpop.xlane.xlu0 %645 }
 0x323   :  { %13220 = vst [vmem:[#allocation47_spill] sm:$0xff] %v8970_v50  ;;  %13223 = vst [vmem:[#allocation50_spill] sm:$0xff] %v8980_v56  ;;  %v8506_v56 = vmov 0  }
 0x324   :  { %8156 = vset.pattern.permute.xlu1 %v8506_v56  ;;  %8155 = vset.pattern.permute.xlu0 %v8506_v56 }
 0x326   :  { %v8978_v55 = vpop.xlane.xlu1 %655  ;;  %v8984_v58 = vpop.xlane.xlu0 %649 }
 0x327   :  { %13222 = vst [vmem:[#allocation49_spill] sm:$0xff] %v8978_v55  ;;  %13225 = vst [vmem:[#allocation52_spill] sm:$0xff] %v8984_v58 }
 0x32a   :  { %v8982_v57 = vpop.xlane.xlu1 %659  ;;  %v8988_v60 = vpop.xlane.xlu0 %653 }
 0x32b   :  { %13224 = vst [vmem:[#allocation51_spill] sm:$0xff] %v8982_v57  ;;  %13227 = vst [vmem:[#allocation54_spill] sm:$0xff] %v8988_v60 }
 0x32e   :  { %v8986_v59 = vpop.xlane.xlu1 %663  ;;  %v8992_v62 = vpop.xlane.xlu0 %657 }
 0x32f   :  { %13226 = vst [vmem:[#allocation53_spill] sm:$0xff] %v8986_v59  ;;  %13229 = vst [vmem:[#allocation56_spill] sm:$0xff] %v8992_v62  ;;  %v9108_v62 = vsub.s32 6, %v8961_v45 }
 0x331   :  { %13265 = vst [vmem:[#allocation92_spill] sm:$0xff] %v9108_v62 }
 0x332   :  { %v8990_v61 = vpop.xlane.xlu1 %667  ;;  %v8999_v2 = vpop.xlane.xlu0 %661 }
 0x333   :  { %13228 = vst [vmem:[#allocation55_spill] sm:$0xff] %v8990_v61  ;;  %13232 = vst [vmem:[#allocation59_spill] sm:$0xff] %v8999_v2 }
 0x336   :  { %v8994_v63 = vpop.xlane.xlu1 %671  ;;  %v9005_v8 = vpop.xlane.xlu0 %665 }
 0x337   :  { %13230 = vst [vmem:[#allocation57_spill] sm:$0xff] %v8994_v63  ;;  %13234 = vst [vmem:[#allocation61_spill] sm:$0xff] %v9005_v8 }
 0x33a   :  { %v9003_v6 = vpop.xlane.xlu1 %675  ;;  %v9009_v12 = vpop.xlane.xlu0 %669 }
 0x33b   :  { %13233 = vst [vmem:[#allocation60_spill] sm:$0xff] %v9003_v6  ;;  %13236 = vst [vmem:[#allocation63_spill] sm:$0xff] %v9009_v12  ;;  %v9089_v12 = vsub.s32 5, %v8961_v45 }
 0x33d   :  { %13264 = vst [vmem:[#allocation91_spill] sm:$0xff] %v9089_v12 }
 0x33e   :  { %v9007_v10 = vpop.xlane.xlu1 %679  ;;  %v9013_v15 = vpop.xlane.xlu0 %673 }
 0x33f   :  { %13235 = vst [vmem:[#allocation62_spill] sm:$0xff] %v9007_v10  ;;  %13238 = vst [vmem:[#allocation65_spill] sm:$0xff] %v9013_v15 }
 0x342   :  { %v9011_v13 = vpop.xlane.xlu1 %683  ;;  %v9017_v17 = vpop.xlane.xlu0 %677 }
 0x343   :  { %13237 = vst [vmem:[#allocation64_spill] sm:$0xff] %v9011_v13  ;;  %13240 = vst [vmem:[#allocation67_spill] sm:$0xff] %v9017_v17 }
 0x346   :  { %v9015_v16 = vpop.xlane.xlu1 %687  ;;  %v9021_v19 = vpop.xlane.xlu0 %681 }
 0x347   :  { %13239 = vst [vmem:[#allocation66_spill] sm:$0xff] %v9015_v16  ;;  %13242 = vst [vmem:[#allocation69_spill] sm:$0xff] %v9021_v19 }
 0x34a   :  { %v9019_v18 = vpop.xlane.xlu1 %691  ;;  %v9030_v25 = vpop.xlane.xlu0 %685 }
 0x34b   :  { %13241 = vst [vmem:[#allocation68_spill] sm:$0xff] %v9019_v18  ;;  %13245 = vst [vmem:[#allocation72_spill] sm:$0xff] %v9030_v25  ;;  %v9049_v18 = vsub.s32 3, %v8961_v45 }
 0x34d   :  { %13254 = vst [vmem:[#allocation81_spill] sm:$0xff] %v9049_v18 }
 0x34e   :  { %v9026_v22 = vpop.permute.xlu1 %701  ;;  %v9034_v31 = vpop.xlane.xlu0 %689 }
 0x34f   :  { %13244 = vst [vmem:[#allocation71_spill] sm:$0xff] %v9026_v22  ;;  %13247 = vst [vmem:[#allocation74_spill] sm:$0xff] %v9034_v31 }
 0x352   :  { %v9032_v29 = vpop.permute.xlu1 %705 }
 0x353   :  { %13246 = vst [vmem:[#allocation73_spill] sm:$0xff] %v9032_v29 }
 0x356   :  { %v9036_v34 = vpop.permute.xlu1 %709 }
 0x357   :  { %13248 = vst [vmem:[#allocation75_spill] sm:$0xff] %v9036_v34 }
 0x399   :  { %v889_v49 = vpop.f32.mrf.mxu1 }
 0x39a   :  { %v8972_v51 = vmul.f32 2.0, %v889_v49  ;;  %v9038_v49 = vpop.permute.xlu0 %697 }
 0x39b   :  { %v7893_v52 = vpop.f32.mrf.mxu1  ;;  %13249 = vst [vmem:[#allocation76_spill] sm:$0xff] %v9038_v49 }
 0x39c   :  { %v898_v54 = vrot.slane %v8972_v51, %v8968_v48  ;;  %v965_v4 = vrot.slane %v8972_v51, %v8997_v1  ;;  %v1032_v23 = vrot.slane %v8972_v51, %v9024_v21  ;;  %v9040_v52 = vpop.permute.xlu1 %717  ;;  %v9057_v25 = vrot.slane %v8972_v51, %v9049_v18 }
 0x39d   :  { %13250 = vst [vmem:[#allocation77_spill] sm:$0xff] %v9040_v52  ;;  %v9099_v8 = vrot.slane %v8972_v51, %v9089_v12  ;;  %v9118_v50 = vrot.slane %v8972_v51, %v9108_v62  ;;  %v9143_v56 = vrot.slane %v8972_v51, %v9133_v41 }
 0x39e   :  { %904 = vbcast.lane.b32.xlu1 %v898_v54, 264  ;;  %900 = vbcast.lane.b32.xlu0 %v898_v54, 256 }
 0x3a2   :  { %912 = vbcast.lane.b32.xlu1 %v898_v54, 280  ;;  %908 = vbcast.lane.b32.xlu0 %v898_v54, 272 }
 0x3a6   :  { %920 = vbcast.lane.b32.xlu1 %v898_v54, 296  ;;  %916 = vbcast.lane.b32.xlu0 %v898_v54, 288 }
 0x3aa   :  { %928 = vbcast.lane.b32.xlu1 %v898_v54, 312  ;;  %924 = vbcast.lane.b32.xlu0 %v898_v54, 304 }
 0x3ae   :  { %936 = vbcast.lane.b32.xlu1 %v898_v54, 328  ;;  %932 = vbcast.lane.b32.xlu0 %v898_v54, 320 }
 0x3b2   :  { %944 = vbcast.lane.b32.xlu1 %v898_v54, 344  ;;  %940 = vbcast.lane.b32.xlu0 %v898_v54, 336 }
 0x3b6   :  { %952 = vbcast.lane.b32.xlu1 %v898_v54, 360  ;;  %948 = vbcast.lane.b32.xlu0 %v898_v54, 352 }
 0x3ba   :  { %960 = vbcast.lane.b32.xlu1 %v898_v54, 376  ;;  %956 = vbcast.lane.b32.xlu0 %v898_v54, 368  ;;  %v9042_v54 = vpop.permute.xlu0 %713 }
 0x3bb   :  { %13251 = vst [vmem:[#allocation78_spill] sm:$0xff] %v9042_v54 }
 0x3be   :  { %971 = vbcast.lane.b32.xlu1 %v965_v4, 264  ;;  %967 = vbcast.lane.b32.xlu0 %v965_v4, 256  ;;  %v9046_v0 = vpop.permute.xlu0 %721 }
 0x3bf   :  { %13253 = vst [vmem:[#allocation80_spill] sm:$0xff] %v9046_v0 }
 0x3c2   :  { %979 = vbcast.lane.b32.xlu1 %v965_v4, 280  ;;  %975 = vbcast.lane.b32.xlu0 %v965_v4, 272  ;;  %v9053_v16 = vpop.permute.xlu0 %729 }
 0x3c3   :  { %13256 = vst [vmem:[#allocation83_spill] sm:$0xff] %v9053_v16 }
 0x3c6   :  { %987 = vbcast.lane.b32.xlu1 %v965_v4, 296  ;;  %983 = vbcast.lane.b32.xlu0 %v965_v4, 288  ;;  %v9063_v19 = vpop.permute.xlu0 %737 }
 0x3c7   :  { %13258 = vst [vmem:[#allocation85_spill] sm:$0xff] %v9063_v19 }
 0x3ca   :  { %995 = vbcast.lane.b32.xlu1 %v965_v4, 312  ;;  %991 = vbcast.lane.b32.xlu0 %v965_v4, 304  ;;  %v9069_v17 = vpop.permute.xlu0 %745 }
 0x3cb   :  { %13260 = vst [vmem:[#allocation87_spill] sm:$0xff] %v9069_v17 }
 0x3ce   :  { %1003 = vbcast.lane.b32.xlu1 %v965_v4, 328  ;;  %999 = vbcast.lane.b32.xlu0 %v965_v4, 320  ;;  %v9080_v15 = vpop.permute.xlu0 %753 }
 0x3cf   :  { %13263 = vst [vmem:[#allocation90_spill] sm:$0xff] %v9080_v15 }
 0x3d2   :  { %1011 = vbcast.lane.b32.xlu1 %v965_v4, 344  ;;  %1007 = vbcast.lane.b32.xlu0 %v965_v4, 336 }
 0x3d6   :  { %1019 = vbcast.lane.b32.xlu1 %v965_v4, 360  ;;  %1015 = vbcast.lane.b32.xlu0 %v965_v4, 352 }
 0x3da   :  { %1027 = vbcast.lane.b32.xlu1 %v965_v4, 376  ;;  %1023 = vbcast.lane.b32.xlu0 %v965_v4, 368  ;;  %v9044_v4 = vpop.permute.xlu1 %725 }
 0x3db   :  { %13252 = vst [vmem:[#allocation79_spill] sm:$0xff] %v9044_v4 }
 0x3de   :  { %1038 = vbcast.lane.b32.xlu1 %v1032_v23, 264  ;;  %1034 = vbcast.lane.b32.xlu0 %v1032_v23, 256  ;;  %v9051_v31 = vpop.permute.xlu1 %733 }
 0x3df   :  { %13255 = vst [vmem:[#allocation82_spill] sm:$0xff] %v9051_v31 }
 0x3e2   :  { %1046 = vbcast.lane.b32.xlu1 %v1032_v23, 280  ;;  %1042 = vbcast.lane.b32.xlu0 %v1032_v23, 272  ;;  %v9061_v13 = vpop.permute.xlu1 %741 }
 0x3e3   :  { %13257 = vst [vmem:[#allocation84_spill] sm:$0xff] %v9061_v13 }
 0x3e6   :  { %1054 = vbcast.lane.b32.xlu1 %v1032_v23, 296  ;;  %1050 = vbcast.lane.b32.xlu0 %v1032_v23, 288  ;;  %v9067_v10 = vpop.permute.xlu1 %749 }
 0x3e7   :  { %13259 = vst [vmem:[#allocation86_spill] sm:$0xff] %v9067_v10 }
 0x3ea   :  { %1062 = vbcast.lane.b32.xlu1 %v1032_v23, 312  ;;  %1058 = vbcast.lane.b32.xlu0 %v1032_v23, 304  ;;  %v9078_v6 = vpop.permute.xlu1 %757 }
 0x3eb   :  { %13262 = vst [vmem:[#allocation89_spill] sm:$0xff] %v9078_v6 }
 0x3ee   :  { %1070 = vbcast.lane.b32.xlu1 %v1032_v23, 328  ;;  %1066 = vbcast.lane.b32.xlu0 %v1032_v23, 320 }
 0x3f2   :  { %1078 = vbcast.lane.b32.xlu1 %v1032_v23, 344  ;;  %1074 = vbcast.lane.b32.xlu0 %v1032_v23, 336 }
 0x3f6   :  { %1086 = vbcast.lane.b32.xlu1 %v1032_v23, 360  ;;  %1082 = vbcast.lane.b32.xlu0 %v1032_v23, 352 }
 0x3fa   :  { %1094 = vbcast.lane.b32.xlu1 %v1032_v23, 376  ;;  %1090 = vbcast.lane.b32.xlu0 %v1032_v23, 368  ;;  %v9076_v23 = vsub.s32 4, %v8961_v45 }
 0x3fc   :  { %13261 = vst [vmem:[#allocation88_spill] sm:$0xff] %v9076_v23  ;;  %v9086_v63 = vrot.slane %v8972_v51, %v9076_v23 }
 0x3fe   :  { %1105 = vbcast.lane.b32.xlu1 %v9057_v25, 264  ;;  %1101 = vbcast.lane.b32.xlu0 %v9057_v25, 256 }
 0x402   :  { %1113 = vbcast.lane.b32.xlu1 %v9057_v25, 280  ;;  %1109 = vbcast.lane.b32.xlu0 %v9057_v25, 272 }
 0x406   :  { %1121 = vbcast.lane.b32.xlu1 %v9057_v25, 296  ;;  %1117 = vbcast.lane.b32.xlu0 %v9057_v25, 288 }
 0x40a   :  { %1129 = vbcast.lane.b32.xlu1 %v9057_v25, 312  ;;  %1125 = vbcast.lane.b32.xlu0 %v9057_v25, 304 }
 0x40e   :  { %1137 = vbcast.lane.b32.xlu1 %v9057_v25, 328  ;;  %1133 = vbcast.lane.b32.xlu0 %v9057_v25, 320 }
 0x410   :  { %v9091_v2 = vpop.permute.xlu1 %904  ;;  %v9093_v61 = vpop.permute.xlu0 %900 }
 0x412   :  { %1172 = vbcast.lane.b32.xlu1 %v9086_v63, 264  ;;  %1168 = vbcast.lane.b32.xlu0 %v9086_v63, 256 }
 0x414   :  { %v9101_v59 = vpop.permute.xlu1 %912  ;;  %v9103_v57 = vpop.permute.xlu0 %908 }
 0x416   :  { %1235 = vbcast.lane.b32.xlu1 %v9099_v8, 256  ;;  %1176 = vbcast.lane.b32.xlu0 %v9086_v63, 272 }
 0x418   :  { %v9110_v55 = vpop.permute.xlu1 %920  ;;  %v9112_v60 = vpop.permute.xlu0 %916 }
 0x41a   :  { %1180 = vbcast.lane.b32.xlu1 %v9086_v63, 280  ;;  %1239 = vbcast.lane.b32.xlu0 %v9099_v8, 264 }
 0x41c   :  { %v9120_v58 = vpop.permute.xlu1 %928  ;;  %v9122_v46 = vpop.permute.xlu0 %924 }
 0x41e   :  { %1302 = vbcast.lane.b32.xlu1 %v9118_v50, 256  ;;  %1243 = vbcast.lane.b32.xlu0 %v9099_v8, 272 }
 0x420   :  { %v9126_v43 = vpop.permute.xlu1 %936  ;;  %v9128_v53 = vpop.permute.xlu0 %932 }
 0x421   :  { %13266 = vst [vmem:[#allocation93_spill] sm:$0xff] %v9126_v43  ;;  %13267 = vst [vmem:[#allocation94_spill] sm:$0xff] %v9128_v53  ;;  %v9323_v53 = vadd.f32 %v9038_v49, %v8922_v7 }
 0x422   :  { %1184 = vbcast.lane.b32.xlu1 %v9086_v63, 288  ;;  %1306 = vbcast.lane.b32.xlu0 %v9118_v50, 264 }
 0x424   :  { %v9135_v47 = vpop.permute.xlu1 %944  ;;  %v9137_v42 = vpop.permute.xlu0 %940 }
 0x425   :  { %13269 = vst [vmem:[#allocation96_spill] sm:$0xff] %v9135_v47  ;;  %13270 = vst [vmem:[#allocation97_spill] sm:$0xff] %v9137_v42 }
 0x426   :  { %1310 = vbcast.lane.b32.xlu1 %v9118_v50, 272  ;;  %1247 = vbcast.lane.b32.xlu0 %v9099_v8, 280 }
 0x428   :  { %v9145_v39 = vpop.permute.xlu1 %952  ;;  %v9147_v44 = vpop.permute.xlu0 %948 }
 0x429   :  { %13271 = vst [vmem:[#allocation98_spill] sm:$0xff] %v9145_v39  ;;  %13272 = vst [vmem:[#allocation99_spill] sm:$0xff] %v9147_v44 }
 0x42a   :  { %1373 = vbcast.lane.b32.xlu1 %v9143_v56, 264  ;;  %1369 = vbcast.lane.b32.xlu0 %v9143_v56, 256 }
 0x42c   :  { %v9151_v37 = vpop.permute.xlu1 %960  ;;  %v9153_v62 = vpop.permute.xlu0 %956 }
 0x42d   :  { %13273 = vst [vmem:[#allocation100_spill] sm:$0xff] %v9151_v37  ;;  %13274 = vst [vmem:[#allocation101_spill] sm:$0xff] %v9153_v62 }
 0x42e   :  { %1251 = vbcast.lane.b32.xlu1 %v9099_v8, 288  ;;  %1188 = vbcast.lane.b32.xlu0 %v9086_v63, 296 }
 0x430   :  { %v9157_v18 = vpop.permute.xlu1 %971  ;;  %v9159_v51 = vpop.permute.xlu0 %967 }
 0x432   :  { %1377 = vbcast.lane.b32.xlu1 %v9143_v56, 272  ;;  %1314 = vbcast.lane.b32.xlu0 %v9118_v50, 280 }
 0x434   :  { %v9163_v41 = vpop.permute.xlu1 %979  ;;  %v9165_v12 = vpop.permute.xlu0 %975 }
 0x436   :  { %1255 = vbcast.lane.b32.xlu1 %v9099_v8, 296  ;;  %1192 = vbcast.lane.b32.xlu0 %v9086_v63, 304 }
 0x438   :  { %v9169_v23 = vpop.permute.xlu1 %987  ;;  %v9171_v21 = vpop.permute.xlu0 %983 }
 0x43a   :  { %1381 = vbcast.lane.b32.xlu1 %v9143_v56, 280  ;;  %1318 = vbcast.lane.b32.xlu0 %v9118_v50, 288 }
 0x43c   :  { %v9175_v1 = vpop.permute.xlu1 %995  ;;  %v9177_v48 = vpop.permute.xlu0 %991 }
 0x43e   :  { %1259 = vbcast.lane.b32.xlu1 %v9099_v8, 304  ;;  %1196 = vbcast.lane.b32.xlu0 %v9086_v63, 312 }
 0x440   :  { %v9181_v27 = vpop.permute.xlu1 %1003  ;;  %v9183_v45 = vpop.permute.xlu0 %999 }
 0x441   :  { %13275 = vst [vmem:[#allocation102_spill] sm:$0xff] %v9181_v27  ;;  %13276 = vst [vmem:[#allocation103_spill] sm:$0xff] %v9183_v45  ;;  %v9319_v45 = vadd.f32 %v9026_v22, %v8926_v9  ;;  %v1575_v9 = vsub.f32 %v9323_v53, %v9159_v51 }
 0x442   :  { %1385 = vbcast.lane.b32.xlu1 %v9143_v56, 288  ;;  %1322 = vbcast.lane.b32.xlu0 %v9118_v50, 296 }
 0x443   :  { %v1576_v7 = vsub.f32 %v9319_v45, %v9157_v18 }
 0x444   :  { %v9187_v20 = vpop.permute.xlu1 %1011  ;;  %v9189_v37 = vpop.permute.xlu0 %1007 }
 0x445   :  { %13277 = vst [vmem:[#allocation104_spill] sm:$0xff] %v9187_v20  ;;  %13278 = vst [vmem:[#allocation105_spill] sm:$0xff] %v9189_v37 }
 0x446   :  { %1263 = vbcast.lane.b32.xlu1 %v9099_v8, 312  ;;  %1200 = vbcast.lane.b32.xlu0 %v9086_v63, 320 }
 0x448   :  { %v9193_v6 = vpop.permute.xlu1 %1019  ;;  %v9195_v35 = vpop.permute.xlu0 %1015 }
 0x449   :  { %13279 = vst [vmem:[#allocation106_spill] sm:$0xff] %v9193_v6  ;;  %13280 = vst [vmem:[#allocation107_spill] sm:$0xff] %v9195_v35 }
 0x44a   :  { %1389 = vbcast.lane.b32.xlu1 %v9143_v56, 296  ;;  %1326 = vbcast.lane.b32.xlu0 %v9118_v50, 304 }
 0x44c   :  { %v9199_v62 = vpop.permute.xlu1 %1027  ;;  %v9201_v15 = vpop.permute.xlu0 %1023 }
 0x44d   :  { %13281 = vst [vmem:[#allocation108_spill] sm:$0xff] %v9199_v62  ;;  %13282 = vst [vmem:[#allocation109_spill] sm:$0xff] %v9201_v15 }
 0x44e   :  { %1204 = vbcast.lane.b32.xlu1 %v9086_v63, 328  ;;  %1141 = vbcast.lane.b32.xlu0 %v9057_v25, 336 }
 0x450   :  { %v9205_v40 = vpop.permute.xlu1 %1038  ;;  %v9207_v39 = vpop.permute.xlu0 %1034 }
 0x451   :  { %v1592_v51 = vsub.f32 %v9319_v45, %v9205_v40 }
 0x452   :  { %1330 = vbcast.lane.b32.xlu1 %v9118_v50, 312  ;;  %1267 = vbcast.lane.b32.xlu0 %v9099_v8, 320 }
 0x454   :  { %v9211_v6 = vpop.permute.xlu1 %1046  ;;  %v9213_v10 = vpop.permute.xlu0 %1042 }
 0x456   :  { %1145 = vbcast.lane.b32.xlu1 %v9057_v25, 344  ;;  %1393 = vbcast.lane.b32.xlu0 %v9143_v56, 304 }
 0x458   :  { %v9217_v62 = vpop.permute.xlu1 %1054  ;;  %v9219_v15 = vpop.permute.xlu0 %1050 }
 0x45a   :  { %1271 = vbcast.lane.b32.xlu1 %v9099_v8, 328  ;;  %1208 = vbcast.lane.b32.xlu0 %v9086_v63, 336 }
 0x45c   :  { %v9223_v32 = vpop.permute.xlu1 %1062  ;;  %v9225_v35 = vpop.permute.xlu0 %1058 }
 0x45d   :  { %13283 = vst [vmem:[#allocation110_spill] sm:$0xff] %v9223_v32 }
 0x45e   :  { %1397 = vbcast.lane.b32.xlu1 %v9143_v56, 312  ;;  %1334 = vbcast.lane.b32.xlu0 %v9118_v50, 320 }
 0x460   :  { %v9229_v44 = vpop.permute.xlu1 %1070  ;;  %v9231_v17 = vpop.permute.xlu0 %1066 }
 0x461   :  { %13284 = vst [vmem:[#allocation111_spill] sm:$0xff] %v9229_v44  ;;  %13285 = vst [vmem:[#allocation112_spill] sm:$0xff] %v9231_v17 }
 0x462   :  { %1212 = vbcast.lane.b32.xlu1 %v9086_v63, 344  ;;  %1149 = vbcast.lane.b32.xlu0 %v9057_v25, 352 }
 0x464   :  { %v9235_v38 = vpop.permute.xlu1 %1078  ;;  %v9237_v20 = vpop.permute.xlu0 %1074 }
 0x465   :  { %13286 = vst [vmem:[#allocation113_spill] sm:$0xff] %v9235_v38  ;;  %13287 = vst [vmem:[#allocation114_spill] sm:$0xff] %v9237_v20 }
 0x466   :  { %1338 = vbcast.lane.b32.xlu1 %v9118_v50, 328  ;;  %1275 = vbcast.lane.b32.xlu0 %v9099_v8, 336 }
 0x468   :  { %v9241_v47 = vpop.permute.xlu1 %1086  ;;  %v9243_v13 = vpop.permute.xlu0 %1082 }
 0x469   :  { %13288 = vst [vmem:[#allocation115_spill] sm:$0xff] %v9241_v47  ;;  %13289 = vst [vmem:[#allocation116_spill] sm:$0xff] %v9243_v13 }
 0x46a   :  { %1153 = vbcast.lane.b32.xlu1 %v9057_v25, 360  ;;  %1401 = vbcast.lane.b32.xlu0 %v9143_v56, 320 }
 0x46c   :  { %v9247_v30 = vpop.permute.xlu1 %1094  ;;  %v9249_v44 = vpop.permute.xlu0 %1090 }
 0x46d   :  { %13290 = vst [vmem:[#allocation117_spill] sm:$0xff] %v9247_v30  ;;  %13291 = vst [vmem:[#allocation118_spill] sm:$0xff] %v9249_v44 }
 0x46e   :  { %1279 = vbcast.lane.b32.xlu1 %v9099_v8, 344  ;;  %1216 = vbcast.lane.b32.xlu0 %v9086_v63, 352 }
 0x470   :  { %v9253_v38 = vpop.permute.xlu1 %1105  ;;  %v9255_v20 = vpop.permute.xlu0 %1101 }
 0x472   :  { %1405 = vbcast.lane.b32.xlu1 %v9143_v56, 328  ;;  %1342 = vbcast.lane.b32.xlu0 %v9118_v50, 336 }
 0x474   :  { %v9259_v47 = vpop.permute.xlu1 %1113  ;;  %v9261_v13 = vpop.permute.xlu0 %1109 }
 0x476   :  { %1220 = vbcast.lane.b32.xlu1 %v9086_v63, 360  ;;  %1157 = vbcast.lane.b32.xlu0 %v9057_v25, 368 }
 0x478   :  { %v9265_v30 = vpop.permute.xlu1 %1121  ;;  %v9267_v44 = vpop.permute.xlu0 %1117 }
 0x47a   :  { %1346 = vbcast.lane.b32.xlu1 %v9118_v50, 344  ;;  %1283 = vbcast.lane.b32.xlu0 %v9099_v8, 352 }
 0x47c   :  { %v9271_v37 = vpop.permute.xlu1 %1129  ;;  %v9273_v42 = vpop.permute.xlu0 %1125 }
 0x47d   :  { %13292 = vst [vmem:[#allocation119_spill] sm:$0xff] %v9271_v37  ;;  %13293 = vst [vmem:[#allocation120_spill] sm:$0xff] %v9273_v42 }
 0x47e   :  { %1161 = vbcast.lane.b32.xlu1 %v9057_v25, 376  ;;  %1409 = vbcast.lane.b32.xlu0 %v9143_v56, 336 }
 0x480   :  { %v9277_v19 = vpop.permute.xlu1 %1137  ;;  %v9279_v36 = vpop.permute.xlu0 %1133 }
 0x481   :  { %13294 = vst [vmem:[#allocation121_spill] sm:$0xff] %v9277_v19  ;;  %13295 = vst [vmem:[#allocation122_spill] sm:$0xff] %v9279_v36 }
 0x482   :  { %1287 = vbcast.lane.b32.xlu1 %v9099_v8, 360  ;;  %1224 = vbcast.lane.b32.xlu0 %v9086_v63, 368 }
 0x484   :  { %v9283_v17 = vpop.permute.xlu1 %1172  ;;  %v9285_v27 = vpop.permute.xlu0 %1168 }
 0x486   :  { %1413 = vbcast.lane.b32.xlu1 %v9143_v56, 344  ;;  %1350 = vbcast.lane.b32.xlu0 %v9118_v50, 352 }
 0x488   :  { %v9289_v37 = vpop.permute.xlu1 %1235  ;;  %v9291_v25 = vpop.permute.xlu0 %1176 }
 0x48a   :  { %1291 = vbcast.lane.b32.xlu1 %v9099_v8, 368  ;;  %1228 = vbcast.lane.b32.xlu0 %v9086_v63, 376 }
 0x48c   :  { %v9295_v19 = vpop.permute.xlu1 %1180  ;;  %v9297_v36 = vpop.permute.xlu0 %1239 }
 0x48e   :  { %1417 = vbcast.lane.b32.xlu1 %v9143_v56, 352  ;;  %1354 = vbcast.lane.b32.xlu0 %v9118_v50, 360 }
 0x490   :  { %v9301_v43 = vpop.permute.xlu1 %1302  ;;  %v9303_v31 = vpop.permute.xlu0 %1243 }
 0x492   :  { %1358 = vbcast.lane.b32.xlu1 %v9118_v50, 368  ;;  %1295 = vbcast.lane.b32.xlu0 %v9099_v8, 376  ;;  %v1559_v8 = vsub.f32 %v9323_v53, %v9093_v61 }
 0x494   :  { %v9307_v28 = vpop.permute.xlu1 %1184  ;;  %v9309_v42 = vpop.permute.xlu0 %1306 }
 0x496   :  { %1362 = vbcast.lane.b32.xlu1 %v9118_v50, 376  ;;  %1421 = vbcast.lane.b32.xlu0 %v9143_v56, 360  ;;  %v1560_v50 = vsub.f32 %v9319_v45, %v9091_v2  ;;  %v9345_v2 = vadd.f32 %v9032_v29, %v8916_v11  ;;  %v1591_v11 = vsub.f32 %v9323_v53, %v9207_v39  ;;  %v13306_v29 = vld [vmem:[#allocation102_spill] sm:$0xff] }
 0x498   :  { %v9313_v63 = vpop.permute.xlu1 %1310  ;;  %v9315_v32 = vpop.permute.xlu0 %1247  ;;  %v1561_v61 = vsub.f32 %v9345_v2, %v9103_v57  ;;  %v9365_v57 = vadd.f32 %v9036_v34, %v8918_v14  ;;  %v1593_v39 = vsub.f32 %v9345_v2, %v9213_v10  ;;  %v1607_v14 = vsub.f32 %v9323_v53, %v9255_v20 }
 0x49a   :  { %1429 = vbcast.lane.b32.xlu1 %v9143_v56, 376  ;;  %1425 = vbcast.lane.b32.xlu0 %v9143_v56, 368 }
 0x49c   :  { %v9331_v16 = vpop.permute.xlu1 %1373  ;;  %v9333_v33 = vpop.permute.xlu0 %1369 }
 0x49e   :  { %1819 = vperm.xlu1 %8156, %v1560_v50   ;;  %1816 = vperm.xlu0 %8155, %v1559_v8   ;;  %v1577_v50 = vsub.f32 %v9345_v2, %v9165_v12  ;;  %v1562_v12 = vsub.f32 %v9365_v57, %v9101_v59  ;;  %v9385_v59 = vadd.f32 %v9042_v54, %v8930_v3  ;;  %v13300_v54 = vld [vmem:[#allocation110_spill] sm:$0xff] }
 0x49f   :  { %v1594_v3 = vsub.f32 %v9365_v57, %v9211_v6 }
 0x4a0   :  { %v9339_v49 = vpop.permute.xlu1 %1251  ;;  %v9341_v56 = vpop.permute.xlu0 %1188  ;;  %v1579_v20 = vsub.f32 %v9385_v59, %v9171_v21  ;;  %v9413_v21 = vadd.f32 %v9040_v52, %v8920_v24  ;;  %v1595_v24 = vsub.f32 %v9385_v59, %v9219_v15  ;;  %v1639_v15 = vsub.f32 %v9323_v53, %v9289_v37 }
 0x4a2   :  { %1864 = vperm.xlu1 %8156, %v1575_v9   ;;  %1867 = vperm.xlu0 %8155, %v1576_v7   ;;  %v1564_v6 = vsub.f32 %v9413_v21, %v9110_v55  ;;  %v1610_v55 = vsub.f32 %v9365_v57, %v9259_v47  ;;  %v9449_v47 = vadd.f32 %v9046_v0, %v8934_v5 }
 0x4a3   :  { %v1611_v5 = vsub.f32 %v9385_v59, %v9267_v44  ;;  %v1655_v44 = vsub.f32 %v9323_v53, %v9301_v43 }
 0x4a4   :  { %v9351_v18 = vpop.permute.xlu1 %1377  ;;  %v9353_v8 = vpop.permute.xlu0 %1314 }
 0x4a6   :  { %1822 = vperm.xlu1 %8156, %v1561_v61   ;;  %1870 = vperm.xlu0 %8155, %v1577_v50   ;;  %v1578_v61 = vsub.f32 %v9365_v57, %v9163_v41  ;;  %v1563_v41 = vsub.f32 %v9385_v59, %v9112_v60  ;;  %v1623_v60 = vsub.f32 %v9323_v53, %v9285_v27 }
 0x4a7   :  { %v1580_v27 = vsub.f32 %v9413_v21, %v9169_v23  ;;  %v1640_v23 = vsub.f32 %v9319_v45, %v9297_v36  ;;  %v1596_v36 = vsub.f32 %v9413_v21, %v9217_v62  ;;  %v1656_v62 = vsub.f32 %v9319_v45, %v9309_v42 }
 0x4a8   :  { %v9359_v9 = vpop.permute.xlu1 %1255  ;;  %v9361_v7 = vpop.permute.xlu0 %1192  ;;  %v1597_v42 = vsub.f32 %v9449_v47, %v9225_v35  ;;  %v1671_v35 = vsub.f32 %v9323_v53, %v9333_v33  ;;  %v13299_v33 = vld [vmem:[#allocation103_spill] sm:$0xff] }
 0x4aa   :  { %1912 = vperm.xlu1 %8156, %v1591_v11   ;;  %1915 = vperm.xlu0 %8155, %v1592_v51  }
 0x4ac   :  { %v9371_v40 = vpop.permute.xlu1 %1381  ;;  %v9373_v50 = vpop.permute.xlu0 %1318 }
 0x4ae   :  { %1825 = vperm.xlu1 %8156, %v1562_v12   ;;  %1873 = vperm.xlu0 %8155, %v1578_v61   ;;  %v1608_v12 = vsub.f32 %v9319_v45, %v9253_v38  ;;  %v1609_v38 = vsub.f32 %v9345_v2, %v9261_v13 }
 0x4b0   :  { %v9379_v11 = vpop.permute.xlu1 %1259  ;;  %v9381_v51 = vpop.permute.xlu0 %1196 }
 0x4b2   :  { %1918 = vperm.xlu1 %8156, %v1593_v39   ;;  %1960 = vperm.xlu0 %8155, %v1607_v14  }
 0x4b4   :  { %v9391_v10 = vpop.permute.xlu1 %1385  ;;  %v9393_v61 = vpop.permute.xlu0 %1322 }
 0x4b6   :  { %1963 = vperm.xlu1 %8156, %v1608_v12   ;;  %1828 = vperm.xlu0 %8155, %v1563_v41  }
 0x4b8   :  { %v9399_v39 = vpop.permute.xlu1 %1263  ;;  %v9401_v14 = vpop.permute.xlu0 %1200 }
 0x4ba   :  { %1876 = vperm.xlu1 %8156, %v1579_v20   ;;  %1921 = vperm.xlu0 %8155, %v1594_v3   ;;  %v1624_v20 = vsub.f32 %v9319_v45, %v9283_v17  ;;  %v1625_v17 = vsub.f32 %v9345_v2, %v9291_v25  ;;  %v1565_v25 = vsub.f32 %v9449_v47, %v9122_v46 }
 0x4bb   :  { %v1626_v46 = vsub.f32 %v9365_v57, %v9295_v19  ;;  %v9485_v19 = vadd.f32 %v9044_v4, %v8924_v26  ;;  %v1612_v26 = vsub.f32 %v9413_v21, %v9265_v30  ;;  %v1657_v30 = vsub.f32 %v9345_v2, %v9313_v63  ;;  %v13297_v4 = vld [vmem:[#allocation83_spill] sm:$0xff] }
 0x4bc   :  { %v9407_v12 = vpop.permute.xlu1 %1389  ;;  %v9409_v41 = vpop.permute.xlu0 %1326 }
 0x4be   :  { %1966 = vperm.xlu1 %8156, %v1609_v38   ;;  %2008 = vperm.xlu0 %8155, %v1623_v60  }
 0x4c0   :  { %v9419_v13 = vpop.permute.xlu1 %1204  ;;  %v9421_v3 = vpop.permute.xlu0 %1141 }
 0x4c2   :  { %2011 = vperm.xlu1 %8156, %v1624_v20   ;;  %1831 = vperm.xlu0 %8155, %v1564_v6  }
 0x4c4   :  { %v9427_v38 = vpop.permute.xlu1 %1330  ;;  %v9429_v60 = vpop.permute.xlu0 %1267 }
 0x4c6   :  { %1879 = vperm.xlu1 %8156, %v1580_v27   ;;  %1924 = vperm.xlu0 %8155, %v1595_v24  }
 0x4c8   :  { %v9435_v20 = vpop.permute.xlu1 %1145  ;;  %v9437_v6 = vpop.permute.xlu0 %1393 }
 0x4ca   :  { %1969 = vperm.xlu1 %8156, %v1610_v55   ;;  %2014 = vperm.xlu0 %8155, %v1625_v17   ;;  %v1581_v55 = vsub.f32 %v9449_v47, %v9177_v48  ;;  %v1641_v48 = vsub.f32 %v9345_v2, %v9303_v31  ;;  %v1566_v31 = vsub.f32 %v9485_v19, %v9120_v58 }
 0x4cb   :  { %v1627_v58 = vsub.f32 %v9385_v59, %v9307_v28  ;;  %v13296_v28 = vld [vmem:[#allocation32_spill] sm:$0xff] }
 0x4cc   :  { %v9443_v27 = vpop.permute.xlu1 %1271  ;;  %v9445_v24 = vpop.permute.xlu0 %1208  ;;  %v9521_v0 = vadd.f32 %v13297_v4, %v13296_v28  ;;  %v1598_v28 = vsub.f32 %v9485_v19, %v13300_v54  ;;  %v1643_v54 = vsub.f32 %v9385_v59, %v9339_v49  ;;  %v13304_v4 = vld [vmem:[#allocation82_spill] sm:$0xff] }
 0x4ce   :  { %2056 = vperm.xlu1 %8156, %v1639_v15   ;;  %2059 = vperm.xlu0 %8155, %v1640_v23   ;;  %v1583_v53 = vsub.f32 %v9521_v0, %v13299_v33  ;;  %v1658_v33 = vsub.f32 %v9365_v57, %v9353_v8 }
 0x4d0   :  { %v9455_v37 = vpop.permute.xlu1 %1397  ;;  %v9457_v17 = vpop.permute.xlu0 %1334 }
 0x4d2   :  { %1834 = vperm.xlu1 %8156, %v1565_v25   ;;  %1882 = vperm.xlu0 %8155, %v1581_v55  }
 0x4d4   :  { %v9463_v15 = vpop.permute.xlu1 %1212  ;;  %v9465_v23 = vpop.permute.xlu0 %1149 }
 0x4d6   :  { %1927 = vperm.xlu1 %8156, %v1596_v36   ;;  %1972 = vperm.xlu0 %8155, %v1611_v5  }
 0x4d8   :  { %v9471_v25 = vpop.permute.xlu1 %1338  ;;  %v9473_v55 = vpop.permute.xlu0 %1275 }
 0x4da   :  { %2017 = vperm.xlu1 %8156, %v1626_v46   ;;  %2062 = vperm.xlu0 %8155, %v1641_v48   ;;  %v1582_v46 = vsub.f32 %v9485_v19, %v9175_v1  ;;  %v1642_v1 = vsub.f32 %v9365_v57, %v9315_v32  ;;  %v13298_v32 = vld [vmem:[#allocation94_spill] sm:$0xff] }
 0x4dc   :  { %v9479_v36 = vpop.permute.xlu1 %1153  ;;  %v9481_v5 = vpop.permute.xlu0 %1401 }
 0x4de   :  { %2104 = vperm.xlu1 %8156, %v1655_v44   ;;  %2107 = vperm.xlu0 %8155, %v1656_v62  }
 0x4e0   :  { %v9491_v43 = vpop.permute.xlu1 %1279  ;;  %v9493_v48 = vpop.permute.xlu0 %1216 }
 0x4e2   :  { %1837 = vperm.xlu1 %8156, %v1566_v31   ;;  %1885 = vperm.xlu0 %8155, %v1582_v46  }
 0x4e4   :  { %v9499_v44 = vpop.permute.xlu1 %1405  ;;  %v9501_v62 = vpop.permute.xlu0 %1342 }
 0x4e6   :  { %1930 = vperm.xlu1 %8156, %v1597_v42   ;;  %1975 = vperm.xlu0 %8155, %v1612_v26  }
 0x4e8   :  { %v9507_v31 = vpop.permute.xlu1 %1220  ;;  %v9509_v46 = vpop.permute.xlu0 %1157 }
 0x4ea   :  { %2020 = vperm.xlu1 %8156, %v1627_v58   ;;  %2065 = vperm.xlu0 %8155, %v1642_v1   ;;  %v1567_v58 = vsub.f32 %v9521_v0, %v13298_v32  ;;  %v1672_v1 = vsub.f32 %v9319_v45, %v9331_v16  ;;  %v13301_v32 = vld [vmem:[#allocation120_spill] sm:$0xff]  ;;  %v1628_v16 = vsub.f32 %v9413_v21, %v9341_v56  ;;  %v13305_v56 = vld [vmem:[#allocation93_spill] sm:$0xff] }
 0x4eb   :  { %v1613_v45 = vsub.f32 %v9449_v47, %v13301_v32  ;;  %v13303_v32 = vld [vmem:[#allocation29_spill] sm:$0xff] }
 0x4ec   :  { %v9515_v42 = vpop.permute.xlu1 %1346  ;;  %v9517_v26 = vpop.permute.xlu0 %1283  ;;  %v9557_v34 = vadd.f32 %v13304_v4, %v13303_v32  ;;  %v13313_v4 = vld [vmem:[#allocation111_spill] sm:$0xff] }
 0x4ee   :  { %2110 = vperm.xlu1 %8156, %v1657_v30   ;;  %2152 = vperm.xlu0 %8155, %v1671_v35   ;;  %v1584_v22 = vsub.f32 %v9557_v34, %v13306_v29  ;;  %v1644_v29 = vsub.f32 %v9413_v21, %v9359_v9  ;;  %v13312_v9 = vld [vmem:[#allocation105_spill] sm:$0xff] }
 0x4f0   :  { %v9527_v63 = vpop.permute.xlu1 %1161  ;;  %v9529_v52 = vpop.permute.xlu0 %1409 }
 0x4f2   :  { %2155 = vperm.xlu1 %8156, %v1672_v1   ;;  %1840 = vperm.xlu0 %8155, %v1567_v58  }
 0x4f4   :  { %v9535_v30 = vpop.permute.xlu1 %1287  ;;  %v9537_v35 = vpop.permute.xlu0 %1224 }
 0x4f6   :  { %1888 = vperm.xlu1 %8156, %v1583_v53   ;;  %1933 = vperm.xlu0 %8155, %v1598_v28  }
 0x4f8   :  { %v9543_v1 = vpop.permute.xlu1 %1413  ;;  %v9545_v58 = vpop.permute.xlu0 %1350 }
 0x4fa   :  { %1978 = vperm.xlu1 %8156, %v1613_v45   ;;  %2023 = vperm.xlu0 %8155, %v1628_v16   ;;  %v1568_v45 = vsub.f32 %v9557_v34, %v13305_v56  ;;  %v1673_v16 = vsub.f32 %v9345_v2, %v9351_v18  ;;  %v1629_v2 = vsub.f32 %v9449_v47, %v9361_v7 }
 0x4fc   :  { %v9551_v53 = vpop.permute.xlu1 %1291  ;;  %v9553_v28 = vpop.permute.xlu0 %1228 }
 0x4fd   :  { %13302 = vst [vmem:[#allocation32_spill] sm:$0xff] %v9553_v28  ;;  %v13307_v28 = vld [vmem:[#allocation112_spill] sm:$0xff] }
 0x4fe   :  { %2068 = vperm.xlu1 %8156, %v1643_v54   ;;  %2113 = vperm.xlu0 %8155, %v1658_v33   ;;  %v1599_v32 = vsub.f32 %v9521_v0, %v13307_v28  ;;  %v13308_v54 = vld [vmem:[#allocation119_spill] sm:$0xff]  ;;  %v1659_v28 = vsub.f32 %v9385_v59, %v9373_v50 }
 0x4ff   :  { %v1614_v33 = vsub.f32 %v9485_v19, %v13308_v54  ;;  %v13311_v54 = vld [vmem:[#allocation97_spill] sm:$0xff] }
 0x500   :  { %v9563_v49 = vpop.permute.xlu1 %1417  ;;  %v9565_v8 = vpop.permute.xlu0 %1354 }
 0x502   :  { %2158 = vperm.xlu1 %8156, %v1673_v16   ;;  %1843 = vperm.xlu0 %8155, %v1568_v45   ;;  %v13310_v45 = vld [vmem:[#allocation85_spill] sm:$0xff] }
 0x504   :  { %v9575_v18 = vpop.permute.xlu1 %1358  ;;  %v9577_v56 = vpop.permute.xlu0 %1295 }
 0x506   :  { %1891 = vperm.xlu1 %8156, %v1584_v22   ;;  %1936 = vperm.xlu0 %8155, %v1599_v32   ;;  %v13309_v22 = vld [vmem:[#allocation34_spill] sm:$0xff] }
 0x507   :  { %v9585_v16 = vadd.f32 %v13310_v45, %v13309_v22  ;;  %v1600_v22 = vsub.f32 %v9557_v34, %v13313_v4  ;;  %v13315_v45 = vld [vmem:[#allocation122_spill] sm:$0xff]  ;;  %v1645_v4 = vsub.f32 %v9449_v47, %v9379_v11 }
 0x508   :  { %v9587_v32 = vpop.permute.xlu1 %1362  ;;  %v9589_v7 = vpop.permute.xlu0 %1421 }
 0x509   :  { %v1585_v50 = vsub.f32 %v9585_v16, %v13312_v9 }
 0x50a   :  { %1981 = vperm.xlu1 %8156, %v1614_v33   ;;  %2026 = vperm.xlu0 %8155, %v1629_v2   ;;  %v1569_v33 = vsub.f32 %v9585_v16, %v13311_v54  ;;  %v1674_v2 = vsub.f32 %v9365_v57, %v9371_v40  ;;  %v1615_v54 = vsub.f32 %v9521_v0, %v13315_v45  ;;  %v13319_v45 = vld [vmem:[#allocation30_spill] sm:$0xff] }
 0x50b   :  { %v1630_v57 = vsub.f32 %v9485_v19, %v9381_v51  ;;  %v13321_v51 = vld [vmem:[#allocation96_spill] sm:$0xff] }
 0x50e   :  { %2071 = vperm.xlu1 %8156, %v1644_v29   ;;  %2116 = vperm.xlu0 %8155, %v1659_v28   ;;  %v9599_v29 = vpop.permute.xlu1 %1429  ;;  %v9601_v28 = vpop.permute.xlu0 %1425 }
 0x50f   :  { %13314 = vst [vmem:[#allocation94_spill] sm:$0xff] %v9601_v28 }
 0x512   :  { %2161 = vperm.xlu1 %8156, %v1674_v2   ;;  %1846 = vperm.xlu0 %8155, %v1569_v33   ;;  %v1660_v2 = vsub.f32 %v9413_v21, %v9393_v61  ;;  %v13322_v61 = vld [vmem:[#allocation104_spill] sm:$0xff] }
 0x516   :  { %1894 = vperm.xlu1 %8156, %v1585_v50   ;;  %1939 = vperm.xlu0 %8155, %v1600_v22   ;;  %v13320_v22 = vld [vmem:[#allocation84_spill] sm:$0xff] }
 0x517   :  { %v9621_v28 = vadd.f32 %v13320_v22, %v13319_v45  ;;  %v13330_v22 = vld [vmem:[#allocation87_spill] sm:$0xff] }
 0x519   :  { %v9607_v40 = vpop.permute.xlu1 %1819  ;;  %v9609_v33 = vpop.permute.xlu0 %1816 }
 0x51a   :  { %13316 = vst [vmem:[#allocation103_spill] sm:$0xff] %v9609_v33  ;;  %1984 = vperm.xlu1 %8156, %v1615_v54   ;;  %2029 = vperm.xlu0 %8155, %v1630_v57   ;;  %v1570_v54 = vsub.f32 %v9621_v28, %v13321_v51  ;;  %v1675_v57 = vsub.f32 %v9385_v59, %v9391_v10  ;;  %v13325_v51 = vld [vmem:[#allocation121_spill] sm:$0xff] }
 0x51b   :  { %v1616_v59 = vsub.f32 %v9557_v34, %v13325_v51  ;;  %v1631_v10 = vsub.f32 %v9521_v0, %v9401_v14  ;;  %v13329_v51 = vld [vmem:[#allocation36_spill] sm:$0xff]  ;;  %v13331_v14 = vld [vmem:[#allocation99_spill] sm:$0xff] }
 0x51d   :  { %v9615_v9 = vpop.permute.xlu1 %1864  ;;  %v9617_v50 = vpop.permute.xlu0 %1867 }
 0x51e   :  { %13317 = vst [vmem:[#allocation110_spill] sm:$0xff] %v9615_v9  ;;  %13318 = vst [vmem:[#allocation120_spill] sm:$0xff] %v9617_v50  ;;  %2074 = vperm.xlu1 %8156, %v1645_v4   ;;  %2119 = vperm.xlu0 %8155, %v1660_v2   ;;  %v1586_v50 = vsub.f32 %v9621_v28, %v13322_v61  ;;  %v13323_v9 = vld [vmem:[#allocation114_spill] sm:$0xff]  ;;  %v1661_v61 = vsub.f32 %v9449_v47, %v9409_v41  ;;  %v13332_v41 = vld [vmem:[#allocation107_spill] sm:$0xff] }
 0x51f   :  { %v1601_v45 = vsub.f32 %v9585_v16, %v13323_v9  ;;  %v1646_v9 = vsub.f32 %v9485_v19, %v9399_v39 }
 0x521   :  { %v9627_v11 = vpop.permute.xlu1 %1822  ;;  %v9629_v33 = vpop.permute.xlu0 %1870 }
 0x522   :  { %2164 = vperm.xlu1 %8156, %v1675_v57   ;;  %1849 = vperm.xlu0 %8155, %v1570_v54  }
 0x525   :  { %v9635_v4 = vpop.permute.xlu1 %1912  ;;  %v9637_v2 = vpop.permute.xlu0 %1915 }
 0x526   :  { %13324 = vst [vmem:[#allocation29_spill] sm:$0xff] %v9637_v2  ;;  %1897 = vperm.xlu1 %8156, %v1586_v50   ;;  %1942 = vperm.xlu0 %8155, %v1601_v45   ;;  %v9657_v2 = vadd.f32 %v13330_v22, %v13329_v51 }
 0x529   :  { %v9643_v57 = vpop.permute.xlu1 %1825  ;;  %v9645_v54 = vpop.permute.xlu0 %1873 }
 0x52a   :  { %13326 = vst [vmem:[#allocation93_spill] sm:$0xff] %v9645_v54  ;;  %1987 = vperm.xlu1 %8156, %v1616_v59   ;;  %2032 = vperm.xlu0 %8155, %v1631_v10   ;;  %v1571_v59 = vsub.f32 %v9657_v2, %v13331_v14  ;;  %v1676_v10 = vsub.f32 %v9413_v21, %v9407_v12 }
 0x52b   :  { %v1632_v12 = vsub.f32 %v9557_v34, %v9419_v13  ;;  %v1617_v21 = vsub.f32 %v9585_v16, %v9421_v3  ;;  %v13337_v13 = vld [vmem:[#allocation31_spill] sm:$0xff]  ;;  %v13339_v3 = vld [vmem:[#allocation98_spill] sm:$0xff] }
 0x52d   :  { %v9651_v50 = vpop.permute.xlu1 %1918  ;;  %v9653_v45 = vpop.permute.xlu0 %1960 }
 0x52e   :  { %13327 = vst [vmem:[#allocation102_spill] sm:$0xff] %v9651_v50  ;;  %13328 = vst [vmem:[#allocation112_spill] sm:$0xff] %v9653_v45  ;;  %2077 = vperm.xlu1 %8156, %v1646_v9   ;;  %2122 = vperm.xlu0 %8155, %v1661_v61   ;;  %v1587_v45 = vsub.f32 %v9657_v2, %v13332_v41  ;;  %v13333_v50 = vld [vmem:[#allocation113_spill] sm:$0xff] }
 0x52f   :  { %v1602_v51 = vsub.f32 %v9621_v28, %v13333_v50  ;;  %v1662_v50 = vsub.f32 %v9485_v19, %v9427_v38 }
 0x531   :  { %v9663_v39 = vpop.permute.xlu1 %1963  ;;  %v9665_v54 = vpop.permute.xlu0 %1828 }
 0x532   :  { %2167 = vperm.xlu1 %8156, %v1676_v10   ;;  %1852 = vperm.xlu0 %8155, %v1571_v59   ;;  %v1647_v10 = vsub.f32 %v9521_v0, %v9429_v60  ;;  %v13340_v60 = vld [vmem:[#allocation106_spill] sm:$0xff] }
 0x535   :  { %v9671_v9 = vpop.permute.xlu1 %1876  ;;  %v9673_v61 = vpop.permute.xlu0 %1921 }
 0x536   :  { %1900 = vperm.xlu1 %8156, %v1587_v45   ;;  %1945 = vperm.xlu0 %8155, %v1602_v51   ;;  %v13338_v51 = vld [vmem:[#allocation86_spill] sm:$0xff] }
 0x537   :  { %v9693_v22 = vadd.f32 %v13338_v51, %v13337_v13 }
 0x539   :  { %v9679_v14 = vpop.permute.xlu1 %1966  ;;  %v9681_v59 = vpop.permute.xlu0 %2008 }
 0x53a   :  { %13334 = vst [vmem:[#allocation119_spill] sm:$0xff] %v9681_v59  ;;  %1990 = vperm.xlu1 %8156, %v1617_v21   ;;  %2035 = vperm.xlu0 %8155, %v1632_v12   ;;  %v1572_v21 = vsub.f32 %v9693_v22, %v13339_v3  ;;  %v1677_v12 = vsub.f32 %v9449_v47, %v9437_v6 }
 0x53b   :  { %v1618_v6 = vsub.f32 %v9621_v28, %v9435_v20  ;;  %v1633_v47 = vsub.f32 %v9585_v16, %v9445_v24  ;;  %v13345_v20 = vld [vmem:[#allocation38_spill] sm:$0xff]  ;;  %v13347_v24 = vld [vmem:[#allocation101_spill] sm:$0xff] }
 0x53d   :  { %v9687_v45 = vpop.permute.xlu1 %2011  ;;  %v9689_v41 = vpop.permute.xlu0 %1831 }
 0x53e   :  { %13335 = vst [vmem:[#allocation34_spill] sm:$0xff] %v9687_v45  ;;  %13336 = vst [vmem:[#allocation97_spill] sm:$0xff] %v9689_v41  ;;  %2080 = vperm.xlu1 %8156, %v1647_v10   ;;  %2125 = vperm.xlu0 %8155, %v1662_v50   ;;  %v1588_v41 = vsub.f32 %v9693_v22, %v13340_v60  ;;  %v13341_v45 = vld [vmem:[#allocation116_spill] sm:$0xff] }
 0x53f   :  { %v1603_v13 = vsub.f32 %v9657_v2, %v13341_v45  ;;  %v1648_v45 = vsub.f32 %v9557_v34, %v9443_v27 }
 0x541   :  { %v9699_v38 = vpop.permute.xlu1 %1879  ;;  %v9701_v59 = vpop.permute.xlu0 %1924 }
 0x542   :  { %2170 = vperm.xlu1 %8156, %v1677_v12   ;;  %1855 = vperm.xlu0 %8155, %v1572_v21   ;;  %v1663_v12 = vsub.f32 %v9521_v0, %v9457_v17  ;;  %v13348_v17 = vld [vmem:[#allocation109_spill] sm:$0xff] }
 0x545   :  { %v9707_v10 = vpop.permute.xlu1 %1969  ;;  %v9709_v50 = vpop.permute.xlu0 %2014 }
 0x546   :  { %1903 = vperm.xlu1 %8156, %v1588_v41   ;;  %1948 = vperm.xlu0 %8155, %v1603_v13   ;;  %v13346_v13 = vld [vmem:[#allocation90_spill] sm:$0xff] }
 0x547   :  { %v9729_v51 = vadd.f32 %v13346_v13, %v13345_v20 }
 0x549   :  { %v9715_v3 = vpop.permute.xlu1 %2056  ;;  %v9717_v21 = vpop.permute.xlu0 %2059 }
 0x54a   :  { %13342 = vst [vmem:[#allocation105_spill] sm:$0xff] %v9717_v21  ;;  %1993 = vperm.xlu1 %8156, %v1618_v6   ;;  %2038 = vperm.xlu0 %8155, %v1633_v47   ;;  %v1573_v6 = vsub.f32 %v9729_v51, %v13347_v24  ;;  %v1678_v47 = vsub.f32 %v9485_v19, %v9455_v37 }
 0x54b   :  { %v1634_v37 = vsub.f32 %v9621_v28, %v9463_v15  ;;  %v1619_v19 = vsub.f32 %v9657_v2, %v9465_v23  ;;  %v13353_v15 = vld [vmem:[#allocation33_spill] sm:$0xff]  ;;  %v13355_v23 = vld [vmem:[#allocation100_spill] sm:$0xff] }
 0x54d   :  { %v9723_v41 = vpop.permute.xlu1 %1834  ;;  %v9725_v60 = vpop.permute.xlu0 %1882 }
 0x54e   :  { %13343 = vst [vmem:[#allocation111_spill] sm:$0xff] %v9723_v41  ;;  %13344 = vst [vmem:[#allocation122_spill] sm:$0xff] %v9725_v60  ;;  %2083 = vperm.xlu1 %8156, %v1648_v45   ;;  %2128 = vperm.xlu0 %8155, %v1663_v12   ;;  %v1589_v60 = vsub.f32 %v9729_v51, %v13348_v17  ;;  %v13349_v41 = vld [vmem:[#allocation115_spill] sm:$0xff] }
 0x54f   :  { %v1604_v20 = vsub.f32 %v9693_v22, %v13349_v41  ;;  %v1664_v41 = vsub.f32 %v9557_v34, %v9471_v25 }
 0x551   :  { %v9735_v27 = vpop.permute.xlu1 %1927  ;;  %v9737_v21 = vpop.permute.xlu0 %1972 }
 0x552   :  { %2173 = vperm.xlu1 %8156, %v1678_v47   ;;  %1858 = vperm.xlu0 %8155, %v1573_v6   ;;  %v1649_v47 = vsub.f32 %v9585_v16, %v9473_v55  ;;  %v13356_v55 = vld [vmem:[#allocation108_spill] sm:$0xff] }
 0x555   :  { %v9743_v45 = vpop.permute.xlu1 %2017  ;;  %v9745_v12 = vpop.permute.xlu0 %2062 }
 0x556   :  { %1906 = vperm.xlu1 %8156, %v1589_v60   ;;  %1951 = vperm.xlu0 %8155, %v1604_v20   ;;  %v13354_v20 = vld [vmem:[#allocation89_spill] sm:$0xff] }
 0x557   :  { %v9765_v13 = vadd.f32 %v13354_v20, %v13353_v15 }
 0x559   :  { %v9751_v24 = vpop.permute.xlu1 %2104  ;;  %v9753_v6 = vpop.permute.xlu0 %2107 }
 0x55a   :  { %13350 = vst [vmem:[#allocation30_spill] sm:$0xff] %v9753_v6  ;;  %1996 = vperm.xlu1 %8156, %v1619_v19   ;;  %2041 = vperm.xlu0 %8155, %v1634_v37   ;;  %v1574_v19 = vsub.f32 %v9765_v13, %v13355_v23  ;;  %v1679_v37 = vsub.f32 %v9521_v0, %v9481_v5 }
 0x55b   :  { %v1620_v0 = vsub.f32 %v9693_v22, %v9479_v36  ;;  %v1635_v5 = vsub.f32 %v9657_v2, %v9493_v48  ;;  %v13358_v36 = vld [vmem:[#allocation117_spill] sm:$0xff] }
 0x55c   :  { %v1606_v48 = vsub.f32 %v9765_v13, %v13358_v36 }
 0x55d   :  { %v9759_v60 = vpop.permute.xlu1 %1837  ;;  %v9761_v17 = vpop.permute.xlu0 %1885 }
 0x55e   :  { %13351 = vst [vmem:[#allocation96_spill] sm:$0xff] %v9759_v60  ;;  %13352 = vst [vmem:[#allocation104_spill] sm:$0xff] %v9761_v17  ;;  %2086 = vperm.xlu1 %8156, %v1649_v47   ;;  %2131 = vperm.xlu0 %8155, %v1664_v41   ;;  %v1590_v17 = vsub.f32 %v9765_v13, %v13356_v55  ;;  %v13357_v60 = vld [vmem:[#allocation118_spill] sm:$0xff] }
 0x55f   :  { %v1605_v15 = vsub.f32 %v9729_v51, %v13357_v60  ;;  %v1650_v60 = vsub.f32 %v9621_v28, %v9491_v43  ;;  %v1636_v43 = vsub.f32 %v9693_v22, %v9507_v31  ;;  %v1622_v31 = vsub.f32 %v9765_v13, %v9527_v63 }
 0x560   :  { %v1667_v63 = vsub.f32 %v9657_v2, %v9545_v58  ;;  %v1668_v58 = vsub.f32 %v9693_v22, %v9565_v8  ;;  %v1684_v8 = vsub.f32 %v9693_v22, %v9589_v7 }
 0x561   :  { %v9771_v25 = vpop.permute.xlu1 %1930  ;;  %v9773_v6 = vpop.permute.xlu0 %1975 }
 0x562   :  { %2176 = vperm.xlu1 %8156, %v1679_v37   ;;  %1861 = vperm.xlu0 %8155, %v1574_v19   ;;  %v1665_v37 = vsub.f32 %v9585_v16, %v9501_v62  ;;  %v1621_v62 = vsub.f32 %v9729_v51, %v9509_v46  ;;  %v1681_v46 = vsub.f32 %v9585_v16, %v9529_v52 }
 0x563   :  { %v1682_v52 = vsub.f32 %v9621_v28, %v9543_v1  ;;  %v1683_v1 = vsub.f32 %v9657_v2, %v9563_v49  ;;  %v1670_v49 = vsub.f32 %v9765_v13, %v9587_v32 }
 0x565   :  { %v9779_v47 = vpop.permute.xlu1 %2020  ;;  %v9781_v41 = vpop.permute.xlu0 %2065 }
 0x566   :  { %1909 = vperm.xlu1 %8156, %v1590_v17   ;;  %1954 = vperm.xlu0 %8155, %v1605_v15   ;;  %v1680_v15 = vsub.f32 %v9557_v34, %v9499_v44  ;;  %v1666_v34 = vsub.f32 %v9621_v28, %v9515_v42  ;;  %v1651_v44 = vsub.f32 %v9657_v2, %v9517_v26 }
 0x567   :  { %v1652_v42 = vsub.f32 %v9693_v22, %v9535_v30  ;;  %v1637_v26 = vsub.f32 %v9729_v51, %v9537_v35  ;;  %v1653_v30 = vsub.f32 %v9729_v51, %v9551_v53  ;;  %v13364_v35 = vld [vmem:[#allocation32_spill] sm:$0xff]  ;;  %v1669_v53 = vsub.f32 %v9729_v51, %v9575_v18 }
 0x568   :  { %v1686_v18 = vsub.f32 %v9765_v13, %v9599_v29 }
 0x569   :  { %v9787_v23 = vpop.permute.xlu1 %2110  ;;  %v9789_v19 = vpop.permute.xlu0 %2152 }
 0x56a   :  { %1999 = vperm.xlu1 %8156, %v1620_v0   ;;  %2044 = vperm.xlu0 %8155, %v1635_v5  }
 0x56d   :  { %v9795_v17 = vpop.permute.xlu1 %2155  ;;  %v9797_v55 = vpop.permute.xlu0 %1840 }
 0x56e   :  { %2089 = vperm.xlu1 %8156, %v1650_v60   ;;  %2134 = vperm.xlu0 %8155, %v1665_v37  }
 0x571   :  { %v9803_v0 = vpop.permute.xlu1 %1888  ;;  %v9805_v5 = vpop.permute.xlu0 %1933 }
 0x572   :  { %2179 = vperm.xlu1 %8156, %v1680_v15   ;;  %1957 = vperm.xlu0 %8155, %v1606_v48  }
 0x575   :  { %v9811_v60 = vpop.permute.xlu1 %1978  ;;  %v9813_v37 = vpop.permute.xlu0 %2023 }
 0x576   :  { %2002 = vperm.xlu1 %8156, %v1621_v62   ;;  %2047 = vperm.xlu0 %8155, %v1636_v43  }
 0x579   :  { %v9819_v36 = vpop.permute.xlu1 %2068  ;;  %v9821_v48 = vpop.permute.xlu0 %2113 }
 0x57a   :  { %2092 = vperm.xlu1 %8156, %v1651_v44   ;;  %2137 = vperm.xlu0 %8155, %v1666_v34  }
 0x57d   :  { %v9827_v15 = vpop.permute.xlu1 %2158  ;;  %v9829_v43 = vpop.permute.xlu0 %1843 }
 0x57e   :  { %13359 = vst [vmem:[#allocation114_spill] sm:$0xff] %v9829_v43  ;;  %2182 = vperm.xlu1 %8156, %v1681_v46   ;;  %2005 = vperm.xlu0 %8155, %v1622_v31   ;;  %v1638_v31 = vsub.f32 %v9765_v13, %v13364_v35 }
 0x581   :  { %v9835_v62 = vpop.permute.xlu1 %1891  ;;  %v9837_v34 = vpop.permute.xlu0 %1936 }
 0x582   :  { %13360 = vst [vmem:[#allocation121_spill] sm:$0xff] %v9835_v62  ;;  %13361 = vst [vmem:[#allocation36_spill] sm:$0xff] %v9837_v34  ;;  %2050 = vperm.xlu1 %8156, %v1637_v26   ;;  %2095 = vperm.xlu0 %8155, %v1652_v42  }
 0x585   :  { %v9843_v16 = vpop.permute.xlu1 %1981  ;;  %v9845_v44 = vpop.permute.xlu0 %2026 }
 0x586   :  { %13362 = vst [vmem:[#allocation99_spill] sm:$0xff] %v9843_v16  ;;  %13363 = vst [vmem:[#allocation107_spill] sm:$0xff] %v9845_v44  ;;  %2140 = vperm.xlu1 %8156, %v1667_v63   ;;  %2185 = vperm.xlu0 %8155, %v1682_v52   ;;  %v1654_v52 = vsub.f32 %v9765_v13, %v9577_v56  ;;  %v13373_v56 = vld [vmem:[#allocation94_spill] sm:$0xff]  ;;  %v13421_v44 = vld [vmem:[#allocation93_spill] sm:$0xff] }
 0x589   :  { %v9851_v46 = vpop.permute.xlu1 %2071  ;;  %v9853_v42 = vpop.permute.xlu0 %2116 }
 0x58a   :  { %13365 = vst [vmem:[#allocation113_spill] sm:$0xff] %v9851_v46  ;;  %13366 = vst [vmem:[#allocation31_spill] sm:$0xff] %v9853_v42  ;;  %2053 = vperm.xlu1 %8156, %v1638_v31   ;;  %2098 = vperm.xlu0 %8155, %v1653_v30   ;;  %v1685_v31 = vsub.f32 %v9729_v51, %v13373_v56 }
 0x58d   :  { %v9859_v28 = vpop.permute.xlu1 %2161  ;;  %v9861_v26 = vpop.permute.xlu0 %1846 }
 0x58e   :  { %13367 = vst [vmem:[#allocation98_spill] sm:$0xff] %v9859_v28  ;;  %13368 = vst [vmem:[#allocation106_spill] sm:$0xff] %v9861_v26  ;;  %2143 = vperm.xlu1 %8156, %v1668_v58   ;;  %2188 = vperm.xlu0 %8155, %v1683_v1   ;;  %v13418_v28 = vld [vmem:[#allocation120_spill] sm:$0xff] }
 0x591   :  { %v9867_v63 = vpop.permute.xlu1 %1894  ;;  %v9869_v30 = vpop.permute.xlu0 %1939 }
 0x592   :  { %13369 = vst [vmem:[#allocation116_spill] sm:$0xff] %v9867_v63  ;;  %13370 = vst [vmem:[#allocation38_spill] sm:$0xff] %v9869_v30  ;;  %2101 = vperm.xlu1 %8156, %v1654_v52   ;;  %2146 = vperm.xlu0 %8155, %v1669_v53  }
 0x595   :  { %v9875_v2 = vpop.permute.xlu1 %1984  ;;  %v9877_v35 = vpop.permute.xlu0 %2029 }
 0x596   :  { %13371 = vst [vmem:[#allocation101_spill] sm:$0xff] %v9875_v2  ;;  %13372 = vst [vmem:[#allocation109_spill] sm:$0xff] %v9877_v35  ;;  %2191 = vperm.xlu1 %8156, %v1684_v8   ;;  %2149 = vperm.xlu0 %8155, %v1670_v49  }
 0x599   :  { %v9883_v1 = vpop.permute.xlu1 %2074  ;;  %v9885_v58 = vpop.permute.xlu0 %2119 }
 0x59a   :  { %13374 = vst [vmem:[#allocation115_spill] sm:$0xff] %v9883_v1  ;;  %13375 = vst [vmem:[#allocation33_spill] sm:$0xff] %v9885_v58  ;;  %2194 = vperm.xlu1 %8156, %v1685_v31   ;;  %2197 = vperm.xlu0 %8155, %v1686_v18  }
 0x59d   :  { %v9887_v32 = vpop.permute.xlu1 %2164  ;;  %v9889_v7 = vpop.permute.xlu0 %1849 }
 0x59e   :  { %13376 = vst [vmem:[#allocation100_spill] sm:$0xff] %v9887_v32  ;;  %13377 = vst [vmem:[#allocation108_spill] sm:$0xff] %v9889_v7 }
 0x5a1   :  { %v9891_v22 = vpop.permute.xlu1 %1897  ;;  %v9893_v53 = vpop.permute.xlu0 %1942 }
 0x5a2   :  { %13378 = vst [vmem:[#allocation118_spill] sm:$0xff] %v9891_v22  ;;  %13379 = vst [vmem:[#allocation117_spill] sm:$0xff] %v9893_v53 }
 0x5a5   :  { %v9895_v52 = vpop.permute.xlu1 %1987  ;;  %v9897_v29 = vpop.permute.xlu0 %2032 }
 0x5a6   :  { %13380 = vst [vmem:[#allocation32_spill] sm:$0xff] %v9895_v52  ;;  %13381 = vst [vmem:[#allocation94_spill] sm:$0xff] %v9897_v29 }
 0x5a9   :  { %v9899_v13 = vpop.permute.xlu1 %2077  ;;  %v9901_v51 = vpop.permute.xlu0 %2122 }
 0x5aa   :  { %13382 = vst [vmem:[#allocation123_spill] sm:$0xff] %v9899_v13  ;;  %13383 = vst [vmem:[#allocation124_spill] sm:$0xff] %v9901_v51 }
 0x5ad   :  { %v9903_v49 = vpop.permute.xlu1 %2167  ;;  %v9905_v8 = vpop.permute.xlu0 %1852 }
 0x5ae   :  { %13384 = vst [vmem:[#allocation125_spill] sm:$0xff] %v9903_v49  ;;  %13385 = vst [vmem:[#allocation126_spill] sm:$0xff] %v9905_v8 }
 0x5b1   :  { %v9907_v18 = vpop.permute.xlu1 %1900  ;;  %v9909_v56 = vpop.permute.xlu0 %1945 }
 0x5b2   :  { %13386 = vst [vmem:[#allocation127_spill] sm:$0xff] %v9907_v18  ;;  %13387 = vst [vmem:[#allocation128_spill] sm:$0xff] %v9909_v56 }
 0x5b5   :  { %v9911_v31 = vpop.permute.xlu1 %1990  ;;  %v9913_v20 = vpop.permute.xlu0 %2035 }
 0x5b6   :  { %13388 = vst [vmem:[#allocation129_spill] sm:$0xff] %v9911_v31  ;;  %13389 = vst [vmem:[#allocation130_spill] sm:$0xff] %v9913_v20  ;;  %v13400_v20 = vld [vmem:[#allocation27_spill] sm:$0xff] }
 0x5b7   :  { %v2266_v2 = vadd.s32 4294967216, %v13400_v20 }
 0x5b9   :  { %v9915_v53 = vpop.permute.xlu1 %2080  ;;  %v9917_v52 = vpop.permute.xlu0 %2125 }
 0x5ba   :  { %13390 = vst [vmem:[#allocation131_spill] sm:$0xff] %v9915_v53  ;;  %13391 = vst [vmem:[#allocation132_spill] sm:$0xff] %v9917_v52  ;;  %v2203_v53 = vadd.s32 4294967288, %v13400_v20 }
 0x5bd   :  { %v9919_v29 = vpop.permute.xlu1 %2170  ;;  %v9921_v13 = vpop.permute.xlu0 %1855 }
 0x5be   :  { %13392 = vst [vmem:[#allocation133_spill] sm:$0xff] %v9919_v29  ;;  %13393 = vst [vmem:[#allocation134_spill] sm:$0xff] %v9921_v13  ;;  %v2210_v13 = vadd.s32 4294967280, %v13400_v20  ;;  %v13403_v29 = vld [vmem:[#allocation43_spill] sm:$0xff] }
 0x5c0   :  { %v9958_v32 = vsub.s32 %v2210_v13, %v13403_v29 }
 0x5c1   :  { %v9923_v51 = vpop.permute.xlu1 %1903  ;;  %v9925_v49 = vpop.permute.xlu0 %1948 }
 0x5c2   :  { %13394 = vst [vmem:[#allocation135_spill] sm:$0xff] %v9923_v51  ;;  %13395 = vst [vmem:[#allocation136_spill] sm:$0xff] %v9925_v49  ;;  %v2217_v51 = vadd.s32 4294967272, %v13400_v20  ;;  %v2224_v49 = vadd.s32 4294967264, %v13400_v20  ;;  %v2214_v42 = vrot.slane %v9627_v11, %v9958_v32  ;;  %v2320_v46 = vrot.slane %v9629_v33, %v9958_v32  ;;  %v13422_v33 = vld [vmem:[#allocation102_spill] sm:$0xff] }
 0x5c3   :  { %13408 = vst [vmem:[#allocation146_spill] sm:$0xff] %v9958_v32  ;;  %v2280_v11 = vadd.s32 4294967200, %v13400_v20  ;;  %v2399_v34 = vrot.slane %v13422_v33, %v9958_v32  ;;  %v10023_v33 = vsub.s32 %v2266_v2, %v13403_v29 }
 0x5c4   :  { %v9961_v58 = vsub.s32 %v2217_v51, %v13403_v29  ;;  %v9965_v1 = vsub.s32 %v2224_v49, %v13403_v29  ;;  %v2259_v51 = vadd.s32 4294967224, %v13400_v20 }
 0x5c5   :  { %v9927_v8 = vpop.permute.xlu1 %1993  ;;  %v9929_v18 = vpop.permute.xlu0 %2038  ;;  %13426 = vst [vmem:[#allocation93_spill] sm:$0xff] %v10023_v33 }
 0x5c6   :  { %13396 = vst [vmem:[#allocation137_spill] sm:$0xff] %v9927_v8  ;;  %13397 = vst [vmem:[#allocation138_spill] sm:$0xff] %v9929_v18  ;;  %v2231_v8 = vadd.s32 4294967256, %v13400_v20  ;;  %v2238_v18 = vadd.s32 4294967248, %v13400_v20  ;;  %v2325_v16 = vrot.slane %v13421_v44, %v9961_v58  ;;  %v10014_v62 = vsub.s32 %v2259_v51, %v13403_v29 }
 0x5c7   :  { %13409 = vst [vmem:[#allocation147_spill] sm:$0xff] %v9961_v58  ;;  %13410 = vst [vmem:[#allocation148_spill] sm:$0xff] %v9965_v1 }
 0x5c9   :  { %v9931_v56 = vpop.permute.xlu1 %2083  ;;  %v9933_v31 = vpop.permute.xlu0 %2128 }
 0x5ca   :  { %13398 = vst [vmem:[#allocation139_spill] sm:$0xff] %v9931_v56  ;;  %13399 = vst [vmem:[#allocation140_spill] sm:$0xff] %v9933_v31  ;;  %v9946_v56 = vsub.s32 %v2203_v53, %v13403_v29  ;;  %v2245_v31 = vadd.s32 4294967240, %v13400_v20  ;;  %v2252_v53 = vadd.s32 4294967232, %v13400_v20 }
 0x5cc   :  { %13404 = vst [vmem:[#allocation43_spill] sm:$0xff] %v9946_v56  ;;  %v2207_v13 = vrot.slane %v9607_v40, %v9946_v56  ;;  %v9976_v35 = vsub.s32 %v2245_v31, %v13403_v29  ;;  %v2315_v40 = vrot.slane %v13418_v28, %v9946_v56  ;;  %v2273_v31 = vadd.s32 4294967208, %v13400_v20 }
 0x5cd   :  { %v9936_v22 = vpop.permute.xlu1 %2173  ;;  %v9938_v52 = vpop.permute.xlu0 %1858  ;;  %v2221_v28 = vrot.slane %v9643_v57, %v9961_v58 }
 0x5ce   :  { %13401 = vst [vmem:[#allocation141_spill] sm:$0xff] %v9936_v22  ;;  %13402 = vst [vmem:[#allocation142_spill] sm:$0xff] %v9938_v52  ;;  %v9955_v52 = vsub.s32 %v13400_v20, %v13403_v29 }
 0x5cf   :  { %13413 = vst [vmem:[#allocation151_spill] sm:$0xff] %v9976_v35 }
 0x5d0   :  { %13407 = vst [vmem:[#allocation145_spill] sm:$0xff] %v9955_v52 }
 0x5d1   :  { %v9949_v7 = vpop.permute.xlu1 %1906  ;;  %v9951_v22 = vpop.permute.xlu0 %1951 }
 0x5d2   :  { %13405 = vst [vmem:[#allocation143_spill] sm:$0xff] %v9949_v7  ;;  %13406 = vst [vmem:[#allocation144_spill] sm:$0xff] %v9951_v22  ;;  %v9968_v22 = vsub.s32 %v2231_v8, %v13403_v29  ;;  %v9971_v7 = vsub.s32 %v2238_v18, %v13403_v29  ;;  %v13416_v8 = vld [vmem:[#allocation103_spill] sm:$0xff]  ;;  %v13417_v18 = vld [vmem:[#allocation110_spill] sm:$0xff] }
 0x5d3   :  { %v2202_v63 = vrot.slane %v13416_v8, %v9955_v52  ;;  %v2311_v26 = vrot.slane %v13417_v18, %v9955_v52  ;;  %v9998_v8 = vsub.s32 %v2252_v53, %v13403_v29  ;;  %v13420_v18 = vld [vmem:[#allocation29_spill] sm:$0xff]  ;;  %v2228_v53 = vrot.slane %v9665_v54, %v9965_v1  ;;  %13423 = vst [vmem:[#allocation110_spill] sm:$0xff] %v10014_v62  ;;  %v13428_v62 = vld [vmem:[#allocation112_spill] sm:$0xff] }
 0x5d4   :  { %13411 = vst [vmem:[#allocation149_spill] sm:$0xff] %v9968_v22  ;;  %13412 = vst [vmem:[#allocation150_spill] sm:$0xff] %v9971_v7 }
 0x5d5   :  { %v9980_v30 = vpop.permute.xlu1 %1996  ;;  %v9982_v49 = vpop.permute.xlu0 %2041  ;;  %13419 = vst [vmem:[#allocation103_spill] sm:$0xff] %v9998_v8  ;;  %v2209_v44 = vsel %vm2208_vm2, %v2207_v13, %v2202_v63  ;;  %v2316_v43 = vsel %vm2208_vm2, %v2315_v40, %v2311_v26  ;;  %v10038_v13 = vsub.s32 %v2280_v11, %v13403_v29 }
 0x5d6   :  { %13414 = vst [vmem:[#allocation152_spill] sm:$0xff] %v9980_v30  ;;  %13415 = vst [vmem:[#allocation153_spill] sm:$0xff] %v9982_v49  ;;  %v2390_v49 = vrot.slane %v9635_v4, %v9955_v52  ;;  %v2394_v30 = vrot.slane %v13420_v18, %v9946_v56  ;;  %v2473_v4 = vrot.slane %v9663_v39, %v9946_v56 }
 0x5d7   :  { %v10026_v39 = vsub.s32 %v2273_v31, %v13403_v29  ;;  %v2216_v54 = vsel %vm2215_vm3, %v2214_v42, %v2209_v44  ;;  %v2321_v51 = vsel %vm2215_vm3, %v2320_v46, %v2316_v43  ;;  %13429 = vst [vmem:[#allocation112_spill] sm:$0xff] %v10038_v13  ;;  %v13431_v31 = vld [vmem:[#allocation97_spill] sm:$0xff]  ;;  %v2557_v44 = vrot.slane %v9709_v50, %v9958_v32 }
 0x5d8   :  { %v2395_v63 = vsel %vm2208_vm2, %v2394_v30, %v2390_v49  ;;  %v2223_v26 = vsel %vm13136_vm4, %v2221_v28, %v2216_v54  ;;  %v2326_v2 = vsel %vm13136_vm4, %v2325_v16, %v2321_v51  ;;  %v2478_v30 = vrot.slane %v9679_v14, %v9958_v32  ;;  %v13430_v16 = vld [vmem:[#allocation34_spill] sm:$0xff] }
 0x5d9   :  { %v10016_v18 = vpop.permute.xlu1 %2086  ;;  %v10018_v57 = vpop.permute.xlu0 %2131  ;;  %13427 = vst [vmem:[#allocation102_spill] sm:$0xff] %v10026_v39  ;;  %v2400_v40 = vsel %vm2215_vm3, %v2399_v34, %v2395_v63  ;;  %v2230_v43 = vsel %vm13131_vm5, %v2228_v53, %v2223_v26  ;;  %v2552_v49 = vrot.slane %v13430_v16, %v9946_v56  ;;  %v2235_v34 = vrot.slane %v13431_v31, %v9968_v22 }
 0x5da   :  { %13424 = vst [vmem:[#allocation120_spill] sm:$0xff] %v10016_v18  ;;  %13425 = vst [vmem:[#allocation29_spill] sm:$0xff] %v10018_v57  ;;  %v2469_v18 = vrot.slane %v13428_v62, %v9955_v52  ;;  %v2330_v57 = vrot.slane %v9671_v9, %v9965_v1  ;;  %v2404_v62 = vrot.slane %v9673_v61, %v9961_v58  ;;  %v2287_v28 = vadd.s32 4294967192, %v13400_v20 }
 0x5db   :  { %v2335_v53 = vrot.slane %v9699_v38, %v9968_v22  ;;  %v2483_v14 = vrot.slane %v9707_v10, %v9961_v58  ;;  %v2627_v54 = vrot.slane %v9715_v3, %v9955_v52  ;;  %v13434_v38 = vld [vmem:[#allocation111_spill] sm:$0xff]  ;;  %v2294_v16 = vadd.s32 4294967184, %v13400_v20 }
 0x5dc   :  { %v2474_v42 = vsel %vm2208_vm2, %v2473_v4, %v2469_v18  ;;  %v2331_v11 = vsel %vm13131_vm5, %v2330_v57, %v2326_v2  ;;  %v13432_v4 = vld [vmem:[#allocation119_spill] sm:$0xff]  ;;  %v2409_v18 = vrot.slane %v9701_v59, %v9965_v1  ;;  %v13433_v57 = vld [vmem:[#allocation105_spill] sm:$0xff]  ;;  %v2405_v63 = vsel %vm13136_vm4, %v2404_v62, %v2400_v40  ;;  %v13435_v59 = vld [vmem:[#allocation122_spill] sm:$0xff] }
 0x5dd   :  { %v10045_v46 = vpop.permute.xlu1 %2176  ;;  %v10047_v9 = vpop.permute.xlu0 %1861  ;;  %v2548_v61 = vrot.slane %v13432_v4, %v9955_v52  ;;  %v2631_v51 = vrot.slane %v13433_v57, %v9946_v56  ;;  %v2242_v26 = vrot.slane %v13434_v38, %v9971_v7  ;;  %v2340_v2 = vrot.slane %v13435_v59, %v9971_v7 }
 0x5de   :  { %v2479_v50 = vsel %vm2215_vm3, %v2478_v30, %v2474_v42  ;;  %v2237_v4 = vsel %vm13124_vm6, %v2235_v34, %v2230_v43  ;;  %v10085_v40 = vsub.s32 %v2287_v28, %v13403_v29  ;;  %v2336_v62 = vsel %vm13124_vm6, %v2335_v53, %v2331_v11 }
 0x5df   :  { %v2553_v3 = vsel %vm2208_vm2, %v2552_v49, %v2548_v61  ;;  %v2410_v57 = vsel %vm13131_vm5, %v2409_v18, %v2405_v63  ;;  %v2414_v38 = vrot.slane %v9735_v27, %v9968_v22  ;;  %v2488_v59 = vrot.slane %v9737_v21, %v9965_v1  ;;  %v13438_v18 = vld [vmem:[#allocation30_spill] sm:$0xff]  ;;  %v13440_v63 = vld [vmem:[#allocation104_spill] sm:$0xff] }
 0x5e0   :  { %13436 = vst [vmem:[#allocation34_spill] sm:$0xff] %v10085_v40  ;;  %v2484_v42 = vsel %vm13136_vm4, %v2483_v14, %v2479_v50  ;;  %v2558_v30 = vsel %vm2215_vm3, %v2557_v44, %v2553_v3  ;;  %v2632_v43 = vsel %vm2208_vm2, %v2631_v51, %v2627_v54  ;;  %v2562_v49 = vrot.slane %v9743_v45, %v9961_v58  ;;  %v13439_v14 = vld [vmem:[#allocation96_spill] sm:$0xff] }
 0x5e1   :  { %v10077_v10 = vpop.permute.xlu1 %1909  ;;  %v10079_v31 = vpop.permute.xlu0 %1954  ;;  %v2244_v34 = vsel %vm13135_vm7, %v2242_v26, %v2237_v4  ;;  %v2341_v28 = vsel %vm13135_vm7, %v2340_v2, %v2336_v62  ;;  %v2636_v11 = vrot.slane %v9745_v12, %v9958_v32  ;;  %v10103_v27 = vsub.s32 %v2294_v16, %v13403_v29 }
 0x5e2   :  { %v2706_v53 = vrot.slane %v9751_v24, %v9955_v52  ;;  %v2710_v45 = vrot.slane %v13438_v18, %v9946_v56  ;;  %v2249_v44 = vrot.slane %v13439_v14, %v9976_v35  ;;  %v2301_v54 = vadd.s32 4294967176, %v13400_v20 }
 0x5e3   :  { %13437 = vst [vmem:[#allocation97_spill] sm:$0xff] %v10103_v27  ;;  %v2415_v12 = vsel %vm13124_vm6, %v2414_v38, %v2410_v57  ;;  %v2489_v51 = vsel %vm13131_vm5, %v2488_v59, %v2484_v42  ;;  %v2345_v26 = vrot.slane %v13440_v63, %v9976_v35  ;;  %v2419_v2 = vrot.slane %v9771_v25, %v9971_v7 }
 0x5e4   :  { %v2563_v24 = vsel %vm13136_vm4, %v2562_v49, %v2558_v30  ;;  %v2493_v16 = vrot.slane %v9773_v6, %v9968_v22  ;;  %v2567_v50 = vrot.slane %v9779_v47, %v9965_v1  ;;  %v2641_v3 = vrot.slane %v9781_v41, %v9961_v58 }
 0x5e5   :  { %v10105_v21 = vpop.permute.xlu1 %1999  ;;  %v10107_v61 = vpop.permute.xlu0 %2044  ;;  %v2637_v4 = vsel %vm2215_vm3, %v2636_v11, %v2632_v43  ;;  %v2715_v62 = vrot.slane %v9787_v23, %v9958_v32  ;;  %v2789_v25 = vrot.slane %v9795_v17, %v9946_v56  ;;  %v2256_v57 = vrot.slane %v9797_v55, %v9998_v8 }
 0x5e6   :  { %v2711_v47 = vsel %vm2208_vm2, %v2710_v45, %v2706_v53  ;;  %v2251_v41 = vsel %vm13134_vm8, %v2249_v44, %v2244_v34  ;;  %v2350_v59 = vrot.slane %v9803_v0, %v9998_v8  ;;  %v10145_v23 = vsub.s32 %v2301_v54, %v13403_v29  ;;  %v13442_v54 = vld [vmem:[#allocation110_spill] sm:$0xff] }
 0x5e7   :  { %v2346_v17 = vsel %vm13134_vm8, %v2345_v26, %v2341_v28  ;;  %v2420_v42 = vsel %vm13135_vm7, %v2419_v2, %v2415_v12  ;;  %v2785_v55 = vrot.slane %v9789_v19, %v9955_v52  ;;  %v2424_v30 = vrot.slane %v9805_v5, %v9976_v35  ;;  %v13443_v12 = vld [vmem:[#allocation114_spill] sm:$0xff]  ;;  %v13445_v26 = vld [vmem:[#allocation36_spill] sm:$0xff] }
 0x5e8   :  { %13441 = vst [vmem:[#allocation119_spill] sm:$0xff] %v10145_v23  ;;  %v2494_v43 = vsel %vm13124_vm6, %v2493_v16, %v2489_v51  ;;  %v2568_v49 = vsel %vm13131_vm5, %v2567_v50, %v2563_v24  ;;  %v2642_v0 = vsel %vm13136_vm4, %v2641_v3, %v2637_v4  ;;  %v2498_v29 = vrot.slane %v9811_v60, %v9971_v7  ;;  %v13444_v51 = vld [vmem:[#allocation121_spill] sm:$0xff] }
 0x5e9   :  { %v10136_v38 = vpop.permute.xlu1 %2089  ;;  %v10138_v6 = vpop.permute.xlu0 %2134  ;;  %v2716_v34 = vsel %vm2215_vm3, %v2715_v62, %v2711_v47  ;;  %v2790_v28 = vsel %vm2208_vm2, %v2789_v25, %v2785_v55  ;;  %v2258_v11 = vsel %vm2257_vm9, %v2256_v57, %v2251_v41  ;;  %v2572_v19 = vrot.slane %v9813_v37, %v9968_v22  ;;  %v13449_v62 = vld [vmem:[#allocation31_spill] sm:$0xff]  ;;  %v13450_v57 = vld [vmem:[#allocation98_spill] sm:$0xff] }
 0x5ea   :  { %v2351_v18 = vsel %vm2257_vm9, %v2350_v59, %v2346_v17  ;;  %v2646_v45 = vrot.slane %v9819_v36, %v9965_v1  ;;  %v2720_v60 = vrot.slane %v9821_v48, %v9961_v58  ;;  %v2794_v14 = vrot.slane %v9827_v15, %v9958_v32  ;;  %v13446_v36 = vld [vmem:[#allocation99_spill] sm:$0xff]  ;;  %v13448_v15 = vld [vmem:[#allocation113_spill] sm:$0xff]  ;;  %v13451_v41 = vld [vmem:[#allocation106_spill] sm:$0xff] }
 0x5eb   :  { %v2425_v44 = vsel %vm13134_vm8, %v2424_v30, %v2420_v42  ;;  %v2263_v37 = vrot.slane %v13443_v12, %v13442_v54  ;;  %v2355_v63 = vrot.slane %v13444_v51, %v13442_v54  ;;  %v2429_v2 = vrot.slane %v13445_v26, %v9998_v8  ;;  %v13447_v48 = vld [vmem:[#allocation107_spill] sm:$0xff]  ;;  %v13453_v26 = vld [vmem:[#allocation38_spill] sm:$0xff] }
 0x5ec   :  { %v2499_v24 = vsel %vm13135_vm7, %v2498_v29, %v2494_v43  ;;  %v2503_v16 = vrot.slane %v13446_v36, %v9976_v35  ;;  %v2577_v50 = vrot.slane %v13447_v48, %v9971_v7  ;;  %v2651_v3 = vrot.slane %v13448_v15, %v9968_v22 }
 0x5ed   :  { %v10163_v53 = vpop.permute.xlu1 %2179  ;;  %v10165_v5 = vpop.permute.xlu0 %1957  ;;  %v2573_v4 = vsel %vm13124_vm6, %v2572_v19, %v2568_v49  ;;  %v2725_v25 = vrot.slane %v13449_v62, %v9965_v1  ;;  %v2799_v47 = vrot.slane %v13450_v57, %v9961_v58  ;;  %v2270_v59 = vrot.slane %v13451_v41, %v10023_v33  ;;  %v13452_v49 = vld [vmem:[#allocation116_spill] sm:$0xff] }
 0x5ee   :  { %v2647_v55 = vsel %vm13131_vm5, %v2646_v45, %v2642_v0  ;;  %v2721_v30 = vsel %vm13136_vm4, %v2720_v60, %v2716_v34  ;;  %v2795_v43 = vsel %vm2215_vm3, %v2794_v14, %v2790_v28  ;;  %v2360_v29 = vrot.slane %v13452_v49, %v10023_v33  ;;  %v13454_v28 = vld [vmem:[#allocation101_spill] sm:$0xff] }
 0x5ef   :  { %v2265_v19 = vsel %vm2264_vm10, %v2263_v37, %v2258_v11  ;;  %v2356_v12 = vsel %vm2264_vm10, %v2355_v63, %v2351_v18  ;;  %v2430_v51 = vsel %vm2257_vm9, %v2429_v2, %v2425_v44  ;;  %v2434_v36 = vrot.slane %v13453_v26, %v13442_v54  ;;  %v13455_v14 = vld [vmem:[#allocation109_spill] sm:$0xff] }
 0x5f0   :  { %v2504_v48 = vsel %vm13134_vm8, %v2503_v16, %v2499_v24  ;;  %v2578_v0 = vsel %vm13135_vm7, %v2577_v50, %v2573_v4  ;;  %v2652_v34 = vsel %vm13124_vm6, %v2651_v3, %v2647_v55  ;;  %v2508_v45 = vrot.slane %v13454_v28, %v9998_v8  ;;  %v13456_v24 = vld [vmem:[#allocation115_spill] sm:$0xff]  ;;  %v13457_v50 = vld [vmem:[#allocation33_spill] sm:$0xff]  ;;  %v13458_v3 = vld [vmem:[#allocation100_spill] sm:$0xff] }
 0x5f1   :  { %v10195_v17 = vpop.permute.xlu1 %2002  ;;  %v10197_v42 = vpop.permute.xlu0 %2047  ;;  %v2726_v60 = vsel %vm13131_vm5, %v2725_v25, %v2721_v30  ;;  %v2800_v11 = vsel %vm13136_vm4, %v2799_v47, %v2795_v43  ;;  %v2272_v18 = vsel %vm2271_vm11, %v2270_v59, %v2265_v19  ;;  %v2582_v44 = vrot.slane %v13455_v14, %v9976_v35  ;;  %v13459_v25 = vld [vmem:[#allocation108_spill] sm:$0xff]  ;;  %v13460_v47 = vld [vmem:[#allocation118_spill] sm:$0xff]  ;;  %v13461_v59 = vld [vmem:[#allocation117_spill] sm:$0xff] }
 0x5f2   :  { %v2361_v2 = vsel %vm2271_vm11, %v2360_v29, %v2356_v12  ;;  %v2656_v16 = vrot.slane %v13456_v24, %v9971_v7  ;;  %v2730_v15 = vrot.slane %v13457_v50, %v9968_v22  ;;  %v2804_v4 = vrot.slane %v13458_v3, %v9965_v1  ;;  %v13462_v43 = vld [vmem:[#allocation32_spill] sm:$0xff]  ;;  %v13463_v29 = vld [vmem:[#allocation94_spill] sm:$0xff]  ;;  %v13464_v12 = vld [vmem:[#allocation123_spill] sm:$0xff] }
 0x5f3   :  { %v2435_v62 = vsel %vm2264_vm10, %v2434_v36, %v2430_v51  ;;  %v2277_v57 = vrot.slane %v13459_v25, %v10026_v39  ;;  %v2365_v41 = vrot.slane %v13460_v47, %v10026_v39  ;;  %v2439_v55 = vrot.slane %v13461_v59, %v10023_v33  ;;  %v13465_v36 = vld [vmem:[#allocation124_spill] sm:$0xff]  ;;  %v13466_v14 = vld [vmem:[#allocation125_spill] sm:$0xff] }
 0x5f4   :  { %v2509_v30 = vsel %vm2257_vm9, %v2508_v45, %v2504_v48  ;;  %v2513_v49 = vrot.slane %v13462_v43, %v13442_v54  ;;  %v2587_v19 = vrot.slane %v13463_v29, %v9998_v8  ;;  %v2661_v51 = vrot.slane %v13464_v12, %v9976_v35  ;;  %v13467_v48 = vld [vmem:[#allocation126_spill] sm:$0xff] }
 0x5f5   :  { %v10219_v37 = vpop.permute.xlu1 %2092  ;;  %v10221_v63 = vpop.permute.xlu0 %2137  ;;  %v2583_v26 = vsel %vm13134_vm8, %v2582_v44, %v2578_v0  ;;  %v2735_v28 = vrot.slane %v13465_v36, %v9971_v7  ;;  %v2809_v24 = vrot.slane %v13466_v14, %v9968_v22  ;;  %v2284_v45 = vrot.slane %v13467_v48, %v10038_v13  ;;  %v13468_v0 = vld [vmem:[#allocation127_spill] sm:$0xff]  ;;  %v13469_v36 = vld [vmem:[#allocation128_spill] sm:$0xff] }
 0x5f6   :  { %v2657_v25 = vsel %vm13135_vm7, %v2656_v16, %v2652_v34  ;;  %v2731_v47 = vsel %vm13124_vm6, %v2730_v15, %v2726_v60  ;;  %v2805_v59 = vsel %vm13131_vm5, %v2804_v4, %v2800_v11  ;;  %v2370_v44 = vrot.slane %v13468_v0, %v10038_v13  ;;  %v13470_v11 = vld [vmem:[#allocation129_spill] sm:$0xff]  ;;  %v13471_v4 = vld [vmem:[#allocation130_spill] sm:$0xff]  ;;  %v13477_v0 = vld [vmem:[#allocation136_spill] sm:$0xff] }
 0x5f7   :  { %v2279_v43 = vsel %vm2278_vm12, %v2277_v57, %v2272_v18  ;;  %v2366_v29 = vsel %vm2278_vm12, %v2365_v41, %v2361_v2  ;;  %v2440_v12 = vsel %vm2271_vm11, %v2439_v55, %v2435_v62  ;;  %v2444_v14 = vrot.slane %v13469_v36, %v10026_v39 }
 0x5f8   :  { %v2514_v48 = vsel %vm2264_vm10, %v2513_v49, %v2509_v30  ;;  %v2588_v34 = vsel %vm2257_vm9, %v2587_v19, %v2583_v26  ;;  %v2662_v60 = vsel %vm13134_vm8, %v2661_v51, %v2657_v25  ;;  %v2518_v16 = vrot.slane %v13470_v11, %v10023_v33  ;;  %v13472_v30 = vld [vmem:[#allocation131_spill] sm:$0xff]  ;;  %v13473_v19 = vld [vmem:[#allocation132_spill] sm:$0xff]  ;;  %v13474_v26 = vld [vmem:[#allocation133_spill] sm:$0xff] }
 0x5f9   :  { %v10251_v50 = vpop.permute.xlu1 %2182  ;;  %v10253_v3 = vpop.permute.xlu0 %2005  ;;  %v2736_v15 = vsel %vm13135_vm7, %v2735_v28, %v2731_v47  ;;  %v2810_v18 = vsel %vm13124_vm6, %v2809_v24, %v2805_v59  ;;  %v2286_v2 = vsel %vm13140_vm13, %v2284_v45, %v2279_v43  ;;  %v2592_v62 = vrot.slane %v13471_v4, %v13442_v54  ;;  %v13475_v45 = vld [vmem:[#allocation134_spill] sm:$0xff]  ;;  %v13476_v47 = vld [vmem:[#allocation135_spill] sm:$0xff] }
 0x5fa   :  { %v2371_v55 = vsel %vm13140_vm13, %v2370_v44, %v2366_v29  ;;  %v2666_v49 = vrot.slane %v13472_v30, %v9998_v8  ;;  %v2740_v51 = vrot.slane %v13473_v19, %v9976_v35  ;;  %v2814_v28 = vrot.slane %v13474_v26, %v9971_v7  ;;  %v13478_v29 = vld [vmem:[#allocation137_spill] sm:$0xff]  ;;  %v13479_v11 = vld [vmem:[#allocation138_spill] sm:$0xff]  ;;  %v13480_v30 = vld [vmem:[#allocation139_spill] sm:$0xff] }
 0x5fb   :  { %v2445_v24 = vsel %vm2278_vm12, %v2444_v14, %v2440_v12  ;;  %v2291_v25 = vrot.slane %v13475_v45, %v10085_v40  ;;  %v2375_v59 = vrot.slane %v13476_v47, %v10085_v40  ;;  %v2449_v44 = vrot.slane %v13477_v0, %v10038_v13  ;;  %v13481_v19 = vld [vmem:[#allocation140_spill] sm:$0xff]  ;;  %v13482_v45 = vld [vmem:[#allocation141_spill] sm:$0xff] }
 0x5fc   :  { %v2519_v43 = vsel %vm2271_vm11, %v2518_v16, %v2514_v48  ;;  %v2523_v36 = vrot.slane %v13478_v29, %v10026_v39  ;;  %v2597_v4 = vrot.slane %v13479_v11, %v10023_v33  ;;  %v2671_v12 = vrot.slane %v13480_v30, %v13442_v54  ;;  %v13483_v48 = vld [vmem:[#allocation142_spill] sm:$0xff] }
 0x5fd   :  { %v10275_v57 = vpop.permute.xlu1 %2050  ;;  %v10277_v41 = vpop.permute.xlu0 %2095  ;;  %v2593_v14 = vsel %vm2264_vm10, %v2592_v62, %v2588_v34  ;;  %v2745_v26 = vrot.slane %v13481_v19, %v9998_v8  ;;  %v2819_v47 = vrot.slane %v13482_v45, %v9976_v35  ;;  %v2298_v16 = vrot.slane %v13483_v48, %v10103_v27  ;;  %v13484_v62 = vld [vmem:[#allocation143_spill] sm:$0xff]  ;;  %v13485_v35 = vld [vmem:[#allocation144_spill] sm:$0xff] }
 0x5fe   :  { %vm13137_vm6 = vcmask 1041409   ;;  %v2667_v11 = vsel %vm2257_vm9, %v2666_v49, %v2662_v60  ;;  %v2741_v30 = vsel %vm13134_vm8, %v2740_v51, %v2736_v15  ;;  %v2815_v34 = vsel %vm13135_vm7, %v2814_v28, %v2810_v18  ;;  %v13486_v18 = vld [vmem:[#allocation152_spill] sm:$0xff] }
 0x5ff   :  { %v2380_v19 = vrot.slane %v13484_v62, %v10103_v27  ;;  %v2293_v7 = vsel %vm2292_vm14, %v2291_v25, %v2286_v2  ;;  %v2376_v45 = vsel %vm2292_vm14, %v2375_v59, %v2371_v55  ;;  %v2450_v48 = vsel %vm13140_vm13, %v2449_v44, %v2445_v24  ;;  %v13487_v59 = vld [vmem:[#allocation153_spill] sm:$0xff] }
 0x600   :  { %v2454_v22 = vrot.slane %v13485_v35, %v10085_v40  ;;  %vm13139_vm5 = vcmask 1042434   ;;  %v2524_v1 = vsel %vm2278_vm12, %v2523_v36, %v2519_v43  ;;  %v2598_v60 = vsel %vm2271_vm11, %v2597_v4, %v2593_v14  ;;  %v13488_v43 = vld [vmem:[#allocation120_spill] sm:$0xff] }
 0x601   :  { %v10307_v0 = vpop.permute.xlu1 %2140  ;;  %v10309_v29 = vpop.permute.xlu0 %2185  ;;  %v2672_v15 = vsel %vm2264_vm10, %v2671_v12, %v2667_v11  ;;  %v2528_v49 = vrot.slane %v13486_v18, %v10038_v13  ;;  %v2746_v51 = vsel %vm2257_vm9, %v2745_v26, %v2741_v30  ;;  %v2820_v2 = vsel %vm13134_vm8, %v2819_v47, %v2815_v34  ;;  %v13489_v12 = vld [vmem:[#allocation29_spill] sm:$0xff] }
 0x602   :  { %v2300_v55 = vsel %vm2299_vm15, %v2298_v16, %v2293_v7  ;;  %v2385_v28 = vrot.slane %v10077_v10, %v10145_v23  ;;  %v2381_v25 = vsel %vm2299_vm15, %v2380_v19, %v2376_v45  ;;  %v2602_v44 = vrot.slane %v13487_v59, %v10026_v39 }
 0x603   :  { %v2676_v36 = vrot.slane %v13488_v43, %v10023_v33  ;;  %v2459_v4 = vrot.slane %v10079_v31, %v10103_v27  ;;  %v2455_v7 = vsel %vm2292_vm14, %v2454_v22, %v2450_v48  ;;  %v2750_v10 = vrot.slane %v13489_v12, %v13442_v54 }
 0x604   :  { %v2305_v14 = vrot.slane %v10047_v9, %v10145_v23  ;;  %v2464_v26 = vrot.slane %v10165_v5, %v10145_v23  ;;  %v2529_v47 = vsel %vm13140_vm13, %v2528_v49, %v2524_v1  ;;  %v2824_v16 = vrot.slane %v10045_v46, %v9998_v8 }
 0x605   :  { %v10331_v35 = vpop.permute.xlu1 %2053  ;;  %v10333_v24 = vpop.permute.xlu0 %2098  ;;  %v2533_v11 = vrot.slane %v10105_v21, %v10085_v40  ;;  %v2607_v22 = vrot.slane %v10107_v61, %v10038_v13  ;;  %v2386_v31 = vsel %vm2306_vm1, %v2385_v28, %v2381_v25  ;;  %v2681_v30 = vrot.slane %v10136_v38, %v10026_v39 }
 0x606   :  { %v2755_v9 = vrot.slane %v10138_v6, %v10023_v33  ;;  %v2829_v1 = vrot.slane %v10163_v53, %v13442_v54  ;;  %v2603_v46 = vsel %vm2278_vm12, %v2602_v44, %v2598_v60  ;;  %v2677_v21 = vsel %vm2271_vm11, %v2676_v36, %v2672_v15 }
 0x607   :  { %v2460_v62 = vsel %vm2299_vm15, %v2459_v4, %v2455_v7  ;;  %v2538_v61 = vrot.slane %v10195_v17, %v10103_v27  ;;  %vm13138_vm8 = vcmask 1043459   ;;  %v2751_v38 = vsel %vm2264_vm10, %v2750_v10, %v2746_v51 }
 0x608   :  { %v2307_v19 = vsel %vm2306_vm1, %v2305_v14, %v2300_v55  ;;  %v2465_v6 = vsel %vm2306_vm1, %v2464_v26, %v2460_v62  ;;  %v2612_v53 = vrot.slane %v10197_v42, %v10085_v40  ;;  %v2825_v45 = vsel %vm2257_vm9, %v2824_v16, %v2820_v2 }
 0x609   :  { %v2144_v5 = vpop.permute.xlu1 %2143  ;;  %v2189_v34 = vpop.permute.xlu0 %2188  ;;  %v2862_v48 = vsel %vm13137_vm6, %v2386_v31, %v2307_v19  ;;  %v2534_v60 = vsel %vm2292_vm14, %v2533_v11, %v2529_v47  ;;  %v2608_v15 = vsel %vm13140_vm13, %v2607_v22, %v2603_v46  ;;  %vm2867_vm7 = vcmask 1044484  }
 0x60a   :  { %v2682_v17 = vsel %vm2278_vm12, %v2681_v30, %v2677_v21  ;;  %v2756_v18 = vsel %vm2271_vm11, %v2755_v9, %v2751_v38  ;;  %v2830_v49 = vsel %vm2264_vm10, %v2829_v1, %v2825_v45  ;;  %v2686_v51 = vrot.slane %v10219_v37, %v10038_v13 }
 0x60b   :  { %vm13197_vm4 = vcmask 1045509   ;;  %v2864_v2 = vsel %vm13139_vm5, %v2465_v6, %v2862_v48  ;;  %v2539_v28 = vsel %vm2299_vm15, %v2538_v61, %v2534_v60  ;;  %v2760_v25 = vrot.slane %v10221_v63, %v10026_v39 }
 0x60c   :  { %v2543_v59 = vrot.slane %v10253_v3, %v10145_v23  ;;  %vm13176_vm6 = vcmask 1046534   ;;  %v2613_v44 = vsel %vm2292_vm14, %v2612_v53, %v2608_v15  ;;  %v2617_v43 = vrot.slane %v10275_v57, %v10103_v27 }
 0x60d   :  { %v2102_v55 = vpop.permute.xlu1 %2101  ;;  %v2147_v42 = vpop.permute.xlu0 %2146  ;;  %v2691_v37 = vrot.slane %v10277_v41, %v10085_v40  ;;  %v2765_v36 = vrot.slane %v10307_v0, %v10038_v13  ;;  %v2834_v4 = vrot.slane %v10251_v50, %v10023_v33  ;;  %v2622_v63 = vrot.slane %v10331_v35, %v10145_v23 }
 0x60e   :  { %v2696_v3 = vrot.slane %v10333_v24, %v10103_v27  ;;  %v2770_v7 = vrot.slane %v2144_v5, %v10085_v40  ;;  %v2687_v12 = vsel %vm13140_vm13, %v2686_v51, %v2682_v17  ;;  %v2839_v57 = vrot.slane %v10309_v29, %v10026_v39 }
 0x60f   :  { %v2701_v41 = vrot.slane %v2102_v55, %v10145_v23  ;;  %v2775_v0 = vrot.slane %v2147_v42, %v10103_v27  ;;  %v2761_v50 = vsel %vm2278_vm12, %v2760_v25, %v2756_v18  ;;  %v2544_v35 = vsel %vm2306_vm1, %v2543_v59, %v2539_v28  ;;  %v8209_v42 = vld [vmem:[#allocation10 + $0xf8] sm:$0xff]  ;;  %v8210_v28 = vld [vmem:[#allocation10 + $0xf0] sm:$0xff]  ;;  %v8211_v25 = vld [vmem:[#allocation10 + $0xe8] sm:$0xff] }
 0x610   :  { %v2844_v26 = vrot.slane %v2189_v34, %v10038_v13  ;;  %v2618_v47 = vsel %vm2299_vm15, %v2617_v43, %v2613_v44  ;;  %v2692_v16 = vsel %vm2292_vm14, %v2691_v37, %v2687_v12  ;;  %v2766_v29 = vsel %vm13140_vm13, %v2765_v36, %v2761_v50  ;;  %v8212_v59 = vld [vmem:[#allocation10 + $0xe0] sm:$0xff]  ;;  %v8213_v44 = vld [vmem:[#allocation10 + $0xd8] sm:$0xff]  ;;  %v8214_v43 = vld [vmem:[#allocation10 + $0xd0] sm:$0xff] }
 0x611   :  { %v2192_v10 = vpop.permute.xlu1 %2191  ;;  %v2150_v14 = vpop.permute.xlu0 %2149  ;;  %v2835_v22 = vsel %vm2271_vm11, %v2834_v4, %v2830_v49  ;;  %v2623_v31 = vsel %vm2306_vm1, %v2622_v63, %v2618_v47  ;;  %v2697_v30 = vsel %vm2299_vm15, %v2696_v3, %v2692_v16  ;;  %v2771_v9 = vsel %vm2292_vm14, %v2770_v7, %v2766_v29  ;;  %v8215_v37 = vld [vmem:[#allocation10 + $0xc8] sm:$0xff]  ;;  %v8216_v36 = vld [vmem:[#allocation10 + $0xc0] sm:$0xff]  ;;  %v8217_v4 = vld [vmem:[#allocation10 + $0xb8] sm:$0xff] }
 0x612   :  { %v2780_v24 = vrot.slane %v2150_v14, %v10145_v23  ;;  %v2849_v11 = vrot.slane %v2192_v10, %v10085_v40  ;;  %v2866_v1 = vsel %vm13138_vm8, %v2544_v35, %v2864_v2  ;;  %v2840_v5 = vsel %vm2278_vm12, %v2839_v57, %v2835_v22  ;;  %v8218_v63 = vld [vmem:[#allocation10 + $0xb0] sm:$0xff]  ;;  %v8219_v3 = vld [vmem:[#allocation10 + $0xa8] sm:$0xff]  ;;  %v8220_v7 = vld [vmem:[#allocation10 + $0xa0] sm:$0xff] }
 0x613   :  { %v2702_v34 = vsel %vm2306_vm1, %v2701_v41, %v2697_v30  ;;  %v2776_v46 = vsel %vm2299_vm15, %v2775_v0, %v2771_v9  ;;  %v2845_v61 = vsel %vm13140_vm13, %v2844_v26, %v2840_v5  ;;  %v2868_v45 = vsel %vm2867_vm7, %v2623_v31, %v2866_v1  ;;  %v8221_v12 = vld [vmem:[#allocation10 + $0x98] sm:$0xff]  ;;  %v8222_v57 = vld [vmem:[#allocation10 + $0x90] sm:$0xff]  ;;  %v8223_v41 = vld [vmem:[#allocation10 + $0x88] sm:$0xff] }
 0x614   :  { %v2781_v6 = vsel %vm2306_vm1, %v2780_v24, %v2776_v46  ;;  %v2850_v53 = vsel %vm2292_vm14, %v2849_v11, %v2845_v61  ;;  %vm13175_vm8 = vcmask 1047559   ;;  %v2870_v60 = vsel %vm13197_vm4, %v2702_v34, %v2868_v45  ;;  %v8224_v0 = vld [vmem:[#allocation10 + $0x80] sm:$0xff]  ;;  %v8225_v26 = vld [vmem:[#allocation10 + $0x178] sm:$0xff]  ;;  %v8226_v24 = vld [vmem:[#allocation10 + $0x170] sm:$0xff] }
 0x615   :  { %v2195_v21 = vpop.permute.xlu1 %2194  ;;  %v2198_v62 = vpop.permute.xlu0 %2197  ;;  %v2872_v17 = vsel %vm13176_vm6, %v2781_v6, %v2870_v60  ;;  %vm13172_vm5 = vcmask 57344   ;;  %v13141_v55 = vmov 1.0   ;;  %v13490_v2 = vmov 0.0   ;;  %v13492_v14 = vld [vmem:[#allocation28_spill] sm:$0xff]  ;;  %v8227_v47 = vld [vmem:[#allocation10 + $0x168] sm:$0xff]  ;;  %v8230_v11 = vld [vmem:[#allocation10 + $0x150] sm:$0xff] }
 0x616   :  { %v2854_v38 = vrot.slane %v2195_v21, %v10103_v27  ;;  %v2859_v19 = vrot.slane %v2198_v62, %v10145_v23  ;;  %v8228_v16 = vld [vmem:[#allocation10 + $0x160] sm:$0xff]  ;;  %v8229_v29 = vld [vmem:[#allocation10 + $0x158] sm:$0xff]  ;;  %v8231_v22 = vld [vmem:[#allocation10 + $0x148] sm:$0xff] }
 0x617   :  { %v8232_v31 = vld [vmem:[#allocation10 + $0x140] sm:$0xff]  ;;  %v8233_v30 = vld [vmem:[#allocation10 + $0x138] sm:$0xff]  ;;  %v8234_v9 = vld [vmem:[#allocation10 + $0x130] sm:$0xff] }
 0x618   :  { %v2855_v48 = vsel %vm2299_vm15, %v2854_v38, %v2850_v53  ;;  %v8235_v1 = vld [vmem:[#allocation10 + $0x128] sm:$0xff]  ;;  %v8236_v5 = vld [vmem:[#allocation10 + $0x120] sm:$0xff]  ;;  %v8237_v34 = vld [vmem:[#allocation10 + $0x118] sm:$0xff] }
 0x619   :  { %v2860_v15 = vsel %vm2306_vm1, %v2859_v19, %v2855_v48  ;;  %v8238_v46 = vld [vmem:[#allocation10 + $0x110] sm:$0xff]  ;;  %v8239_v21 = vld [vmem:[#allocation10 + $0x108] sm:$0xff]  ;;  %v8240_v62 = vld [vmem:[#allocation10 + $0x100] sm:$0xff] }
 0x61a   :  { %v2874_v18 = vsel %vm13175_vm8, %v2860_v15, %v2872_v17  ;;  %v13494_v6 = vld [vmem:[#allocation46_spill] sm:$0xff]  ;;  %v13497_v17 = vld [vmem:[#allocation88_spill] sm:$0xff]  ;;  %vm13693_vm8 = vcmask 392512  }
 0x61b   :  { %2876 = vmin.index.xlane.f32.xlu1 %v2874_v18  ;;  %v13495_v45 = vld [vmem:[#allocation58_spill] sm:$0xff] }
 0x61c   :  { %v13496_v60 = vld [vmem:[#allocation70_spill] sm:$0xff] }
 0x6a4   :  { %v2877_v49 = vpop.xlane.xlu1 %2876 }
 0x6a5   :  { %vm2878_vm13 = vcmp.eq.s32.totalorder %v13400_v20, %v2877_v49  ;;  %v2966_v51 = vrot.slane %v2877_v49, %v9955_v52  ;;  %v13498_v49 = vld [vmem:[#allocation91_spill] sm:$0xff] }
 0x6a6   :  { %7927 = vmatmul.mubr.msk.f32.vlgmr.msra.gmra.mxu0 %vm2878_vm13, %v13141_v55  ;;  %vm13673_vm13 = vcmask 261312  }
 0x6a7   :  { %7930 = vmatpush3.xpose.msra.mxu0 %v8209_v42  ;;  %7961 = vmatprep.mubr.msk.f32.mxu0 %vm13173_vm0, %v13490_v2  ;;  %2968 = vst.msk [vmem:[#allocation17] sm:$0x1] %vm13172_vm5, %v2966_v51  ;;  %v13499_v42 = vld [vmem:[#allocation81_spill] sm:$0xff]  ;;  %vm13685_vm5 = vcmask 392512  }
 0x6a8   :  { %7931 = vmatprep.subr.mxu0 %v13490_v2 }
 0x6ab   :  { %7932 = vmatpush3.xpose.msra.mxu0 %v8210_v28 }
 0x6ac   :  { %7933 = vmatprep.subr.mxu0 %v13490_v2 }
 0x6af   :  { %7934 = vmatpush3.xpose.msra.mxu0 %v8211_v25  ;;  %v13500_v25 = vld [vmem:[#allocation92_spill] sm:$0xff] }
 0x6b0   :  { %7935 = vmatprep.subr.mxu0 %v13490_v2 }
 0x6b3   :  { %7936 = vmatpush3.xpose.msra.mxu0 %v8212_v59 }
 0x6b4   :  { %7937 = vmatprep.subr.mxu0 %v13490_v2 }
 0x6b7   :  { %7938 = vmatpush3.xpose.msra.mxu0 %v8213_v44  ;;  %v13501_v44 = vld [vmem:[#allocation95_spill] sm:$0xff] }
 0x6b8   :  { %7939 = vmatprep.subr.mxu0 %v13490_v2 }
 0x6bb   :  { %7940 = vmatpush3.xpose.msra.mxu0 %v8214_v43 }
 0x6bc   :  { %7941 = vmatprep.subr.mxu0 %v13490_v2 }
 0x6bf   :  { %7942 = vmatpush3.xpose.msra.mxu0 %v8215_v37 }
 0x6c0   :  { %7943 = vmatprep.subr.mxu0 %v13490_v2 }
 0x6c3   :  { %7944 = vmatpush3.xpose.msra.mxu0 %v8216_v36 }
 0x6c4   :  { %7945 = vmatprep.subr.mxu0 %v13490_v2 }
 0x6c7   :  { %7946 = vmatpush3.xpose.msra.mxu0 %v8217_v4 }
 0x6c8   :  { %7947 = vmatprep.subr.mxu0 %v13490_v2 }
 0x6cb   :  { %7948 = vmatpush3.xpose.msra.mxu0 %v8218_v63 }
 0x6cc   :  { %7949 = vmatprep.subr.mxu0 %v13490_v2 }
 0x6cf   :  { %7950 = vmatpush3.xpose.msra.mxu0 %v8219_v3 }
 0x6d0   :  { %7951 = vmatprep.subr.mxu0 %v13490_v2 }
 0x6d3   :  { %7952 = vmatpush3.xpose.msra.mxu0 %v8220_v7 }
 0x6d4   :  { %7953 = vmatprep.subr.mxu0 %v13490_v2 }
 0x6d7   :  { %7954 = vmatpush3.xpose.msra.mxu0 %v8221_v12 }
 0x6d8   :  { %7955 = vmatprep.subr.mxu0 %v13490_v2 }
 0x6db   :  { %7956 = vmatpush3.xpose.msra.mxu0 %v8222_v57 }
 0x6dc   :  { %7957 = vmatprep.subr.mxu0 %v13490_v2 }
 0x6df   :  { %7958 = vmatpush3.xpose.msra.mxu0 %v8223_v41 }
 0x6e0   :  { %7959 = vmatprep.subr.mxu0 %v13490_v2 }
 0x6e3   :  { %7960 = vmatpush3.xpose.msra.mxu0 %v8224_v0 }
 0x6e4   :  { %8034 = vmatprep.subr.mxu0 %v13490_v2 }
 0x766   :  { %v10456_v10 = vpop.f32.mrf.mxu0 }
 0x767   :  { %13491 = vst [vmem:[#allocation105_spill] sm:$0xff] %v10456_v10  ;;  %v10460_v50 = vsub.f32 %v13492_v14, %v10456_v10 }
 0x768   :  { %v7928_v35 = vpop.f32.mrf.mxu0 }
 0x769   :  { %13493 = vst [vmem:[#allocation111_spill] sm:$0xff] %v10460_v50  ;;  %7962 = vmatmul.mubr.f32.vlgmr.msra.gmra.mxu0 %v10460_v50 }
 0x76a   :  { %8035 = vmatpush3.msra.mxu0 %v8225_v26  ;;  %8066 = vmatprep.mubr.msk.f32.mxu0 %vm13173_vm0, %v13490_v2 }
 0x76b   :  { %8036 = vmatprep.subr.mxu0 %v13490_v2 }
 0x76c   :  { %8037 = vmatpush3.msra.mxu0 %v8226_v24 }
 0x76d   :  { %8038 = vmatprep.subr.mxu0 %v13490_v2 }
 0x76e   :  { %8039 = vmatpush3.msra.mxu0 %v8227_v47 }
 0x76f   :  { %8040 = vmatprep.subr.mxu0 %v13490_v2 }
 0x770   :  { %8041 = vmatpush3.msra.mxu0 %v8228_v16 }
 0x771   :  { %8042 = vmatprep.subr.mxu0 %v13490_v2 }
 0x772   :  { %8043 = vmatpush3.msra.mxu0 %v8229_v29 }
 0x773   :  { %8044 = vmatprep.subr.mxu0 %v13490_v2 }
 0x774   :  { %8045 = vmatpush3.msra.mxu0 %v8230_v11 }
 0x775   :  { %8046 = vmatprep.subr.mxu0 %v13490_v2 }
 0x776   :  { %8047 = vmatpush3.msra.mxu0 %v8231_v22 }
 0x777   :  { %8048 = vmatprep.subr.mxu0 %v13490_v2 }
 0x778   :  { %8049 = vmatpush3.msra.mxu0 %v8232_v31 }
 0x779   :  { %8050 = vmatprep.subr.mxu0 %v13490_v2 }
 0x77a   :  { %8051 = vmatpush3.msra.mxu0 %v8233_v30 }
 0x77b   :  { %8052 = vmatprep.subr.mxu0 %v13490_v2 }
 0x77c   :  { %8053 = vmatpush3.msra.mxu0 %v8234_v9 }
 0x77d   :  { %8054 = vmatprep.subr.mxu0 %v13490_v2 }
 0x77e   :  { %8055 = vmatpush3.msra.mxu0 %v8235_v1 }
 0x77f   :  { %8056 = vmatprep.subr.mxu0 %v13490_v2 }
 0x780   :  { %8057 = vmatpush3.msra.mxu0 %v8236_v5 }
 0x781   :  { %8058 = vmatprep.subr.mxu0 %v13490_v2 }
 0x782   :  { %8059 = vmatpush3.msra.mxu0 %v8237_v34 }
 0x783   :  { %8060 = vmatprep.subr.mxu0 %v13490_v2 }
 0x784   :  { %8061 = vmatpush3.msra.mxu0 %v8238_v46 }
 0x785   :  { %8062 = vmatprep.subr.mxu0 %v13490_v2 }
 0x786   :  { %8063 = vmatpush3.msra.mxu0 %v8239_v21 }
 0x787   :  { %8064 = vmatprep.subr.mxu0 %v13490_v2 }
 0x788   :  { %8065 = vmatpush3.msra.mxu0 %v8240_v62 }
 0x789   :  { %8069 = vmatprep.subr.bf16.mxu0 %v13490_v2 }
 0x829   :  { %v3037_v61 = vpop.f32.mrf.mxu0 }
 0x82a   :  { %v3041_v38 = vmul.f32 2.0, %v3037_v61 }
 0x82b   :  { %v7963_v19 = vpop.f32.mrf.mxu0 }
 0x82c   :  { %v10482_v53 = vrot.slane %v3041_v38, %v13494_v6  ;;  %v10485_v48 = vrot.slane %v3041_v38, %v13495_v45  ;;  %v10490_v15 = vrot.slane %v3041_v38, %v13496_v60  ;;  %v10495_v18 = vrot.slane %v3041_v38, %v13497_v17 }
 0x82d   :  { %v10506_v51 = vrot.slane %v3041_v38, %v13498_v49  ;;  %v10513_v28 = vrot.slane %v3041_v38, %v13499_v42  ;;  %v10520_v59 = vrot.slane %v3041_v38, %v13500_v25  ;;  %v10531_v43 = vrot.slane %v3041_v38, %v13501_v44 }
 0x82e   :  { %3127 = vbcast.lane.b32.xlu1 %v10485_v48, 280  ;;  %3048 = vbcast.lane.b32.xlu0 %v10482_v53, 256 }
 0x832   :  { %3194 = vbcast.lane.b32.xlu1 %v10490_v15, 280  ;;  %3052 = vbcast.lane.b32.xlu0 %v10482_v53, 264 }
 0x836   :  { %3316 = vbcast.lane.b32.xlu1 %v10495_v18, 256  ;;  %3115 = vbcast.lane.b32.xlu0 %v10485_v48, 256 }
 0x83a   :  { %3068 = vbcast.lane.b32.xlu1 %v10482_v53, 296  ;;  %3119 = vbcast.lane.b32.xlu0 %v10485_v48, 264 }
 0x83e   :  { %3198 = vbcast.lane.b32.xlu1 %v10490_v15, 288  ;;  %3056 = vbcast.lane.b32.xlu0 %v10482_v53, 272 }
 0x842   :  { %3324 = vbcast.lane.b32.xlu1 %v10495_v18, 272  ;;  %3123 = vbcast.lane.b32.xlu0 %v10485_v48, 272 }
 0x846   :  { %3387 = vbcast.lane.b32.xlu1 %v10506_v51, 264  ;;  %3182 = vbcast.lane.b32.xlu0 %v10490_v15, 256 }
 0x84a   :  { %3139 = vbcast.lane.b32.xlu1 %v10485_v48, 304  ;;  %3186 = vbcast.lane.b32.xlu0 %v10490_v15, 264 }
 0x84e   :  { %3265 = vbcast.lane.b32.xlu1 %v10513_v28, 288  ;;  %3060 = vbcast.lane.b32.xlu0 %v10482_v53, 280 }
 0x852   :  { %3391 = vbcast.lane.b32.xlu1 %v10506_v51, 272  ;;  %3190 = vbcast.lane.b32.xlu0 %v10490_v15, 272 }
 0x856   :  { %3454 = vbcast.lane.b32.xlu1 %v10520_v59, 264  ;;  %3249 = vbcast.lane.b32.xlu0 %v10513_v28, 256 }
 0x85a   :  { %3143 = vbcast.lane.b32.xlu1 %v10485_v48, 312  ;;  %3253 = vbcast.lane.b32.xlu0 %v10513_v28, 264 }
 0x85e   :  { %3269 = vbcast.lane.b32.xlu1 %v10513_v28, 296  ;;  %3064 = vbcast.lane.b32.xlu0 %v10482_v53, 288 }
 0x862   :  { %3395 = vbcast.lane.b32.xlu1 %v10506_v51, 280  ;;  %3131 = vbcast.lane.b32.xlu0 %v10485_v48, 288 }
 0x866   :  { %3517 = vbcast.lane.b32.xlu1 %v10531_v43, 256  ;;  %3257 = vbcast.lane.b32.xlu0 %v10513_v28, 272 }
 0x86a   :  { %3080 = vbcast.lane.b32.xlu1 %v10482_v53, 320  ;;  %3320 = vbcast.lane.b32.xlu0 %v10495_v18, 264 }
 0x86e   :  { %3210 = vbcast.lane.b32.xlu1 %v10490_v15, 312  ;;  %3135 = vbcast.lane.b32.xlu0 %v10485_v48, 296 }
 0x872   :  { %3336 = vbcast.lane.b32.xlu1 %v10495_v18, 296  ;;  %3261 = vbcast.lane.b32.xlu0 %v10513_v28, 280 }
 0x876   :  { %3462 = vbcast.lane.b32.xlu1 %v10520_v59, 280  ;;  %3383 = vbcast.lane.b32.xlu0 %v10506_v51, 256 }
 0x87a   :  { %3084 = vbcast.lane.b32.xlu1 %v10482_v53, 328  ;;  %3072 = vbcast.lane.b32.xlu0 %v10482_v53, 304 }
 0x87e   :  { %3214 = vbcast.lane.b32.xlu1 %v10490_v15, 320  ;;  %3202 = vbcast.lane.b32.xlu0 %v10490_v15, 296 }
 0x882   :  { %3340 = vbcast.lane.b32.xlu1 %v10495_v18, 304  ;;  %3328 = vbcast.lane.b32.xlu0 %v10495_v18, 280 }
 0x886   :  { %3466 = vbcast.lane.b32.xlu1 %v10520_v59, 288  ;;  %3450 = vbcast.lane.b32.xlu0 %v10520_v59, 256 }
 0x88a   :  { %3088 = vbcast.lane.b32.xlu1 %v10482_v53, 336  ;;  %3076 = vbcast.lane.b32.xlu0 %v10482_v53, 312 }
 0x88e   :  { %3218 = vbcast.lane.b32.xlu1 %v10490_v15, 328  ;;  %3206 = vbcast.lane.b32.xlu0 %v10490_v15, 304 }
 0x892   :  { %3344 = vbcast.lane.b32.xlu1 %v10495_v18, 312  ;;  %3332 = vbcast.lane.b32.xlu0 %v10495_v18, 288 }
 0x896   :  { %3470 = vbcast.lane.b32.xlu1 %v10520_v59, 296  ;;  %3458 = vbcast.lane.b32.xlu0 %v10520_v59, 272 }
 0x89a   :  { %3092 = vbcast.lane.b32.xlu1 %v10482_v53, 344  ;;  %3521 = vbcast.lane.b32.xlu0 %v10531_v43, 264 }
 0x89e   :  { %3222 = vbcast.lane.b32.xlu1 %v10490_v15, 336  ;;  %3147 = vbcast.lane.b32.xlu0 %v10485_v48, 320 }
 0x8a0   :  { %v10563_v37 = vpop.permute.xlu1 %3127  ;;  %v10565_v36 = vpop.permute.xlu0 %3048 }
 0x8a2   :  { %3348 = vbcast.lane.b32.xlu1 %v10495_v18, 320  ;;  %3273 = vbcast.lane.b32.xlu0 %v10513_v28, 304 }
 0x8a4   :  { %v10569_v4 = vpop.permute.xlu1 %3194  ;;  %v10571_v63 = vpop.permute.xlu0 %3052 }
 0x8a6   :  { %3474 = vbcast.lane.b32.xlu1 %v10520_v59, 304  ;;  %3399 = vbcast.lane.b32.xlu0 %v10506_v51, 288 }
 0x8a8   :  { %v10575_v3 = vpop.permute.xlu1 %3316  ;;  %v10577_v7 = vpop.permute.xlu0 %3115 }
 0x8aa   :  { %3096 = vbcast.lane.b32.xlu1 %v10482_v53, 352  ;;  %3525 = vbcast.lane.b32.xlu0 %v10531_v43, 272 }
 0x8ac   :  { %v10581_v12 = vpop.permute.xlu1 %3068  ;;  %v10583_v57 = vpop.permute.xlu0 %3119 }
 0x8ae   :  { %3226 = vbcast.lane.b32.xlu1 %v10490_v15, 344  ;;  %3151 = vbcast.lane.b32.xlu0 %v10485_v48, 328 }
 0x8b0   :  { %v10587_v41 = vpop.permute.xlu1 %3198  ;;  %v10589_v0 = vpop.permute.xlu0 %3056 }
 0x8b2   :  { %3352 = vbcast.lane.b32.xlu1 %v10495_v18, 328  ;;  %3277 = vbcast.lane.b32.xlu0 %v10513_v28, 312 }
 0x8b4   :  { %v10593_v35 = vpop.permute.xlu1 %3324  ;;  %v10595_v26 = vpop.permute.xlu0 %3123 }
 0x8b6   :  { %3478 = vbcast.lane.b32.xlu1 %v10520_v59, 312  ;;  %3403 = vbcast.lane.b32.xlu0 %v10506_v51, 296 }
 0x8b8   :  { %v10599_v24 = vpop.permute.xlu1 %3387  ;;  %v10601_v47 = vpop.permute.xlu0 %3182 }
 0x8ba   :  { %3100 = vbcast.lane.b32.xlu1 %v10482_v53, 360  ;;  %3529 = vbcast.lane.b32.xlu0 %v10531_v43, 280 }
 0x8bc   :  { %v10605_v16 = vpop.permute.xlu1 %3139  ;;  %v10607_v29 = vpop.permute.xlu0 %3186 }
 0x8be   :  { %3230 = vbcast.lane.b32.xlu1 %v10490_v15, 352  ;;  %3155 = vbcast.lane.b32.xlu0 %v10485_v48, 336 }
 0x8c0   :  { %v10611_v11 = vpop.permute.xlu1 %3265  ;;  %v10613_v22 = vpop.permute.xlu0 %3060 }
 0x8c2   :  { %3356 = vbcast.lane.b32.xlu1 %v10495_v18, 336  ;;  %3281 = vbcast.lane.b32.xlu0 %v10513_v28, 320 }
 0x8c4   :  { %v10617_v31 = vpop.permute.xlu1 %3391  ;;  %v10619_v30 = vpop.permute.xlu0 %3190 }
 0x8c6   :  { %3482 = vbcast.lane.b32.xlu1 %v10520_v59, 320  ;;  %3407 = vbcast.lane.b32.xlu0 %v10506_v51, 304 }
 0x8c8   :  { %v10623_v9 = vpop.permute.xlu1 %3454  ;;  %v10625_v1 = vpop.permute.xlu0 %3249 }
 0x8ca   :  { %3104 = vbcast.lane.b32.xlu1 %v10482_v53, 368  ;;  %3533 = vbcast.lane.b32.xlu0 %v10531_v43, 288 }
 0x8cc   :  { %v10629_v5 = vpop.permute.xlu1 %3143  ;;  %v10631_v34 = vpop.permute.xlu0 %3253 }
 0x8ce   :  { %3234 = vbcast.lane.b32.xlu1 %v10490_v15, 360  ;;  %3159 = vbcast.lane.b32.xlu0 %v10485_v48, 344 }
 0x8d0   :  { %v10635_v46 = vpop.permute.xlu1 %3269  ;;  %v10637_v21 = vpop.permute.xlu0 %3064 }
 0x8d2   :  { %3360 = vbcast.lane.b32.xlu1 %v10495_v18, 344  ;;  %3285 = vbcast.lane.b32.xlu0 %v10513_v28, 328 }
 0x8d4   :  { %v10641_v62 = vpop.permute.xlu1 %3395  ;;  %v10643_v61 = vpop.permute.xlu0 %3131 }
 0x8d6   :  { %3486 = vbcast.lane.b32.xlu1 %v10520_v59, 328  ;;  %3411 = vbcast.lane.b32.xlu0 %v10506_v51, 312 }
 0x8d8   :  { %v10647_v38 = vpop.permute.xlu1 %3517  ;;  %v10649_v19 = vpop.permute.xlu0 %3257 }
 0x8da   :  { %3108 = vbcast.lane.b32.xlu1 %v10482_v53, 376  ;;  %3537 = vbcast.lane.b32.xlu0 %v10531_v43, 296 }
 0x8dc   :  { %v10653_v55 = vpop.permute.xlu1 %3080  ;;  %v10655_v10 = vpop.permute.xlu0 %3320 }
 0x8de   :  { %3238 = vbcast.lane.b32.xlu1 %v10490_v15, 368  ;;  %3163 = vbcast.lane.b32.xlu0 %v10485_v48, 352 }
 0x8e0   :  { %v10659_v14 = vpop.permute.xlu1 %3210  ;;  %v10661_v44 = vpop.permute.xlu0 %3135 }
 0x8e2   :  { %3364 = vbcast.lane.b32.xlu1 %v10495_v18, 352  ;;  %3289 = vbcast.lane.b32.xlu0 %v10513_v28, 336 }
 0x8e4   :  { %v10665_v25 = vpop.permute.xlu1 %3336  ;;  %v10667_v53 = vpop.permute.xlu0 %3261 }
 0x8e6   :  { %3490 = vbcast.lane.b32.xlu1 %v10520_v59, 336  ;;  %3415 = vbcast.lane.b32.xlu0 %v10506_v51, 320 }
 0x8e8   :  { %v10671_v42 = vpop.permute.xlu1 %3462  ;;  %v10673_v49 = vpop.permute.xlu0 %3383 }
 0x8ea   :  { %3242 = vbcast.lane.b32.xlu1 %v10490_v15, 376  ;;  %3541 = vbcast.lane.b32.xlu0 %v10531_v43, 304 }
 0x8ec   :  { %v10677_v17 = vpop.permute.xlu1 %3084  ;;  %v10679_v45 = vpop.permute.xlu0 %3072 }
 0x8ee   :  { %3368 = vbcast.lane.b32.xlu1 %v10495_v18, 360  ;;  %3167 = vbcast.lane.b32.xlu0 %v10485_v48, 360 }
 0x8f0   :  { %v10683_v60 = vpop.permute.xlu1 %3214  ;;  %v10685_v6 = vpop.permute.xlu0 %3202 }
 0x8f2   :  { %3494 = vbcast.lane.b32.xlu1 %v10520_v59, 344  ;;  %3293 = vbcast.lane.b32.xlu0 %v10513_v28, 344 }
 0x8f4   :  { %v10689_v50 = vpop.permute.xlu1 %3340  ;;  %v10691_v15 = vpop.permute.xlu0 %3328 }
 0x8f6   :  { %3309 = vbcast.lane.b32.xlu1 %v10513_v28, 376  ;;  %3419 = vbcast.lane.b32.xlu0 %v10506_v51, 328 }
 0x8f8   :  { %v10695_v2 = vpop.permute.xlu1 %3466  ;;  %v10697_v20 = vpop.permute.xlu0 %3450 }
 0x8fa   :  { %3435 = vbcast.lane.b32.xlu1 %v10506_v51, 360  ;;  %3545 = vbcast.lane.b32.xlu0 %v10531_v43, 312 }
 0x8fc   :  { %v10701_v23 = vpop.permute.xlu1 %3088  ;;  %v10703_v27 = vpop.permute.xlu0 %3076 }
 0x8fe   :  { %3561 = vbcast.lane.b32.xlu1 %v10531_v43, 344  ;;  %3171 = vbcast.lane.b32.xlu0 %v10485_v48, 368 }
 0x900   :  { %v10707_v40 = vpop.permute.xlu1 %3218  ;;  %v10709_v13 = vpop.permute.xlu0 %3206 }
 0x901   :  { %13502 = vst [vmem:[#allocation122_spill] sm:$0xff] %v10709_v13 }
 0x902   :  { %3439 = vbcast.lane.b32.xlu1 %v10506_v51, 368  ;;  %3297 = vbcast.lane.b32.xlu0 %v10513_v28, 352 }
 0x904   :  { %v10713_v39 = vpop.permute.xlu1 %3344  ;;  %v10715_v33 = vpop.permute.xlu0 %3332 }
 0x905   :  { %13503 = vst [vmem:[#allocation30_spill] sm:$0xff] %v10713_v39  ;;  %13504 = vst [vmem:[#allocation96_spill] sm:$0xff] %v10715_v33  ;;  %v13511_v33 = vld [vmem:[#allocation35_spill] sm:$0xff] }
 0x906   :  { %3565 = vbcast.lane.b32.xlu1 %v10531_v43, 352  ;;  %3423 = vbcast.lane.b32.xlu0 %v10506_v51, 336 }
 0x908   :  { %v10719_v54 = vpop.permute.xlu1 %3470  ;;  %v10721_v8 = vpop.permute.xlu0 %3458 }
 0x909   :  { %13505 = vst [vmem:[#allocation104_spill] sm:$0xff] %v10719_v54  ;;  %13506 = vst [vmem:[#allocation114_spill] sm:$0xff] %v10721_v8  ;;  %v13512_v54 = vld [vmem:[#allocation71_spill] sm:$0xff] }
 0x90a   :  { %3506 = vbcast.lane.b32.xlu1 %v10520_v59, 368  ;;  %3549 = vbcast.lane.b32.xlu0 %v10531_v43, 320  ;;  %v10737_v39 = vadd.f32 %v13512_v54, %v13511_v33  ;;  %v13516_v54 = vld [vmem:[#allocation42_spill] sm:$0xff] }
 0x90c   :  { %v10725_v58 = vpop.permute.xlu1 %3092  ;;  %v10727_v56 = vpop.permute.xlu0 %3521 }
 0x90d   :  { %13507 = vst [vmem:[#allocation121_spill] sm:$0xff] %v10725_v58  ;;  %13508 = vst [vmem:[#allocation36_spill] sm:$0xff] %v10727_v56  ;;  %v3708_v58 = vsub.f32 %v10737_v39, %v10571_v63 }
 0x90e   :  { %3510 = vbcast.lane.b32.xlu1 %v10520_v59, 376  ;;  %3175 = vbcast.lane.b32.xlu0 %v10485_v48, 376  ;;  %v3724_v48 = vsub.f32 %v10737_v39, %v10583_v57  ;;  %v3740_v57 = vsub.f32 %v10737_v39, %v10607_v29  ;;  %v13525_v29 = vld [vmem:[#allocation76_spill] sm:$0xff] }
 0x910   :  { %v10731_v32 = vpop.permute.xlu1 %3222  ;;  %v10733_v52 = vpop.permute.xlu0 %3147 }
 0x911   :  { %13509 = vst [vmem:[#allocation99_spill] sm:$0xff] %v10731_v32  ;;  %13510 = vst [vmem:[#allocation107_spill] sm:$0xff] %v10733_v52  ;;  %v13517_v32 = vld [vmem:[#allocation73_spill] sm:$0xff] }
 0x912   :  { %3577 = vbcast.lane.b32.xlu1 %v10531_v43, 376  ;;  %3301 = vbcast.lane.b32.xlu0 %v10513_v28, 360  ;;  %v10756_v13 = vadd.f32 %v13517_v32, %v13516_v54  ;;  %v13523_v32 = vld [vmem:[#allocation75_spill] sm:$0xff] }
 0x914   :  { %v10743_v56 = vpop.permute.xlu1 %3348  ;;  %v10745_v8 = vpop.permute.xlu0 %3273  ;;  %v3725_v63 = vsub.f32 %v10756_v13, %v10595_v26 }
 0x915   :  { %13513 = vst [vmem:[#allocation113_spill] sm:$0xff] %v10745_v8 }
 0x916   :  { %3967 = vperm.xlu1 %8156, %v3708_v58   ;;  %3427 = vbcast.lane.b32.xlu0 %v10506_v51, 344 }
 0x918   :  { %v10750_v52 = vpop.permute.xlu1 %3474  ;;  %v10752_v33 = vpop.permute.xlu0 %3399 }
 0x919   :  { %13514 = vst [vmem:[#allocation31_spill] sm:$0xff] %v10750_v52  ;;  %13515 = vst [vmem:[#allocation98_spill] sm:$0xff] %v10752_v33 }
 0x91a   :  { %4015 = vperm.xlu1 %8156, %v3724_v48   ;;  %3553 = vbcast.lane.b32.xlu0 %v10531_v43, 328  ;;  %v13522_v48 = vld [vmem:[#allocation37_spill] sm:$0xff] }
 0x91b   :  { %v10774_v52 = vadd.f32 %v13523_v32, %v13522_v48 }
 0x91c   :  { %v10761_v58 = vpop.permute.xlu1 %3096  ;;  %v10763_v8 = vpop.permute.xlu0 %3525 }
 0x91d   :  { %13518 = vst [vmem:[#allocation106_spill] sm:$0xff] %v10761_v58  ;;  %13519 = vst [vmem:[#allocation116_spill] sm:$0xff] %v10763_v8  ;;  %v3726_v26 = vsub.f32 %v10774_v52, %v10563_v37  ;;  %v13524_v8 = vld [vmem:[#allocation40_spill] sm:$0xff]  ;;  %v13528_v37 = vld [vmem:[#allocation78_spill] sm:$0xff] }
 0x91e   :  { %4018 = vperm.xlu1 %8156, %v3725_v63   ;;  %3305 = vbcast.lane.b32.xlu0 %v10513_v28, 368  ;;  %v10785_v58 = vadd.f32 %v13525_v29, %v13524_v8 }
 0x920   :  { %v10768_v33 = vpop.permute.xlu1 %3226  ;;  %v10770_v54 = vpop.permute.xlu0 %3151  ;;  %v3755_v48 = vsub.f32 %v10785_v58, %v10625_v1  ;;  %v3742_v1 = vsub.f32 %v10774_v52, %v10569_v4 }
 0x921   :  { %13520 = vst [vmem:[#allocation38_spill] sm:$0xff] %v10768_v33  ;;  %13521 = vst [vmem:[#allocation101_spill] sm:$0xff] %v10770_v54  ;;  %v13527_v54 = vld [vmem:[#allocation45_spill] sm:$0xff] }
 0x922   :  { %4063 = vperm.xlu1 %8156, %v3740_v57   ;;  %3431 = vbcast.lane.b32.xlu0 %v10506_v51, 352  ;;  %v10796_v33 = vadd.f32 %v13528_v37, %v13527_v54 }
 0x924   :  { %v10779_v63 = vpop.permute.xlu1 %3352  ;;  %v10781_v28 = vpop.permute.xlu0 %3277  ;;  %v3711_v8 = vsub.f32 %v10796_v33, %v10637_v21  ;;  %v3771_v21 = vsub.f32 %v10785_v58, %v10575_v3  ;;  %v3743_v3 = vsub.f32 %v10796_v33, %v10587_v41  ;;  %v3788_v41 = vsub.f32 %v10737_v39, %v10599_v24 }
 0x925   :  { %v3709_v24 = vsub.f32 %v10756_v13, %v10589_v0  ;;  %v3710_v0 = vsub.f32 %v10774_v52, %v10613_v22 }
 0x926   :  { %4021 = vperm.xlu1 %8156, %v3726_v26   ;;  %3557 = vbcast.lane.b32.xlu0 %v10531_v43, 336 }
 0x928   :  { %v10790_v57 = vpop.permute.xlu1 %3478  ;;  %v10792_v32 = vpop.permute.xlu0 %3403 }
 0x929   :  { %13526 = vst [vmem:[#allocation109_spill] sm:$0xff] %v10792_v32 }
 0x92a   :  { %4108 = vperm.xlu1 %8156, %v3755_v48   ;;  %3372 = vbcast.lane.b32.xlu0 %v10495_v18, 368 }
 0x92c   :  { %v10801_v26 = vpop.permute.xlu1 %3100  ;;  %v10803_v29 = vpop.permute.xlu0 %3529 }
 0x92d   :  { %13529 = vst [vmem:[#allocation115_spill] sm:$0xff] %v10801_v26  ;;  %13530 = vst [vmem:[#allocation33_spill] sm:$0xff] %v10803_v29  ;;  %v13533_v29 = vld [vmem:[#allocation77_spill] sm:$0xff] }
 0x92e   :  { %3976 = vperm.xlu1 %8156, %v3711_v8   ;;  %3498 = vbcast.lane.b32.xlu0 %v10520_v59, 352  ;;  %v13532_v8 = vld [vmem:[#allocation39_spill] sm:$0xff] }
 0x92f   :  { %v10821_v26 = vadd.f32 %v13533_v29, %v13532_v8  ;;  %v13536_v29 = vld [vmem:[#allocation48_spill] sm:$0xff] }
 0x930   :  { %v10808_v32 = vpop.permute.xlu1 %3230  ;;  %v10810_v54 = vpop.permute.xlu0 %3155 }
 0x931   :  { %v3712_v4 = vsub.f32 %v10821_v26, %v10581_v12 }
 0x932   :  { %4069 = vperm.xlu1 %8156, %v3742_v1   ;;  %3376 = vbcast.lane.b32.xlu0 %v10495_v18, 376 }
 0x934   :  { %v10815_v48 = vpop.permute.xlu1 %3356  ;;  %v10817_v37 = vpop.permute.xlu0 %3281 }
 0x935   :  { %13531 = vst [vmem:[#allocation100_spill] sm:$0xff] %v10817_v37 }
 0x936   :  { %4156 = vperm.xlu1 %8156, %v3771_v21   ;;  %3502 = vbcast.lane.b32.xlu0 %v10520_v59, 360  ;;  %v3773_v59 = vsub.f32 %v10756_v13, %v10593_v35 }
 0x938   :  { %v10826_v1 = vpop.permute.xlu1 %3482  ;;  %v10828_v18 = vpop.permute.xlu0 %3407 }
 0x93a   :  { %3979 = vperm.xlu1 %8156, %v3712_v4   ;;  %3443 = vbcast.lane.b32.xlu0 %v10506_v51, 376  ;;  %v3707_v51 = vsub.f32 %v10785_v58, %v10565_v36 }
 0x93c   :  { %v10833_v37 = vpop.permute.xlu1 %3104  ;;  %v10835_v8 = vpop.permute.xlu0 %3533 }
 0x93d   :  { %13534 = vst [vmem:[#allocation108_spill] sm:$0xff] %v10835_v8  ;;  %v13537_v8 = vld [vmem:[#allocation80_spill] sm:$0xff] }
 0x93e   :  { %4072 = vperm.xlu1 %8156, %v3743_v3   ;;  %3569 = vbcast.lane.b32.xlu0 %v10531_v43, 360  ;;  %v10855_v35 = vadd.f32 %v13537_v8, %v13536_v29  ;;  %v3759_v29 = vsub.f32 %v10796_v33, %v10611_v11  ;;  %v3804_v11 = vsub.f32 %v10737_v39, %v10623_v9  ;;  %v13540_v8 = vld [vmem:[#allocation79_spill] sm:$0xff] }
 0x93f   :  { %v3756_v9 = vsub.f32 %v10737_v39, %v10631_v34  ;;  %v3819_v34 = vsub.f32 %v10785_v58, %v10647_v38 }
 0x940   :  { %v10840_v12 = vpop.permute.xlu1 %3234  ;;  %v10842_v21 = vpop.permute.xlu0 %3159 }
 0x941   :  { %13535 = vst [vmem:[#allocation118_spill] sm:$0xff] %v10842_v21 }
 0x942   :  { %4162 = vperm.xlu1 %8156, %v3773_v59   ;;  %3573 = vbcast.lane.b32.xlu0 %v10531_v43, 368  ;;  %v3723_v59 = vsub.f32 %v10785_v58, %v10577_v7  ;;  %v3729_v43 = vsub.f32 %v10855_v35, %v10605_v16  ;;  %v3739_v7 = vsub.f32 %v10785_v58, %v10601_v47  ;;  %v13539_v47 = vld [vmem:[#allocation41_spill] sm:$0xff] }
 0x943   :  { %v3789_v16 = vsub.f32 %v10756_v13, %v10617_v31  ;;  %v3741_v31 = vsub.f32 %v10756_v13, %v10619_v30  ;;  %v3790_v30 = vsub.f32 %v10774_v52, %v10641_v62  ;;  %v13542_v62 = vld [vmem:[#allocation50_spill] sm:$0xff] }
 0x944   :  { %v10849_v4 = vpop.permute.xlu1 %3360  ;;  %v10851_v3 = vpop.permute.xlu0 %3285 }
 0x946   :  { %4207 = vperm.xlu1 %8156, %v3788_v41   ;;  %3964 = vperm.xlu0 %8155, %v3707_v51  }
 0x948   :  { %v10861_v36 = vpop.permute.xlu1 %3486  ;;  %v10863_v21 = vpop.permute.xlu0 %3411 }
 0x94a   :  { %4030 = vperm.xlu1 %8156, %v3729_v43   ;;  %4012 = vperm.xlu0 %8155, %v3723_v59  }
 0x94c   :  { %v10869_v41 = vpop.permute.xlu1 %3108  ;;  %v10871_v51 = vpop.permute.xlu0 %3537 }
 0x94d   :  { %13538 = vst [vmem:[#allocation117_spill] sm:$0xff] %v10871_v51  ;;  %v10891_v51 = vadd.f32 %v13540_v8, %v13539_v47  ;;  %v3760_v47 = vsub.f32 %v10821_v26, %v10635_v46  ;;  %v3757_v46 = vsub.f32 %v10756_v13, %v10649_v19  ;;  %v13543_v8 = vld [vmem:[#allocation83_spill] sm:$0xff] }
 0x94e   :  { %4120 = vperm.xlu1 %8156, %v3759_v29   ;;  %3970 = vperm.xlu0 %8155, %v3709_v24  }
 0x94f   :  { %v3746_v19 = vsub.f32 %v10891_v51, %v10659_v14  ;;  %v3806_v14 = vsub.f32 %v10774_v52, %v10671_v42 }
 0x950   :  { %v10877_v43 = vpop.permute.xlu1 %3238  ;;  %v10879_v59 = vpop.permute.xlu0 %3163 }
 0x952   :  { %4210 = vperm.xlu1 %8156, %v3789_v16   ;;  %4060 = vperm.xlu0 %8155, %v3739_v7   ;;  %v3730_v7 = vsub.f32 %v10891_v51, %v10629_v5  ;;  %v3727_v5 = vsub.f32 %v10796_v33, %v10643_v61 }
 0x954   :  { %v10885_v29 = vpop.permute.xlu1 %3364  ;;  %v10887_v24 = vpop.permute.xlu0 %3289 }
 0x956   :  { %4255 = vperm.xlu1 %8156, %v3804_v11   ;;  %3973 = vperm.xlu0 %8155, %v3710_v0  }
 0x958   :  { %v10897_v22 = vpop.permute.xlu1 %3490  ;;  %v10899_v16 = vpop.permute.xlu0 %3415 }
 0x95a   :  { %4033 = vperm.xlu1 %8156, %v3730_v7   ;;  %4066 = vperm.xlu0 %8155, %v3741_v31  }
 0x95c   :  { %v10905_v11 = vpop.permute.xlu1 %3242  ;;  %v10907_v0 = vpop.permute.xlu0 %3541 }
 0x95d   :  { %13541 = vst [vmem:[#allocation32_spill] sm:$0xff] %v10907_v0  ;;  %v10927_v0 = vadd.f32 %v13543_v8, %v13542_v62  ;;  %v3728_v62 = vsub.f32 %v10821_v26, %v10661_v44  ;;  %v3787_v44 = vsub.f32 %v10785_v58, %v10673_v49  ;;  %v13546_v8 = vld [vmem:[#allocation82_spill] sm:$0xff] }
 0x95e   :  { %4123 = vperm.xlu1 %8156, %v3760_v47   ;;  %4111 = vperm.xlu0 %8155, %v3756_v9  }
 0x95f   :  { %v3715_v61 = vsub.f32 %v10927_v0, %v10653_v55  ;;  %v3776_v55 = vsub.f32 %v10821_v26, %v10665_v25  ;;  %v13545_v25 = vld [vmem:[#allocation44_spill] sm:$0xff] }
 0x960   :  { %v10913_v7 = vpop.permute.xlu1 %3368  ;;  %v10915_v31 = vpop.permute.xlu0 %3167 }
 0x962   :  { %4213 = vperm.xlu1 %8156, %v3790_v30   ;;  %4024 = vperm.xlu0 %8155, %v3727_v5   ;;  %v3772_v30 = vsub.f32 %v10737_v39, %v10655_v10  ;;  %v3758_v10 = vsub.f32 %v10774_v52, %v10667_v53 }
 0x964   :  { %v10921_v47 = vpop.permute.xlu1 %3494  ;;  %v10923_v9 = vpop.permute.xlu0 %3293 }
 0x966   :  { %4300 = vperm.xlu1 %8156, %v3819_v34   ;;  %4114 = vperm.xlu0 %8155, %v3757_v46  }
 0x968   :  { %v10933_v38 = vpop.permute.xlu1 %3309  ;;  %v10935_v5 = vpop.permute.xlu0 %3419 }
 0x96a   :  { %3988 = vperm.xlu1 %8156, %v3715_v61   ;;  %4159 = vperm.xlu0 %8155, %v3772_v30  }
 0x96c   :  { %v10941_v34 = vpop.permute.xlu1 %3435  ;;  %v10943_v46 = vpop.permute.xlu0 %3545 }
 0x96d   :  { %13544 = vst [vmem:[#allocation94_spill] sm:$0xff] %v10943_v46  ;;  %v10963_v46 = vadd.f32 %v13546_v8, %v13545_v25  ;;  %v3744_v25 = vsub.f32 %v10821_v26, %v10685_v6  ;;  %v3803_v6 = vsub.f32 %v10785_v58, %v10697_v20  ;;  %v13551_v58 = vld [vmem:[#allocation122_spill] sm:$0xff] }
 0x96e   :  { %4081 = vperm.xlu1 %8156, %v3746_v19   ;;  %4027 = vperm.xlu0 %8155, %v3728_v62  }
 0x96f   :  { %v3716_v53 = vsub.f32 %v10963_v46, %v10677_v17  ;;  %v3777_v17 = vsub.f32 %v10855_v35, %v10689_v50  ;;  %v3748_v20 = vsub.f32 %v10963_v46, %v10707_v40  ;;  %v13558_v40 = vld [vmem:[#allocation104_spill] sm:$0xff] }
 0x970   :  { %v10949_v61 = vpop.permute.xlu1 %3561  ;;  %v10951_v30 = vpop.permute.xlu0 %3171 }
 0x972   :  { %4171 = vperm.xlu1 %8156, %v3776_v55   ;;  %4117 = vperm.xlu0 %8155, %v3758_v10   ;;  %v3713_v55 = vsub.f32 %v10855_v35, %v10679_v45  ;;  %v3747_v10 = vsub.f32 %v10927_v0, %v10683_v60  ;;  %v3774_v45 = vsub.f32 %v10774_v52, %v10691_v15 }
 0x973   :  { %v3807_v60 = vsub.f32 %v10796_v33, %v10695_v2 }
 0x974   :  { %v10957_v19 = vpop.permute.xlu0 %3297  ;;  %v10959_v62 = vpop.permute.xlu1 %3439 }
 0x976   :  { %4261 = vperm.xlu1 %8156, %v3806_v14   ;;  %4204 = vperm.xlu0 %8155, %v3787_v44  }
 0x978   :  { %v10969_v42 = vpop.permute.xlu0 %3423  ;;  %v10971_v49 = vpop.permute.xlu1 %3565 }
 0x97a   :  { %3991 = vperm.xlu1 %8156, %v3716_v53   ;;  %3982 = vperm.xlu0 %8155, %v3713_v55  }
 0x97c   :  { %v10977_v14 = vpop.permute.xlu0 %3549  ;;  %v10985_v53 = vpop.permute.xlu1 %3506 }
 0x97e   :  { %4084 = vperm.xlu1 %8156, %v3747_v10   ;;  %4075 = vperm.xlu0 %8155, %v3744_v25   ;;  %v13548_v10 = vld [vmem:[#allocation52_spill] sm:$0xff]  ;;  %v13549_v25 = vld [vmem:[#allocation85_spill] sm:$0xff] }
 0x97f   :  { %v10995_v50 = vadd.f32 %v13549_v25, %v13548_v10  ;;  %v3745_v10 = vsub.f32 %v10855_v35, %v13551_v58  ;;  %v3808_v58 = vsub.f32 %v10821_v26, %v13558_v40 }
 0x980   :  { %v10983_v44 = vpop.permute.xlu0 %3175  ;;  %v10997_v15 = vpop.permute.xlu1 %3510 }
 0x982   :  { %4174 = vperm.xlu1 %8156, %v3777_v17   ;;  %4165 = vperm.xlu0 %8155, %v3774_v45   ;;  %v3717_v17 = vsub.f32 %v10995_v50, %v10701_v23  ;;  %v3714_v45 = vsub.f32 %v10891_v51, %v10703_v27  ;;  %v13554_v23 = vld [vmem:[#allocation30_spill] sm:$0xff]  ;;  %v13555_v27 = vld [vmem:[#allocation96_spill] sm:$0xff] }
 0x983   :  { %v3778_v25 = vsub.f32 %v10891_v51, %v13554_v23  ;;  %v3775_v8 = vsub.f32 %v10796_v33, %v13555_v27  ;;  %v13562_v23 = vld [vmem:[#allocation47_spill] sm:$0xff]  ;;  %v13564_v27 = vld [vmem:[#allocation121_spill] sm:$0xff] }
 0x984   :  { %v10991_v55 = vpop.permute.xlu0 %3301 }
 0x985   :  { %13547 = vst [vmem:[#allocation123_spill] sm:$0xff] %v10991_v55  ;;  %v13563_v55 = vld [vmem:[#allocation84_spill] sm:$0xff] }
 0x986   :  { %4264 = vperm.xlu1 %8156, %v3807_v60   ;;  %4252 = vperm.xlu0 %8155, %v3803_v6   ;;  %v11011_v6 = vpop.permute.xlu1 %3577 }
 0x987   :  { %13553 = vst [vmem:[#allocation126_spill] sm:$0xff] %v11011_v6  ;;  %v11031_v6 = vadd.f32 %v13563_v55, %v13562_v23  ;;  %v13575_v55 = vld [vmem:[#allocation98_spill] sm:$0xff] }
 0x988   :  { %v11003_v2 = vpop.permute.xlu0 %3427 }
 0x989   :  { %13550 = vst [vmem:[#allocation124_spill] sm:$0xff] %v11003_v2 }
 0x98a   :  { %3994 = vperm.xlu1 %8156, %v3717_v17   ;;  %3985 = vperm.xlu0 %8155, %v3714_v45  }
 0x98c   :  { %v11009_v60 = vpop.permute.xlu0 %3553 }
 0x98d   :  { %13552 = vst [vmem:[#allocation125_spill] sm:$0xff] %v11009_v60  ;;  %v13559_v60 = vld [vmem:[#allocation114_spill] sm:$0xff] }
 0x98e   :  { %4087 = vperm.xlu1 %8156, %v3748_v20   ;;  %4078 = vperm.xlu0 %8155, %v3745_v10   ;;  %v3805_v2 = vsub.f32 %v10756_v13, %v13559_v60  ;;  %v13567_v60 = vld [vmem:[#allocation99_spill] sm:$0xff] }
 0x990   :  { %v11017_v17 = vpop.permute.xlu0 %3305 }
 0x991   :  { %13556 = vst [vmem:[#allocation127_spill] sm:$0xff] %v11017_v17  ;;  %v11019_v45 = vpop.permute.xlu1 %3967 }
 0x992   :  { %13557 = vst [vmem:[#allocation128_spill] sm:$0xff] %v11019_v45  ;;  %4177 = vperm.xlu1 %8156, %v3778_v25   ;;  %4168 = vperm.xlu0 %8155, %v3775_v8   ;;  %v3718_v25 = vsub.f32 %v11031_v6, %v13564_v27  ;;  %v13565_v8 = vld [vmem:[#allocation36_spill] sm:$0xff]  ;;  %v13571_v27 = vld [vmem:[#allocation113_spill] sm:$0xff] }
 0x993   :  { %v3820_v45 = vsub.f32 %v10737_v39, %v13565_v8  ;;  %v3779_v39 = vsub.f32 %v10927_v0, %v10743_v56  ;;  %v3761_v8 = vsub.f32 %v10855_v35, %v13571_v27  ;;  %v13578_v56 = vld [vmem:[#allocation54_spill] sm:$0xff] }
 0x994   :  { %v11025_v20 = vpop.permute.xlu0 %3431  ;;  %v13580_v27 = vld [vmem:[#allocation106_spill] sm:$0xff] }
 0x995   :  { %13560 = vst [vmem:[#allocation129_spill] sm:$0xff] %v11025_v20  ;;  %v11027_v10 = vpop.permute.xlu1 %4015  ;;  %v13568_v20 = vld [vmem:[#allocation107_spill] sm:$0xff] }
 0x996   :  { %13561 = vst [vmem:[#allocation130_spill] sm:$0xff] %v11027_v10  ;;  %4267 = vperm.xlu1 %8156, %v3808_v58   ;;  %4258 = vperm.xlu0 %8155, %v3805_v2   ;;  %v3749_v10 = vsub.f32 %v10995_v50, %v13567_v60  ;;  %v3731_v23 = vsub.f32 %v10927_v0, %v13568_v20  ;;  %v13574_v60 = vld [vmem:[#allocation31_spill] sm:$0xff] }
 0x997   :  { %v3809_v20 = vsub.f32 %v10855_v35, %v13574_v60 }
 0x998   :  { %v11037_v40 = vpop.permute.xlu0 %3557 }
 0x999   :  { %v11039_v17 = vpop.permute.xlu1 %4018 }
 0x99a   :  { %13566 = vst [vmem:[#allocation131_spill] sm:$0xff] %v11039_v17  ;;  %3997 = vperm.xlu1 %8156, %v3718_v25   ;;  %4303 = vperm.xlu0 %8155, %v3820_v45   ;;  %v13579_v17 = vld [vmem:[#allocation87_spill] sm:$0xff] }
 0x99c   :  { %v11045_v58 = vpop.permute.xlu0 %3372 }
 0x99d   :  { %13569 = vst [vmem:[#allocation132_spill] sm:$0xff] %v11045_v58  ;;  %v11047_v2 = vpop.permute.xlu1 %4063  ;;  %v11067_v58 = vadd.f32 %v13579_v17, %v13578_v56  ;;  %v13588_v17 = vld [vmem:[#allocation115_spill] sm:$0xff] }
 0x99e   :  { %13570 = vst [vmem:[#allocation133_spill] sm:$0xff] %v11047_v2  ;;  %4090 = vperm.xlu1 %8156, %v3749_v10   ;;  %4036 = vperm.xlu0 %8155, %v3731_v23   ;;  %v3791_v2 = vsub.f32 %v10796_v33, %v13575_v55 }
 0x9a0   :  { %v11053_v25 = vpop.permute.xlu0 %3498 }
 0x9a1   :  { %13572 = vst [vmem:[#allocation134_spill] sm:$0xff] %v11053_v25  ;;  %v11055_v45 = vpop.permute.xlu1 %4021  ;;  %v13583_v25 = vld [vmem:[#allocation101_spill] sm:$0xff] }
 0x9a2   :  { %13573 = vst [vmem:[#allocation135_spill] sm:$0xff] %v11055_v45  ;;  %4180 = vperm.xlu1 %8156, %v3779_v39   ;;  %4126 = vperm.xlu0 %8155, %v3761_v8   ;;  %v3719_v39 = vsub.f32 %v11067_v58, %v13580_v27  ;;  %v13581_v8 = vld [vmem:[#allocation116_spill] sm:$0xff]  ;;  %v3732_v56 = vsub.f32 %v10963_v46, %v13583_v25  ;;  %v13585_v25 = vld [vmem:[#allocation109_spill] sm:$0xff] }
 0x9a3   :  { %v3821_v45 = vsub.f32 %v10756_v13, %v13581_v8  ;;  %v3762_v13 = vsub.f32 %v10891_v51, %v10781_v28  ;;  %v13586_v8 = vld [vmem:[#allocation49_spill] sm:$0xff] }
 0x9a4   :  { %v11061_v10 = vpop.permute.xlu0 %3376 }
 0x9a5   :  { %13576 = vst [vmem:[#allocation136_spill] sm:$0xff] %v11061_v10  ;;  %v11063_v23 = vpop.permute.xlu1 %4108  ;;  %v13582_v10 = vld [vmem:[#allocation38_spill] sm:$0xff] }
 0x9a6   :  { %13577 = vst [vmem:[#allocation137_spill] sm:$0xff] %v11063_v23  ;;  %4270 = vperm.xlu1 %8156, %v3809_v20   ;;  %4216 = vperm.xlu0 %8155, %v3791_v2   ;;  %v3750_v23 = vsub.f32 %v11031_v6, %v13582_v10  ;;  %v3780_v2 = vsub.f32 %v10963_v46, %v10779_v63 }
 0x9a7   :  { %v3810_v10 = vsub.f32 %v10891_v51, %v10790_v57 }
 0x9a8   :  { %v11075_v55 = vpop.permute.xlu0 %3502 }
 0x9a9   :  { %v11073_v60 = vpop.permute.xlu1 %3976 }
 0x9aa   :  { %4000 = vperm.xlu1 %8156, %v3719_v39   ;;  %4306 = vperm.xlu0 %8155, %v3821_v45   ;;  %v3792_v39 = vsub.f32 %v10821_v26, %v13585_v25  ;;  %v3751_v25 = vsub.f32 %v11067_v58, %v10808_v32  ;;  %v3811_v32 = vsub.f32 %v10927_v0, %v10826_v1 }
 0x9ac   :  { %v11087_v27 = vpop.permute.xlu0 %3443 }
 0x9ad   :  { %v11081_v20 = vpop.permute.xlu1 %4069 }
 0x9ae   :  { %4093 = vperm.xlu1 %8156, %v3750_v23   ;;  %4039 = vperm.xlu0 %8155, %v3732_v56   ;;  %v13587_v56 = vld [vmem:[#allocation86_spill] sm:$0xff] }
 0x9af   :  { %v11099_v63 = vadd.f32 %v13587_v56, %v13586_v8  ;;  %v3733_v8 = vsub.f32 %v10995_v50, %v10810_v54  ;;  %v3793_v54 = vsub.f32 %v10855_v35, %v10828_v18  ;;  %v13595_v56 = vld [vmem:[#allocation90_spill] sm:$0xff] }
 0x9b0   :  { %v11101_v28 = vpop.permute.xlu0 %3569 }
 0x9b1   :  { %v11089_v45 = vpop.permute.xlu1 %4156  ;;  %v3752_v18 = vsub.f32 %v11099_v63, %v10840_v12  ;;  %v3812_v12 = vsub.f32 %v10963_v46, %v10861_v36 }
 0x9b2   :  { %13584 = vst [vmem:[#allocation138_spill] sm:$0xff] %v11089_v45  ;;  %4183 = vperm.xlu1 %8156, %v3780_v2   ;;  %4129 = vperm.xlu0 %8155, %v3762_v13   ;;  %v3720_v2 = vsub.f32 %v11099_v63, %v13588_v17  ;;  %v13589_v13 = vld [vmem:[#allocation33_spill] sm:$0xff]  ;;  %v3781_v17 = vsub.f32 %v10995_v50, %v10815_v48  ;;  %v13594_v48 = vld [vmem:[#allocation56_spill] sm:$0xff] }
 0x9b3   :  { %v3822_v45 = vsub.f32 %v10774_v52, %v13589_v13  ;;  %v13591_v52 = vld [vmem:[#allocation100_spill] sm:$0xff] }
 0x9b4   :  { %v3763_v13 = vsub.f32 %v10927_v0, %v13591_v52  ;;  %v13596_v52 = vld [vmem:[#allocation108_spill] sm:$0xff] }
 0x9b5   :  { %v11095_v23 = vpop.permute.xlu1 %3979 }
 0x9b6   :  { %4273 = vperm.xlu1 %8156, %v3810_v10   ;;  %4219 = vperm.xlu0 %8155, %v3792_v39   ;;  %v11113_v10 = vpop.permute.xlu0 %3573 }
 0x9b9   :  { %v11107_v57 = vpop.permute.xlu1 %4072 }
 0x9ba   :  { %4003 = vperm.xlu1 %8156, %v3720_v2   ;;  %4309 = vperm.xlu0 %8155, %v3822_v45  }
 0x9bd   :  { %v11115_v39 = vpop.permute.xlu1 %4162 }
 0x9be   :  { %13590 = vst [vmem:[#allocation139_spill] sm:$0xff] %v11115_v39  ;;  %4096 = vperm.xlu1 %8156, %v3751_v25   ;;  %4042 = vperm.xlu0 %8155, %v3733_v8   ;;  %v11135_v39 = vadd.f32 %v13595_v56, %v13594_v48 }
 0x9c1   :  { %v11121_v2 = vpop.permute.xlu1 %4207  ;;  %v11123_v45 = vpop.permute.xlu0 %3964 }
 0x9c2   :  { %13592 = vst [vmem:[#allocation140_spill] sm:$0xff] %v11121_v2  ;;  %4186 = vperm.xlu1 %8156, %v3781_v17   ;;  %4132 = vperm.xlu0 %8155, %v3763_v13   ;;  %v3721_v17 = vsub.f32 %v11135_v39, %v10833_v37  ;;  %v3823_v13 = vsub.f32 %v10796_v33, %v13596_v52 }
 0x9c3   :  { %v3782_v33 = vsub.f32 %v11031_v6, %v10849_v4  ;;  %v3764_v37 = vsub.f32 %v10963_v46, %v10851_v3  ;;  %v13599_v4 = vld [vmem:[#allocation51_spill] sm:$0xff] }
 0x9c5   :  { %v11129_v25 = vpop.permute.xlu1 %4030  ;;  %v11131_v8 = vpop.permute.xlu0 %4012 }
 0x9c6   :  { %13593 = vst [vmem:[#allocation141_spill] sm:$0xff] %v11129_v25  ;;  %4276 = vperm.xlu1 %8156, %v3811_v32   ;;  %4222 = vperm.xlu0 %8155, %v3793_v54   ;;  %v13597_v25 = vld [vmem:[#allocation118_spill] sm:$0xff] }
 0x9c7   :  { %v3734_v48 = vsub.f32 %v11031_v6, %v13597_v25  ;;  %v3794_v25 = vsub.f32 %v10891_v51, %v10863_v21  ;;  %v3753_v21 = vsub.f32 %v11135_v39, %v10877_v43  ;;  %v3813_v43 = vsub.f32 %v10995_v50, %v10897_v22 }
 0x9c8   :  { %v3784_v22 = vsub.f32 %v11099_v63, %v10913_v7 }
 0x9c9   :  { %v11141_v1 = vpop.permute.xlu1 %4120  ;;  %v11143_v2 = vpop.permute.xlu0 %3970 }
 0x9ca   :  { %4006 = vperm.xlu1 %8156, %v3721_v17   ;;  %4312 = vperm.xlu0 %8155, %v3823_v13  }
 0x9cd   :  { %v11149_v32 = vpop.permute.xlu1 %4210  ;;  %v11151_v54 = vpop.permute.xlu0 %4060 }
 0x9ce   :  { %4099 = vperm.xlu1 %8156, %v3752_v18   ;;  %4045 = vperm.xlu0 %8155, %v3734_v48   ;;  %v13600_v48 = vld [vmem:[#allocation89_spill] sm:$0xff] }
 0x9cf   :  { %v11171_v56 = vadd.f32 %v13600_v48, %v13599_v4  ;;  %v3735_v4 = vsub.f32 %v11067_v58, %v10879_v59  ;;  %v3795_v59 = vsub.f32 %v10927_v0, %v10899_v16  ;;  %v3736_v16 = vsub.f32 %v11099_v63, %v10915_v31 }
 0x9d0   :  { %v3796_v31 = vsub.f32 %v10963_v46, %v10935_v5  ;;  %v3737_v5 = vsub.f32 %v11135_v39, %v10951_v30  ;;  %v3797_v30 = vsub.f32 %v10995_v50, %v10969_v42 }
 0x9d1   :  { %v11157_v17 = vpop.permute.xlu1 %4255  ;;  %v11159_v52 = vpop.permute.xlu0 %3973  ;;  %v3722_v3 = vsub.f32 %v11171_v56, %v10869_v41  ;;  %v3765_v41 = vsub.f32 %v10995_v50, %v10887_v24  ;;  %v13602_v24 = vld [vmem:[#allocation32_spill] sm:$0xff]  ;;  %v3770_v7 = vsub.f32 %v11171_v56, %v10933_v38  ;;  %v3830_v38 = vsub.f32 %v11031_v6, %v10949_v61 }
 0x9d2   :  { %13598 = vst [vmem:[#allocation142_spill] sm:$0xff] %v11157_v17  ;;  %4189 = vperm.xlu1 %8156, %v3782_v33   ;;  %4135 = vperm.xlu0 %8155, %v3764_v37   ;;  %v13601_v33 = vld [vmem:[#allocation117_spill] sm:$0xff]  ;;  %v3831_v61 = vsub.f32 %v11067_v58, %v10971_v49  ;;  %v3818_v42 = vsub.f32 %v11171_v56, %v10997_v15  ;;  %v13609_v15 = vld [vmem:[#allocation124_spill] sm:$0xff] }
 0x9d3   :  { %v3824_v37 = vsub.f32 %v10821_v26, %v13601_v33  ;;  %v3783_v26 = vsub.f32 %v11067_v58, %v10885_v29  ;;  %v3754_v29 = vsub.f32 %v11171_v56, %v10905_v11  ;;  %v3766_v11 = vsub.f32 %v11031_v6, %v10923_v9  ;;  %v13603_v9 = vld [vmem:[#allocation94_spill] sm:$0xff] }
 0x9d4   :  { %v3738_v49 = vsub.f32 %v11171_v56, %v10983_v44  ;;  %v3798_v44 = vsub.f32 %v11031_v6, %v13609_v15 }
 0x9d5   :  { %v11165_v13 = vpop.permute.xlu1 %4033  ;;  %v11167_v18 = vpop.permute.xlu0 %4066 }
 0x9d6   :  { %4279 = vperm.xlu1 %8156, %v3812_v12   ;;  %4225 = vperm.xlu0 %8155, %v3794_v25  }
 0x9d9   :  { %v11177_v36 = vpop.permute.xlu1 %4123  ;;  %v11179_v17 = vpop.permute.xlu0 %4111 }
 0x9da   :  { %4009 = vperm.xlu1 %8156, %v3722_v3   ;;  %4315 = vperm.xlu0 %8155, %v3824_v37  }
 0x9dd   :  { %v11185_v12 = vpop.permute.xlu1 %4213  ;;  %v11187_v25 = vpop.permute.xlu0 %4024 }
 0x9de   :  { %4102 = vperm.xlu1 %8156, %v3753_v21   ;;  %4048 = vperm.xlu0 %8155, %v3735_v4   ;;  %v3825_v4 = vsub.f32 %v10855_v35, %v13602_v24  ;;  %v3814_v35 = vsub.f32 %v11031_v6, %v10921_v47  ;;  %v3800_v47 = vsub.f32 %v11099_v63, %v10941_v34  ;;  %v13616_v6 = vld [vmem:[#allocation129_spill] sm:$0xff] }
 0x9df   :  { %v3767_v34 = vsub.f32 %v11067_v58, %v10957_v19  ;;  %v3817_v19 = vsub.f32 %v11135_v39, %v10985_v53  ;;  %v13606_v53 = vld [vmem:[#allocation126_spill] sm:$0xff]  ;;  %v3799_v15 = vsub.f32 %v11067_v58, %v13616_v6 }
 0x9e0   :  { %v13624_v6 = vld [vmem:[#allocation134_spill] sm:$0xff] }
 0x9e1   :  { %v11193_v3 = vpop.permute.xlu1 %4300  ;;  %v11195_v33 = vpop.permute.xlu0 %4114 }
 0x9e2   :  { %4192 = vperm.xlu1 %8156, %v3783_v26   ;;  %4138 = vperm.xlu0 %8155, %v3765_v41  }
 0x9e5   :  { %v11201_v37 = vpop.permute.xlu1 %3988  ;;  %v11203_v21 = vpop.permute.xlu0 %4159 }
 0x9e6   :  { %4282 = vperm.xlu1 %8156, %v3813_v43   ;;  %4228 = vperm.xlu0 %8155, %v3795_v59  }
 0x9e9   :  { %v11209_v26 = vpop.permute.xlu1 %4081  ;;  %v11211_v41 = vpop.permute.xlu0 %4027 }
 0x9ea   :  { %4105 = vperm.xlu1 %8156, %v3754_v29   ;;  %4318 = vperm.xlu0 %8155, %v3825_v4  }
 0x9ed   :  { %v11217_v43 = vpop.permute.xlu1 %4171  ;;  %v11219_v59 = vpop.permute.xlu0 %4117 }
 0x9ee   :  { %4195 = vperm.xlu1 %8156, %v3784_v22   ;;  %4051 = vperm.xlu0 %8155, %v3736_v16   ;;  %v3826_v16 = vsub.f32 %v10891_v51, %v13603_v9  ;;  %v3801_v51 = vsub.f32 %v11135_v39, %v10959_v62  ;;  %v3827_v62 = vsub.f32 %v10927_v0, %v10977_v14  ;;  %v13607_v14 = vld [vmem:[#allocation123_spill] sm:$0xff] }
 0x9ef   :  { %v3834_v0 = vsub.f32 %v11171_v56, %v13606_v53 }
 0x9f1   :  { %v11225_v29 = vpop.permute.xlu1 %4261  ;;  %v11227_v24 = vpop.permute.xlu0 %4204 }
 0x9f2   :  { %4285 = vperm.xlu1 %8156, %v3814_v35   ;;  %4141 = vperm.xlu0 %8155, %v3766_v11  }
 0x9f5   :  { %v11233_v4 = vpop.permute.xlu1 %3991  ;;  %v11235_v22 = vpop.permute.xlu0 %3982 }
 0x9f6   :  { %4153 = vperm.xlu1 %8156, %v3770_v7   ;;  %4231 = vperm.xlu0 %8155, %v3796_v31  }
 0x9f9   :  { %v11241_v35 = vpop.permute.xlu1 %4084  ;;  %v11243_v11 = vpop.permute.xlu0 %4075 }
 0x9fa   :  { %4243 = vperm.xlu1 %8156, %v3800_v47   ;;  %4321 = vperm.xlu0 %8155, %v3826_v16  }
 0x9fd   :  { %v11249_v7 = vpop.permute.xlu1 %4174  ;;  %v11251_v31 = vpop.permute.xlu0 %4165 }
 0x9fe   :  { %4333 = vperm.xlu1 %8156, %v3830_v38   ;;  %4054 = vperm.xlu0 %8155, %v3737_v5  }
 0xa01   :  { %v11257_v47 = vpop.permute.xlu1 %4264  ;;  %v11259_v9 = vpop.permute.xlu0 %4252 }
 0xa02   :  { %4246 = vperm.xlu1 %8156, %v3801_v51   ;;  %4144 = vperm.xlu0 %8155, %v3767_v34  }
 0xa05   :  { %v11265_v16 = vpop.permute.xlu1 %3994  ;;  %v11267_v38 = vpop.permute.xlu0 %3985 }
 0xa06   :  { %4336 = vperm.xlu1 %8156, %v3831_v61   ;;  %4234 = vperm.xlu0 %8155, %v3797_v30   ;;  %v3768_v30 = vsub.f32 %v11099_v63, %v13607_v14 }
 0xa09   :  { %v11273_v5 = vpop.permute.xlu1 %4087  ;;  %v11275_v51 = vpop.permute.xlu0 %4078 }
 0xa0a   :  { %13604 = vst [vmem:[#allocation143_spill] sm:$0xff] %v11273_v5  ;;  %4294 = vperm.xlu1 %8156, %v3817_v19   ;;  %4324 = vperm.xlu0 %8155, %v3827_v62  }
 0xa0d   :  { %v11281_v34 = vpop.permute.xlu1 %4177  ;;  %v11283_v61 = vpop.permute.xlu0 %4168 }
 0xa0e   :  { %13605 = vst [vmem:[#allocation144_spill] sm:$0xff] %v11281_v34  ;;  %4297 = vperm.xlu1 %8156, %v3818_v42   ;;  %4057 = vperm.xlu0 %8155, %v3738_v49   ;;  %v13611_v42 = vld [vmem:[#allocation125_spill] sm:$0xff] }
 0xa0f   :  { %v3828_v49 = vsub.f32 %v10963_v46, %v13611_v42  ;;  %v3829_v46 = vsub.f32 %v10995_v50, %v11037_v40  ;;  %v13627_v50 = vld [vmem:[#allocation136_spill] sm:$0xff] }
 0xa10   :  { %v3786_v40 = vsub.f32 %v11171_v56, %v13627_v50  ;;  %v3832_v50 = vsub.f32 %v11099_v63, %v11101_v28 }
 0xa11   :  { %v11289_v19 = vpop.permute.xlu1 %4267  ;;  %v11291_v62 = vpop.permute.xlu0 %4258 }
 0xa12   :  { %13608 = vst [vmem:[#allocation152_spill] sm:$0xff] %v11289_v19  ;;  %4345 = vperm.xlu1 %8156, %v3834_v0   ;;  %4147 = vperm.xlu0 %8155, %v3768_v30   ;;  %v13613_v19 = vld [vmem:[#allocation127_spill] sm:$0xff] }
 0xa13   :  { %v3769_v0 = vsub.f32 %v11135_v39, %v13613_v19  ;;  %v13621_v19 = vld [vmem:[#allocation132_spill] sm:$0xff] }
 0xa15   :  { %v11295_v48 = vpop.permute.xlu1 %3997  ;;  %v11297_v34 = vpop.permute.xlu0 %4303 }
 0xa16   :  { %13610 = vst [vmem:[#allocation153_spill] sm:$0xff] %v11297_v34  ;;  %4237 = vperm.xlu0 %8155, %v3798_v44  }
 0xa19   :  { %v11301_v53 = vpop.permute.xlu1 %4090  ;;  %v11303_v14 = vpop.permute.xlu0 %4036 }
 0xa1a   :  { %13612 = vst [vmem:[#allocation120_spill] sm:$0xff] %v11303_v14  ;;  %4327 = vperm.xlu0 %8155, %v3828_v49  }
 0xa1d   :  { %v11307_v30 = vpop.permute.xlu1 %4180  ;;  %v11309_v5 = vpop.permute.xlu0 %4126 }
 0xa1e   :  { %13614 = vst [vmem:[#allocation29_spill] sm:$0xff] %v11307_v30  ;;  %13615 = vst [vmem:[#allocation35_spill] sm:$0xff] %v11309_v5  ;;  %4150 = vperm.xlu0 %8155, %v3769_v0   ;;  %v3785_v5 = vsub.f32 %v11135_v39, %v13621_v19  ;;  %v3816_v19 = vsub.f32 %v11099_v63, %v11075_v55  ;;  %v3833_v55 = vsub.f32 %v11135_v39, %v11113_v10 }
 0xa21   :  { %v11313_v44 = vpop.permute.xlu1 %4270  ;;  %v11315_v34 = vpop.permute.xlu0 %4216 }
 0xa22   :  { %13617 = vst [vmem:[#allocation42_spill] sm:$0xff] %v11313_v44  ;;  %13618 = vst [vmem:[#allocation37_spill] sm:$0xff] %v11315_v34  ;;  %4240 = vperm.xlu0 %8155, %v3799_v15   ;;  %v3815_v34 = vsub.f32 %v11067_v58, %v13624_v6  ;;  %v3802_v58 = vsub.f32 %v11171_v56, %v11087_v27 }
 0xa25   :  { %v11319_v42 = vpop.permute.xlu1 %4000  ;;  %v11321_v49 = vpop.permute.xlu0 %4306 }
 0xa26   :  { %13619 = vst [vmem:[#allocation40_spill] sm:$0xff] %v11319_v42  ;;  %13620 = vst [vmem:[#allocation45_spill] sm:$0xff] %v11321_v49  ;;  %4330 = vperm.xlu0 %8155, %v3829_v46  }
 0xa29   :  { %v11325_v0 = vpop.permute.xlu1 %4093  ;;  %v11327_v30 = vpop.permute.xlu0 %4039 }
 0xa2a   :  { %13622 = vst [vmem:[#allocation39_spill] sm:$0xff] %v11325_v0  ;;  %13623 = vst [vmem:[#allocation48_spill] sm:$0xff] %v11327_v30  ;;  %4198 = vperm.xlu0 %8155, %v3785_v5   ;;  %v13680_v0 = vld [vmem:[#allocation141_spill] sm:$0xff] }
 0xa2d   :  { %v11331_v15 = vpop.permute.xlu1 %4183  ;;  %v11333_v44 = vpop.permute.xlu0 %4129 }
 0xa2e   :  { %13625 = vst [vmem:[#allocation41_spill] sm:$0xff] %v11331_v15  ;;  %13626 = vst [vmem:[#allocation50_spill] sm:$0xff] %v11333_v44  ;;  %4288 = vperm.xlu0 %8155, %v3815_v34   ;;  %v13672_v15 = vld [vmem:[#allocation137_spill] sm:$0xff] }
 0xa31   :  { %v11337_v46 = vpop.permute.xlu0 %4219  ;;  %v11339_v49 = vpop.permute.xlu1 %4273 }
 0xa32   :  { %13628 = vst [vmem:[#allocation44_spill] sm:$0xff] %v11337_v46  ;;  %13629 = vst [vmem:[#allocation52_spill] sm:$0xff] %v11339_v49  ;;  %4201 = vperm.xlu0 %8155, %v3786_v40  }
 0xa35   :  { %v11343_v5 = vpop.permute.xlu0 %4309  ;;  %v11347_v6 = vpop.permute.xlu1 %4003 }
 0xa36   :  { %13630 = vst [vmem:[#allocation122_spill] sm:$0xff] %v11343_v5  ;;  %4291 = vperm.xlu0 %8155, %v3816_v19   ;;  %13631 = vst [vmem:[#allocation30_spill] sm:$0xff] %v11347_v6 }
 0xa39   :  { %v11349_v34 = vpop.permute.xlu0 %4042  ;;  %v11355_v40 = vpop.permute.xlu1 %4096 }
 0xa3a   :  { %13632 = vst [vmem:[#allocation96_spill] sm:$0xff] %v11349_v34  ;;  %4249 = vperm.xlu0 %8155, %v3802_v58   ;;  %13634 = vst [vmem:[#allocation114_spill] sm:$0xff] %v11355_v40  ;;  %v13665_v40 = vld [vmem:[#allocation147_spill] sm:$0xff] }
 0xa3d   :  { %v11353_v46 = vpop.permute.xlu0 %4132  ;;  %v11361_v27 = vpop.permute.xlu1 %4186 }
 0xa3e   :  { %13633 = vst [vmem:[#allocation104_spill] sm:$0xff] %v11353_v46  ;;  %4339 = vperm.xlu0 %8155, %v3832_v50   ;;  %13636 = vst [vmem:[#allocation121_spill] sm:$0xff] %v11361_v27  ;;  %v13664_v27 = vld [vmem:[#allocation128_spill] sm:$0xff] }
 0xa41   :  { %v11359_v19 = vpop.permute.xlu0 %4222  ;;  %v11367_v58 = vpop.permute.xlu1 %4276 }
 0xa42   :  { %13635 = vst [vmem:[#allocation47_spill] sm:$0xff] %v11359_v19  ;;  %4342 = vperm.xlu0 %8155, %v3833_v55   ;;  %13639 = vst [vmem:[#allocation107_spill] sm:$0xff] %v11367_v58 }
 0xa45   :  { %v11363_v56 = vpop.permute.xlu0 %4312  ;;  %v11371_v28 = vpop.permute.xlu1 %4006 }
 0xa46   :  { %13637 = vst [vmem:[#allocation36_spill] sm:$0xff] %v11363_v56  ;;  %13641 = vst [vmem:[#allocation31_spill] sm:$0xff] %v11371_v28 }
 0xa49   :  { %v11365_v34 = vpop.permute.xlu0 %4045  ;;  %v11377_v10 = vpop.permute.xlu1 %4099 }
 0xa4a   :  { %13638 = vst [vmem:[#allocation99_spill] sm:$0xff] %v11365_v34  ;;  %13644 = vst [vmem:[#allocation106_spill] sm:$0xff] %v11377_v10 }
 0xa4d   :  { %v11369_v63 = vpop.permute.xlu0 %4135  ;;  %v11381_v55 = vpop.permute.xlu1 %4189 }
 0xa4e   :  { %13640 = vst [vmem:[#allocation113_spill] sm:$0xff] %v11369_v63  ;;  %13646 = vst [vmem:[#allocation38_spill] sm:$0xff] %v11381_v55 }
 0xa51   :  { %v11373_v46 = vpop.permute.xlu0 %4225  ;;  %v11387_v34 = vpop.permute.xlu1 %4279 }
 0xa52   :  { %13642 = vst [vmem:[#allocation98_spill] sm:$0xff] %v11373_v46  ;;  %13649 = vst [vmem:[#allocation49_spill] sm:$0xff] %v11387_v34  ;;  %v13660_v34 = vld [vmem:[#allocation145_spill] sm:$0xff] }
 0xa55   :  { %v11375_v50 = vpop.permute.xlu0 %4315  ;;  %v11391_v63 = vpop.permute.xlu1 %4009 }
 0xa56   :  { %13643 = vst [vmem:[#allocation54_spill] sm:$0xff] %v11375_v50  ;;  %13651 = vst [vmem:[#allocation33_spill] sm:$0xff] %v11391_v63 }
 0xa59   :  { %v11379_v39 = vpop.permute.xlu0 %4048  ;;  %v11397_v50 = vpop.permute.xlu1 %4102 }
 0xa5a   :  { %13645 = vst [vmem:[#allocation116_spill] sm:$0xff] %v11379_v39  ;;  %13654 = vst [vmem:[#allocation108_spill] sm:$0xff] %v11397_v50 }
 0xa5d   :  { %v11383_v19 = vpop.permute.xlu0 %4138  ;;  %v11401_v39 = vpop.permute.xlu1 %4192 }
 0xa5e   :  { %13647 = vst [vmem:[#allocation101_spill] sm:$0xff] %v11383_v19  ;;  %13656 = vst [vmem:[#allocation51_spill] sm:$0xff] %v11401_v39 }
 0xa61   :  { %v11385_v56 = vpop.permute.xlu0 %4228 }
 0xa62   :  { %13648 = vst [vmem:[#allocation109_spill] sm:$0xff] %v11385_v56  ;;  %v11407_v56 = vpop.permute.xlu1 %4282 }
 0xa63   :  { %13659 = vst [vmem:[#allocation94_spill] sm:$0xff] %v11407_v56 }
 0xa65   :  { %v11389_v58 = vpop.permute.xlu0 %4318 }
 0xa66   :  { %13650 = vst [vmem:[#allocation115_spill] sm:$0xff] %v11389_v58  ;;  %v4350_v58 = vrot.slane %v11123_v45, %v13660_v34  ;;  %v11423_v5 = vpop.permute.xlu1 %4105  ;;  %v13668_v45 = vld [vmem:[#allocation131_spill] sm:$0xff] }
 0xa67   :  { %13667 = vst [vmem:[#allocation123_spill] sm:$0xff] %v11423_v5 }
 0xa69   :  { %v11393_v28 = vpop.permute.xlu0 %4051 }
 0xa6a   :  { %13652 = vst [vmem:[#allocation100_spill] sm:$0xff] %v11393_v28  ;;  %v13662_v28 = vld [vmem:[#allocation146_spill] sm:$0xff]  ;;  %v11466_v14 = vpop.permute.xlu1 %4195 }
 0xa6b   :  { %v4359_v50 = vrot.slane %v11143_v2, %v13662_v28  ;;  %v13670_v2 = vld [vmem:[#allocation133_spill] sm:$0xff] }
 0xa6d   :  { %v11395_v46 = vpop.permute.xlu0 %4141 }
 0xa6e   :  { %13653 = vst [vmem:[#allocation56_spill] sm:$0xff] %v11395_v46  ;;  %v4429_v46 = vrot.slane %v11131_v8, %v13660_v34 }
 0xa71   :  { %v11399_v10 = vpop.permute.xlu0 %4231 }
 0xa72   :  { %13655 = vst [vmem:[#allocation118_spill] sm:$0xff] %v11399_v10  ;;  %v13663_v10 = vld [vmem:[#allocation43_spill] sm:$0xff] }
 0xa73   :  { %v4354_v39 = vrot.slane %v13664_v27, %v13663_v10  ;;  %v4512_v49 = vrot.slane %v13670_v2, %v13663_v10 }
 0xa75   :  { %v11403_v55 = vpop.permute.xlu0 %4321  ;;  %v4355_v6 = vsel %vm2208_vm2, %v4354_v39, %v4350_v58  ;;  %v4517_v39 = vrot.slane %v11167_v18, %v13662_v28  ;;  %v13678_v18 = vld [vmem:[#allocation140_spill] sm:$0xff] }
 0xa76   :  { %13657 = vst [vmem:[#allocation117_spill] sm:$0xff] %v11403_v55  ;;  %v4364_v55 = vrot.slane %v11159_v52, %v13665_v40  ;;  %v4360_v44 = vsel %vm2215_vm3, %v4359_v50, %v4355_v6  ;;  %v4508_v52 = vrot.slane %v11151_v54, %v13660_v34  ;;  %v13675_v6 = vld [vmem:[#allocation138_spill] sm:$0xff] }
 0xa77   :  { %v4666_v54 = vrot.slane %v13675_v6, %v13660_v34 }
 0xa78   :  { %v4365_v58 = vsel %vm13673_vm13, %v4364_v55, %v4360_v44  ;;  %v13677_v44 = vld [vmem:[#allocation139_spill] sm:$0xff]  ;;  %v4513_v6 = vsel %vm2208_vm2, %v4512_v49, %v4508_v52  ;;  %vm13681_vm13 = vcmask 326912  }
 0xa79   :  { %v11405_v19 = vpop.permute.xlu0 %4054  ;;  %v4675_v55 = vrot.slane %v13677_v44, %v13662_v28  ;;  %v4518_v44 = vsel %vm2215_vm3, %v4517_v39, %v4513_v6  ;;  %v13684_v39 = vld [vmem:[#allocation151_spill] sm:$0xff] }
 0xa7a   :  { %13658 = vst [vmem:[#allocation32_spill] sm:$0xff] %v11405_v19  ;;  %v13666_v19 = vld [vmem:[#allocation130_spill] sm:$0xff] }
 0xa7b   :  { %v4433_v56 = vrot.slane %v13666_v19, %v13663_v10  ;;  %v13671_v19 = vld [vmem:[#allocation135_spill] sm:$0xff] }
 0xa7c   :  { %v4443_v5 = vrot.slane %v13671_v19, %v13665_v40  ;;  %v4749_v19 = vrot.slane %v13678_v18, %v13663_v10  ;;  %v4591_v18 = vrot.slane %v11179_v17, %v13663_v10 }
 0xa7d   :  { %v11411_v63 = vpop.permute.xlu0 %4144  ;;  %v4434_v27 = vsel %vm2208_vm2, %v4433_v56, %v4429_v46  ;;  %v4522_v46 = vrot.slane %v11081_v20, %v13665_v40  ;;  %v13676_v56 = vld [vmem:[#allocation149_spill] sm:$0xff]  ;;  %v13679_v20 = vld [vmem:[#allocation150_spill] sm:$0xff] }
 0xa7e   :  { %13661 = vst [vmem:[#allocation126_spill] sm:$0xff] %v11411_v63  ;;  %v4438_v63 = vrot.slane %v13668_v45, %v13662_v28  ;;  %v4587_v45 = vrot.slane %v13672_v15, %v13660_v34  ;;  %v4374_v50 = vrot.slane %v11095_v23, %v13676_v56  ;;  %v4458_v42 = vrot.slane %v13680_v0, %v13679_v20 }
 0xa7f   :  { %v4453_v0 = vrot.slane %v11211_v41, %v13676_v56  ;;  %v4379_v52 = vrot.slane %v11235_v22, %v13679_v20  ;;  %v4384_v41 = vrot.slane %v11267_v38, %v13684_v39  ;;  %v4601_v38 = vrot.slane %v11219_v59, %v13665_v40 }
 0xa80   :  { %v4592_v6 = vsel %vm2208_vm2, %v4591_v18, %v4587_v45  ;;  %v4824_v45 = vrot.slane %v11259_v9, %v13660_v34  ;;  %v4537_v59 = vrot.slane %v11275_v51, %v13679_v20  ;;  %v13690_v18 = vld [vmem:[#allocation103_spill] sm:$0xff]  ;;  %v4833_v9 = vrot.slane %v11291_v62, %v13662_v28 }
 0xa81   :  { %v11428_v8 = vpop.permute.xlu0 %4234 }
 0xa82   :  { %13669 = vst [vmem:[#allocation124_spill] sm:$0xff] %v11428_v8  ;;  %v13674_v8 = vld [vmem:[#allocation148_spill] sm:$0xff] }
 0xa83   :  { %v4369_v2 = vrot.slane %v11073_v60, %v13674_v8  ;;  %v4527_v15 = vrot.slane %v11107_v57, %v13674_v8  ;;  %v4439_v60 = vsel %vm2215_vm3, %v4438_v63, %v4434_v27  ;;  %v4448_v57 = vrot.slane %v11187_v25, %v13674_v8 }
 0xa84   :  { %v4670_v63 = vrot.slane %v11203_v21, %v13663_v10  ;;  %v4606_v49 = vrot.slane %v11141_v1, %v13674_v8  ;;  %v4754_v27 = vrot.slane %v11149_v32, %v13662_v28  ;;  %v4463_v21 = vrot.slane %v11165_v13, %v13684_v39 }
 0xa85   :  { %v11458_v30 = vpop.permute.xlu0 %4324  ;;  %v4370_v23 = vsel %vm13681_vm13, %v4369_v2, %v4365_v58  ;;  %vm13682_vm13 = vcmask 261312   ;;  %v13683_v58 = vld [vmem:[#allocation142_spill] sm:$0xff] }
 0xa86   :  { %v4444_v25 = vsel %vm13682_vm13, %v4443_v5, %v4439_v60  ;;  %v4828_v17 = vrot.slane %v13683_v58, %v13663_v10  ;;  %v4375_v2 = vsel %vm13685_vm5, %v4374_v50, %v4370_v23  ;;  %vm13686_vm0 = vmmov %vm13682_vm13  ;;  %v4611_v5 = vrot.slane %v11177_v36, %v13676_v56 }
 0xa87   :  { %v4523_v32 = vsel %vm13686_vm0, %v4522_v46, %v4518_v44  ;;  %vm13687_vm13 = vcmask 326912   ;;  %v4596_v60 = vrot.slane %v11195_v33, %v13662_v28  ;;  %v4671_v13 = vsel %vm2208_vm2, %v4670_v63, %v4666_v54 }
 0xa88   :  { %v4449_v22 = vsel %vm13687_vm13, %v4448_v57, %v4444_v25  ;;  %v4745_v46 = vrot.slane %v11227_v24, %v13660_v34  ;;  %vm13688_vm0 = vcmask 458112   ;;  %v4532_v36 = vrot.slane %v11243_v11, %v13676_v56  ;;  %v11509_v57 = vpop.permute.xlu1 %4285 }
 0xa89   :  { %v11489_v1 = vpop.permute.xlu0 %4057  ;;  %v4454_v50 = vsel %vm13685_vm5, %v4453_v0, %v4449_v22  ;;  %v4380_v23 = vsel %vm13688_vm0, %v4379_v52, %v4375_v2  ;;  %v4680_v33 = vrot.slane %v11251_v31, %v13665_v40  ;;  %vm13689_vm13 = vcmask 523712   ;;  %v13695_v2 = vld [vmem:[#allocation110_spill] sm:$0xff] }
 0xa8a   :  { %v4385_v54 = vsel %vm13689_vm13, %v4384_v41, %v4380_v23  ;;  %v4685_v24 = vrot.slane %v11283_v61, %v13674_v8  ;;  %v4597_v11 = vsel %vm2215_vm3, %v4596_v60, %v4592_v6  ;;  %v4389_v31 = vrot.slane %v11201_v37, %v13690_v18 }
 0xa8b   :  { %vm13691_vm5 = vcmask 326912   ;;  %v4759_v0 = vrot.slane %v11185_v12, %v13665_v40  ;;  %v4459_v51 = vsel %vm13688_vm0, %v4458_v42, %v4454_v50  ;;  %vm13692_vm13 = vcmask 261312  }
 0xa8c   :  { %v4528_v63 = vsel %vm13691_vm5, %v4527_v15, %v4523_v32  ;;  %v4602_v25 = vsel %vm13692_vm13, %v4601_v38, %v4597_v11  ;;  %v4676_v61 = vsel %vm2215_vm3, %v4675_v55, %v4671_v13  ;;  %v4750_v52 = vsel %vm2208_vm2, %v4749_v19, %v4745_v46  ;;  %vm13694_vm6 = vmmov %vm13692_vm13  ;;  %v11548_v6 = vpop.permute.xlu1 %4153 }
 0xa8d   :  { %v11518_v44 = vpop.permute.xlu0 %4147  ;;  %v4533_v58 = vsel %vm13693_vm8, %v4532_v36, %v4528_v63  ;;  %v4681_v37 = vsel %vm13694_vm6, %v4680_v33, %v4676_v61  ;;  %v4390_v15 = vsel %vm2257_vm9, %v4389_v31, %v4385_v54  ;;  %v4394_v62 = vrot.slane %v11233_v4, %v13695_v2  ;;  %vm13696_vm5 = vmmov %vm13688_vm0  ;;  %v13705_v33 = vld [vmem:[#allocation143_spill] sm:$0xff]  ;;  %v13710_v31 = vld [vmem:[#allocation153_spill] sm:$0xff] }
 0xa8e   :  { %v4829_v41 = vsel %vm2208_vm2, %v4828_v17, %v4824_v45  ;;  %v4538_v12 = vsel %vm13696_vm5, %v4537_v59, %v4533_v58  ;;  %vm13697_vm0 = vcmask 326912   ;;  %v4542_v55 = vrot.slane %v11209_v26, %v13684_v39  ;;  %v13699_v26 = vld [vmem:[#allocation93_spill] sm:$0xff]  ;;  %v13713_v61 = vld [vmem:[#allocation152_spill] sm:$0xff] }
 0xa8f   :  { %v4686_v42 = vsel %vm13697_vm0, %v4685_v24, %v4681_v37  ;;  %v4690_v19 = vrot.slane %v11217_v43, %v13676_v56  ;;  %vm13698_vm6 = vmmov %vm13697_vm0  ;;  %v4834_v60 = vsel %vm2215_vm3, %v4833_v9, %v4829_v41  ;;  %v4903_v4 = vrot.slane %v11193_v3, %v13660_v34  ;;  %v13711_v9 = vld [vmem:[#allocation120_spill] sm:$0xff]  ;;  %v13715_v37 = vld [vmem:[#allocation35_spill] sm:$0xff] }
 0xa90   :  { %v4607_v22 = vsel %vm13698_vm6, %v4606_v49, %v4602_v25  ;;  %v4838_v17 = vrot.slane %v11225_v29, %v13665_v40  ;;  %v4755_v13 = vsel %vm2215_vm3, %v4754_v27, %v4750_v52  ;;  %v4395_v50 = vsel %vm2264_vm10, %v4394_v62, %v4390_v15  ;;  %v11588_v25 = vpop.permute.xlu1 %4243  ;;  %v13714_v52 = vld [vmem:[#allocation29_spill] sm:$0xff]  ;;  %v13716_v62 = vld [vmem:[#allocation42_spill] sm:$0xff] }
 0xa91   :  { %v11540_v32 = vpop.permute.xlu0 %4237  ;;  %v4399_v38 = vrot.slane %v11265_v16, %v13699_v26  ;;  %vm13700_vm8 = vcmask 523712   ;;  %vm13701_vm13 = vcmask 392512   ;;  %v4547_v23 = vrot.slane %v11241_v35, %v13690_v18  ;;  %v13707_v35 = vld [vmem:[#allocation144_spill] sm:$0xff] }
 0xa92   :  { %v4543_v43 = vsel %vm13700_vm8, %v4542_v55, %v4538_v12  ;;  %v4691_v49 = vsel %vm13701_vm13, %v4690_v19, %v4686_v42  ;;  %vm13702_vm5 = vmmov %vm13700_vm8  ;;  %v4695_v3 = vrot.slane %v11249_v7, %v13679_v20  ;;  %vm13703_vm0 = vcmask 261312   ;;  %v13708_v7 = vld [vmem:[#allocation102_spill] sm:$0xff]  ;;  %v13718_v55 = vld [vmem:[#allocation37_spill] sm:$0xff] }
 0xa93   :  { %v4464_v46 = vsel %vm13702_vm5, %v4463_v21, %v4459_v51  ;;  %v4839_v29 = vsel %vm13703_vm0, %v4838_v17, %v4834_v60  ;;  %vm13704_vm6 = vmmov %vm13701_vm13  ;;  %v4843_v16 = vrot.slane %v11257_v47, %v13674_v8  ;;  %v4552_v45 = vrot.slane %v13705_v33, %v13695_v2  ;;  %v13720_v60 = vld [vmem:[#allocation40_spill] sm:$0xff] }
 0xa94   :  { %v4612_v27 = vsel %vm13704_vm6, %v4611_v5, %v4607_v22  ;;  %v4400_v21 = vsel %vm2271_vm11, %v4399_v38, %v4395_v50  ;;  %vm13706_vm8 = vmmov %vm13703_vm0  ;;  %v4700_v59 = vrot.slane %v13707_v35, %v13684_v39  ;;  %v4404_v24 = vrot.slane %v11295_v48, %v13708_v7  ;;  %v13719_v22 = vld [vmem:[#allocation112_spill] sm:$0xff]  ;;  %v13721_v38 = vld [vmem:[#allocation45_spill] sm:$0xff] }
 0xa95   :  { %v11567_v36 = vpop.permute.xlu0 %4327  ;;  %v4760_v54 = vsel %vm13706_vm8, %v4759_v0, %v4755_v13  ;;  %v4548_v5 = vsel %vm2257_vm9, %v4547_v23, %v4543_v43  ;;  %vm13709_vm13 = vcmask 458112   ;;  %v4907_v47 = vrot.slane %v13710_v31, %v13663_v10  ;;  %v13723_v33 = vld [vmem:[#allocation48_spill] sm:$0xff] }
 0xa96   :  { %v4696_v11 = vsel %vm13709_vm13, %v4695_v3, %v4691_v49  ;;  %v4557_v63 = vrot.slane %v11301_v53, %v13699_v26  ;;  %v4468_v51 = vrot.slane %v13711_v9, %v13690_v18  ;;  %vm13712_vm5 = vcmask 326912   ;;  %v13722_v49 = vld [vmem:[#allocation39_spill] sm:$0xff]  ;;  %vm13724_vm8 = vmmov %vm13709_vm13 }
 0xa97   :  { %v4844_v0 = vsel %vm13712_vm5, %v4843_v16, %v4839_v29  ;;  %v4848_v48 = vrot.slane %v13713_v61, %v13676_v56  ;;  %v4705_v58 = vrot.slane %v13714_v52, %v13690_v18  ;;  %v4616_v15 = vrot.slane %v13715_v37, %v13679_v20  ;;  %vm13725_vm13 = vmmov %vm13724_vm8  ;;  %v13730_v61 = vld [vmem:[#allocation44_spill] sm:$0xff]  ;;  %v13731_v52 = vld [vmem:[#allocation34_spill] sm:$0xff] }
 0xa98   :  { %v4853_v41 = vrot.slane %v13716_v62, %v13679_v20  ;;  %v4553_v12 = vsel %vm2264_vm10, %v4552_v45, %v4548_v5  ;;  %vm13717_vm0 = vcmask 523712   ;;  %v4764_v19 = vrot.slane %v13718_v55, %v13674_v8 }
 0xa99   :  { %v11598_v53 = vpop.permute.xlu0 %4150  ;;  %v4701_v42 = vsel %vm13717_vm0, %v4700_v59, %v4696_v11  ;;  %v4409_v17 = vrot.slane %v13720_v60, %v13719_v22  ;;  %v4405_v13 = vsel %vm2278_vm12, %v4404_v24, %v4400_v21  ;;  %v4849_v50 = vsel %vm13704_vm6, %v4848_v48, %v4844_v0  ;;  %v13726_v24 = vld [vmem:[#allocation41_spill] sm:$0xff] }
 0xa9a   :  { %v4912_v43 = vrot.slane %v13721_v38, %v13662_v28  ;;  %v4562_v23 = vrot.slane %v13722_v49, %v13708_v7  ;;  %v4908_v3 = vsel %vm2208_vm2, %v4907_v47, %v4903_v4  ;;  %v4558_v29 = vsel %vm2271_vm11, %v4557_v63, %v4553_v12  ;;  %v13729_v63 = vld [vmem:[#allocation52_spill] sm:$0xff]  ;;  %v13736_v60 = vld [vmem:[#allocation121_spill] sm:$0xff]  ;;  %v13738_v38 = vld [vmem:[#allocation107_spill] sm:$0xff] }
 0xa9b   :  { %v4469_v16 = vsel %vm2257_vm9, %v4468_v51, %v4464_v46  ;;  %v4473_v45 = vrot.slane %v13723_v33, %v13695_v2  ;;  %v4706_v35 = vsel %vm2257_vm9, %v4705_v58, %v4701_v42  ;;  %v4617_v21 = vsel %vm13724_vm8, %v4616_v15, %v4612_v27  ;;  %v13728_v46 = vld [vmem:[#allocation50_spill] sm:$0xff]  ;;  %v11630_v51 = vpop.permute.xlu1 %4333  ;;  %v13735_v42 = vld [vmem:[#allocation96_spill] sm:$0xff]  ;;  %v13742_v33 = vld [vmem:[#allocation97_spill] sm:$0xff] }
 0xa9c   :  { %v4854_v59 = vsel %vm13725_vm13, %v4853_v41, %v4849_v50  ;;  %v4710_v5 = vrot.slane %v13726_v24, %v13695_v2  ;;  %v4765_v4 = vsel %vm13712_vm5, %v4764_v19, %v4760_v54  ;;  %vm13727_vm0 = vcmask 851712   ;;  %v13732_v58 = vld [vmem:[#allocation30_spill] sm:$0xff] }
 0xa9d   :  { %v11622_v11 = vpop.permute.xlu0 %4240  ;;  %v4410_v31 = vsel %vm13727_vm0, %v4409_v17, %v4405_v13  ;;  %v4621_v47 = vrot.slane %v13728_v46, %v13684_v39  ;;  %v4858_v9 = vrot.slane %v13729_v63, %v13684_v39  ;;  %v4913_v27 = vsel %vm2215_vm3, %v4912_v43, %v4908_v3  ;;  %v13733_v15 = vld [vmem:[#allocation122_spill] sm:$0xff]  ;;  %v13737_v13 = vld [vmem:[#allocation104_spill] sm:$0xff] }
 0xa9e   :  { %v4563_v0 = vsel %vm2278_vm12, %v4562_v23, %v4558_v29  ;;  %v4769_v48 = vrot.slane %v13730_v61, %v13676_v56  ;;  %v4414_v54 = vrot.slane %v13732_v58, %v13731_v52  ;;  %v4474_v37 = vsel %vm2264_vm10, %v4473_v45, %v4469_v16  ;;  %v13734_v41 = vld [vmem:[#allocation114_spill] sm:$0xff]  ;;  %v13741_v29 = vld [vmem:[#allocation47_spill] sm:$0xff]  ;;  %v13745_v46 = vld [vmem:[#allocation36_spill] sm:$0xff] }
 0xa9f   :  { %v4917_v62 = vrot.slane %v13733_v15, %v13665_v40  ;;  %v4567_v12 = vrot.slane %v13734_v41, %v13719_v22  ;;  %v4478_v55 = vrot.slane %v13735_v42, %v13699_v26  ;;  %v4711_v19 = vsel %vm2264_vm10, %v4710_v5, %v4706_v35  ;;  %v13743_v45 = vld [vmem:[#allocation31_spill] sm:$0xff]  ;;  %v13746_v61 = vld [vmem:[#allocation106_spill] sm:$0xff]  ;;  %v11671_v41 = vpop.permute.xlu1 %4246 }
 0xaa0   :  { %v4715_v17 = vrot.slane %v13736_v60, %v13699_v26  ;;  %v4626_v50 = vrot.slane %v13737_v13, %v13690_v18  ;;  %v4863_v43 = vrot.slane %v13738_v38, %v13690_v18  ;;  %vm13739_vm6 = vcmask 523712   ;;  %v13754_v13 = vld [vmem:[#allocation98_spill] sm:$0xff]  ;;  %v13755_v38 = vld [vmem:[#allocation119_spill] sm:$0xff] }
 0xaa1   :  { %v11652_v49 = vpop.permute.xlu0 %4330  ;;  %v4622_v23 = vsel %vm13739_vm6, %v4621_v47, %v4617_v21  ;;  %vm13740_vm8 = vmmov %vm13739_vm6  ;;  %v4774_v16 = vrot.slane %v13741_v29, %v13679_v20  ;;  %v4419_v35 = vrot.slane %v13743_v45, %v13742_v33  ;;  %vm13744_vm13 = vcmask 392512   ;;  %v13757_v29 = vld [vmem:[#allocation54_spill] sm:$0xff]  ;;  %v13758_v45 = vld [vmem:[#allocation108_spill] sm:$0xff] }
 0xaa2   :  { %v4859_v3 = vsel %vm13740_vm8, %v4858_v9, %v4854_v59  ;;  %v4770_v24 = vsel %vm13744_vm13, %v4769_v48, %v4765_v4  ;;  %v4415_v5 = vsel %vm2292_vm14, %v4414_v54, %v4410_v31  ;;  %v4922_v63 = vrot.slane %v13745_v46, %v13674_v8  ;;  %v13748_v9 = vld [vmem:[#allocation99_spill] sm:$0xff]  ;;  %v13749_v54 = vld [vmem:[#allocation38_spill] sm:$0xff] }
 0xaa3   :  { %v4572_v58 = vrot.slane %v13746_v61, %v13731_v52  ;;  %vm13747_vm5 = vcmask 261312   ;;  %v4568_v59 = vsel %vm13727_vm0, %v4567_v12, %v4563_v0  ;;  %v4479_v47 = vsel %vm2271_vm11, %v4478_v55, %v4474_v37  ;;  %v13751_v37 = vld [vmem:[#allocation113_spill] sm:$0xff] }
 0xaa4   :  { %v4918_v21 = vsel %vm13747_vm5, %v4917_v62, %v4913_v27  ;;  %v4483_v15 = vrot.slane %v13748_v9, %v13708_v7  ;;  %v4716_v4 = vsel %vm2271_vm11, %v4715_v17, %v4711_v19  ;;  %v4627_v31 = vsel %vm2257_vm9, %v4626_v50, %v4622_v23  ;;  %v13752_v12 = vld [vmem:[#allocation49_spill] sm:$0xff] }
 0xaa5   :  { %v4864_v48 = vsel %vm2257_vm9, %v4863_v43, %v4859_v3  ;;  %v4720_v42 = vrot.slane %v13749_v54, %v13708_v7  ;;  %v11678_v60 = vpop.permute.xlu0 %4198  ;;  %vm13750_vm6 = vcmask 458112   ;;  %v4420_v0 = vsel %vm2299_vm15, %v4419_v35, %v4415_v5  ;;  %v13756_v43 = vld [vmem:[#allocation33_spill] sm:$0xff] }
 0xaa6   :  { %v4775_v27 = vsel %vm13750_vm6, %v4774_v16, %v4770_v24  ;;  %v4631_v62 = vrot.slane %v13751_v37, %v13695_v2  ;;  %v4868_v55 = vrot.slane %v13752_v12, %v13695_v2  ;;  %vm13753_vm8 = vcmask 326912   ;;  %v13759_v24 = vld [vmem:[#allocation116_spill] sm:$0xff]  ;;  %v13763_v37 = vld [vmem:[#allocation109_spill] sm:$0xff]  ;;  %vm13769_vm6 = vmmov %vm13727_vm0 }
 0xaa7   :  { %v4923_v19 = vsel %vm13753_vm8, %v4922_v63, %v4918_v21  ;;  %v4573_v17 = vsel %vm2292_vm14, %v4572_v58, %v4568_v59  ;;  %v4779_v50 = vrot.slane %v13754_v13, %v13684_v39  ;;  %v4424_v23 = vrot.slane %v13756_v43, %v13755_v38  ;;  %v13760_v63 = vld [vmem:[#allocation51_spill] sm:$0xff]  ;;  %v13761_v58 = vld [vmem:[#allocation101_spill] sm:$0xff]  ;;  %v13762_v59 = vld [vmem:[#allocation94_spill] sm:$0xff]  ;;  %v11714_v13 = vpop.permute.xlu1 %4336 }
 0xaa8   :  { %v4484_v3 = vsel %vm2278_vm12, %v4483_v15, %v4479_v47  ;;  %v4927_v16 = vrot.slane %v13757_v29, %v13676_v56  ;;  %v4577_v35 = vrot.slane %v13758_v45, %v13742_v33  ;;  %v4488_v5 = vrot.slane %v13759_v24, %v13719_v22  ;;  %v13766_v45 = vld [vmem:[#allocation115_spill] sm:$0xff] }
 0xaa9   :  { %v4721_v46 = vsel %vm2278_vm12, %v4720_v42, %v4716_v4  ;;  %v4725_v61 = vrot.slane %v13760_v63, %v13719_v22  ;;  %v4636_v21 = vrot.slane %v13761_v58, %v13699_v26  ;;  %v4873_v47 = vrot.slane %v13762_v59, %v13699_v26  ;;  %v11706_v9 = vpop.permute.xlu0 %4288  ;;  %v13764_v4 = vld [vmem:[#allocation123_spill] sm:$0xff]  ;;  %v13768_v63 = vld [vmem:[#allocation100_spill] sm:$0xff] }
 0xaaa   :  { %v4632_v15 = vsel %vm2264_vm10, %v4631_v62, %v4627_v31  ;;  %v4869_v54 = vsel %vm2264_vm10, %v4868_v55, %v4864_v48  ;;  %v4784_v12 = vrot.slane %v13763_v37, %v13690_v18  ;;  %v4582_v42 = vrot.slane %v13764_v4, %v13755_v38  ;;  %v13776_v4 = vld [vmem:[#allocation126_spill] sm:$0xff] }
 0xaab   :  { %vm13765_vm13 = vcmask 523712   ;;  %v4425_v29 = vsel %vm2306_vm1, %v4424_v23, %v4420_v0  ;;  %v4932_v24 = vrot.slane %v13766_v45, %v13679_v20  ;;  %v4730_v31 = vrot.slane %v11466_v14, %v13731_v52 }
 0xaac   :  { %v4780_v43 = vsel %vm13765_vm13, %v4779_v50, %v4775_v27  ;;  %vm13767_vm5 = vcmask 392512   ;;  %v4578_v62 = vsel %vm2299_vm15, %v4577_v35, %v4573_v17  ;;  %v4489_v55 = vsel %vm13727_vm0, %v4488_v5, %v4484_v3  ;;  %v13770_v50 = vld [vmem:[#allocation118_spill] sm:$0xff]  ;;  %v13771_v17 = vld [vmem:[#allocation56_spill] sm:$0xff] }
 0xaad   :  { %v4928_v48 = vsel %vm13767_vm5, %v4927_v16, %v4923_v19  ;;  %v4493_v58 = vrot.slane %v13768_v63, %v13731_v52  ;;  %v4726_v59 = vsel %vm13769_vm6, %v4725_v61, %v4721_v46  ;;  %v4637_v27 = vsel %vm2271_vm11, %v4636_v21, %v4632_v15  ;;  %v4202_v37 = vpop.permute.xlu0 %4201  ;;  %v13772_v16 = vld [vmem:[#allocation124_spill] sm:$0xff]  ;;  %v13774_v61 = vld [vmem:[#allocation117_spill] sm:$0xff]  ;;  %vm13777_vm5 = vmmov %vm13727_vm0 }
 0xaae   :  { %v4874_v0 = vsel %vm2271_vm11, %v4873_v47, %v4869_v54  ;;  %v4789_v23 = vrot.slane %v13770_v50, %v13695_v2  ;;  %v4785_v14 = vsel %vm2257_vm9, %v4784_v12, %v4780_v43  ;;  %v4583_v19 = vsel %vm2306_vm1, %v4582_v42, %v4578_v62  ;;  %v13775_v54 = vld [vmem:[#allocation32_spill] sm:$0xff]  ;;  %v4295_v43 = vpop.permute.xlu1 %4294 }
 0xaaf   :  { %v4641_v3 = vrot.slane %v13771_v17, %v13708_v7  ;;  %v4794_v35 = vrot.slane %v13772_v16, %v13699_v26  ;;  %vm13773_vm8 = vcmask 458112   ;;  %v4731_v46 = vsel %vm2292_vm14, %v4730_v31, %v4726_v59 }
 0xab0   :  { %v4933_v5 = vsel %vm13773_vm8, %v4932_v24, %v4928_v48  ;;  %v4937_v21 = vrot.slane %v13774_v61, %v13684_v39  ;;  %v4799_v47 = vrot.slane %v11540_v32, %v13708_v7  ;;  %v4494_v15 = vsel %vm2292_vm14, %v4493_v58, %v4489_v55  ;;  %vm13779_vm8 = vmmov %vm13727_vm0 }
 0xab1   :  { %v4498_v12 = vrot.slane %v13775_v54, %v13742_v33  ;;  %v4646_v42 = vrot.slane %v13776_v4, %v13719_v22  ;;  %v4804_v45 = vrot.slane %v11622_v11, %v13719_v22  ;;  %v4878_v24 = vrot.slane %v11509_v57, %v13708_v7  ;;  %v4292_v62 = vpop.permute.xlu0 %4291 }
 0xab2   :  { %v4790_v31 = vsel %vm2264_vm10, %v4789_v23, %v4785_v14  ;;  %v4503_v32 = vrot.slane %v11489_v1, %v13755_v38  ;;  %v4651_v48 = vrot.slane %v11518_v44, %v13731_v52  ;;  %v4642_v55 = vsel %vm2278_vm12, %v4641_v3, %v4637_v27  ;;  %v4298_v16 = vpop.permute.xlu1 %4297 }
 0xab3   :  { %v4795_v63 = vsel %vm2271_vm11, %v4794_v35, %v4790_v31  ;;  %v4942_v58 = vrot.slane %v11458_v30, %v13690_v18  ;;  %v4656_v11 = vrot.slane %v11598_v53, %v13742_v33  ;;  %v4809_v57 = vrot.slane %v11588_v25, %v13731_v52 }
 0xab4   :  { %v4938_v59 = vsel %vm13765_vm13, %v4937_v21, %v4933_v5  ;;  %v4800_v1 = vsel %vm2278_vm12, %v4799_v47, %v4795_v63  ;;  %v4947_v44 = vrot.slane %v11567_v36, %v13695_v2  ;;  %v4499_v27 = vsel %vm2299_vm15, %v4498_v12, %v4494_v15 }
 0xab5   :  { %v4647_v50 = vsel %vm13777_vm5, %v4646_v42, %v4642_v55  ;;  %v4805_v23 = vsel %vm13727_vm0, %v4804_v45, %v4800_v1  ;;  %v4952_v30 = vrot.slane %v11652_v49, %v13699_v26  ;;  %v4504_v53 = vsel %vm2306_vm1, %v4503_v32, %v4499_v27  ;;  %v4250_v36 = vpop.permute.xlu0 %4249 }
 0xab6   :  { %v4652_v25 = vsel %vm2292_vm14, %v4651_v48, %v4647_v50  ;;  %v4735_v14 = vrot.slane %v11678_v60, %v13742_v33  ;;  %v4883_v17 = vrot.slane %v11706_v9, %v13719_v22  ;;  %v4943_v3 = vsel %vm2257_vm9, %v4942_v58, %v4938_v59 }
 0xab7   :  { %v4657_v35 = vsel %vm2299_vm15, %v4656_v11, %v4652_v25  ;;  %v4740_v5 = vrot.slane %v4202_v37, %v13755_v38  ;;  %v4888_v49 = vrot.slane %v4292_v62, %v13731_v52  ;;  %v4661_v61 = vrot.slane %v11548_v6, %v13755_v38  ;;  %v4346_v62 = vpop.permute.xlu1 %4345  ;;  %v13784_v25 = vld [vmem:[#allocation27_spill] sm:$0xff] }
 0xab8   :  { %v4948_v21 = vsel %vm2264_vm10, %v4947_v44, %v4943_v3  ;;  %v4810_v60 = vsel %vm2292_vm14, %v4809_v57, %v4805_v23  ;;  %v4819_v47 = vrot.slane %v4250_v36, %v13755_v38  ;;  %v4879_v9 = vsel %vm2278_vm12, %v4878_v24, %v4874_v0  ;;  %v8241_v36 = vld [vmem:[#allocation10 + $0x178] sm:$0xff] }
 0xab9   :  { %v4814_v15 = vrot.slane %v11671_v41, %v13742_v33  ;;  %vm13778_vm6 = vcmask 1041409   ;;  %v4953_v37 = vsel %vm2271_vm11, %v4952_v30, %v4948_v21  ;;  %v4957_v12 = vrot.slane %v11630_v51, %v13708_v7  ;;  %v4340_v45 = vpop.permute.xlu0 %4339  ;;  %v8247_v21 = vld [vmem:[#allocation10 + $0x148] sm:$0xff] }
 0xaba   :  { %v4979_v54 = vsel %vm13778_vm6, %v4504_v53, %v4425_v29  ;;  %v4662_v6 = vsel %vm2306_vm1, %v4661_v61, %v4657_v35  ;;  %v4736_v4 = vsel %vm2299_vm15, %v4735_v14, %v4731_v46  ;;  %v4884_v42 = vsel %vm13779_vm8, %v4883_v17, %v4879_v9  ;;  %v8243_v35 = vld [vmem:[#allocation10 + $0x168] sm:$0xff]  ;;  %v8246_v61 = vld [vmem:[#allocation10 + $0x150] sm:$0xff] }
 0xabb   :  { %v4893_v31 = vrot.slane %v4295_v43, %v13742_v33  ;;  %v4741_v0 = vsel %vm2306_vm1, %v4740_v5, %v4736_v4  ;;  %v4889_v41 = vsel %vm2292_vm14, %v4888_v49, %v4884_v42  ;;  %v4815_v29 = vsel %vm2299_vm15, %v4814_v15, %v4810_v60  ;;  %v8244_v5 = vld [vmem:[#allocation10 + $0x160] sm:$0xff]  ;;  %v8245_v49 = vld [vmem:[#allocation10 + $0x158] sm:$0xff]  ;;  %v8250_v9 = vld [vmem:[#allocation10 + $0x130] sm:$0xff] }
 0xabc   :  { %vm13780_vm13 = vcmask 1042434   ;;  %v4958_v32 = vsel %vm2278_vm12, %v4957_v12, %v4953_v37  ;;  %v4820_v51 = vsel %vm2306_vm1, %v4819_v47, %v4815_v29  ;;  %v4967_v48 = vrot.slane %v4340_v45, %v13731_v52  ;;  %v8248_v60 = vld [vmem:[#allocation10 + $0x140] sm:$0xff]  ;;  %v8249_v47 = vld [vmem:[#allocation10 + $0x138] sm:$0xff]  ;;  %v8251_v15 = vld [vmem:[#allocation10 + $0x128] sm:$0xff] }
 0xabd   :  { %v4980_v24 = vsel %vm13780_vm13, %v4583_v19, %v4979_v54  ;;  %v4962_v46 = vrot.slane %v11714_v13, %v13719_v22  ;;  %vm13781_vm5 = vcmask 1043459   ;;  %v4343_v55 = vpop.permute.xlu0 %4342  ;;  %v4894_v63 = vsel %vm2299_vm15, %v4893_v31, %v4889_v41  ;;  %v8252_v54 = vld [vmem:[#allocation10 + $0x120] sm:$0xff]  ;;  %v8253_v37 = vld [vmem:[#allocation10 + $0x118] sm:$0xff]  ;;  %v8254_v12 = vld [vmem:[#allocation10 + $0x110] sm:$0xff] }
 0xabe   :  { %v4981_v43 = vsel %vm13781_vm5, %v4662_v6, %v4980_v24  ;;  %v4898_v11 = vrot.slane %v4298_v16, %v13755_v38  ;;  %v4972_v57 = vrot.slane %v4343_v55, %v13742_v33  ;;  %v4977_v1 = vrot.slane %v4346_v62, %v13755_v38  ;;  %v8242_v16 = vld [vmem:[#allocation10 + $0x170] sm:$0xff]  ;;  %v8255_v6 = vld [vmem:[#allocation10 + $0x108] sm:$0xff]  ;;  %v8256_v4 = vld [vmem:[#allocation10 + $0x100] sm:$0xff] }
 0xabf   :  { %v4982_v58 = vsel %vm2867_vm7, %v4741_v0, %v4981_v43  ;;  %v4963_v19 = vsel %vm13727_vm0, %v4962_v46, %v4958_v32  ;;  %vm13782_vm6 = vcmask 1046534   ;;  %vm13783_vm8 = vcmask 1047559   ;;  %v13790_v45 = vld [vmem:[#allocation111_spill] sm:$0xff]  ;;  %v13792_v32 = vld [vmem:[#allocation46_spill] sm:$0xff]  ;;  %v13795_v55 = vld [vmem:[#allocation88_spill] sm:$0xff] }
 0xac0   :  { %v4983_v59 = vsel %vm13197_vm4, %v4820_v51, %v4982_v58  ;;  %v4968_v13 = vsel %vm2292_vm14, %v4967_v48, %v4963_v19  ;;  %v4899_v44 = vsel %vm2306_vm1, %v4898_v11, %v4894_v63  ;;  %v13785_v17 = vmov 1.0   ;;  %v13793_v48 = vld [vmem:[#allocation70_spill] sm:$0xff]  ;;  %v13796_v58 = vld [vmem:[#allocation91_spill] sm:$0xff]  ;;  %v13797_v19 = vld [vmem:[#allocation81_spill] sm:$0xff] }
 0xac1   :  { %v4973_v27 = vsel %vm2299_vm15, %v4972_v57, %v4968_v13  ;;  %v4984_v23 = vsel %vm13782_vm6, %v4899_v44, %v4983_v59  ;;  %v13786_v3 = vmov 0.0   ;;  %vm13787_vm5 = vmmov 0   ;;  %v13794_v62 = vld [vmem:[#allocation58_spill] sm:$0xff]  ;;  %v13798_v59 = vld [vmem:[#allocation92_spill] sm:$0xff]  ;;  %v13799_v13 = vld [vmem:[#allocation95_spill] sm:$0xff] }
 0xac2   :  { %v4978_v50 = vsel %vm2306_vm1, %v4977_v1, %v4973_v27  ;;  %vm13788_vm0 = vcmask 57344   ;;  %vm13910_vm6 = vcmask 261312  }
 0xac3   :  { %v4985_v30 = vsel %vm13783_vm8, %v4978_v50, %v4984_v23  ;;  %vm13912_vm8 = vcmask 326912  }
 0xac4   :  { %4987 = vmin.index.xlane.f32.xlu0 %v4985_v30 }
 0xb4d   :  { %v4988_v53 = vpop.xlane.xlu0 %4987 }
 0xb4e   :  { %vm4989_vm13 = vcmp.eq.s32.totalorder %v13784_v25, %v4988_v53  ;;  %v5077_v14 = vrot.slane %v4988_v53, %v13660_v34 }
 0xb4f   :  { %7997 = vmatmul.mubr.msk.f32.vlgmr.msra.gmra.mxu1 %vm4989_vm13, %v13785_v17  ;;  %vm13915_vm13 = vcmask 392512  }
 0xb50   :  { %8000 = vmatpush3.xpose.msra.mxu1 %v8241_v36  ;;  %8031 = vmatprep.mubr.msk.f32.mxu1 %vm13787_vm5, %v13786_v3  ;;  %5078 = vst.msk [vmem:[#allocation17 + $0x1] sm:$0x1] %vm13788_vm0, %v5077_v14  ;;  %vm13916_vm0 = vmmov %vm13910_vm6 }
 0xb51   :  { %8001 = vmatprep.subr.mxu1 %v13786_v3 }
 0xb54   :  { %8002 = vmatpush3.xpose.msra.mxu1 %v8242_v16 }
 0xb55   :  { %8003 = vmatprep.subr.mxu1 %v13786_v3 }
 0xb58   :  { %8004 = vmatpush3.xpose.msra.mxu1 %v8243_v35 }
 0xb59   :  { %8005 = vmatprep.subr.mxu1 %v13786_v3 }
 0xb5c   :  { %8006 = vmatpush3.xpose.msra.mxu1 %v8244_v5 }
 0xb5d   :  { %8007 = vmatprep.subr.mxu1 %v13786_v3 }
 0xb60   :  { %8008 = vmatpush3.xpose.msra.mxu1 %v8245_v49 }
 0xb61   :  { %8009 = vmatprep.subr.mxu1 %v13786_v3 }
 0xb64   :  { %8010 = vmatpush3.xpose.msra.mxu1 %v8246_v61 }
 0xb65   :  { %8011 = vmatprep.subr.mxu1 %v13786_v3 }
 0xb68   :  { %8012 = vmatpush3.xpose.msra.mxu1 %v8247_v21 }
 0xb69   :  { %8013 = vmatprep.subr.mxu1 %v13786_v3 }
 0xb6c   :  { %8014 = vmatpush3.xpose.msra.mxu1 %v8248_v60 }
 0xb6d   :  { %8015 = vmatprep.subr.mxu1 %v13786_v3 }
 0xb70   :  { %8016 = vmatpush3.xpose.msra.mxu1 %v8249_v47 }
 0xb71   :  { %8017 = vmatprep.subr.mxu1 %v13786_v3 }
 0xb74   :  { %8018 = vmatpush3.xpose.msra.mxu1 %v8250_v9 }
 0xb75   :  { %8019 = vmatprep.subr.mxu1 %v13786_v3 }
 0xb78   :  { %8020 = vmatpush3.xpose.msra.mxu1 %v8251_v15 }
 0xb79   :  { %8021 = vmatprep.subr.mxu1 %v13786_v3 }
 0xb7c   :  { %8022 = vmatpush3.xpose.msra.mxu1 %v8252_v54 }
 0xb7d   :  { %8023 = vmatprep.subr.mxu1 %v13786_v3 }
 0xb80   :  { %8024 = vmatpush3.xpose.msra.mxu1 %v8253_v37 }
 0xb81   :  { %8025 = vmatprep.subr.mxu1 %v13786_v3 }
 0xb84   :  { %8026 = vmatpush3.xpose.msra.mxu1 %v8254_v12 }
 0xb85   :  { %8027 = vmatprep.subr.mxu1 %v13786_v3 }
 0xb88   :  { %8028 = vmatpush3.xpose.msra.mxu1 %v8255_v6 }
 0xb89   :  { %8029 = vmatprep.subr.mxu1 %v13786_v3 }
 0xb8c   :  { %8030 = vmatpush3.xpose.msra.mxu1 %v8256_v4 }
 0xb8d   :  { %8089 = vmatprep.subr.bf16.mxu1 %v13786_v3 }
 0xc0f   :  { %v11846_v42 = vpop.f32.mrf.mxu1 }
 0xc10   :  { %13789 = vst [vmem:[#allocation125_spill] sm:$0xff] %v11846_v42  ;;  %v11850_v31 = vsub.f32 %v13790_v45, %v11846_v42 }
 0xc11   :  { %v7998_v0 = vpop.f32.mrf.mxu1 }
 0xc12   :  { %13791 = vst [vmem:[#allocation127_spill] sm:$0xff] %v11850_v31  ;;  %8032 = vmatmul.mubr.f32.vlgmr.msra.gmra.mxu1 %v11850_v31 }
 0xc13   :  { %8105 = vmatprep.mubr.msk.bf16.mxu1 %vm13787_vm5, %v13786_v3 }
 0xcd2   :  { %v5147_v41 = vpop.f32.mrf.mxu1 }
 0xcd3   :  { %v5151_v29 = vmul.f32 2.0, %v5147_v41 }
 0xcd4   :  { %v8033_v24 = vpop.f32.mrf.mxu1 }
 0xcd5   :  { %v11856_v51 = vrot.slane %v5151_v29, %v13792_v32  ;;  %v11861_v46 = vrot.slane %v5151_v29, %v13793_v48  ;;  %v11866_v43 = vrot.slane %v5151_v29, %v13794_v62  ;;  %v11869_v63 = vrot.slane %v5151_v29, %v13795_v55 }
 0xcd6   :  { %v11880_v11 = vrot.slane %v5151_v29, %v13796_v58  ;;  %v11887_v57 = vrot.slane %v5151_v29, %v13797_v19  ;;  %v11894_v1 = vrot.slane %v5151_v29, %v13798_v59  ;;  %v11905_v44 = vrot.slane %v5151_v29, %v13799_v13 }
 0xcd7   :  { %5170 = vbcast.lane.b32.xlu0 %v11856_v51, 280  ;;  %5158 = vbcast.lane.b32.xlu1 %v11856_v51, 256 }
 0xcdb   :  { %5304 = vbcast.lane.b32.xlu0 %v11861_v46, 280  ;;  %5162 = vbcast.lane.b32.xlu1 %v11856_v51, 264 }
 0xcdf   :  { %5426 = vbcast.lane.b32.xlu0 %v11869_v63, 256  ;;  %5225 = vbcast.lane.b32.xlu1 %v11866_v43, 256 }
 0xce3   :  { %5178 = vbcast.lane.b32.xlu0 %v11856_v51, 296  ;;  %5229 = vbcast.lane.b32.xlu1 %v11866_v43, 264 }
 0xce7   :  { %5308 = vbcast.lane.b32.xlu0 %v11861_v46, 288  ;;  %5166 = vbcast.lane.b32.xlu1 %v11856_v51, 272 }
 0xceb   :  { %5434 = vbcast.lane.b32.xlu0 %v11869_v63, 272  ;;  %5233 = vbcast.lane.b32.xlu1 %v11866_v43, 272 }
 0xcef   :  { %5497 = vbcast.lane.b32.xlu0 %v11880_v11, 264  ;;  %5292 = vbcast.lane.b32.xlu1 %v11861_v46, 256 }
 0xcf3   :  { %5249 = vbcast.lane.b32.xlu0 %v11866_v43, 304  ;;  %5296 = vbcast.lane.b32.xlu1 %v11861_v46, 264 }
 0xcf7   :  { %5375 = vbcast.lane.b32.xlu0 %v11887_v57, 288  ;;  %5237 = vbcast.lane.b32.xlu1 %v11866_v43, 280 }
 0xcfb   :  { %5501 = vbcast.lane.b32.xlu0 %v11880_v11, 272  ;;  %5300 = vbcast.lane.b32.xlu1 %v11861_v46, 272 }
 0xcff   :  { %5564 = vbcast.lane.b32.xlu0 %v11894_v1, 264  ;;  %5359 = vbcast.lane.b32.xlu1 %v11887_v57, 256 }
 0xd03   :  { %5253 = vbcast.lane.b32.xlu0 %v11866_v43, 312  ;;  %5363 = vbcast.lane.b32.xlu1 %v11887_v57, 264 }
 0xd07   :  { %5379 = vbcast.lane.b32.xlu0 %v11887_v57, 296  ;;  %5174 = vbcast.lane.b32.xlu1 %v11856_v51, 288 }
 0xd0b   :  { %5505 = vbcast.lane.b32.xlu0 %v11880_v11, 280  ;;  %5241 = vbcast.lane.b32.xlu1 %v11866_v43, 288 }
 0xd0f   :  { %5627 = vbcast.lane.b32.xlu0 %v11905_v44, 256  ;;  %5367 = vbcast.lane.b32.xlu1 %v11887_v57, 272 }
 0xd13   :  { %5190 = vbcast.lane.b32.xlu0 %v11856_v51, 320  ;;  %5430 = vbcast.lane.b32.xlu1 %v11869_v63, 264 }
 0xd17   :  { %5320 = vbcast.lane.b32.xlu0 %v11861_v46, 312  ;;  %5245 = vbcast.lane.b32.xlu1 %v11866_v43, 296 }
 0xd1b   :  { %5446 = vbcast.lane.b32.xlu0 %v11869_v63, 296  ;;  %5371 = vbcast.lane.b32.xlu1 %v11887_v57, 280 }
 0xd1f   :  { %5572 = vbcast.lane.b32.xlu0 %v11894_v1, 280  ;;  %5493 = vbcast.lane.b32.xlu1 %v11880_v11, 256 }
 0xd23   :  { %5194 = vbcast.lane.b32.xlu0 %v11856_v51, 328  ;;  %5182 = vbcast.lane.b32.xlu1 %v11856_v51, 304 }
 0xd27   :  { %5324 = vbcast.lane.b32.xlu0 %v11861_v46, 320  ;;  %5312 = vbcast.lane.b32.xlu1 %v11861_v46, 296 }
 0xd2b   :  { %5450 = vbcast.lane.b32.xlu0 %v11869_v63, 304  ;;  %5438 = vbcast.lane.b32.xlu1 %v11869_v63, 280 }
 0xd2f   :  { %5576 = vbcast.lane.b32.xlu0 %v11894_v1, 288  ;;  %5560 = vbcast.lane.b32.xlu1 %v11894_v1, 256 }
 0xd33   :  { %5198 = vbcast.lane.b32.xlu0 %v11856_v51, 336  ;;  %5186 = vbcast.lane.b32.xlu1 %v11856_v51, 312 }
 0xd37   :  { %5328 = vbcast.lane.b32.xlu0 %v11861_v46, 328  ;;  %5316 = vbcast.lane.b32.xlu1 %v11861_v46, 304 }
 0xd3b   :  { %5454 = vbcast.lane.b32.xlu0 %v11869_v63, 312  ;;  %5442 = vbcast.lane.b32.xlu1 %v11869_v63, 288 }
 0xd3f   :  { %5580 = vbcast.lane.b32.xlu0 %v11894_v1, 296  ;;  %5568 = vbcast.lane.b32.xlu1 %v11894_v1, 272 }
 0xd43   :  { %5202 = vbcast.lane.b32.xlu0 %v11856_v51, 344  ;;  %5631 = vbcast.lane.b32.xlu1 %v11905_v44, 264 }
 0xd47   :  { %5332 = vbcast.lane.b32.xlu0 %v11861_v46, 336  ;;  %5257 = vbcast.lane.b32.xlu1 %v11866_v43, 320 }
 0xd49   :  { %v11937_v27 = vpop.permute.xlu0 %5170  ;;  %v11939_v50 = vpop.permute.xlu1 %5158 }
 0xd4b   :  { %5458 = vbcast.lane.b32.xlu0 %v11869_v63, 320  ;;  %5383 = vbcast.lane.b32.xlu1 %v11887_v57, 304 }
 0xd4d   :  { %v11943_v23 = vpop.permute.xlu0 %5304  ;;  %v11945_v30 = vpop.permute.xlu1 %5162 }
 0xd4f   :  { %5584 = vbcast.lane.b32.xlu0 %v11894_v1, 304  ;;  %5509 = vbcast.lane.b32.xlu1 %v11880_v11, 288 }
 0xd51   :  { %v11949_v53 = vpop.permute.xlu0 %5426  ;;  %v11951_v14 = vpop.permute.xlu1 %5225 }
 0xd53   :  { %5206 = vbcast.lane.b32.xlu0 %v11856_v51, 352  ;;  %5635 = vbcast.lane.b32.xlu1 %v11905_v44, 272 }
 0xd55   :  { %v11955_v36 = vpop.permute.xlu0 %5178  ;;  %v11957_v16 = vpop.permute.xlu1 %5229 }
 0xd57   :  { %5336 = vbcast.lane.b32.xlu0 %v11861_v46, 344  ;;  %5261 = vbcast.lane.b32.xlu1 %v11866_v43, 328 }
 0xd59   :  { %v11961_v35 = vpop.permute.xlu0 %5308  ;;  %v11963_v5 = vpop.permute.xlu1 %5166 }
 0xd5b   :  { %5462 = vbcast.lane.b32.xlu0 %v11869_v63, 328  ;;  %5387 = vbcast.lane.b32.xlu1 %v11887_v57, 312 }
 0xd5d   :  { %v11967_v49 = vpop.permute.xlu0 %5434  ;;  %v11969_v61 = vpop.permute.xlu1 %5233 }
 0xd5f   :  { %5588 = vbcast.lane.b32.xlu0 %v11894_v1, 312  ;;  %5513 = vbcast.lane.b32.xlu1 %v11880_v11, 296 }
 0xd61   :  { %v11973_v21 = vpop.permute.xlu0 %5497  ;;  %v11975_v60 = vpop.permute.xlu1 %5292 }
 0xd63   :  { %5210 = vbcast.lane.b32.xlu0 %v11856_v51, 360  ;;  %5639 = vbcast.lane.b32.xlu1 %v11905_v44, 280 }
 0xd65   :  { %v11979_v47 = vpop.permute.xlu0 %5249  ;;  %v11981_v9 = vpop.permute.xlu1 %5296 }
 0xd67   :  { %5340 = vbcast.lane.b32.xlu0 %v11861_v46, 352  ;;  %5265 = vbcast.lane.b32.xlu1 %v11866_v43, 336 }
 0xd69   :  { %v11985_v15 = vpop.permute.xlu0 %5375  ;;  %v11987_v54 = vpop.permute.xlu1 %5237 }
 0xd6b   :  { %5466 = vbcast.lane.b32.xlu0 %v11869_v63, 336  ;;  %5391 = vbcast.lane.b32.xlu1 %v11887_v57, 320 }
 0xd6d   :  { %v11991_v37 = vpop.permute.xlu0 %5501  ;;  %v11993_v12 = vpop.permute.xlu1 %5300 }
 0xd6f   :  { %5592 = vbcast.lane.b32.xlu0 %v11894_v1, 320  ;;  %5517 = vbcast.lane.b32.xlu1 %v11880_v11, 304 }
 0xd71   :  { %v11997_v6 = vpop.permute.xlu0 %5564  ;;  %v11999_v4 = vpop.permute.xlu1 %5359 }
 0xd73   :  { %5214 = vbcast.lane.b32.xlu0 %v11856_v51, 368  ;;  %5643 = vbcast.lane.b32.xlu1 %v11905_v44, 288 }
 0xd75   :  { %v12003_v0 = vpop.permute.xlu0 %5253  ;;  %v12005_v41 = vpop.permute.xlu1 %5363 }
 0xd77   :  { %5344 = vbcast.lane.b32.xlu0 %v11861_v46, 360  ;;  %5269 = vbcast.lane.b32.xlu1 %v11866_v43, 344 }
 0xd79   :  { %v12009_v29 = vpop.permute.xlu0 %5379  ;;  %v12011_v24 = vpop.permute.xlu1 %5174 }
 0xd7b   :  { %5470 = vbcast.lane.b32.xlu0 %v11869_v63, 344  ;;  %5395 = vbcast.lane.b32.xlu1 %v11887_v57, 328 }
 0xd7d   :  { %v12015_v32 = vpop.permute.xlu0 %5505  ;;  %v12017_v48 = vpop.permute.xlu1 %5241 }
 0xd7f   :  { %5596 = vbcast.lane.b32.xlu0 %v11894_v1, 328  ;;  %5521 = vbcast.lane.b32.xlu1 %v11880_v11, 312 }
 0xd81   :  { %v12021_v62 = vpop.permute.xlu0 %5627  ;;  %v12023_v55 = vpop.permute.xlu1 %5367 }
 0xd83   :  { %5218 = vbcast.lane.b32.xlu0 %v11856_v51, 376  ;;  %5647 = vbcast.lane.b32.xlu1 %v11905_v44, 296 }
 0xd85   :  { %v12027_v58 = vpop.permute.xlu0 %5190  ;;  %v12029_v19 = vpop.permute.xlu1 %5430 }
 0xd87   :  { %5348 = vbcast.lane.b32.xlu0 %v11861_v46, 368  ;;  %5273 = vbcast.lane.b32.xlu1 %v11866_v43, 352 }
 0xd89   :  { %v12033_v59 = vpop.permute.xlu0 %5320  ;;  %v12035_v13 = vpop.permute.xlu1 %5245 }
 0xd8b   :  { %5474 = vbcast.lane.b32.xlu0 %v11869_v63, 352  ;;  %5399 = vbcast.lane.b32.xlu1 %v11887_v57, 336 }
 0xd8d   :  { %v12039_v31 = vpop.permute.xlu0 %5446  ;;  %v12041_v51 = vpop.permute.xlu1 %5371 }
 0xd8f   :  { %5600 = vbcast.lane.b32.xlu0 %v11894_v1, 336  ;;  %5525 = vbcast.lane.b32.xlu1 %v11880_v11, 320 }
 0xd91   :  { %v12045_v3 = vpop.permute.xlu0 %5572  ;;  %v12047_v17 = vpop.permute.xlu1 %5493 }
 0xd93   :  { %5352 = vbcast.lane.b32.xlu0 %v11861_v46, 376  ;;  %5651 = vbcast.lane.b32.xlu1 %v11905_v44, 304 }
 0xd95   :  { %v12051_v25 = vpop.permute.xlu0 %5194  ;;  %v12053_v38 = vpop.permute.xlu1 %5182 }
 0xd97   :  { %5478 = vbcast.lane.b32.xlu0 %v11869_v63, 360  ;;  %5277 = vbcast.lane.b32.xlu1 %v11866_v43, 360 }
 0xd99   :  { %v12057_v33 = vpop.permute.xlu0 %5324  ;;  %v12059_v52 = vpop.permute.xlu1 %5312 }
 0xd9b   :  { %5604 = vbcast.lane.b32.xlu0 %v11894_v1, 344  ;;  %5403 = vbcast.lane.b32.xlu1 %v11887_v57, 344 }
 0xd9d   :  { %v12063_v42 = vpop.permute.xlu0 %5450  ;;  %v12065_v46 = vpop.permute.xlu1 %5438 }
 0xd9f   :  { %5419 = vbcast.lane.b32.xlu0 %v11887_v57, 376  ;;  %5529 = vbcast.lane.b32.xlu1 %v11880_v11, 328 }
 0xda1   :  { %v12069_v45 = vpop.permute.xlu0 %5576  ;;  %v12071_v22 = vpop.permute.xlu1 %5560 }
 0xda3   :  { %5545 = vbcast.lane.b32.xlu0 %v11880_v11, 360  ;;  %5655 = vbcast.lane.b32.xlu1 %v11905_v44, 312 }
 0xda5   :  { %v12075_v7 = vpop.permute.xlu0 %5198  ;;  %v12077_v26 = vpop.permute.xlu1 %5186 }
 0xda7   :  { %5671 = vbcast.lane.b32.xlu0 %v11905_v44, 344  ;;  %5281 = vbcast.lane.b32.xlu1 %v11866_v43, 368 }
 0xda9   :  { %v12081_v2 = vpop.permute.xlu0 %5328  ;;  %v12083_v18 = vpop.permute.xlu1 %5316 }
 0xdaa   :  { %13800 = vst [vmem:[#allocation129_spill] sm:$0xff] %v12083_v18 }
 0xdab   :  { %5549 = vbcast.lane.b32.xlu0 %v11880_v11, 368  ;;  %5407 = vbcast.lane.b32.xlu1 %v11887_v57, 352 }
 0xdad   :  { %v12087_v39 = vpop.permute.xlu0 %5454  ;;  %v12089_v20 = vpop.permute.xlu1 %5442 }
 0xdae   :  { %13801 = vst [vmem:[#allocation132_spill] sm:$0xff] %v12087_v39  ;;  %13802 = vst [vmem:[#allocation134_spill] sm:$0xff] %v12089_v20  ;;  %v13809_v20 = vld [vmem:[#allocation53_spill] sm:$0xff] }
 0xdaf   :  { %5675 = vbcast.lane.b32.xlu0 %v11905_v44, 352  ;;  %5533 = vbcast.lane.b32.xlu1 %v11880_v11, 336 }
 0xdb1   :  { %v12093_v56 = vpop.permute.xlu0 %5580  ;;  %v12095_v8 = vpop.permute.xlu1 %5568 }
 0xdb2   :  { %13803 = vst [vmem:[#allocation136_spill] sm:$0xff] %v12093_v56  ;;  %13804 = vst [vmem:[#allocation128_spill] sm:$0xff] %v12095_v8  ;;  %v13810_v56 = vld [vmem:[#allocation71_spill] sm:$0xff] }
 0xdb3   :  { %5616 = vbcast.lane.b32.xlu0 %v11894_v1, 368  ;;  %5659 = vbcast.lane.b32.xlu1 %v11905_v44, 320  ;;  %v12111_v39 = vadd.f32 %v13810_v56, %v13809_v20  ;;  %v13814_v20 = vld [vmem:[#allocation61_spill] sm:$0xff] }
 0xdb5   :  { %v12099_v40 = vpop.permute.xlu0 %5202  ;;  %v12101_v10 = vpop.permute.xlu1 %5631 }
 0xdb6   :  { %13805 = vst [vmem:[#allocation130_spill] sm:$0xff] %v12099_v40  ;;  %13806 = vst [vmem:[#allocation131_spill] sm:$0xff] %v12101_v10  ;;  %v5818_v40 = vsub.f32 %v12111_v39, %v11945_v30 }
 0xdb7   :  { %5620 = vbcast.lane.b32.xlu0 %v11894_v1, 376  ;;  %5285 = vbcast.lane.b32.xlu1 %v11866_v43, 376  ;;  %v5834_v43 = vsub.f32 %v12111_v39, %v11957_v16  ;;  %v5850_v16 = vsub.f32 %v12111_v39, %v11981_v9  ;;  %v13823_v9 = vld [vmem:[#allocation76_spill] sm:$0xff] }
 0xdb9   :  { %v12105_v28 = vpop.permute.xlu0 %5332  ;;  %v12107_v34 = vpop.permute.xlu1 %5257 }
 0xdba   :  { %13807 = vst [vmem:[#allocation133_spill] sm:$0xff] %v12105_v28  ;;  %13808 = vst [vmem:[#allocation135_spill] sm:$0xff] %v12107_v34  ;;  %v13815_v28 = vld [vmem:[#allocation73_spill] sm:$0xff] }
 0xdbb   :  { %5687 = vbcast.lane.b32.xlu0 %v11905_v44, 376  ;;  %5411 = vbcast.lane.b32.xlu1 %v11887_v57, 360  ;;  %v12130_v18 = vadd.f32 %v13815_v28, %v13814_v20  ;;  %v13821_v20 = vld [vmem:[#allocation75_spill] sm:$0xff] }
 0xdbd   :  { %v12117_v10 = vpop.permute.xlu0 %5458  ;;  %v12119_v8 = vpop.permute.xlu1 %5383  ;;  %v5835_v30 = vsub.f32 %v12130_v18, %v11969_v61 }
 0xdbe   :  { %13811 = vst [vmem:[#allocation137_spill] sm:$0xff] %v12119_v8 }
 0xdbf   :  { %6077 = vperm.xlu0 %8155, %v5818_v40   ;;  %5537 = vbcast.lane.b32.xlu1 %v11880_v11, 344 }
 0xdc1   :  { %v12124_v34 = vpop.permute.xlu0 %5584  ;;  %v12126_v56 = vpop.permute.xlu1 %5509 }
 0xdc2   :  { %13812 = vst [vmem:[#allocation138_spill] sm:$0xff] %v12124_v34  ;;  %13813 = vst [vmem:[#allocation139_spill] sm:$0xff] %v12126_v56 }
 0xdc3   :  { %6125 = vperm.xlu0 %8155, %v5834_v43   ;;  %5663 = vbcast.lane.b32.xlu1 %v11905_v44, 328  ;;  %v13820_v43 = vld [vmem:[#allocation55_spill] sm:$0xff] }
 0xdc4   :  { %v12148_v34 = vadd.f32 %v13821_v20, %v13820_v43 }
 0xdc5   :  { %v12135_v40 = vpop.permute.xlu0 %5206  ;;  %v12137_v8 = vpop.permute.xlu1 %5635 }
 0xdc6   :  { %13816 = vst [vmem:[#allocation140_spill] sm:$0xff] %v12135_v40  ;;  %13817 = vst [vmem:[#allocation141_spill] sm:$0xff] %v12137_v8  ;;  %v5836_v61 = vsub.f32 %v12148_v34, %v11987_v54  ;;  %v13822_v8 = vld [vmem:[#allocation59_spill] sm:$0xff]  ;;  %v13826_v54 = vld [vmem:[#allocation78_spill] sm:$0xff] }
 0xdc7   :  { %6128 = vperm.xlu0 %8155, %v5835_v30   ;;  %5415 = vbcast.lane.b32.xlu1 %v11887_v57, 368  ;;  %v12159_v40 = vadd.f32 %v13823_v9, %v13822_v8 }
 0xdc9   :  { %v12142_v56 = vpop.permute.xlu0 %5336  ;;  %v12144_v28 = vpop.permute.xlu1 %5261  ;;  %v5865_v43 = vsub.f32 %v12159_v40, %v11999_v4  ;;  %v5852_v4 = vsub.f32 %v12148_v34, %v11943_v23 }
 0xdca   :  { %13818 = vst [vmem:[#allocation142_spill] sm:$0xff] %v12142_v56  ;;  %13819 = vst [vmem:[#allocation143_spill] sm:$0xff] %v12144_v28  ;;  %v13825_v28 = vld [vmem:[#allocation63_spill] sm:$0xff] }
 0xdcb   :  { %6173 = vperm.xlu0 %8155, %v5850_v16   ;;  %5541 = vbcast.lane.b32.xlu1 %v11880_v11, 352  ;;  %v12170_v56 = vadd.f32 %v13826_v54, %v13825_v28 }
 0xdcd   :  { %v12153_v30 = vpop.permute.xlu0 %5462  ;;  %v12155_v57 = vpop.permute.xlu1 %5387  ;;  %v5821_v8 = vsub.f32 %v12170_v56, %v12011_v24  ;;  %v5881_v24 = vsub.f32 %v12159_v40, %v11949_v53  ;;  %v5853_v53 = vsub.f32 %v12170_v56, %v11961_v35  ;;  %v5898_v35 = vsub.f32 %v12111_v39, %v11973_v21 }
 0xdce   :  { %v5819_v21 = vsub.f32 %v12130_v18, %v11963_v5  ;;  %v5820_v5 = vsub.f32 %v12148_v34, %v11937_v27 }
 0xdcf   :  { %6131 = vperm.xlu0 %8155, %v5836_v61   ;;  %5667 = vbcast.lane.b32.xlu1 %v11905_v44, 336 }
 0xdd1   :  { %v12164_v16 = vpop.permute.xlu0 %5588  ;;  %v12166_v20 = vpop.permute.xlu1 %5513 }
 0xdd2   :  { %13824 = vst [vmem:[#allocation144_spill] sm:$0xff] %v12166_v20 }
 0xdd3   :  { %6218 = vperm.xlu0 %8155, %v5865_v43   ;;  %5482 = vbcast.lane.b32.xlu1 %v11869_v63, 368 }
 0xdd5   :  { %v12175_v61 = vpop.permute.xlu0 %5210  ;;  %v12177_v9 = vpop.permute.xlu1 %5639 }
 0xdd6   :  { %13827 = vst [vmem:[#allocation153_spill] sm:$0xff] %v12175_v61  ;;  %13828 = vst [vmem:[#allocation120_spill] sm:$0xff] %v12177_v9  ;;  %v13831_v9 = vld [vmem:[#allocation77_spill] sm:$0xff] }
 0xdd7   :  { %6086 = vperm.xlu0 %8155, %v5821_v8   ;;  %5608 = vbcast.lane.b32.xlu1 %v11894_v1, 352  ;;  %v13830_v8 = vld [vmem:[#allocation57_spill] sm:$0xff] }
 0xdd8   :  { %v12195_v61 = vadd.f32 %v13831_v9, %v13830_v8 }
 0xdd9   :  { %v12182_v20 = vpop.permute.xlu0 %5340  ;;  %v12184_v28 = vpop.permute.xlu1 %5265 }
 0xdda   :  { %v5822_v23 = vsub.f32 %v12195_v61, %v11955_v36 }
 0xddb   :  { %6179 = vperm.xlu0 %8155, %v5852_v4   ;;  %5486 = vbcast.lane.b32.xlu1 %v11869_v63, 376 }
 0xddd   :  { %v12189_v43 = vpop.permute.xlu0 %5466  ;;  %v12191_v54 = vpop.permute.xlu1 %5391 }
 0xdde   :  { %13829 = vst [vmem:[#allocation152_spill] sm:$0xff] %v12191_v54 }
 0xddf   :  { %6266 = vperm.xlu0 %8155, %v5881_v24   ;;  %5612 = vbcast.lane.b32.xlu1 %v11894_v1, 360  ;;  %v5883_v1 = vsub.f32 %v12130_v18, %v11967_v49 }
 0xde1   :  { %v12200_v4 = vpop.permute.xlu0 %5592  ;;  %v12202_v63 = vpop.permute.xlu1 %5517 }
 0xde3   :  { %6089 = vperm.xlu0 %8155, %v5822_v23   ;;  %5553 = vbcast.lane.b32.xlu1 %v11880_v11, 376  ;;  %v5817_v11 = vsub.f32 %v12159_v40, %v11939_v50 }
 0xde5   :  { %v12207_v54 = vpop.permute.xlu0 %5214  ;;  %v12209_v9 = vpop.permute.xlu1 %5643 }
 0xde6   :  { %13832 = vst [vmem:[#allocation29_spill] sm:$0xff] %v12209_v9  ;;  %v13835_v9 = vld [vmem:[#allocation80_spill] sm:$0xff] }
 0xde7   :  { %6182 = vperm.xlu0 %8155, %v5853_v53   ;;  %5679 = vbcast.lane.b32.xlu1 %v11905_v44, 360  ;;  %v13834_v53 = vld [vmem:[#allocation65_spill] sm:$0xff] }
 0xde8   :  { %v12229_v49 = vadd.f32 %v13835_v9, %v13834_v53  ;;  %v5869_v9 = vsub.f32 %v12170_v56, %v11985_v15  ;;  %v5914_v15 = vsub.f32 %v12111_v39, %v11997_v6  ;;  %v5866_v6 = vsub.f32 %v12111_v39, %v12005_v41 }
 0xde9   :  { %v12214_v36 = vpop.permute.xlu0 %5344  ;;  %v12216_v24 = vpop.permute.xlu1 %5269  ;;  %v5929_v41 = vsub.f32 %v12159_v40, %v12021_v62 }
 0xdea   :  { %13833 = vst [vmem:[#allocation35_spill] sm:$0xff] %v12216_v24 }
 0xdeb   :  { %6272 = vperm.xlu0 %8155, %v5883_v1   ;;  %5683 = vbcast.lane.b32.xlu1 %v11905_v44, 368  ;;  %v5833_v1 = vsub.f32 %v12159_v40, %v11951_v14  ;;  %v5839_v44 = vsub.f32 %v12229_v49, %v11979_v47  ;;  %v5849_v14 = vsub.f32 %v12159_v40, %v11975_v60  ;;  %v13837_v60 = vld [vmem:[#allocation60_spill] sm:$0xff] }
 0xdec   :  { %v5899_v47 = vsub.f32 %v12130_v18, %v11991_v37  ;;  %v5851_v37 = vsub.f32 %v12130_v18, %v11993_v12  ;;  %v5900_v12 = vsub.f32 %v12148_v34, %v12015_v32  ;;  %v13840_v32 = vld [vmem:[#allocation67_spill] sm:$0xff] }
 0xded   :  { %v12223_v8 = vpop.permute.xlu0 %5470  ;;  %v12225_v23 = vpop.permute.xlu1 %5395 }
 0xdef   :  { %6317 = vperm.xlu0 %8155, %v5898_v35   ;;  %6074 = vperm.xlu1 %8156, %v5817_v11  }
 0xdf1   :  { %v12235_v50 = vpop.permute.xlu0 %5596  ;;  %v12237_v24 = vpop.permute.xlu1 %5521 }
 0xdf3   :  { %6140 = vperm.xlu0 %8155, %v5839_v44   ;;  %6122 = vperm.xlu1 %8156, %v5833_v1  }
 0xdf5   :  { %v12243_v35 = vpop.permute.xlu0 %5218  ;;  %v12245_v11 = vpop.permute.xlu1 %5647 }
 0xdf6   :  { %13836 = vst [vmem:[#allocation42_spill] sm:$0xff] %v12245_v11 }
 0xdf7   :  { %6230 = vperm.xlu0 %8155, %v5869_v9   ;;  %6080 = vperm.xlu1 %8156, %v5819_v21   ;;  %v13838_v9 = vld [vmem:[#allocation79_spill] sm:$0xff] }
 0xdf8   :  { %v12265_v11 = vadd.f32 %v13838_v9, %v13837_v60  ;;  %v5870_v60 = vsub.f32 %v12195_v61, %v12009_v29  ;;  %v5867_v29 = vsub.f32 %v12130_v18, %v12023_v55 }
 0xdf9   :  { %v12251_v53 = vpop.permute.xlu0 %5348  ;;  %v12253_v1 = vpop.permute.xlu1 %5273 }
 0xdfa   :  { %v5856_v55 = vsub.f32 %v12265_v11, %v12033_v59  ;;  %v5916_v59 = vsub.f32 %v12148_v34, %v12045_v3 }
 0xdfb   :  { %6320 = vperm.xlu0 %8155, %v5899_v47   ;;  %6170 = vperm.xlu1 %8156, %v5849_v14   ;;  %v5840_v14 = vsub.f32 %v12265_v11, %v12003_v0  ;;  %v5837_v0 = vsub.f32 %v12170_v56, %v12017_v48 }
 0xdfd   :  { %v12259_v44 = vpop.permute.xlu0 %5474  ;;  %v12261_v21 = vpop.permute.xlu1 %5399 }
 0xdff   :  { %6365 = vperm.xlu0 %8155, %v5914_v15   ;;  %6083 = vperm.xlu1 %8156, %v5820_v5  }
 0xe01   :  { %v12271_v27 = vpop.permute.xlu0 %5600  ;;  %v12273_v47 = vpop.permute.xlu1 %5525 }
 0xe03   :  { %6143 = vperm.xlu0 %8155, %v5840_v14   ;;  %6176 = vperm.xlu1 %8156, %v5851_v37  }
 0xe05   :  { %v12279_v15 = vpop.permute.xlu0 %5352  ;;  %v12281_v5 = vpop.permute.xlu1 %5651 }
 0xe06   :  { %13839 = vst [vmem:[#allocation37_spill] sm:$0xff] %v12281_v5 }
 0xe07   :  { %6233 = vperm.xlu0 %8155, %v5870_v60   ;;  %6221 = vperm.xlu1 %8156, %v5866_v6   ;;  %v13841_v60 = vld [vmem:[#allocation83_spill] sm:$0xff] }
 0xe08   :  { %v12301_v5 = vadd.f32 %v13841_v60, %v13840_v32  ;;  %v5838_v32 = vsub.f32 %v12195_v61, %v12035_v13  ;;  %v5897_v13 = vsub.f32 %v12159_v40, %v12047_v17 }
 0xe09   :  { %v12287_v9 = vpop.permute.xlu0 %5478  ;;  %v12289_v37 = vpop.permute.xlu1 %5277 }
 0xe0a   :  { %v5825_v48 = vsub.f32 %v12301_v5, %v12027_v58  ;;  %v5886_v58 = vsub.f32 %v12195_v61, %v12039_v31  ;;  %v13843_v31 = vld [vmem:[#allocation62_spill] sm:$0xff] }
 0xe0b   :  { %6323 = vperm.xlu0 %8155, %v5900_v12   ;;  %6134 = vperm.xlu1 %8156, %v5837_v0   ;;  %v5882_v12 = vsub.f32 %v12111_v39, %v12029_v19  ;;  %v5868_v19 = vsub.f32 %v12148_v34, %v12041_v51 }
 0xe0d   :  { %v12295_v14 = vpop.permute.xlu0 %5604  ;;  %v12297_v6 = vpop.permute.xlu1 %5403 }
 0xe0f   :  { %6410 = vperm.xlu0 %8155, %v5929_v41   ;;  %6224 = vperm.xlu1 %8156, %v5867_v29  }
 0xe11   :  { %v12307_v62 = vpop.permute.xlu0 %5419  ;;  %v12309_v0 = vpop.permute.xlu1 %5529 }
 0xe13   :  { %6098 = vperm.xlu0 %8155, %v5825_v48   ;;  %6269 = vperm.xlu1 %8156, %v5882_v12  }
 0xe15   :  { %v12315_v41 = vpop.permute.xlu0 %5545  ;;  %v12317_v29 = vpop.permute.xlu1 %5655 }
 0xe16   :  { %13842 = vst [vmem:[#allocation40_spill] sm:$0xff] %v12317_v29 }
 0xe17   :  { %6191 = vperm.xlu0 %8155, %v5856_v55   ;;  %6137 = vperm.xlu1 %8156, %v5838_v32   ;;  %v13844_v32 = vld [vmem:[#allocation82_spill] sm:$0xff] }
 0xe18   :  { %v12337_v29 = vadd.f32 %v13844_v32, %v13843_v31  ;;  %v5854_v31 = vsub.f32 %v12195_v61, %v12059_v52  ;;  %v5913_v52 = vsub.f32 %v12159_v40, %v12071_v22  ;;  %v13850_v40 = vld [vmem:[#allocation129_spill] sm:$0xff] }
 0xe19   :  { %v12323_v60 = vpop.permute.xlu0 %5671  ;;  %v12325_v48 = vpop.permute.xlu1 %5281 }
 0xe1a   :  { %v5826_v51 = vsub.f32 %v12337_v29, %v12051_v25  ;;  %v5887_v25 = vsub.f32 %v12229_v49, %v12063_v42  ;;  %v5858_v22 = vsub.f32 %v12337_v29, %v12081_v2  ;;  %v13856_v2 = vld [vmem:[#allocation136_spill] sm:$0xff] }
 0xe1b   :  { %6281 = vperm.xlu0 %8155, %v5886_v58   ;;  %6227 = vperm.xlu1 %8156, %v5868_v19   ;;  %v5823_v58 = vsub.f32 %v12229_v49, %v12053_v38  ;;  %v5857_v19 = vsub.f32 %v12301_v5, %v12057_v33  ;;  %v5884_v38 = vsub.f32 %v12148_v34, %v12065_v46 }
 0xe1c   :  { %v5917_v33 = vsub.f32 %v12170_v56, %v12069_v45 }
 0xe1d   :  { %v12331_v12 = vpop.permute.xlu1 %5407  ;;  %v12333_v55 = vpop.permute.xlu0 %5549 }
 0xe1f   :  { %6371 = vperm.xlu0 %8155, %v5916_v59   ;;  %6314 = vperm.xlu1 %8156, %v5897_v13  }
 0xe21   :  { %v12343_v3 = vpop.permute.xlu1 %5533  ;;  %v12345_v17 = vpop.permute.xlu0 %5675 }
 0xe23   :  { %6101 = vperm.xlu0 %8155, %v5826_v51   ;;  %6092 = vperm.xlu1 %8156, %v5823_v58   ;;  %v13847_v58 = vld [vmem:[#allocation69_spill] sm:$0xff] }
 0xe25   :  { %v12351_v59 = vpop.permute.xlu1 %5659  ;;  %v12359_v32 = vpop.permute.xlu0 %5616 }
 0xe27   :  { %6194 = vperm.xlu0 %8155, %v5857_v19   ;;  %6185 = vperm.xlu1 %8156, %v5854_v31   ;;  %v13848_v19 = vld [vmem:[#allocation85_spill] sm:$0xff] }
 0xe28   :  { %v12369_v42 = vadd.f32 %v13848_v19, %v13847_v58 }
 0xe29   :  { %v12357_v13 = vpop.permute.xlu1 %5285  ;;  %v12371_v46 = vpop.permute.xlu0 %5620 }
 0xe2a   :  { %13845 = vst [vmem:[#allocation45_spill] sm:$0xff] %v12357_v13  ;;  %v5827_v31 = vsub.f32 %v12369_v42, %v12075_v7  ;;  %v13853_v7 = vld [vmem:[#allocation132_spill] sm:$0xff] }
 0xe2b   :  { %6284 = vperm.xlu0 %8155, %v5887_v25   ;;  %6275 = vperm.xlu1 %8156, %v5884_v38   ;;  %v5824_v25 = vsub.f32 %v12265_v11, %v12077_v26  ;;  %v5855_v38 = vsub.f32 %v12229_v49, %v13850_v40  ;;  %v5888_v58 = vsub.f32 %v12265_v11, %v13853_v7  ;;  %v13854_v26 = vld [vmem:[#allocation134_spill] sm:$0xff]  ;;  %v13860_v7 = vld [vmem:[#allocation64_spill] sm:$0xff] }
 0xe2c   :  { %v5885_v19 = vsub.f32 %v12170_v56, %v13854_v26  ;;  %v5918_v40 = vsub.f32 %v12195_v61, %v13856_v2  ;;  %v13862_v26 = vld [vmem:[#allocation130_spill] sm:$0xff] }
 0xe2d   :  { %v12365_v51 = vpop.permute.xlu1 %5411 }
 0xe2e   :  { %13846 = vst [vmem:[#allocation39_spill] sm:$0xff] %v12365_v51  ;;  %v13861_v51 = vld [vmem:[#allocation84_spill] sm:$0xff] }
 0xe2f   :  { %6374 = vperm.xlu0 %8155, %v5917_v33   ;;  %6362 = vperm.xlu1 %8156, %v5913_v52   ;;  %v12385_v52 = vpop.permute.xlu0 %5687 }
 0xe30   :  { %13852 = vst [vmem:[#allocation50_spill] sm:$0xff] %v12385_v52  ;;  %v12405_v52 = vadd.f32 %v13861_v51, %v13860_v7  ;;  %v13869_v7 = vld [vmem:[#allocation137_spill] sm:$0xff] }
 0xe31   :  { %v12377_v45 = vpop.permute.xlu1 %5537 }
 0xe32   :  { %13849 = vst [vmem:[#allocation48_spill] sm:$0xff] %v12377_v45 }
 0xe33   :  { %6104 = vperm.xlu0 %8155, %v5827_v31   ;;  %6095 = vperm.xlu1 %8156, %v5824_v25  }
 0xe35   :  { %v12383_v33 = vpop.permute.xlu1 %5663 }
 0xe36   :  { %13851 = vst [vmem:[#allocation41_spill] sm:$0xff] %v12383_v33  ;;  %v13857_v33 = vld [vmem:[#allocation128_spill] sm:$0xff] }
 0xe37   :  { %6197 = vperm.xlu0 %8155, %v5858_v22   ;;  %6188 = vperm.xlu1 %8156, %v5855_v38   ;;  %v5915_v45 = vsub.f32 %v12130_v18, %v13857_v33  ;;  %v13866_v33 = vld [vmem:[#allocation133_spill] sm:$0xff] }
 0xe39   :  { %v12391_v31 = vpop.permute.xlu1 %5415 }
 0xe3a   :  { %13855 = vst [vmem:[#allocation52_spill] sm:$0xff] %v12391_v31  ;;  %v12393_v25 = vpop.permute.xlu0 %6077 }
 0xe3b   :  { %6287 = vperm.xlu0 %8155, %v5888_v58   ;;  %6278 = vperm.xlu1 %8156, %v5885_v19   ;;  %v5828_v58 = vsub.f32 %v12405_v52, %v13862_v26  ;;  %v13863_v19 = vld [vmem:[#allocation131_spill] sm:$0xff]  ;;  %v5871_v26 = vsub.f32 %v12229_v49, %v13869_v7  ;;  %v13878_v7 = vld [vmem:[#allocation140_spill] sm:$0xff] }
 0xe3c   :  { %v5930_v31 = vsub.f32 %v12111_v39, %v13863_v19  ;;  %v5889_v39 = vsub.f32 %v12301_v5, %v12117_v10  ;;  %v13872_v19 = vld [vmem:[#allocation138_spill] sm:$0xff]  ;;  %v13876_v10 = vld [vmem:[#allocation72_spill] sm:$0xff] }
 0xe3d   :  { %v12399_v22 = vpop.permute.xlu1 %5541 }
 0xe3e   :  { %13858 = vst [vmem:[#allocation44_spill] sm:$0xff] %v12399_v22  ;;  %v12401_v38 = vpop.permute.xlu0 %6125  ;;  %v5859_v22 = vsub.f32 %v12369_v42, %v13866_v33  ;;  %v13873_v33 = vld [vmem:[#allocation139_spill] sm:$0xff] }
 0xe3f   :  { %13859 = vst [vmem:[#allocation30_spill] sm:$0xff] %v12401_v38  ;;  %6377 = vperm.xlu0 %8155, %v5918_v40   ;;  %6368 = vperm.xlu1 %8156, %v5915_v45   ;;  %v13867_v38 = vld [vmem:[#allocation135_spill] sm:$0xff] }
 0xe40   :  { %v5841_v51 = vsub.f32 %v12301_v5, %v13867_v38  ;;  %v5919_v38 = vsub.f32 %v12229_v49, %v13872_v19 }
 0xe41   :  { %v12411_v2 = vpop.permute.xlu1 %5667 }
 0xe42   :  { %13864 = vst [vmem:[#allocation122_spill] sm:$0xff] %v12411_v2  ;;  %v12413_v13 = vpop.permute.xlu0 %6128  ;;  %v13877_v2 = vld [vmem:[#allocation87_spill] sm:$0xff] }
 0xe43   :  { %13865 = vst [vmem:[#allocation114_spill] sm:$0xff] %v12413_v13  ;;  %6107 = vperm.xlu0 %8155, %v5828_v58   ;;  %6413 = vperm.xlu1 %8156, %v5930_v31   ;;  %v12441_v13 = vadd.f32 %v13877_v2, %v13876_v10 }
 0xe45   :  { %v12419_v40 = vpop.permute.xlu1 %5482 }
 0xe46   :  { %13868 = vst [vmem:[#allocation96_spill] sm:$0xff] %v12419_v40  ;;  %v12421_v45 = vpop.permute.xlu0 %6173  ;;  %v5901_v40 = vsub.f32 %v12170_v56, %v13873_v33 }
 0xe47   :  { %6200 = vperm.xlu0 %8155, %v5859_v22   ;;  %6146 = vperm.xlu1 %8156, %v5841_v51  }
 0xe49   :  { %v12427_v58 = vpop.permute.xlu1 %5608 }
 0xe4a   :  { %13870 = vst [vmem:[#allocation121_spill] sm:$0xff] %v12427_v58  ;;  %v12429_v31 = vpop.permute.xlu0 %6131 }
 0xe4b   :  { %13871 = vst [vmem:[#allocation104_spill] sm:$0xff] %v12429_v31  ;;  %6290 = vperm.xlu0 %8155, %v5889_v39   ;;  %6236 = vperm.xlu1 %8156, %v5871_v26   ;;  %v5829_v39 = vsub.f32 %v12441_v13, %v13878_v7  ;;  %v13879_v26 = vld [vmem:[#allocation141_spill] sm:$0xff] }
 0xe4c   :  { %v5931_v58 = vsub.f32 %v12130_v18, %v13879_v26  ;;  %v5872_v18 = vsub.f32 %v12265_v11, %v12155_v57  ;;  %v13886_v26 = vld [vmem:[#allocation86_spill] sm:$0xff] }
 0xe4d   :  { %v12435_v22 = vpop.permute.xlu1 %5486 }
 0xe4e   :  { %13874 = vst [vmem:[#allocation107_spill] sm:$0xff] %v12435_v22  ;;  %v12437_v51 = vpop.permute.xlu0 %6218  ;;  %v13881_v22 = vld [vmem:[#allocation142_spill] sm:$0xff] }
 0xe4f   :  { %13875 = vst [vmem:[#allocation47_spill] sm:$0xff] %v12437_v51  ;;  %6380 = vperm.xlu0 %8155, %v5919_v38   ;;  %6326 = vperm.xlu1 %8156, %v5901_v40   ;;  %v5860_v31 = vsub.f32 %v12405_v52, %v13881_v22  ;;  %v13882_v51 = vld [vmem:[#allocation143_spill] sm:$0xff]  ;;  %v5890_v40 = vsub.f32 %v12337_v29, %v12153_v30 }
 0xe50   :  { %v5842_v2 = vsub.f32 %v12337_v29, %v13882_v51  ;;  %v5920_v22 = vsub.f32 %v12265_v11, %v12164_v16  ;;  %v13884_v51 = vld [vmem:[#allocation144_spill] sm:$0xff] }
 0xe51   :  { %v12449_v33 = vpop.permute.xlu1 %5612  ;;  %v5902_v7 = vsub.f32 %v12195_v61, %v13884_v51  ;;  %v5861_v51 = vsub.f32 %v12441_v13, %v12182_v20  ;;  %v5921_v20 = vsub.f32 %v12301_v5, %v12200_v4 }
 0xe52   :  { %v12447_v19 = vpop.permute.xlu0 %6086  ;;  %13880 = vst [vmem:[#allocation31_spill] sm:$0xff] %v12449_v33  ;;  %v13896_v33 = vld [vmem:[#allocation35_spill] sm:$0xff] }
 0xe53   :  { %6110 = vperm.xlu0 %8155, %v5829_v39   ;;  %6416 = vperm.xlu1 %8156, %v5931_v58   ;;  %v13885_v39 = vld [vmem:[#allocation66_spill] sm:$0xff] }
 0xe54   :  { %v12473_v30 = vadd.f32 %v13886_v26, %v13885_v39  ;;  %v5843_v39 = vsub.f32 %v12369_v42, %v12184_v28  ;;  %v5891_v26 = vsub.f32 %v12369_v42, %v12189_v43  ;;  %v5903_v28 = vsub.f32 %v12229_v49, %v12202_v63  ;;  %v13893_v43 = vld [vmem:[#allocation74_spill] sm:$0xff] }
 0xe55   :  { %v12461_v10 = vpop.permute.xlu1 %5553 }
 0xe56   :  { %v12455_v38 = vpop.permute.xlu0 %6179  ;;  %13883 = vst [vmem:[#allocation36_spill] sm:$0xff] %v12461_v10  ;;  %v5862_v63 = vsub.f32 %v12473_v30, %v12214_v36  ;;  %v5922_v36 = vsub.f32 %v12337_v29, %v12235_v50 }
 0xe57   :  { %6203 = vperm.xlu0 %8155, %v5860_v31   ;;  %6149 = vperm.xlu1 %8156, %v5842_v2   ;;  %v13888_v2 = vld [vmem:[#allocation153_spill] sm:$0xff] }
 0xe59   :  { %v12475_v57 = vpop.permute.xlu1 %5679 }
 0xe5a   :  { %v12463_v58 = vpop.permute.xlu0 %6266  ;;  %13887 = vst [vmem:[#allocation106_spill] sm:$0xff] %v12475_v57 }
 0xe5b   :  { %6293 = vperm.xlu0 %8155, %v5890_v40   ;;  %6239 = vperm.xlu1 %8156, %v5872_v18   ;;  %v5830_v40 = vsub.f32 %v12473_v30, %v13888_v2  ;;  %v13889_v18 = vld [vmem:[#allocation120_spill] sm:$0xff] }
 0xe5c   :  { %v5932_v10 = vsub.f32 %v12148_v34, %v13889_v18  ;;  %v13891_v34 = vld [vmem:[#allocation152_spill] sm:$0xff] }
 0xe5d   :  { %v5873_v2 = vsub.f32 %v12301_v5, %v13891_v34  ;;  %v13895_v34 = vld [vmem:[#allocation29_spill] sm:$0xff] }
 0xe5e   :  { %v12469_v31 = vpop.permute.xlu0 %6089 }
 0xe5f   :  { %6383 = vperm.xlu0 %8155, %v5920_v22   ;;  %6329 = vperm.xlu1 %8156, %v5902_v7   ;;  %v12487_v22 = vpop.permute.xlu1 %5683 }
 0xe60   :  { %13890 = vst [vmem:[#allocation99_spill] sm:$0xff] %v12487_v22 }
 0xe62   :  { %v12481_v16 = vpop.permute.xlu0 %6182 }
 0xe63   :  { %6113 = vperm.xlu0 %8155, %v5830_v40   ;;  %6419 = vperm.xlu1 %8156, %v5932_v10  }
 0xe66   :  { %v12489_v7 = vpop.permute.xlu0 %6272 }
 0xe67   :  { %6206 = vperm.xlu0 %8155, %v5861_v51   ;;  %6152 = vperm.xlu1 %8156, %v5843_v39   ;;  %v13894_v39 = vld [vmem:[#allocation90_spill] sm:$0xff] }
 0xe68   :  { %v12509_v22 = vadd.f32 %v13894_v39, %v13893_v43  ;;  %v5844_v43 = vsub.f32 %v12405_v52, %v13896_v33  ;;  %v5904_v33 = vsub.f32 %v12265_v11, %v12237_v24 }
 0xe6a   :  { %v12495_v40 = vpop.permute.xlu0 %6317  ;;  %v12497_v10 = vpop.permute.xlu1 %6074  ;;  %v5863_v24 = vsub.f32 %v12509_v22, %v12251_v53  ;;  %v5923_v53 = vsub.f32 %v12369_v42, %v12271_v27  ;;  %v5894_v27 = vsub.f32 %v12473_v30, %v12287_v9 }
 0xe6b   :  { %6296 = vperm.xlu0 %8155, %v5891_v26   ;;  %6242 = vperm.xlu1 %8156, %v5873_v2   ;;  %v5831_v26 = vsub.f32 %v12509_v22, %v12207_v54  ;;  %v5933_v2 = vsub.f32 %v12170_v56, %v13895_v34  ;;  %v5892_v56 = vsub.f32 %v12405_v52, %v12223_v8  ;;  %v13898_v8 = vld [vmem:[#allocation68_spill] sm:$0xff] }
 0xe6c   :  { %v5874_v54 = vsub.f32 %v12337_v29, %v12225_v23 }
 0xe6e   :  { %v12503_v18 = vpop.permute.xlu0 %6140  ;;  %v12505_v51 = vpop.permute.xlu1 %6122 }
 0xe6f   :  { %13892 = vst [vmem:[#allocation38_spill] sm:$0xff] %v12503_v18  ;;  %6386 = vperm.xlu0 %8155, %v5921_v20   ;;  %6332 = vperm.xlu1 %8156, %v5903_v28  }
 0xe72   :  { %v12515_v4 = vpop.permute.xlu0 %6230  ;;  %v12517_v57 = vpop.permute.xlu1 %6080 }
 0xe73   :  { %6116 = vperm.xlu0 %8155, %v5831_v26   ;;  %6422 = vperm.xlu1 %8156, %v5933_v2  }
 0xe76   :  { %v12523_v20 = vpop.permute.xlu0 %6320  ;;  %v12525_v28 = vpop.permute.xlu1 %6170 }
 0xe77   :  { %6209 = vperm.xlu0 %8155, %v5862_v63   ;;  %6155 = vperm.xlu1 %8156, %v5844_v43   ;;  %v13899_v63 = vld [vmem:[#allocation89_spill] sm:$0xff] }
 0xe78   :  { %v12545_v43 = vadd.f32 %v13899_v63, %v13898_v8  ;;  %v5845_v8 = vsub.f32 %v12441_v13, %v12253_v1  ;;  %v5905_v1 = vsub.f32 %v12301_v5, %v12273_v47  ;;  %v5846_v47 = vsub.f32 %v12473_v30, %v12289_v37 }
 0xe79   :  { %v5906_v37 = vsub.f32 %v12337_v29, %v12309_v0 }
 0xe7a   :  { %v12531_v39 = vpop.permute.xlu0 %6365  ;;  %v12533_v26 = vpop.permute.xlu1 %6083  ;;  %v5832_v23 = vsub.f32 %v12545_v43, %v12243_v35  ;;  %v5875_v35 = vsub.f32 %v12369_v42, %v12261_v21  ;;  %v13903_v21 = vld [vmem:[#allocation37_spill] sm:$0xff]  ;;  %v5880_v9 = vsub.f32 %v12545_v43, %v12307_v62 }
 0xe7b   :  { %6299 = vperm.xlu0 %8155, %v5892_v56   ;;  %6245 = vperm.xlu1 %8156, %v5874_v54   ;;  %v13900_v56 = vld [vmem:[#allocation42_spill] sm:$0xff] }
 0xe7c   :  { %v5934_v54 = vsub.f32 %v12195_v61, %v13900_v56  ;;  %v5893_v61 = vsub.f32 %v12441_v13, %v12259_v44  ;;  %v5864_v44 = vsub.f32 %v12545_v43, %v12279_v15  ;;  %v5876_v15 = vsub.f32 %v12405_v52, %v12297_v6  ;;  %v13905_v6 = vld [vmem:[#allocation40_spill] sm:$0xff] }
 0xe7e   :  { %v12539_v34 = vpop.permute.xlu0 %6143  ;;  %v12541_v2 = vpop.permute.xlu1 %6176 }
 0xe7f   :  { %13897 = vst [vmem:[#allocation113_spill] sm:$0xff] %v12539_v34  ;;  %6389 = vperm.xlu0 %8155, %v5922_v36   ;;  %6335 = vperm.xlu1 %8156, %v5904_v33   ;;  %v13907_v34 = vld [vmem:[#allocation146_spill] sm:$0xff] }
 0xe80   :  { %v6469_v0 = vrot.slane %v12517_v57, %v13907_v34 }
 0xe82   :  { %v12551_v50 = vpop.permute.xlu0 %6233  ;;  %v12553_v18 = vpop.permute.xlu1 %6221 }
 0xe83   :  { %6119 = vperm.xlu0 %8155, %v5832_v23   ;;  %6425 = vperm.xlu1 %8156, %v5934_v54  }
 0xe86   :  { %v12559_v36 = vpop.permute.xlu0 %6323  ;;  %v12561_v33 = vpop.permute.xlu1 %6134 }
 0xe87   :  { %13901 = vst [vmem:[#allocation49_spill] sm:$0xff] %v12559_v36  ;;  %13902 = vst [vmem:[#allocation98_spill] sm:$0xff] %v12561_v33  ;;  %6212 = vperm.xlu0 %8155, %v5863_v24   ;;  %6158 = vperm.xlu1 %8156, %v5845_v8   ;;  %v5935_v24 = vsub.f32 %v12229_v49, %v13903_v21  ;;  %v5924_v49 = vsub.f32 %v12405_v52, %v12295_v14  ;;  %v13909_v36 = vld [vmem:[#allocation147_spill] sm:$0xff] }
 0xe88   :  { %v5910_v14 = vsub.f32 %v12473_v30, %v12315_v41  ;;  %v6474_v41 = vrot.slane %v12533_v26, %v13909_v36 }
 0xe8a   :  { %v12567_v63 = vpop.permute.xlu0 %6410  ;;  %v12569_v23 = vpop.permute.xlu1 %6224 }
 0xe8b   :  { %6302 = vperm.xlu0 %8155, %v5893_v61   ;;  %6248 = vperm.xlu1 %8156, %v5875_v35  }
 0xe8e   :  { %v12575_v56 = vpop.permute.xlu0 %6098  ;;  %v12577_v54 = vpop.permute.xlu1 %6269 }
 0xe8f   :  { %6392 = vperm.xlu0 %8155, %v5923_v53   ;;  %6338 = vperm.xlu1 %8156, %v5905_v1  }
 0xe92   :  { %v12583_v8 = vpop.permute.xlu0 %6191  ;;  %v12585_v61 = vpop.permute.xlu1 %6137 }
 0xe93   :  { %13904 = vst [vmem:[#allocation33_spill] sm:$0xff] %v12585_v61  ;;  %6215 = vperm.xlu0 %8155, %v5864_v44   ;;  %6428 = vperm.xlu1 %8156, %v5935_v24  }
 0xe96   :  { %v12591_v35 = vpop.permute.xlu0 %6281  ;;  %v12593_v53 = vpop.permute.xlu1 %6227 }
 0xe97   :  { %6305 = vperm.xlu0 %8155, %v5894_v27   ;;  %6161 = vperm.xlu1 %8156, %v5846_v47   ;;  %v5936_v27 = vsub.f32 %v12265_v11, %v13905_v6  ;;  %v13906_v47 = vld [vmem:[#allocation145_spill] sm:$0xff]  ;;  %v5940_v11 = vsub.f32 %v12405_v52, %v12323_v60  ;;  %v6627_v60 = vrot.slane %v12541_v2, %v13907_v34 }
 0xe9a   :  { %v12599_v1 = vpop.permute.xlu0 %6371  ;;  %v12601_v44 = vpop.permute.xlu1 %6314 }
 0xe9b   :  { %6395 = vperm.xlu0 %8155, %v5924_v49   ;;  %6251 = vperm.xlu1 %8156, %v5876_v15   ;;  %v6460_v49 = vrot.slane %v12497_v10, %v13906_v47  ;;  %v5847_v10 = vsub.f32 %v12509_v22, %v12325_v48  ;;  %v5911_v48 = vsub.f32 %v12509_v22, %v12333_v55  ;;  %v13913_v55 = vld [vmem:[#allocation149_spill] sm:$0xff] }
 0xe9e   :  { %v12607_v21 = vpop.permute.xlu0 %6101  ;;  %v6093_v24 = vpop.permute.xlu1 %6092 }
 0xe9f   :  { %6263 = vperm.xlu0 %8155, %v5880_v9   ;;  %6341 = vperm.xlu1 %8156, %v5906_v37   ;;  %v13908_v9 = vld [vmem:[#allocation43_spill] sm:$0xff] }
 0xea0   :  { %v6464_v37 = vrot.slane %v12393_v25, %v13908_v9  ;;  %v6618_v25 = vrot.slane %v12525_v28, %v13906_v47 }
 0xea2   :  { %v12615_v15 = vpop.permute.xlu0 %6194  ;;  %v12617_v62 = vpop.permute.xlu1 %6185  ;;  %v6465_v6 = vsel %vm2208_vm2, %v6464_v37, %v6460_v49  ;;  %v13911_v49 = vld [vmem:[#allocation148_spill] sm:$0xff] }
 0xea3   :  { %6353 = vperm.xlu0 %8155, %v5910_v14   ;;  %6431 = vperm.xlu1 %8156, %v5936_v27   ;;  %v6470_v57 = vsel %vm2215_vm3, %v6469_v0, %v6465_v6  ;;  %v5877_v14 = vsub.f32 %v12441_v13, %v12331_v12  ;;  %v6622_v27 = vrot.slane %v12421_v45, %v13908_v9 }
 0xea4   :  { %v6475_v26 = vsel %vm13910_vm6, %v6474_v41, %v6470_v57  ;;  %v6479_v0 = vrot.slane %v12447_v19, %v13911_v49  ;;  %v5941_v19 = vsub.f32 %v12441_v13, %v12345_v17  ;;  %v5907_v6 = vsub.f32 %v12369_v42, %v12343_v3 }
 0xea5   :  { %v6623_v41 = vsel %vm2208_vm2, %v6622_v27, %v6618_v25  ;;  %v6632_v57 = vrot.slane %v12455_v38, %v13909_v36  ;;  %v5927_v25 = vsub.f32 %v12509_v22, %v12359_v32  ;;  %v6637_v3 = vrot.slane %v12481_v16, %v13911_v49  ;;  %v13918_v38 = vld [vmem:[#allocation103_spill] sm:$0xff] }
 0xea6   :  { %v12630_v61 = vpop.permute.xlu0 %6284  ;;  %v12632_v33 = vpop.permute.xlu1 %6275  ;;  %v6480_v2 = vsel %vm13912_vm8, %v6479_v0, %v6475_v26  ;;  %v6628_v12 = vsel %vm2215_vm3, %v6627_v60, %v6623_v41  ;;  %v6499_v27 = vrot.slane %v12575_v56, %v13918_v38  ;;  %vm13919_vm6 = vcmask 458112  }
 0xea7   :  { %6443 = vperm.xlu0 %8155, %v5940_v11   ;;  %6164 = vperm.xlu1 %8156, %v5847_v10   ;;  %v6484_v11 = vrot.slane %v12469_v31, %v13913_v55  ;;  %v13914_v10 = vld [vmem:[#allocation150_spill] sm:$0xff]  ;;  %v6633_v60 = vsel %vm13916_vm0, %v6632_v57, %v6628_v12  ;;  %v6642_v0 = vrot.slane %v12617_v62, %v13913_v55  ;;  %vm13921_vm8 = vcmask 523712  }
 0xea8   :  { %v6489_v45 = vrot.slane %v6093_v24, %v13914_v10  ;;  %v6780_v24 = vrot.slane %v12577_v54, %v13908_v9  ;;  %v5937_v41 = vsub.f32 %v12301_v5, %v12351_v59  ;;  %v6776_v54 = vrot.slane %v12463_v58, %v13906_v47 }
 0xea9   :  { %v6485_v26 = vsel %vm13915_vm13, %v6484_v11, %v6480_v2  ;;  %v13920_v2 = vld [vmem:[#allocation110_spill] sm:$0xff]  ;;  %v5928_v16 = vsub.f32 %v12545_v43, %v12371_v46  ;;  %vm13922_vm13 = vcmask 326912   ;;  %vm13924_vm0 = vcmask 392512  }
 0xeaa   :  { %v12648_v28 = vpop.permute.xlu0 %6374  ;;  %v12650_v37 = vpop.permute.xlu1 %6362  ;;  %v6490_v32 = vsel %vm13919_vm6, %v6489_v45, %v6485_v26  ;;  %v6504_v11 = vrot.slane %v12607_v21, %v13920_v2  ;;  %v6638_v56 = vsel %vm13922_vm13, %v6637_v3, %v6633_v60  ;;  %v13923_v45 = vld [vmem:[#allocation93_spill] sm:$0xff]  ;;  %v6781_v5 = vsel %vm2208_vm2, %v6780_v24, %v6776_v54 }
 0xeab   :  { %6356 = vperm.xlu0 %8155, %v5911_v48   ;;  %6254 = vperm.xlu1 %8156, %v5877_v14   ;;  %v13917_v14 = vld [vmem:[#allocation151_spill] sm:$0xff]  ;;  %v6643_v46 = vsel %vm13924_vm0, %v6642_v0, %v6638_v56  ;;  %v6790_v26 = vrot.slane %v12632_v33, %v13909_v36  ;;  %v6785_v24 = vrot.slane %v12489_v7, %v13907_v34  ;;  %vm13926_vm13 = vcmask 261312  }
 0xeac   :  { %v6652_v21 = vrot.slane %v12583_v8, %v13917_v14  ;;  %v6800_v7 = vrot.slane %v12591_v35, %v13913_v55  ;;  %v6934_v54 = vrot.slane %v12650_v37, %v13906_v47  ;;  %vm13929_vm0 = vcmask 326912  }
 0xead   :  { %v6786_v33 = vsel %vm2215_vm3, %v6785_v24, %v6781_v5  ;;  %v6938_v35 = vrot.slane %v12531_v39, %v13908_v9  ;;  %v6706_v24 = vrot.slane %v12569_v23, %v13907_v34  ;;  %v7013_v23 = vrot.slane %v12567_v63, %v13906_v47 }
 0xeae   :  { %v6105_v48 = vpop.permute.xlu0 %6104  ;;  %v6096_v31 = vpop.permute.xlu1 %6095 }
 0xeaf   :  { %v6494_v17 = vrot.slane %v6096_v31, %v13917_v14  ;;  %6446 = vperm.xlu0 %8155, %v5941_v19   ;;  %6344 = vperm.xlu1 %8156, %v5907_v6   ;;  %v6509_v19 = vrot.slane %v6105_v48, %v13923_v45  ;;  %v13925_v31 = vld [vmem:[#allocation45_spill] sm:$0xff]  ;;  %v6939_v39 = vsel %vm2208_vm2, %v6938_v35, %v6934_v54  ;;  %v13941_v35 = vld [vmem:[#allocation30_spill] sm:$0xff] }
 0xeb0   :  { %v5848_v60 = vsub.f32 %v12545_v43, %v13925_v31  ;;  %v13933_v31 = vld [vmem:[#allocation48_spill] sm:$0xff] }
 0xeb1   :  { %v6495_v12 = vsel %vm13921_vm8, %v6494_v17, %v6490_v32 }
 0xeb2   :  { %v6500_v62 = vsel %vm2257_vm9, %v6499_v27, %v6495_v12  ;;  %v6198_v6 = vpop.permute.xlu0 %6197  ;;  %v6189_v57 = vpop.permute.xlu1 %6188  ;;  %v13927_v12 = vld [vmem:[#allocation50_spill] sm:$0xff] }
 0xeb3   :  { %v6647_v59 = vrot.slane %v6189_v57, %v13914_v10  ;;  %6404 = vperm.xlu0 %8155, %v5927_v25   ;;  %6434 = vperm.xlu1 %8156, %v5937_v41   ;;  %v6505_v58 = vsel %vm2264_vm10, %v6504_v11, %v6500_v62  ;;  %v6657_v25 = vrot.slane %v12615_v15, %v13918_v38 }
 0xeb4   :  { %v6510_v48 = vsel %vm2271_vm11, %v6509_v19, %v6505_v58  ;;  %v6662_v8 = vrot.slane %v6198_v6, %v13920_v2  ;;  %v6791_v15 = vsel %vm13926_vm13, %v6790_v26, %v6786_v33  ;;  %v5944_v56 = vsub.f32 %v12545_v43, %v13927_v12  ;;  %v13928_v19 = vld [vmem:[#allocation39_spill] sm:$0xff]  ;;  %v13936_v33 = vld [vmem:[#allocation102_spill] sm:$0xff] }
 0xeb5   :  { %v6648_v17 = vsel %vm13919_vm6, %v6647_v59, %v6643_v46  ;;  %v5878_v62 = vsub.f32 %v12473_v30, %v13928_v19  ;;  %vm13930_vm6 = vcmask 392512   ;;  %v6948_v46 = vrot.slane %v12599_v1, %v13909_v36 }
 0xeb6   :  { %v6653_v3 = vsel %vm13921_vm8, %v6652_v21, %v6648_v17  ;;  %v6288_v27 = vpop.permute.xlu0 %6287  ;;  %v6279_v32 = vpop.permute.xlu1 %6278  ;;  %vm13931_vm8 = vcmask 458112   ;;  %vm13932_vm13 = vcmask 523712   ;;  %v6711_v1 = vrot.slane %v12593_v53, %v13909_v36 }
 0xeb7   :  { %v6795_v0 = vrot.slane %v6279_v32, %v13911_v49  ;;  %6407 = vperm.xlu0 %8155, %v5928_v16   ;;  %6167 = vperm.xlu1 %8156, %v5848_v60   ;;  %v6658_v41 = vsel %vm2257_vm9, %v6657_v25, %v6653_v3  ;;  %v6805_v16 = vrot.slane %v12630_v61, %v13914_v10 }
 0xeb8   :  { %v6663_v11 = vsel %vm2264_vm10, %v6662_v8, %v6658_v41  ;;  %v6810_v57 = vrot.slane %v6288_v27, %v13917_v14  ;;  %v6701_v61 = vrot.slane %v12553_v18, %v13908_v9  ;;  %v5908_v60 = vsub.f32 %v12405_v52, %v13933_v31  ;;  %v13934_v18 = vld [vmem:[#allocation47_spill] sm:$0xff] }
 0xeb9   :  { %v6796_v6 = vsel %vm13929_vm0, %v6795_v0, %v6791_v15  ;;  %v6953_v25 = vrot.slane %v12648_v28, %v13911_v49  ;;  %v6697_v8 = vrot.slane %v13934_v18, %v13906_v47  ;;  %vm13935_vm0 = vcmask 261312  }
 0xeba   :  { %v6801_v37 = vsel %vm13930_vm6, %v6800_v7, %v6796_v6  ;;  %v6378_v5 = vpop.permute.xlu0 %6377  ;;  %v6369_v59 = vpop.permute.xlu1 %6368  ;;  %vm13937_vm6 = vcmask 326912   ;;  %v13938_v7 = vld [vmem:[#allocation41_spill] sm:$0xff]  ;;  %v6539_v12 = vrot.slane %v12505_v51, %v13906_v47 }
 0xebb   :  { %v6943_v58 = vrot.slane %v6369_v59, %v13907_v34  ;;  %6455 = vperm.xlu0 %8155, %v5944_v56   ;;  %6257 = vperm.xlu1 %8156, %v5878_v62   ;;  %v6806_v21 = vsel %vm13931_vm8, %v6805_v16, %v6801_v37  ;;  %v6958_v3 = vrot.slane %v6378_v5, %v13913_v55  ;;  %vm13939_vm8 = vcmask 392512   ;;  %v13942_v5 = vld [vmem:[#allocation52_spill] sm:$0xff] }
 0xebc   :  { %v6811_v26 = vsel %vm13932_vm13, %v6810_v57, %v6806_v21  ;;  %v5938_v15 = vsub.f32 %v12337_v29, %v13938_v7  ;;  %v6702_v53 = vsel %vm2208_vm2, %v6701_v61, %v6697_v8  ;;  %vm13940_vm13 = vmmov %vm13935_vm0  ;;  %v6855_v16 = vrot.slane %v12601_v44, %v13906_v47  ;;  %v13944_v61 = vld [vmem:[#allocation114_spill] sm:$0xff] }
 0xebd   :  { %v6944_v17 = vsel %vm2215_vm3, %v6943_v58, %v6939_v39  ;;  %v6707_v56 = vsel %vm2215_vm3, %v6706_v24, %v6702_v53  ;;  %v6543_v57 = vrot.slane %v13941_v35, %v13908_v9  ;;  %v6716_v37 = vrot.slane %v12515_v4, %v13911_v49  ;;  %v13947_v8 = vld [vmem:[#allocation98_spill] sm:$0xff] }
 0xebe   :  { %v6949_v27 = vsel %vm13935_vm0, %v6948_v46, %v6944_v17  ;;  %v6108_v32 = vpop.permute.xlu0 %6107  ;;  %v6414_v52 = vpop.permute.xlu1 %6413  ;;  %v6712_v62 = vsel %vm13940_vm13, %v6711_v1, %v6707_v56  ;;  %v5879_v59 = vsub.f32 %v12509_v22, %v13942_v5  ;;  %vm13943_vm0 = vmmov %vm13937_vm6  ;;  %v6548_v46 = vrot.slane %v13944_v61, %v13907_v34  ;;  %v13946_v17 = vld [vmem:[#allocation104_spill] sm:$0xff] }
 0xebf   :  { %v6514_v0 = vrot.slane %v6108_v32, %v13936_v33  ;;  %v7017_v28 = vrot.slane %v6414_v52, %v13908_v9  ;;  %6347 = vperm.xlu1 %8156, %v5908_v60   ;;  %v6954_v41 = vsel %vm13937_vm6, %v6953_v25, %v6949_v27  ;;  %v6544_v58 = vsel %vm2208_vm2, %v6543_v57, %v6539_v12  ;;  %v13949_v27 = vld [vmem:[#allocation33_spill] sm:$0xff] }
 0xec0   :  { %v6959_v54 = vsel %vm13939_vm8, %v6958_v3, %v6954_v41  ;;  %v6717_v44 = vsel %vm13943_vm0, %v6716_v37, %v6712_v62  ;;  %v6721_v4 = vrot.slane %v12551_v50, %v13913_v55  ;;  %v6864_v24 = vrot.slane %v12523_v20, %v13907_v34  ;;  %v13957_v37 = vld [vmem:[#allocation38_spill] sm:$0xff] }
 0xec1   :  { %v6515_v63 = vsel %vm2278_vm12, %v6514_v0, %v6510_v48  ;;  %v7018_v19 = vsel %vm2208_vm2, %v7017_v28, %v7013_v23  ;;  %v6859_v48 = vrot.slane %v12495_v40, %v13908_v9  ;;  %v13945_v40 = vld [vmem:[#allocation44_spill] sm:$0xff]  ;;  %v6553_v18 = vrot.slane %v13946_v17, %v13909_v36  ;;  %v13951_v0 = vld [vmem:[#allocation49_spill] sm:$0xff] }
 0xec2   :  { %v6201_v6 = vpop.permute.xlu0 %6200  ;;  %v6147_v29 = vpop.permute.xlu1 %6146  ;;  %v5909_v9 = vsub.f32 %v12441_v13, %v13945_v40  ;;  %v6549_v50 = vsel %vm2215_vm3, %v6548_v46, %v6544_v58  ;;  %v6558_v1 = vrot.slane %v13947_v8, %v13911_v49  ;;  %v6563_v32 = vrot.slane %v13949_v27, %v13913_v55  ;;  %v13960_v46 = vld [vmem:[#allocation96_spill] sm:$0xff] }
 0xec3   :  { %v6667_v51 = vrot.slane %v6201_v6, %v13923_v45  ;;  %6437 = vperm.xlu1 %8156, %v5938_v15   ;;  %v6860_v39 = vsel %vm2208_vm2, %v6859_v48, %v6855_v16  ;;  %vm13948_vm2 = vmmov %vm13939_vm8  ;;  %vm13950_vm6 = vcmask 458112   ;;  %v6869_v28 = vrot.slane %v13951_v0, %v13909_v36  ;;  %v13955_v16 = vld [vmem:[#allocation122_spill] sm:$0xff]  ;;  %v13968_v0 = vld [vmem:[#allocation125_spill] sm:$0xff] }
 0xec4   :  { %v6722_v3 = vsel %vm13948_vm2, %v6721_v4, %v6717_v44  ;;  %v6865_v20 = vsel %vm2215_vm3, %v6864_v24, %v6860_v39  ;;  %vm13952_vm8 = vmmov %vm13940_vm13  ;;  %v5895_v4 = vsub.f32 %v12509_v22, %v13960_v46 }
 0xec5   :  { %v6668_v21 = vsel %vm2271_vm11, %v6667_v51, %v6663_v11  ;;  %v6554_v15 = vsel %vm13952_vm8, %v6553_v18, %v6549_v50  ;;  %vm13953_vm13 = vmmov %vm13943_vm0  ;;  %v6568_v51 = vrot.slane %v13957_v37, %v13914_v10  ;;  %v13966_v50 = vld [vmem:[#allocation121_spill] sm:$0xff] }
 0xec6   :  { %v6291_v31 = vpop.permute.xlu0 %6290  ;;  %v6237_v60 = vpop.permute.xlu1 %6236  ;;  %v6559_v56 = vsel %vm13953_vm13, %v6558_v1, %v6554_v15  ;;  %vm13954_vm0 = vmmov %vm13952_vm8  ;;  %v5925_v8 = vsub.f32 %v12441_v13, %v13966_v50 }
 0xec7   :  { %v6815_v25 = vrot.slane %v6291_v31, %v13918_v38  ;;  %v6726_v11 = vrot.slane %v6237_v60, %v13914_v10  ;;  %6260 = vperm.xlu1 %8156, %v5879_v59   ;;  %v6870_v62 = vsel %vm13954_vm0, %v6869_v28, %v6865_v20  ;;  %v6564_v6 = vsel %vm13948_vm2, %v6563_v32, %v6559_v56  ;;  %vm13956_vm4 = vmmov %vm13953_vm13  ;;  %v13958_v59 = vld [vmem:[#allocation112_spill] sm:$0xff]  ;;  %v13967_v20 = vld [vmem:[#allocation111_spill] sm:$0xff] }
 0xec8   :  { %vm13959_vm8 = vmmov %vm13950_vm6  ;;  %vm13963_vm13 = vcmask 523712   ;;  %v5062_v28 = vsub.f32 %v13968_v0, %v13967_v20 }
 0xec9   :  { %v6816_v52 = vsel %vm2257_vm9, %v6815_v25, %v6811_v26  ;;  %v6727_v23 = vsel %vm13950_vm6, %v6726_v11, %v6722_v3  ;;  %v5939_v26 = vsub.f32 %v12369_v42, %v13955_v16  ;;  %v6569_v61 = vsel %vm13959_vm8, %v6568_v51, %v6564_v6  ;;  %v13965_v11 = vld [vmem:[#allocation105_spill] sm:$0xff] }
 0xeca   :  { %v6381_v41 = vpop.permute.xlu0 %6380  ;;  %v6327_v7 = vpop.permute.xlu1 %6326  ;;  %v6578_v42 = vrot.slane %v6147_v29, %v13918_v38  ;;  %v13964_v29 = vld [vmem:[#allocation28_spill] sm:$0xff]  ;;  %v5063_v16 = vmul.f32 %v5062_v28, %v5062_v28 }
 0xecb   :  { %v6963_v53 = vrot.slane %v6381_v41, %v13914_v10  ;;  %v6874_v12 = vrot.slane %v6327_v7, %v13911_v49  ;;  %6350 = vperm.xlu1 %8156, %v5909_v9   ;;  %v2951_v17 = vsub.f32 %v13965_v11, %v13964_v29  ;;  %v13969_v7 = vld [vmem:[#allocation107_spill] sm:$0xff] }
 0xecc   :  { %v5896_v15 = vsub.f32 %v12545_v43, %v13969_v7 }
 0xecd   :  { %v6964_v35 = vsel %vm13950_vm6, %v6963_v53, %v6959_v54  ;;  %v6875_v57 = vsel %vm13956_vm4, %v6874_v12, %v6870_v62  ;;  %v13961_v54 = vld [vmem:[#allocation113_spill] sm:$0xff]  ;;  %vm13962_vm4 = vcmask 851712   ;;  %v2952_v41 = vmul.f32 %v2951_v17, %v2951_v17 }
 0xece   :  { %v6111_v48 = vpop.permute.xlu0 %6110  ;;  %v6417_v5 = vpop.permute.xlu1 %6416  ;;  %v6573_v39 = vrot.slane %v13961_v54, %v13917_v14  ;;  %vm13975_vm6 = vcmask 261312   ;;  %vm13977_vm8 = vmmov %vm13962_vm4 }
 0xecf   :  { %v6519_v58 = vrot.slane %v6111_v48, %v13958_v59  ;;  %v7022_v44 = vrot.slane %v6417_v5, %v13907_v34  ;;  %6440 = vperm.xlu1 %8156, %v5939_v26   ;;  %v13971_v26 = vld [vmem:[#allocation31_spill] sm:$0xff] }
 0xed0   :  { %v6574_v24 = vsel %vm13963_vm13, %v6573_v39, %v6569_v61  ;;  %v5926_v6 = vsub.f32 %v12473_v30, %v13971_v26  ;;  %v13976_v39 = vld [vmem:[#allocation106_spill] sm:$0xff] }
 0xed1   :  { %v6520_v31 = vsel %vm13962_vm4, %v6519_v58, %v6515_v63  ;;  %v7023_v60 = vsel %vm2215_vm3, %v7022_v44, %v7018_v19  ;;  %v6579_v18 = vsel %vm2257_vm9, %v6578_v42, %v6574_v24  ;;  %vm13970_vm3 = vmmov %vm13963_vm13  ;;  %v13974_v44 = vld [vmem:[#allocation36_spill] sm:$0xff]  ;;  %vm13979_vm4 = vcmask 458112  }
 0xed2   :  { %v6204_v40 = vpop.permute.xlu0 %6203  ;;  %v6150_v9 = vpop.permute.xlu1 %6149  ;;  %vm13972_vm0 = vmmov %vm13970_vm3  ;;  %v5912_v61 = vsub.f32 %v12545_v43, %v13974_v44  ;;  %vm13981_vm13 = vcmask 326912  }
 0xed3   :  { %v6672_v34 = vrot.slane %v6204_v40, %v13936_v33  ;;  %v6583_v25 = vrot.slane %v6150_v9, %v13920_v2  ;;  %6308 = vperm.xlu1 %8156, %v5895_v4   ;;  %v5942_v40 = vsub.f32 %v12473_v30, %v13976_v39 }
 0xed5   :  { %v6673_v63 = vsel %vm2278_vm12, %v6672_v34, %v6668_v21  ;;  %v6584_v19 = vsel %vm2264_vm10, %v6583_v25, %v6579_v18  ;;  %v13978_v34 = vld [vmem:[#allocation99_spill] sm:$0xff] }
 0xed6   :  { %v6294_v1 = vpop.permute.xlu0 %6293  ;;  %v6240_v3 = vpop.permute.xlu1 %6239  ;;  %v5943_v25 = vsub.f32 %v12509_v22, %v13978_v34 }
 0xed7   :  { %v6820_v27 = vrot.slane %v6294_v1, %v13920_v2  ;;  %v6731_v32 = vrot.slane %v6240_v3, %v13917_v14  ;;  %6398 = vperm.xlu1 %8156, %v5925_v8  }
 0xed9   :  { %v6821_v13 = vsel %vm2264_vm10, %v6820_v27, %v6816_v52  ;;  %v6732_v21 = vsel %vm13970_vm3, %v6731_v32, %v6727_v23  ;;  %v13973_v23 = vld [vmem:[#allocation34_spill] sm:$0xff]  ;;  %v13980_v27 = vld [vmem:[#allocation97_spill] sm:$0xff]  ;;  %vm13982_vm3 = vmmov %vm13972_vm0 }
 0xeda   :  { %2953 = vadd.xlane.f32.xlu0 %v2952_v41  ;;  %v6384_v53 = vpop.permute.xlu0 %6383  ;;  %v6330_v12 = vpop.permute.xlu1 %6329 }
 0xedb   :  { %v6968_v56 = vrot.slane %v6384_v53, %v13917_v14  ;;  %v6879_v62 = vrot.slane %v6330_v12, %v13913_v55  ;;  %6311 = vperm.xlu1 %8156, %v5896_v15  }
 0xedd   :  { %v6969_v37 = vsel %vm13972_vm0, %v6968_v56, %v6964_v35  ;;  %v6880_v51 = vsel %vm13948_vm2, %v6879_v62, %v6875_v57  ;;  %vm13983_vm0 = vmmov %vm13948_vm2 }
 0xede   :  { %5064 = vadd.xlane.f32.xlu0 %v5063_v16  ;;  %v6114_v52 = vpop.permute.xlu0 %6113  ;;  %v6420_v48 = vpop.permute.xlu1 %6419  ;;  %vm13984_vm2 = vmmov %vm13977_vm8 }
 0xedf   :  { %v6524_v5 = vrot.slane %v6114_v52, %v13973_v23  ;;  %v7027_v58 = vrot.slane %v6420_v48, %v13909_v36  ;;  %6401 = vperm.xlu1 %8156, %v5926_v6  }
 0xee1   :  { %v6525_v42 = vsel %vm2292_vm14, %v6524_v5, %v6520_v31  ;;  %v7028_v46 = vsel %vm13975_vm6, %v7027_v58, %v7023_v60  ;;  %vm13985_vm6 = vmmov %vm13979_vm4 }
 0xee2   :  { %v6207_v4 = vpop.permute.xlu0 %6206  ;;  %v6153_v54 = vpop.permute.xlu1 %6152 }
 0xee3   :  { %v6677_v35 = vrot.slane %v6207_v4, %v13958_v59  ;;  %v6588_v57 = vrot.slane %v6153_v54, %v13923_v45  ;;  %6359 = vperm.xlu1 %8156, %v5912_v61  }
 0xee5   :  { %v6678_v36 = vsel %vm13977_vm8, %v6677_v35, %v6673_v63  ;;  %v6589_v9 = vsel %vm2271_vm11, %v6588_v57, %v6584_v19  ;;  %vm13986_vm8 = vmmov %vm13982_vm3 }
 0xee6   :  { %v6297_v24 = vpop.permute.xlu0 %6296  ;;  %v6243_v43 = vpop.permute.xlu1 %6242 }
 0xee7   :  { %v6825_v31 = vrot.slane %v6297_v24, %v13923_v45  ;;  %v6736_v60 = vrot.slane %v6243_v43, %v13918_v38  ;;  %6449 = vperm.xlu1 %8156, %v5942_v40  }
 0xee9   :  { %v6826_v29 = vsel %vm2271_vm11, %v6825_v31, %v6821_v13  ;;  %v6737_v17 = vsel %vm2257_vm9, %v6736_v60, %v6732_v21 }
 0xeea   :  { %v6387_v18 = vpop.permute.xlu0 %6386  ;;  %v6333_v30 = vpop.permute.xlu1 %6332 }
 0xeeb   :  { %v6973_v50 = vrot.slane %v6387_v18, %v13918_v38  ;;  %v6884_v8 = vrot.slane %v6333_v30, %v13914_v10  ;;  %6452 = vperm.xlu1 %8156, %v5943_v25  }
 0xeed   :  { %v12869_v63 = vsel %vm2257_vm9, %v6973_v50, %v6969_v37  ;;  %v6885_v19 = vsel %vm13979_vm4, %v6884_v8, %v6880_v51  ;;  %vm13988_vm4 = vcmask 1041409  }
 0xeee   :  { %v6117_v1 = vpop.permute.xlu0 %6116  ;;  %v6423_v3 = vpop.permute.xlu1 %6422 }
 0xeef   :  { %v6529_v22 = vrot.slane %v6117_v1, %v13980_v27  ;;  %v7032_v32 = vrot.slane %v6423_v3, %v13911_v49 }
 0xef1   :  { %v12875_v20 = vsel %vm2299_vm15, %v6529_v22, %v6525_v42  ;;  %v7033_v28 = vsel %vm13981_vm13, %v7032_v32, %v7028_v46  ;;  %vm13989_vm13 = vcmask 1042434  }
 0xef2   :  { %v6210_v41 = vpop.permute.xlu0 %6209  ;;  %v6156_v7 = vpop.permute.xlu1 %6155 }
 0xef3   :  { %v6682_v15 = vrot.slane %v6210_v41, %v13973_v23  ;;  %v6593_v13 = vrot.slane %v6156_v7, %v13936_v33 }
 0xef5   :  { %v6683_v21 = vsel %vm2292_vm14, %v6682_v15, %v6678_v36  ;;  %v6594_v53 = vsel %vm2278_vm12, %v6593_v13, %v6589_v9 }
 0xef6   :  { %v6300_v12 = vpop.permute.xlu0 %6299  ;;  %v6246_v56 = vpop.permute.xlu1 %6245 }
 0xef7   :  { %v6830_v62 = vrot.slane %v6300_v12, %v13936_v33  ;;  %v6741_v49 = vrot.slane %v6246_v56, %v13920_v2 }
 0xef9   :  { %v12885_v16 = vsel %vm2278_vm12, %v6830_v62, %v6826_v29  ;;  %v6742_v26 = vsel %vm2264_vm10, %v6741_v49, %v6737_v17 }
 0xefa   :  { %v6336_v6 = vpop.permute.xlu1 %6335  ;;  %v12893_v61 = vpop.permute.xlu0 %6389 }
 0xefb   :  { %v6889_v37 = vrot.slane %v6336_v6, %v13917_v14 }
 0xefd   :  { %v6890_v51 = vsel %vm13982_vm3, %v6889_v37, %v6885_v19  ;;  %vm13990_vm3 = vmmov %vm13984_vm2 }
 0xefe   :  { %v6426_v52 = vpop.permute.xlu1 %6425  ;;  %v6120_v57 = vpop.permute.xlu0 %6119 }
 0xeff   :  { %v7037_v48 = vrot.slane %v6426_v52, %v13913_v55 }
 0xf01   :  { %v7038_v5 = vsel %vm13983_vm0, %v7037_v48, %v7033_v28  ;;  %vm13991_vm0 = vcmask 1043459  }
 0xf02   :  { %v6159_v58 = vpop.permute.xlu1 %6158  ;;  %v6213_v9 = vpop.permute.xlu0 %6212 }
 0xf03   :  { %v6598_v44 = vrot.slane %v6159_v58, %v13958_v59  ;;  %v6687_v56 = vrot.slane %v6213_v9, %v13980_v27 }
 0xf05   :  { %v6599_v42 = vsel %vm13984_vm2, %v6598_v44, %v6594_v53  ;;  %v13987_v53 = vld [vmem:[#allocation119_spill] sm:$0xff]  ;;  %v6688_v37 = vsel %vm2299_vm15, %v6687_v56, %v6683_v21 }
 0xf06   :  { %v6249_v46 = vpop.permute.xlu1 %6248  ;;  %v6303_v25 = vpop.permute.xlu0 %6302  ;;  %v6534_v12 = vrot.slane %v6120_v57, %v13987_v53 }
 0xf07   :  { %v6746_v4 = vrot.slane %v6249_v46, %v13923_v45 }
 0xf08   :  { %v6535_v6 = vsel %vm2306_vm1, %v6534_v12, %v12875_v20 }
 0xf09   :  { %v6747_v54 = vsel %vm2271_vm11, %v6746_v4, %v6742_v26 }
 0xf0a   :  { %v6339_v35 = vpop.permute.xlu1 %6338  ;;  %v12907_v50 = vpop.permute.xlu0 %6392 }
 0xf0b   :  { %v6894_v39 = vrot.slane %v6339_v35, %v13918_v38  ;;  %v6983_v12 = vrot.slane %v12907_v50, %v13923_v45 }
 0xf0d   :  { %v6895_v55 = vsel %vm2257_vm9, %v6894_v39, %v6890_v51 }
 0xf0e   :  { %v6429_v40 = vpop.permute.xlu1 %6428  ;;  %v6216_v22 = vpop.permute.xlu0 %6215 }
 0xf0f   :  { %v7042_v36 = vrot.slane %v6429_v40, %v13914_v10 }
 0xf11   :  { %v7043_v24 = vsel %vm13985_vm6, %v7042_v36, %v7038_v5  ;;  %vm13992_vm6 = vmmov %vm13984_vm2 }
 0xf12   :  { %v6162_v43 = vpop.permute.xlu1 %6161  ;;  %v6306_v28 = vpop.permute.xlu0 %6305 }
 0xf13   :  { %v6603_v31 = vrot.slane %v6162_v43, %v13973_v23 }
 0xf15   :  { %v6604_v60 = vsel %vm2292_vm14, %v6603_v31, %v6599_v42 }
 0xf16   :  { %v6252_v34 = vpop.permute.xlu1 %6251  ;;  %v12916_v15 = vpop.permute.xlu0 %6395 }
 0xf17   :  { %v6751_v29 = vrot.slane %v6252_v34, %v13936_v33 }
 0xf19   :  { %v6752_v17 = vsel %vm2278_vm12, %v6751_v29, %v6747_v54 }
 0xf1a   :  { %v6342_v18 = vpop.permute.xlu1 %6341  ;;  %v6264_v51 = vpop.permute.xlu0 %6263 }
 0xf1b   :  { %v6899_v30 = vrot.slane %v6342_v18, %v13920_v2 }
 0xf1d   :  { %v6900_v10 = vsel %vm2264_vm10, %v6899_v30, %v6895_v55  ;;  %v6771_v55 = vrot.slane %v6264_v51, %v13987_v53  ;;  %v6840_v30 = vrot.slane %v6306_v28, %v13973_v23 }
 0xf1e   :  { %v6432_v8 = vpop.permute.xlu1 %6431  ;;  %v6354_v46 = vpop.permute.xlu0 %6353 }
 0xf1f   :  { %v7047_v19 = vrot.slane %v6432_v8, %v13917_v14  ;;  %v6692_v14 = vrot.slane %v6216_v22, %v13987_v53  ;;  %v6978_v22 = vrot.slane %v12893_v61, %v13920_v2 }
 0xf21   :  { %v12912_v1 = vsel %vm13986_vm8, %v7047_v19, %v7043_v24  ;;  %v6693_v48 = vsel %vm2306_vm1, %v6692_v14, %v6688_v37  ;;  %vm13993_vm8 = vmmov %vm13984_vm2 }
 0xf22   :  { %v6165_v3 = vpop.permute.xlu1 %6164  ;;  %v12933_v20 = vpop.permute.xlu0 %6443 }
 0xf23   :  { %v6608_v13 = vrot.slane %v6165_v3, %v13980_v27 }
 0xf25   :  { %v6609_v26 = vsel %vm2299_vm15, %v6608_v13, %v6604_v60 }
 0xf26   :  { %v6255_v32 = vpop.permute.xlu1 %6254  ;;  %v6357_v43 = vpop.permute.xlu0 %6356 }
 0xf27   :  { %v6756_v54 = vrot.slane %v6255_v32, %v13958_v59 }
 0xf29   :  { %v6757_v57 = vsel %vm13990_vm3, %v6756_v54, %v6752_v17  ;;  %v6835_v17 = vrot.slane %v6303_v25, %v13958_v59 }
 0xf2a   :  { %v6345_v41 = vpop.permute.xlu1 %6344  ;;  %v12942_v34 = vpop.permute.xlu0 %6446 }
 0xf2b   :  { %v6904_v19 = vrot.slane %v6345_v41, %v13923_v45  ;;  %v6836_v13 = vsel %vm13984_vm2, %v6835_v17, %v12885_v16  ;;  %v6988_v41 = vrot.slane %v12916_v15, %v13936_v33  ;;  %v6979_v16 = vsel %vm2264_vm10, %v6978_v22, %v12869_v63 }
 0xf2c   :  { %v6841_v28 = vsel %vm2292_vm14, %v6840_v30, %v6836_v13  ;;  %v6984_v37 = vsel %vm2271_vm11, %v6983_v12, %v6979_v16  ;;  %v7072_v30 = vrot.slane %v12942_v34, %v13958_v59  ;;  %v13998_v16 = vld [vmem:[#allocation27_spill] sm:$0xff] }
 0xf2d   :  { %v6905_v61 = vsel %vm2271_vm11, %v6904_v19, %v6900_v10  ;;  %v6989_v10 = vsel %vm2278_vm12, %v6988_v41, %v6984_v37  ;;  %v14001_v37 = vmov 0.0  }
 0xf2e   :  { %v12914_v7 = vpop.permute.xlu1 %6434  ;;  %v6405_v8 = vpop.permute.xlu0 %6404 }
 0xf32   :  { %v6168_v62 = vpop.permute.xlu1 %6167  ;;  %v6408_v50 = vpop.permute.xlu0 %6407 }
 0xf33   :  { %v6613_v49 = vrot.slane %v6168_v62, %v13987_v53 }
 0xf35   :  { %v6614_v52 = vsel %vm2306_vm1, %v6613_v49, %v6609_v26 }
 0xf36   :  { %v7089_v5 = vsel %vm13988_vm4, %v6614_v52, %v6535_v6  ;;  %v6258_v58 = vpop.permute.xlu1 %6257 }
 0xf37   :  { %v7090_v44 = vsel %vm13989_vm13, %v6693_v48, %v7089_v5  ;;  %v6761_v35 = vrot.slane %v6258_v58, %v13973_v23  ;;  %v6919_v48 = vrot.slane %v6354_v46, %v13973_v23  ;;  %v7052_v5 = vrot.slane %v12914_v7, %v13918_v38  ;;  %v6456_v7 = vpop.permute.xlu0 %6455 }
 0xf38   :  { %v7087_v22 = vrot.slane %v6456_v7, %v13987_v53  ;;  %v8194_v7 = vld [vmem:[#allocation13 + $0x10] sm:$0xff]  }
 0xf39   :  { %v6762_v40 = vsel %vm2292_vm14, %v6761_v35, %v6757_v57  ;;  %v6924_v57 = vrot.slane %v6357_v43, %v13980_v27  ;;  %v7053_v38 = vsel %vm2257_vm9, %v7052_v5, %v12912_v1  ;;  %vm13995_vm9 = vcmask 1046534  }
 0xf3a   :  { %v6348_v42 = vpop.permute.xlu1 %6347  ;;  %v5079_v5 = vadd.f32 %v13968_v0, %v13965_v11  ;;  %v8192_v11 = vld [vmem:[#allocation13 + $0x20] sm:$0xff]   ;;  %v8193_v0 = vld [vmem:[#allocation13 + $0x18] sm:$0xff]  }
 0xf3b   :  { %v6909_v32 = vrot.slane %v6348_v42, %v13936_v33  ;;  %v7003_v42 = vrot.slane %v6405_v8, %v13980_v27 }
 0xf3d   :  { %v6910_v26 = vsel %vm2278_vm12, %v6909_v32, %v6905_v61 }
 0xf3e   :  { %v6438_v4 = vpop.permute.xlu1 %6437 }
 0xf3f   :  { %v7057_v58 = vrot.slane %v6438_v4, %v13920_v2  ;;  %v7008_v4 = vrot.slane %v6408_v50, %v13987_v53 }
 0xf42   :  { %v6261_v21 = vpop.permute.xlu1 %6260 }
 0xf43   :  { %v6766_v39 = vrot.slane %v6261_v21, %v13980_v27 }
 0xf45   :  { %v6767_v36 = vsel %vm2299_vm15, %v6766_v39, %v6762_v40 }
 0xf46   :  { %v6772_v9 = vsel %vm2306_vm1, %v6771_v55, %v6767_v36  ;;  %v6351_v24 = vpop.permute.xlu1 %6350  ;;  %v7058_v55 = vsel %vm2264_vm10, %v7057_v58, %v7053_v38  ;;  %vm13996_vm10 = vmmov %vm13984_vm2  ;;  %v14002_v58 = vld [vmem:[#allocation127_spill] sm:$0xff]  ;;  %v8191_v38 = vld [vmem:[#allocation13 + $0x28] sm:$0xff]  }
 0xf47   :  { %v7091_v31 = vsel %vm13991_vm0, %v6772_v9, %v7090_v44  ;;  %v6914_v25 = vrot.slane %v6351_v24, %v13958_v59  ;;  %v7067_v9 = vrot.slane %v12933_v20, %v13936_v33 }
 0xf49   :  { %v6915_v15 = vsel %vm13992_vm6, %v6914_v25, %v6910_v26  ;;  %v13999_v26 = vmov 1.0  }
 0xf4a   :  { %v6441_v60 = vpop.permute.xlu1 %6440  ;;  %v6920_v54 = vsel %vm2292_vm14, %v6919_v48, %v6915_v15  ;;  %v8183_v15 = vld [vmem:[#allocation11 + $0x28] sm:$0xff]   ;;  %v8188_v48 = vld [vmem:[#allocation11] sm:$0xff]  }
 0xf4b   :  { %v7062_v35 = vrot.slane %v6441_v60, %v13923_v45  ;;  %v6925_v40 = vsel %vm2299_vm15, %v6924_v57, %v6920_v54  ;;  %v8189_v57 = vld [vmem:[#allocation13 + $0x38] sm:$0xff]  }
 0xf4c   :  { %8090 = vmatpush3.bf16.msra.mxu1 %v8189_v57 }
 0xf4d   :  { %v7063_v45 = vsel %vm2271_vm11, %v7062_v35, %v7058_v55  ;;  %vm13997_vm11 = vcmask 1047559   ;;  %8091 = vmatprep.subr.bf16.mxu1 %v14001_v37  ;;  %v8198_v55 = vld [vmem:[#allocation14 + $0x30] sm:$0xff]  }
 0xf4e   :  { %v6309_v29 = vpop.permute.xlu1 %6308 }
 0xf4f   :  { %v6845_v3 = vrot.slane %v6309_v29, %v13980_v27  ;;  %v7068_v29 = vsel %vm2278_vm12, %v7067_v9, %v7063_v45  ;;  %v8200_v45 = vld [vmem:[#allocation14 + $0x20] sm:$0xff]   ;;  %v8202_v9 = vld [vmem:[#allocation14 + $0x10] sm:$0xff]  }
 0xf50   :  { %v7073_v33 = vsel %vm13996_vm10, %v7072_v30, %v7068_v29 }
 0xf51   :  { %v6846_v62 = vsel %vm2299_vm15, %v6845_v3, %v6841_v28 }
 0xf52   :  { %v6399_v18 = vpop.permute.xlu1 %6398 }
 0xf53   :  { %v6993_v49 = vrot.slane %v6399_v18, %v13958_v59 }
 0xf55   :  { %v6994_v44 = vsel %vm13993_vm8, %v6993_v49, %v6989_v10  ;;  %v8187_v10 = vld [vmem:[#allocation11 + $0x8] sm:$0xff]  }
 0xf56   :  { %v6312_v56 = vpop.permute.xlu1 %6311 }
 0xf57   :  { %v6850_v14 = vrot.slane %v6312_v56, %v13987_v53 }
 0xf59   :  { %v6851_v6 = vsel %vm2306_vm1, %v6850_v14, %v6846_v62  ;;  %v8181_v62 = vld [vmem:[#allocation11 + $0x38] sm:$0xff]  }
 0xf5a   :  { %v7092_v51 = vsel %vm2867_vm7, %v6851_v6, %v7091_v31  ;;  %v6402_v52 = vpop.permute.xlu1 %6401  ;;  %vm13994_vm7 = vcmask 1045509   ;;  %v8182_v6 = vld [vmem:[#allocation11 + $0x30] sm:$0xff]  }
 0xf5b   :  { %v6998_v63 = vrot.slane %v6402_v52, %v13973_v23  ;;  %v8186_v52 = vld [vmem:[#allocation11 + $0x10] sm:$0xff]  }
 0xf5d   :  { %v6999_v21 = vsel %vm2292_vm14, %v6998_v63, %v6994_v44 }
 0xf5e   :  { %v6360_v46 = vpop.permute.xlu1 %6359  ;;  %v7004_v39 = vsel %vm2299_vm15, %v7003_v42, %v6999_v21 }
 0xf5f   :  { %v6929_v2 = vrot.slane %v6360_v46, %v13987_v53  ;;  %v7009_v1 = vsel %vm2306_vm1, %v7008_v4, %v7004_v39  ;;  %v8190_v46 = vld [vmem:[#allocation13 + $0x30] sm:$0xff]   ;;  %v8195_v39 = vld [vmem:[#allocation13 + $0x8] sm:$0xff]   ;;  %v8197_v4 = vld [vmem:[#allocation14 + $0x38] sm:$0xff]  }
 0xf60   :  { %8092 = vmatpush3.bf16.msra.mxu1 %v8190_v46 }
 0xf61   :  { %v6930_v36 = vsel %vm2306_vm1, %v6929_v2, %v6925_v40  ;;  %8093 = vmatprep.subr.bf16.mxu1 %v14001_v37  ;;  %v8196_v2 = vld [vmem:[#allocation13] sm:$0xff]   ;;  %v8199_v40 = vld [vmem:[#allocation14 + $0x28] sm:$0xff]  }
 0xf62   :  { %v6450_v24 = vpop.permute.xlu1 %6449  ;;  %v7093_v43 = vsel %vm13994_vm7, %v6930_v36, %v7092_v51  ;;  %v8184_v51 = vld [vmem:[#allocation11 + $0x20] sm:$0xff]   ;;  %v8201_v36 = vld [vmem:[#allocation14 + $0x18] sm:$0xff]  }
 0xf63   :  { %v2954_v31 = vpop.xlane.xlu0 %2953  ;;  %v7094_v60 = vsel %vm13995_vm9, %v7009_v1, %v7093_v43  ;;  %v7077_v17 = vrot.slane %v6450_v24, %v13973_v23 }
 0xf64   :  { %v2955_v18 = vrot.slane %v2954_v31, 4  ;;  %8094 = vmatpush3.bf16.msra.mxu1 %v8191_v38 }
 0xf65   :  { %v7078_v32 = vsel %vm2292_vm14, %v7077_v17, %v7073_v33  ;;  %vm14000_vm14 = vcmask 57344   ;;  %8095 = vmatprep.subr.bf16.mxu1 %v14001_v37 }
 0xf66   :  { %v2956_v8 = vadd.f32 %v2955_v18, %v2954_v31  ;;  %v6453_v19 = vpop.permute.xlu1 %6452  ;;  %v7616_v18 = vld [vmem:[%s13067_s9] ss:$0 sm:$0xff] }
 0xf67   :  { %v7082_v20 = vrot.slane %v6453_v19, %v13980_v27  ;;  %v5065_v3 = vpop.xlane.xlu0 %5064 }
 0xf68   :  { %v2957_v13 = vrot.slane %v2956_v8, 2  ;;  %v5066_v12 = vrot.slane %v5065_v3, 4  ;;  %8096 = vmatpush3.bf16.msra.mxu1 %v8192_v11 }
 0xf69   :  { %v7083_v25 = vsel %vm2299_vm15, %v7082_v20, %v7078_v32  ;;  %8097 = vmatprep.subr.bf16.mxu1 %v14001_v37 }
 0xf6a   :  { %v5067_v23 = vadd.f32 %v5066_v12, %v5065_v3  ;;  %v7088_v56 = vsel %vm2306_vm1, %v7087_v22, %v7083_v25  ;;  %v2958_v28 = vadd.f32 %v2957_v13, %v2956_v8  ;;  %v8203_v13 = vld [vmem:[#allocation14 + $0x8] sm:$0xff]   ;;  %v8204_v12 = vld [vmem:[#allocation14] sm:$0xff]   ;;  %v7625_v25 = vld [vmem:[%s13069_s11] ss:$0 sm:$0xff] }
 0xf6b   :  { %v7095_v59 = vsel %vm13997_vm11, %v7088_v56, %v7094_v60 }
 0xf6c   :  { %v5068_v34 = vrot.slane %v5067_v23, 2  ;;  %7097 = vmin.index.xlane.f32.xlu1 %v7095_v59  ;;  %v2959_v41 = vrot.slane %v2958_v28, 1  ;;  %8098 = vmatpush3.bf16.msra.mxu1 %v8193_v0 }
 0xf6d   :  { %8099 = vmatprep.subr.bf16.mxu1 %v14001_v37 }
 0xf6e   :  { %v2960_v14 = vadd.f32 %v2959_v41, %v2958_v28  ;;  %v5069_v27 = vadd.f32 %v5068_v34, %v5067_v23 }
 0xf70   :  { %8129 = vpush %v2960_v14  ;;  %v5070_v61 = vrot.slane %v5069_v27, 1  ;;  %8100 = vmatpush3.bf16.msra.mxu1 %v8194_v7 }
 0xf71   :  { %8101 = vmatprep.subr.bf16.mxu1 %v14001_v37 }
 0xf72   :  { %v5071_v53 = vadd.f32 %v5070_v61, %v5069_v27 }
 0xf74   :  { %8131 = vpush %v5071_v53  ;;  %8102 = vmatpush3.bf16.msra.mxu1 %v8195_v39 }
 0xf75   :  { %8103 = vmatprep.subr.bf16.mxu1 %v14001_v37 }
 0xf78   :  { %8104 = vmatpush3.bf16.msra.mxu1 %v8196_v2 }
 0xfa1   :  { %s8130_s18 = spop %8129 }
 0xfa5   :  { %s8132_s19 = spop %8131 }
 0xfa6   :  { %s5073_s1 = sadd.f32 %s8132_s19, %s8130_s18 }
 0xff5   :  { %v7098_v49 = vpop.xlane.xlu1 %7097 }
 0xff6   :  { %vm7099_vm12 = vcmp.eq.s32.totalorder %v13998_v16, %v7098_v49  ;;  %v7187_v50 = vrot.slane %v7098_v49, %v13906_v47  ;;  %v8185_v47 = vld [vmem:[#allocation11 + $0x18] sm:$0xff]  }
 0xff7   :  { %8067 = vmatmul.mubr.msk.f32.vlgmr.msra.gmra.mxu0 %vm7099_vm12, %v13999_v26 }
 0xff8   :  { %7188 = vst.msk [vmem:[#allocation17 + $0x2] sm:$0x1] %vm14000_vm14, %v7187_v50  ;;  %8070 = vmatpush3.bf16.msra.mxu0 %v8181_v62  ;;  %8085 = vmatprep.mubr.msk.bf16.mxu0 %vm13787_vm5, %v14001_v37 }
 0xff9   :  { %8071 = vmatprep.subr.bf16.mxu0 %v14001_v37 }
 0xffc   :  { %8072 = vmatpush3.bf16.msra.mxu0 %v8182_v6 }
 0xffd   :  { %8073 = vmatprep.subr.bf16.mxu0 %v14001_v37 }
0x1000   :  { %8074 = vmatpush3.bf16.msra.mxu0 %v8183_v15 }
0x1001   :  { %8075 = vmatprep.subr.bf16.mxu0 %v14001_v37 }
0x1004   :  { %8076 = vmatpush3.bf16.msra.mxu0 %v8184_v51 }
0x1005   :  { %8077 = vmatprep.subr.bf16.mxu0 %v14001_v37 }
0x1008   :  { %8078 = vmatpush3.bf16.msra.mxu0 %v8185_v47 }
0x1009   :  { %8079 = vmatprep.subr.bf16.mxu0 %v14001_v37 }
0x100c   :  { %8080 = vmatpush3.bf16.msra.mxu0 %v8186_v52 }
0x100d   :  { %8081 = vmatprep.subr.bf16.mxu0 %v14001_v37 }
0x1010   :  { %8082 = vmatpush3.bf16.msra.mxu0 %v8187_v10 }
0x1011   :  { %8083 = vmatprep.subr.bf16.mxu0 %v14001_v37 }
0x1014   :  { %8084 = vmatpush3.bf16.msra.mxu0 %v8188_v48 }
0x1015   :  { %8109 = vmatprep.subr.bf16.mxu0 %v14001_v37 }
0x10b7   :  { %v7168_v63 = vpop.f32.mrf.mxu0 }
0x10b8   :  { %v7172_v44 = vsub.f32 %v7168_v63, %v14002_v58  ;;  %v7189_v42 = vadd.f32 %v7168_v63, %v5079_v5 }
0x10b9   :  { %v8068_v54 = vpop.f32.mrf.mxu0 }
0x10ba   :  { %v7173_v35 = vmul.f32 %v7172_v44, %v7172_v44  ;;  %v7206_v21 = vpack.c.bf16 %v7189_v42, %v7189_v42 }
0x10bc   :  { %8086 = vmatmul.mubr.bf16.vlgmr.msra.gmra.mxu0 %v7206_v21  ;;  %7174 = vadd.xlane.f32.xlu0 %v7173_v35 }
0x10bd   :  { %8125 = vmatprep.mubr.msk.bf16.mxu0 %vm13787_vm5, %v14001_v37  ;;  %8110 = vmatpush3.bf16.msra.mxu0 %v8197_v4 }
0x10be   :  { %8111 = vmatprep.subr.bf16.mxu0 %v14001_v37 }
0x10c1   :  { %8112 = vmatpush3.bf16.msra.mxu0 %v8198_v55 }
0x10c2   :  { %8113 = vmatprep.subr.bf16.mxu0 %v14001_v37 }
0x10c5   :  { %8114 = vmatpush3.bf16.msra.mxu0 %v8199_v40 }
0x10c6   :  { %8115 = vmatprep.subr.bf16.mxu0 %v14001_v37 }
0x10c9   :  { %8116 = vmatpush3.bf16.msra.mxu0 %v8200_v45 }
0x10ca   :  { %8117 = vmatprep.subr.bf16.mxu0 %v14001_v37 }
0x10cd   :  { %8118 = vmatpush3.bf16.msra.mxu0 %v8201_v36 }
0x10ce   :  { %8119 = vmatprep.subr.bf16.mxu0 %v14001_v37 }
0x10d1   :  { %8120 = vmatpush3.bf16.msra.mxu0 %v8202_v9 }
0x10d2   :  { %8121 = vmatprep.subr.bf16.mxu0 %v14001_v37 }
0x10d5   :  { %8122 = vmatpush3.bf16.msra.mxu0 %v8203_v13 }
0x10d6   :  { %8123 = vmatprep.subr.bf16.mxu0 %v14001_v37 }
0x10d9   :  { %8124 = vmatpush3.bf16.msra.mxu0 %v8204_v12 }
0x1145   :  { %v7175_v24 = vpop.xlane.xlu0 %7174 }
0x1146   :  { %v7176_v1 = vrot.slane %v7175_v24, 4 }
0x1148   :  { %v7177_v43 = vadd.f32 %v7176_v1, %v7175_v24 }
0x114a   :  { %v7178_v31 = vrot.slane %v7177_v43, 2 }
0x114c   :  { %v7179_v60 = vadd.f32 %v7178_v31, %v7177_v43 }
0x114e   :  { %v7180_v29 = vrot.slane %v7179_v60, 1 }
0x1150   :  { %v7181_v17 = vadd.f32 %v7180_v29, %v7179_v60 }
0x1152   :  { %8133 = vpush %v7181_v17 }
0x117c   :  { %v7296_v30 = vpop.f32.mrf.mxu0 }
0x117d   :  { %v7297_v8 = vadd.f32 %v7616_v18, %v7296_v30 }
0x117e   :  { %v8087_v19 = vpop.f32.mrf.mxu0 }
0x117f   :  { %v7302_v33 = vmax.f32 %v7297_v8, 0.0 }
0x1180   :  { %v7299_v20 = vpop.f32.mrf.mxu0 }
0x1181   :  { %v7319_v3 = vpack.c.bf16 %v7302_v33, %v7302_v33 }
0x1182   :  { %v8088_v22 = vpop.f32.mrf.mxu0 }
0x1183   :  { %s8134_s20 = spop %8133  ;;  %8106 = vmatmul.mubr.bf16.vlgmr.msra.gmra.mxu1 %v7319_v3 }
0x1184   :  { %s7183_s21 = sadd.f32 %s8134_s20, %s5073_s1 }
0x1186   :  { %v7534_v32 = vstv %s7183_s21 }
0x1187   :  { %7536 = vst [vmem:[#allocation19] sm:$0xff] %v7534_v32 }
0x1243   :  { %v7409_v23 = vpop.f32.mrf.mxu1 }
0x1244   :  { %v7410_v56 = vadd.f32 %v7625_v25, %v7409_v23 }
0x1245   :  { %v8107_v28 = vpop.f32.mrf.mxu1 }
0x1246   :  { %v7415_v59 = vmax.f32 %v7410_v56, 0.0 }
0x1247   :  { %v7412_v34 = vpop.f32.mrf.mxu1 }
0x1248   :  { %v7432_v41 = vpack.c.bf16 %v7415_v59, %v7415_v59 }
0x1249   :  { %v8108_v14 = vpop.f32.mrf.mxu1 }
0x124a   :  { %8126 = vmatmul.mubr.bf16.vlgmr.msra.gmra.mxu0 %v7432_v41 }
0x124b   :  { %8428 = shalt.err (!%p8425_p2)
}
0x124c   :  { %7556 = dma.vmem_to_hbm [thread:$0]  %s7554_s26, 64, %s13073_s15, [#allocation18]  }
0x124d   :  { %s8509_s3 = smov [#allocation19]  }
0x124e   :  { %s7563_s5 = sshll.u32 %s8509_s3, 4  ;;  %s7564_s5 = int_to_ptr.vmem [resolvable:$true] %s7563_s5 }
0x124f   :  { %s8437_s29 = scalar_lea.vmem %s7564_s5, 128  ;;  %p8442_p4 = scmp.lt.s32.totalorder %s7564_s5, %s7564_s5 }
0x1250   :  { %p8438_p3 = scmp.ne.s32.totalorder %s7564_s5, %s8437_s29  ;;  %p8443_p5 = scmp.lt.s32.totalorder %s8437_s29, %s8437_s29 }
0x1252   :  { %p8444_p6 = por %p8443_p5, %p8442_p4 }
0x1254   :  { %p8445_p7 = pnand %p8444_p6, %p8438_p3 }
0x1256   :  { %8448 = shalt.err (!%p8445_p7)
}
0x1257   :  { %7566 = dma.vmem_to_hbm [thread:$0]  %s7564_s5, 128, %s13074_s16, [#allocation18]   ;;  %v7634_v27 = vld [vmem:[%s13071_s13] ss:$0 sm:$0xff] }
0x1258   :  { %s8510_s15 = smov [#allocation16]  }
0x1259   :  { %s7543_s10 = sshll.u32 %s8510_s15, 4  ;;  %s7544_s10 = int_to_ptr.vmem [resolvable:$true] %s7543_s10 }
0x125a   :  { %s8457_s16 = scalar_lea.vmem %s7544_s10, 128  ;;  %p8462_p9 = scmp.lt.s32.totalorder %s7544_s10, %s7544_s10 }
0x125b   :  { %p8458_p8 = scmp.ne.s32.totalorder %s7544_s10, %s8457_s16  ;;  %p8463_p10 = scmp.lt.s32.totalorder %s8457_s16, %s8457_s16 }
0x125d   :  { %p8464_p11 = por %p8463_p10, %p8462_p9 }
0x125f   :  { %p8465_p12 = pnand %p8464_p11, %p8458_p8 }
0x130a   :  { %v7522_v61 = vpop.f32.mrf.mxu0 }
0x130b   :  { %v7523_v53 = vadd.f32 %v7634_v27, %v7522_v61 }
0x130c   :  { %v8127_v62 = vpop.f32.mrf.mxu0 }
0x130d   :  { %v7528_v49 = vsub.f32 0.0, %v7523_v53 }
0x130e   :  { %v7525_v16 = vpop.f32.mrf.mxu0 }
0x130f   :  { %v7529_v50 = vmul.f32 1.442695, %v7528_v49 }
0x1310   :  { %v8128_v26 = vpop.f32.mrf.mxu0 }
0x1311   :  { %8205 = vpow2.f32 %v7529_v50 }
0x131e   :  { %v8206_v6 = vpop.eup %8205 }
0x131f   :  { %v7531_v37 = vadd.f32 1.0, %v8206_v6 }
0x1321   :  { %8207 = vrcp.f32 %v7531_v37 }
0x132e   :  { %v8208_v15 = vpop.eup %8207 }
0x132f   :  { %7533 = vst [vmem:[#allocation16] sm:$0xff] %v8208_v15 }
0x1330   :  { %8468 = shalt.err (!%p8465_p12)
}
0x1331   :  { %7546 = dma.vmem_to_hbm [thread:$0]  %s7544_s10, 128, %s13072_s14, [#allocation4]  }
0x1332   :  { %8487 = dma.done.wait [#allocation4], 128  }
0x1333   :  { %8488 = vsyncadd [#allocation4], 4294967168 }
0x1334   :  { %8489 = dma.done.wait [#allocation18], 192  }
0x1335   :  { %8490 = vsyncadd [#allocation18], 4294967104 }
0x1336   :  { %7576 = vsyncpa [#allocation3], 1 }
0x1337   :  { %7577 = vsyncpa [#allocation6], 1 }
0x1338   :  { %7578 = vsyncpa [#allocation9], 1 }
0x1339   :  { %7579 = vsyncpa [#allocation12], 1 }
0x133a   :  { %7580 = vsyncpa [#allocation15], 1 }
0x133b   :  { %7581 = vsyncpa [#allocation4], 1 }
0x133c   :  { %7582 = vsyncpa [#allocation18], 1 }

</bundles_post_ra>
